<compile_context>
chip_gen: v7x
topology: tpu7x:2x2x1
jax: 0.10.0
libtpu: 0.0.40
codegen_flags: <defaults>
</compile_context>

<pallas_src>
import jax
import jax.numpy as jnp
from jax import lax
from jax.experimental import pallas as pl
from jax.experimental.pallas import tpu as pltpu

LRELU_SLOPE = 0.1

_HALO_W = 128                          # halo block width (lanes) >= any halo
_MIN_W = 2 * _HALO_W                   # so the main/tail split is always valid
_MAX_W = 4096                          # cap on output lanes per grid step
_TILE_BUDGET_BYTES = 4 * 1024 * 1024   # per-step activation working set
_VMEM_LIMIT_BYTES = 40 * 1024 * 1024   # < v7x 64 MiB physical VMEM
_MIN_GRID = 4                          # >= 4 parallel grid points (v7x 2 TCs)


def _round_up(x, m):
    return -(-x // m) * m


def _cdiv(a, b):
    return -(-a // b)


def get_padding(kernel_size, dilation=1):
    return (kernel_size * dilation - dilation) // 2


def _leaky(x, slope):
    return jnp.where(x >= 0, x, x * slope)


def _choose_w(t_out, per_lane_bytes, batch):
    """Pick the output-lane tile width W (multiple of 128) and tile count."""
    w = (_TILE_BUDGET_BYTES // max(per_lane_bytes, 1)) // _HALO_W * _HALO_W
    w = max(_MIN_W, min(_MAX_W, w))
    w = max(_MIN_W, min(w, _round_up(t_out, _HALO_W)))
    # v7x has two TensorCores: make sure the "parallel" grid has enough points.
    while batch * _cdiv(t_out, w) < _MIN_GRID and w > _MIN_W:
        w = max(_MIN_W, (w // 2) // _HALO_W * _HALO_W)
    return w, _cdiv(t_out, w)


# ----------------------------------------------------------------------------
# Core tiled conv kernel: stride 1, time on lanes, K shallow MXU dots, optional
# fused leaky_relu on the input and tanh on the output.
# ----------------------------------------------------------------------------
def _conv_core(x, wk, b2, *, K, dilation, pad_left, t_out,
               pre_slope=None, post_act=None, dtype=jnp.float32):
    """Stride-1 conv with `pad_left` zeros prepended on the time (lane) axis.

    x   : (B, Cin, T)       activations, time on lanes
    wk  : (K, Cout, Cin)    tap-major weights (already scaled / cast)
    b2  : (Cout, 1)         f32 bias
    out : (B, Cout, t_out)
    """
    B, Cin, T = x.shape
    _, Cout, _ = wk.shape
    halo = (K - 1) * dilation
    assert halo <= _HALO_W
    itemsize = jnp.dtype(dtype).itemsize
    per_lane = 2 * itemsize * (Cin + Cout) + 4 * (Cin + Cout)
    W, nt = _choose_w(t_out, per_lane, B)
    Wm = W - _HALO_W                      # "main" region width (>= 128)
    ratio = W // _HALO_W
    need = nt * W + _HALO_W
    pad_right = need - pad_left - T
    assert pad_right >= 0
    # TODO(synk): the boundary/zero padding is still one wrapper-side XLA pad
    # (an extra HBM pass per layer); folding it into edge-tile masks inside
    # the kernel is not done here.
    x_pad = jnp.pad(x.astype(dtype), ((0, 0), (0, 0), (pad_left, pad_right)))

    def kernel(x_ref, xh_ref, w_ref, b_ref, o_ref):
        xm = x_ref[0]                     # (Cin, W)        lane-dense
        xh = xh_ref[0]                    # (Cin, _HALO_W)
        if pre_slope is not None:
            xm = _leaky(xm, pre_slope)    # pads are zero -> exact
            xh = _leaky(xh, pre_slope)
        # The last 128 output lanes need the next tile's first lanes: use a
        # small (Cin, 256) window instead of stitching the whole tile.
        tail = jnp.concatenate([xm[:, Wm:], xh], axis=-1)
        acc_m = jnp.zeros((Cout, Wm), jnp.float32)
        acc_t = jnp.zeros((Cout, _HALO_W), jnp.float32)
        for k in range(K):                # K shallow MXU dots, no im2col copy
            off = k * dilation
            wkk = w_ref[k]                # (Cout, Cin)
            acc_m = acc_m + jnp.dot(wkk, xm[:, off:off + Wm],
                                    preferred_element_type=jnp.float32)
            acc_t = acc_t + jnp.dot(wkk, tail[:, off:off + _HALO_W],
                                    preferred_element_type=jnp.float32)
        acc_m = acc_m + b_ref[...]
        acc_t = acc_t + b_ref[...]
        if post_act == "tanh":
            acc_m = jnp.tanh(acc_m)
            acc_t = jnp.tanh(acc_t)
        o_ref[0, :, :Wm] = acc_m.astype(o_ref.dtype)   # lane-dense stores
        o_ref[0, :, Wm:] = acc_t.astype(o_ref.dtype)

    out = pl.pallas_call(
        kernel,
        out_shape=jax.ShapeDtypeStruct((B, Cout, nt * W), dtype),
        grid_spec=pltpu.PrefetchScalarGridSpec(
            num_scalar_prefetch=0,
            grid=(B, nt),
            in_specs=[
                pl.BlockSpec((1, Cin, W), lambda bi, ti: (bi, 0, ti)),
                pl.BlockSpec((1, Cin, _HALO_W),
                             lambda bi, ti: (bi, 0, (ti + 1) * ratio)),
                pl.BlockSpec((K, Cout, Cin), lambda bi, ti: (0, 0, 0)),
                pl.BlockSpec((Cout, 1), lambda bi, ti: (0, 0)),
            ],
            out_specs=pl.BlockSpec((1, Cout, W), lambda bi, ti: (bi, 0, ti)),
        ),
        compiler_params=pltpu.CompilerParams(
            dimension_semantics=("parallel", "parallel"),
            vmem_limit_bytes=_VMEM_LIMIT_BYTES),
    )(x_pad, x_pad, wk, b2)
    return out[:, :, :t_out]


# ----------------------------------------------------------------------------
# Layer wrappers
# ----------------------------------------------------------------------------
def conv1d_pallas(x, wk, b2, *, K, dilation=1, padding=0, pre_slope=None,
                  post_act=None, dtype=jnp.float32):
    B, Cin, T = x.shape
    t_out = T + 2 * padding - (K - 1) * dilation
    return _conv_core(x, wk, b2, K=K, dilation=dilation, pad_left=padding,
                      t_out=t_out, pre_slope=pre_slope, post_act=post_act,
                      dtype=dtype)


def conv_transpose1d_pallas(x, up, *, pre_slope, dtype=jnp.float32):
    """ConvTranspose1d as a polyphase conv on the un-upsampled input.

    The `stride` phase kernels are stacked along Cout (one ordinary conv ->
    (B, s*Cout, Q)); a wrapper transpose interleaves the phases in time.
    """
    B, Cin, T = x.shape
    s, K, pad, j_lo = up["stride"], up["K"], up["padding"], up["j_lo"]
    t_full = (T - 1) * s + K - 2 * pad
    Q = _cdiv(t_full, s)
    wk, b2 = up["wk"], up["b2"]
    Cout = wk.shape[1] // s
    if j_lo > 0:
        x = x[:, :, j_lo:]
        pad_left = 0
    else:
        pad_left = -j_lo
    y = _conv_core(x, wk, b2, K=wk.shape[0], dilation=1, pad_left=pad_left,
                   t_out=Q, pre_slope=pre_slope, dtype=dtype)   # (B, s*Cout, Q)
    # interleave phases: y[b, r*Cout+co, q] -> out[b, co, q*s + r]
    # TODO(synk): this is one extra XLA transpose pass per ups layer; an
    # in-kernel lane interleave of the phase outputs would remove it.
    y = y.reshape(B, s, Cout, Q).transpose(0, 2, 3, 1).reshape(B, Cout, Q * s)
    return y[:, :, :t_full]


def resblock_branch_pallas(x, w1k, b1, w2k, b2, *, K, dilation, xs=None,
                           dtype=jnp.float32):
    """Fused ResBlock1 branch: leaky -> conv(d) -> leaky -> conv(1) -> +x [+xs].

    The conv1 intermediate stays on-chip; its lanes outside the true sequence
    are masked to zero so conv2 sees the same zero padding as the PyTorch
    module.  If `xs` is given it is added before the store (folds the
    resblock-sum HBM pass into the last branch).
    """
    B, C, T = x.shape
    d = dilation
    halo1 = (K - 1) * d
    halo2 = K - 1
    P = (halo1 + halo2) // 2              # combined 'same' offset
    p2 = halo2 // 2
    assert halo1 + halo2 <= _HALO_W
    has_xs = xs is not None
    itemsize = jnp.dtype(dtype).itemsize
    per_lane = 2 * itemsize * C * (3 + int(has_xs)) + 4 * 8 * C
    W, nt = _choose_w(T, per_lane, B)
    ratio = W // _HALO_W
    W1p = W + halo2
    need = nt * W + _HALO_W
    pad_right = need - P - T
    assert pad_right >= 0
    x_pad = jnp.pad(x.astype(dtype), ((0, 0), (0, 0), (P, pad_right)))
    if has_xs:
        xs_pad = jnp.pad(xs.astype(dtype), ((0, 0), (0, 0), (0, nt * W - T)))

    def kernel(*refs):
        if has_xs:
            x_ref, xh_ref, xs_ref, w1_ref, b1_ref, w2_ref, b2_ref, o_ref = refs
        else:
            x_ref, xh_ref, w1_ref, b1_ref, w2_ref, b2_ref, o_ref = refs
        # single lane-dense stitch of main + halo (needed: two conv stages).
        xw = jnp.concatenate([x_ref[0], xh_ref[0]], axis=-1)   # (C, W+128)
        a1 = _leaky(xw, LRELU_SLOPE)
        t1 = jnp.zeros((C, W1p), jnp.float32)
        for k in range(K):
            t1 = t1 + jnp.dot(w1_ref[k], a1[:, k * d:k * d + W1p],
                              preferred_element_type=jnp.float32)
        t1 = t1 + b1_ref[...]
        a2 = _leaky(t1, LRELU_SLOPE).astype(dtype)
        # zero the intermediate lanes that fall outside conv1's true output so
        # conv2 sees the same zero padding as the separate PyTorch convs.
        lane = (lax.broadcasted_iota(jnp.int32, (1, W1p), 1)
                + pl.program_id(1) * W)
        a2 = jnp.where((lane >= p2) & (lane < T + p2), a2, 0)
        t2 = jnp.zeros((C, W), jnp.float32)
        for k in range(K):
            t2 = t2 + jnp.dot(w2_ref[k], a2[:, k:k + W],
                              preferred_element_type=jnp.float32)
        t2 = t2 + b2_ref[...]
        out = t2 + xw[:, P:P + W].astype(jnp.float32)           # residual
        if has_xs:
            out = out + xs_ref[0].astype(jnp.float32)            # folded xs+=r
        o_ref[0] = out.astype(o_ref.dtype)

    in_arrays = [x_pad, x_pad] + ([xs_pad] if has_xs else []) \
        + [w1k, b1, w2k, b2]
    in_specs = (
        [pl.BlockSpec((1, C, W), lambda bi, ti: (bi, 0, ti)),
         pl.BlockSpec((1, C, _HALO_W),
                      lambda bi, ti: (bi, 0, (ti + 1) * ratio))]
        + ([pl.BlockSpec((1, C, W), lambda bi, ti: (bi, 0, ti))]
           if has_xs else [])
        + [pl.BlockSpec((K, C, C), lambda bi, ti: (0, 0, 0)),
           pl.BlockSpec((C, 1), lambda bi, ti: (0, 0)),
           pl.BlockSpec((K, C, C), lambda bi, ti: (0, 0, 0)),
           pl.BlockSpec((C, 1), lambda bi, ti: (0, 0))])

    out = pl.pallas_call(
        kernel,
        out_shape=jax.ShapeDtypeStruct((B, C, nt * W), dtype),
        grid_spec=pltpu.PrefetchScalarGridSpec(
            num_scalar_prefetch=0,
            grid=(B, nt),
            in_specs=in_specs,
            out_specs=pl.BlockSpec((1, C, W), lambda bi, ti: (bi, 0, ti)),
        ),
        compiler_params=pltpu.CompilerParams(
            dimension_semantics=("parallel", "parallel"),
            vmem_limit_bytes=_VMEM_LIMIT_BYTES),
    )(*in_arrays)
    return out[:, :, :T]


# ----------------------------------------------------------------------------
# One-time parameter preparation (outside the jitted forward)
# ----------------------------------------------------------------------------
def _prep_conv(w_oik, b, *, w_scale=1.0, dtype=jnp.float32):
    # torch Conv1d weight (Cout, Cin, K) -> tap-major (K, Cout, Cin)
    K = w_oik.shape[2]
    wk = (jnp.transpose(w_oik, (2, 0, 1)) * w_scale).astype(dtype)
    return dict(wk=wk, b2=b.reshape(-1, 1).astype(jnp.float32), K=K)


def _prep_transpose_conv(w_iok, b, *, stride, padding, w_scale, dtype):
    # torch ConvTranspose1d weight (Cin, Cout, K) -> polyphase taps
    Cin, Cout, K = w_iok.shape
    s = int(stride)
    A = K - 1 - padding
    wf = jnp.flip(w_iok, axis=2)                    # wf[..., k] = W[..., K-1-k]
    taps = []
    for r in range(s):
        taps.append([(k, (r + k - A) // s) for k in range(K)
                     if (k - (A - r)) % s == 0])
    all_j = [j for ph in taps for (_, j) in ph]
    j_lo, j_hi = min(all_j), max(all_j)
    Kp = j_hi - j_lo + 1
    w_all = jnp.zeros((Kp, s * Cout, Cin), w_iok.dtype)
    for r, ph in enumerate(taps):
        for (k, j) in ph:
            w_all = w_all.at[j - j_lo, r * Cout:(r + 1) * Cout, :].set(
                jnp.transpose(wf[:, :, k]))
    b_all = jnp.tile(b, s).reshape(s * Cout, 1).astype(jnp.float32)
    return dict(wk=(w_all * w_scale).astype(dtype), b2=b_all,
                stride=s, K=K, padding=padding, j_lo=j_lo)


def prepare_generator_params(params, h, dtype=jnp.float32):
    """One-time weight packing (tap-major / polyphase / scale folds)."""
    nk = len(h["resblock_kernel_sizes"])
    prep = {"conv_pre": _prep_conv(*params["conv_pre"], dtype=dtype),
            "ups": [], "resblocks": []}
    for i, (u, k) in enumerate(zip(h["upsample_rates"],
                                   h["upsample_kernel_sizes"])):
        # previous stage's `xs / num_kernels` is folded into this layer's
        # weights (leaky_relu commutes with a positive scale, conv is linear).
        scale = 1.0 if i == 0 else 1.0 / nk
        w, b = params["ups"][i]
        prep["ups"].append(_prep_transpose_conv(
            w, b, stride=u, padding=(k - u) // 2, w_scale=scale, dtype=dtype))
    for rb in params["resblocks"]:
        prep["resblocks"].append({
            "convs1": [_prep_conv(w, b, dtype=dtype) for (w, b) in rb["convs1"]],
            "convs2": [_prep_conv(w, b, dtype=dtype) for (w, b) in rb["convs2"]],
        })
    # conv_post: fold 1/num_kernels and pad Cout 1 -> 8 (dense sublanes).
    w, b = params["conv_post"]
    K = w.shape[2]
    w8 = jnp.zeros((8, w.shape[1], K), w.dtype).at[:1].set(w)
    b8 = jnp.zeros((8,), b.dtype).at[:1].set(b)
    prep["conv_post"] = _prep_conv(w8, b8, w_scale=1.0 / nk, dtype=dtype)
    return prep


# ----------------------------------------------------------------------------
# Model forward (ResBlock1 path; config below uses h["resblock"] == "1")
# ----------------------------------------------------------------------------
def generator_forward_pallas(prep, h, x, dtype=jnp.float32):
    # x: (B, Cin, T) -- the module's native NCL layout, time on lanes.
    assert h["resblock"] == "1"  # TODO(synk): ResBlock2 path not implemented
    nk = len(h["resblock_kernel_sizes"])
    x = x.astype(dtype)
    cp = prep["conv_pre"]
    x = conv1d_pallas(x, cp["wk"], cp["b2"], K=cp["K"],
                      padding=(cp["K"] - 1) // 2, dtype=dtype)
    for i in range(len(h["upsample_rates"])):
        x = conv_transpose1d_pallas(x, prep["ups"][i], pre_slope=LRELU_SLOPE,
                                    dtype=dtype)
        xs = None
        for j, (rk, rd) in enumerate(zip(h["resblock_kernel_sizes"],
                                         h["resblock_dilation_sizes"])):
            rb = prep["resblocks"][i * nk + j]
            r = x
            for di, d in enumerate(rd):
                c1, c2 = rb["convs1"][di], rb["convs2"][di]
                fold_xs = xs if (j > 0 and di == len(rd) - 1) else None
                r = resblock_branch_pallas(r, c1["wk"], c1["b2"],
                                           c2["wk"], c2["b2"],
                                           K=rk, dilation=d, xs=fold_xs,
                                           dtype=dtype)
            xs = r
        # TODO(synk): both resblocks of a stage could run in one pallas_call
        # (weights stacked block-diagonally) to halve the HBM reads of x.
        x = xs                        # /num_kernels folded into the next layer
    cpo = prep["conv_post"]
    x = conv1d_pallas(x, cpo["wk"], cpo["b2"], K=cpo["K"],
                      padding=(cpo["K"] - 1) // 2, pre_slope=0.01,
                      post_act="tanh", dtype=dtype)
    return x[:, :1, :]                                       # (B, 1, T_out)


# ----------------------------------------------------------------------------
# Pure-JAX reference mirroring the PyTorch forward directly (no polyphase,
# no halo tiling, no weight-scale folding) -- validates the Pallas lowering.
# ----------------------------------------------------------------------------
def generator_forward_ref(params, h, x_ncl):
    def conv(x, w_oik, b, dilation, padding):
        w = jnp.transpose(w_oik, (2, 1, 0))
        y = lax.conv_general_dilated(x, w, (1,), [(padding, padding)],
                                     rhs_dilation=(dilation,),
                                     dimension_numbers=("NHC", "HIO", "NHC"))
        return y + b[None, None, :]

    def conv_t(x, w_iok, b, stride, padding):
        K = w_iok.shape[2]
        w = jnp.transpose(jnp.flip(w_iok, axis=2), (2, 0, 1))
        y = lax.conv_general_dilated(x, w, (1,),
                                     [(K - 1 - padding, K - 1 - padding)],
                                     lhs_dilation=(stride,),
                                     dimension_numbers=("NHC", "HIO", "NHC"))
        return y + b[None, None, :]

    nk = len(h["resblock_kernel_sizes"])
    x = jnp.transpose(x_ncl, (0, 2, 1)).astype(jnp.float32)
    x = conv(x, *params["conv_pre"], 1, 3)
    for i, (u, k) in enumerate(zip(h["upsample_rates"],
                                   h["upsample_kernel_sizes"])):
        x = _leaky(x, LRELU_SLOPE)
        x = conv_t(x, *params["ups"][i], u, (k - u) // 2)
        xs = None
        for j, (rk, rd) in enumerate(zip(h["resblock_kernel_sizes"],
                                         h["resblock_dilation_sizes"])):
            rb = params["resblocks"][i * nk + j]
            r = x
            for di, d in enumerate(rd):
                w1, b1 = rb["convs1"][di]
                w2, b2 = rb["convs2"][di]
                t = conv(_leaky(r, LRELU_SLOPE), w1, b1, d, get_padding(rk, d))
                t = conv(_leaky(t, LRELU_SLOPE), w2, b2, 1, get_padding(rk, 1))
                r = t + r
            xs = r if xs is None else xs + r
        x = xs / nk
    x = _leaky(x, 0.01)
    x = conv(x, *params["conv_post"], 1, 3)
    x = jnp.tanh(x)
    return jnp.transpose(x, (0, 2, 1))


# ----------------------------------------------------------------------------
# Deterministic parameter init (torch layouts)
# ----------------------------------------------------------------------------
def init_params(key, h):
    keys = iter(jax.random.split(key, 512))

    def nrm(shape, std=0.01):
        return std * jax.random.normal(next(keys), shape, jnp.float32)

    params = {}
    cin = h["model_in_dim"]
    c0 = h["upsample_initial_channel"]
    params["conv_pre"] = (nrm((c0, cin, 7)), nrm((c0,)))
    params["ups"] = []
    params["resblocks"] = []
    ch = c0
    for i, (u, k) in enumerate(zip(h["upsample_rates"],
                                   h["upsample_kernel_sizes"])):
        ci, co = c0 // (2 ** i), c0 // (2 ** (i + 1))
        params["ups"].append((nrm((ci, co, k)), nrm((co,))))  # (Cin, Cout, K)
        ch = co
        for rk, rd in zip(h["resblock_kernel_sizes"],
                          h["resblock_dilation_sizes"]):
            rb = {"convs1": [], "convs2": []}
            for _ in rd:
                rb["convs1"].append((nrm((ch, ch, rk)), nrm((ch,))))
                rb["convs2"].append((nrm((ch, ch, rk)), nrm((ch,))))
            params["resblocks"].append(rb)
    params["conv_post"] = (nrm((1, ch, 7)), nrm((1,)))
    return params


if __name__ == "__main__":
    # small synthetic config (HiFi-GAN-like, ResBlock1)
    h = {
        "resblock": "1",
        "resblock_kernel_sizes": [3, 3],
        "resblock_dilation_sizes": [[1, 3, 5], [1, 3, 5]],
        "upsample_rates": [2, 2],
        "upsample_kernel_sizes": [4, 4],
        "upsample_initial_channel": 32,
        "model_in_dim": 16,
    }
    key = jax.random.PRNGKey(0)
    pkey, xkey = jax.random.split(key)
    params = init_params(pkey, h)

    B, T_in = 2, 8
    x = jax.random.normal(xkey, (B, h["model_in_dim"], T_in), jnp.float32)
    T_out = T_in
    for u in h["upsample_rates"]:
        T_out *= u

    # f32 path: strict correctness check against the pure-JAX reference.
    prep32 = prepare_generator_params(params, h, dtype=jnp.float32)
    fwd32 = jax.jit(
        lambda xx: generator_forward_pallas(prep32, h, xx, dtype=jnp.float32))
    out = jax.block_until_ready(fwd32(x))
    assert out.shape == (B, 1, T_out), out.shape

    ref = jax.block_until_ready(
        jax.jit(lambda xx: generator_forward_ref(params, h, xx))(x))
    max_err = float(jnp.max(jnp.abs(out - ref)))
    if max_err > 1e-3:
        raise AssertionError(f"Pallas(f32) vs reference mismatch: {max_err}")

    # bf16 storage + bf16 elementwise/MXU with f32 accumulation (perf config).
    prep16 = prepare_generator_params(params, h, dtype=jnp.bfloat16)
    fwd16 = jax.jit(
        lambda xx: generator_forward_pallas(prep16, h, xx, dtype=jnp.bfloat16))
    out16 = jax.block_until_ready(fwd16(x)).astype(jnp.float32)
    bf16_err = float(jnp.max(jnp.abs(out16 - ref)))
    if bf16_err > 5e-2:
        raise AssertionError(f"Pallas(bf16) vs reference mismatch: {bf16_err}")

    print("KERNEL_OK")
</pallas_src>

<mosaic_0001>
module attributes {stable_mosaic.version = 11 : i64} {
  func.func @kernel(%arg0: i32, %arg1: i32, %arg2: memref<1x16x256xf32, #tpu.memory_space<vmem>>, %arg3: memref<1x16x128xf32, #tpu.memory_space<vmem>>, %arg4: memref<7x32x16xf32, #tpu.memory_space<vmem>>, %arg5: memref<32x1xf32, #tpu.memory_space<vmem>>, %arg6: memref<1x32x256xf32, #tpu.memory_space<vmem>>) attributes {dimension_semantics = [#tpu.dimension_semantics<parallel>, #tpu.dimension_semantics<parallel>], iteration_bounds = array<i64: 2, 1>, scalar_prefetch = 0 : i64, scratch_operands = 0 : i64, tpu.core_type = #tpu.core_type<tc>, window_params = [{transform_indices = @transform_0, window_bounds = array<i64: 1, 16, 256>}, {transform_indices = @transform_1, window_bounds = array<i64: 1, 16, 128>}, {pipeline_mode = #tpu.pipeline_mode<synchronous>, transform_indices = @transform_2, window_bounds = array<i64: 7, 32, 16>}, {pipeline_mode = #tpu.pipeline_mode<synchronous>, transform_indices = @transform_3, window_bounds = array<i64: 32, 1>}, {transform_indices = @transform_4, window_bounds = array<i64: 1, 32, 256>}]} {
    %c0 = arith.constant 0 : index
    %c0_0 = arith.constant 0 : index
    %c0_1 = arith.constant 0 : index
    %0 = vector.load %arg2[%c0, %c0_0, %c0_1] : memref<1x16x256xf32, #tpu.memory_space<vmem>>, vector<1x16x256xf32>
    %1 = vector.shape_cast %0 : vector<1x16x256xf32> to vector<16x256xf32>
    %c0_2 = arith.constant 0 : index
    %c0_3 = arith.constant 0 : index
    %c0_4 = arith.constant 0 : index
    %2 = vector.load %arg3[%c0_2, %c0_3, %c0_4] : memref<1x16x128xf32, #tpu.memory_space<vmem>>, vector<1x16x128xf32>
    %3 = vector.shape_cast %2 : vector<1x16x128xf32> to vector<16x128xf32>
    %4 = vector.extract_strided_slice %1 {offsets = [0, 128], sizes = [16, 128], strides = [1, 1]} : vector<16x256xf32> to vector<16x128xf32>
    %5 = tpu.concatenate %4, %3 in 1 : vector<16x128xf32>, vector<16x128xf32> -> vector<16x256xf32>
    %cst = arith.constant 0.000000e+00 : f32
    %6 = vector.broadcast %cst : f32 to vector<32x128xf32>
    %cst_5 = arith.constant 0.000000e+00 : f32
    %7 = vector.broadcast %cst_5 : f32 to vector<32x128xf32>
    %c0_6 = arith.constant 0 : index
    %c0_7 = arith.constant 0 : index
    %c0_8 = arith.constant 0 : index
    %8 = vector.load %arg4[%c0_6, %c0_7, %c0_8] : memref<7x32x16xf32, #tpu.memory_space<vmem>>, vector<1x32x16xf32>
    %9 = vector.shape_cast %8 : vector<1x32x16xf32> to vector<32x16xf32>
    %10 = vector.extract_strided_slice %1 {offsets = [0, 0], sizes = [16, 128], strides = [1, 1]} : vector<16x256xf32> to vector<16x128xf32>
    %cst_9 = arith.constant dense<0.000000e+00> : vector<32x128xf32>
    %11 = tpu.matmul %9, %10, %cst_9 {dimension_numbers = #tpu.dot_dimension_numbers<[1], [0], [0], [1], [0, 0, 1, 1], [], []>} : vector<32x16xf32>, vector<16x128xf32>, vector<32x128xf32> -> vector<32x128xf32>
    %12 = arith.addf %6, %11 : vector<32x128xf32>
    %13 = vector.extract_strided_slice %5 {offsets = [0, 0], sizes = [16, 128], strides = [1, 1]} : vector<16x256xf32> to vector<16x128xf32>
    %cst_10 = arith.constant dense<0.000000e+00> : vector<32x128xf32>
    %14 = tpu.matmul %9, %13, %cst_10 {dimension_numbers = #tpu.dot_dimension_numbers<[1], [0], [0], [1], [0, 0, 1, 1], [], []>} : vector<32x16xf32>, vector<16x128xf32>, vector<32x128xf32> -> vector<32x128xf32>
    %15 = arith.addf %7, %14 : vector<32x128xf32>
    %c1 = arith.constant 1 : index
    %c0_11 = arith.constant 0 : index
    %c0_12 = arith.constant 0 : index
    %16 = vector.load %arg4[%c1, %c0_11, %c0_12] : memref<7x32x16xf32, #tpu.memory_space<vmem>>, vector<1x32x16xf32>
    %17 = vector.shape_cast %16 : vector<1x32x16xf32> to vector<32x16xf32>
    %18 = vector.extract_strided_slice %1 {offsets = [0, 1], sizes = [16, 128], strides = [1, 1]} : vector<16x256xf32> to vector<16x128xf32>
    %cst_13 = arith.constant dense<0.000000e+00> : vector<32x128xf32>
    %19 = tpu.matmul %17, %18, %cst_13 {dimension_numbers = #tpu.dot_dimension_numbers<[1], [0], [0], [1], [0, 0, 1, 1], [], []>} : vector<32x16xf32>, vector<16x128xf32>, vector<32x128xf32> -> vector<32x128xf32>
    %20 = arith.addf %12, %19 : vector<32x128xf32>
    %21 = vector.extract_strided_slice %5 {offsets = [0, 1], sizes = [16, 128], strides = [1, 1]} : vector<16x256xf32> to vector<16x128xf32>
    %cst_14 = arith.constant dense<0.000000e+00> : vector<32x128xf32>
    %22 = tpu.matmul %17, %21, %cst_14 {dimension_numbers = #tpu.dot_dimension_numbers<[1], [0], [0], [1], [0, 0, 1, 1], [], []>} : vector<32x16xf32>, vector<16x128xf32>, vector<32x128xf32> -> vector<32x128xf32>
    %23 = arith.addf %15, %22 : vector<32x128xf32>
    %c2 = arith.constant 2 : index
    %c0_15 = arith.constant 0 : index
    %c0_16 = arith.constant 0 : index
    %24 = vector.load %arg4[%c2, %c0_15, %c0_16] : memref<7x32x16xf32, #tpu.memory_space<vmem>>, vector<1x32x16xf32>
    %25 = vector.shape_cast %24 : vector<1x32x16xf32> to vector<32x16xf32>
    %26 = vector.extract_strided_slice %1 {offsets = [0, 2], sizes = [16, 128], strides = [1, 1]} : vector<16x256xf32> to vector<16x128xf32>
    %cst_17 = arith.constant dense<0.000000e+00> : vector<32x128xf32>
    %27 = tpu.matmul %25, %26, %cst_17 {dimension_numbers = #tpu.dot_dimension_numbers<[1], [0], [0], [1], [0, 0, 1, 1], [], []>} : vector<32x16xf32>, vector<16x128xf32>, vector<32x128xf32> -> vector<32x128xf32>
    %28 = arith.addf %20, %27 : vector<32x128xf32>
    %29 = vector.extract_strided_slice %5 {offsets = [0, 2], sizes = [16, 128], strides = [1, 1]} : vector<16x256xf32> to vector<16x128xf32>
    %cst_18 = arith.constant dense<0.000000e+00> : vector<32x128xf32>
    %30 = tpu.matmul %25, %29, %cst_18 {dimension_numbers = #tpu.dot_dimension_numbers<[1], [0], [0], [1], [0, 0, 1, 1], [], []>} : vector<32x16xf32>, vector<16x128xf32>, vector<32x128xf32> -> vector<32x128xf32>
    %31 = arith.addf %23, %30 : vector<32x128xf32>
    %c3 = arith.constant 3 : index
    %c0_19 = arith.constant 0 : index
    %c0_20 = arith.constant 0 : index
    %32 = vector.load %arg4[%c3, %c0_19, %c0_20] : memref<7x32x16xf32, #tpu.memory_space<vmem>>, vector<1x32x16xf32>
    %33 = vector.shape_cast %32 : vector<1x32x16xf32> to vector<32x16xf32>
    %34 = vector.extract_strided_slice %1 {offsets = [0, 3], sizes = [16, 128], strides = [1, 1]} : vector<16x256xf32> to vector<16x128xf32>
    %cst_21 = arith.constant dense<0.000000e+00> : vector<32x128xf32>
    %35 = tpu.matmul %33, %34, %cst_21 {dimension_numbers = #tpu.dot_dimension_numbers<[1], [0], [0], [1], [0, 0, 1, 1], [], []>} : vector<32x16xf32>, vector<16x128xf32>, vector<32x128xf32> -> vector<32x128xf32>
    %36 = arith.addf %28, %35 : vector<32x128xf32>
    %37 = vector.extract_strided_slice %5 {offsets = [0, 3], sizes = [16, 128], strides = [1, 1]} : vector<16x256xf32> to vector<16x128xf32>
    %cst_22 = arith.constant dense<0.000000e+00> : vector<32x128xf32>
    %38 = tpu.matmul %33, %37, %cst_22 {dimension_numbers = #tpu.dot_dimension_numbers<[1], [0], [0], [1], [0, 0, 1, 1], [], []>} : vector<32x16xf32>, vector<16x128xf32>, vector<32x128xf32> -> vector<32x128xf32>
    %39 = arith.addf %31, %38 : vector<32x128xf32>
    %c4 = arith.constant 4 : index
    %c0_23 = arith.constant 0 : index
    %c0_24 = arith.constant 0 : index
    %40 = vector.load %arg4[%c4, %c0_23, %c0_24] : memref<7x32x16xf32, #tpu.memory_space<vmem>>, vector<1x32x16xf32>
    %41 = vector.shape_cast %40 : vector<1x32x16xf32> to vector<32x16xf32>
    %42 = vector.extract_strided_slice %1 {offsets = [0, 4], sizes = [16, 128], strides = [1, 1]} : vector<16x256xf32> to vector<16x128xf32>
    %cst_25 = arith.constant dense<0.000000e+00> : vector<32x128xf32>
    %43 = tpu.matmul %41, %42, %cst_25 {dimension_numbers = #tpu.dot_dimension_numbers<[1], [0], [0], [1], [0, 0, 1, 1], [], []>} : vector<32x16xf32>, vector<16x128xf32>, vector<32x128xf32> -> vector<32x128xf32>
    %44 = arith.addf %36, %43 : vector<32x128xf32>
    %45 = vector.extract_strided_slice %5 {offsets = [0, 4], sizes = [16, 128], strides = [1, 1]} : vector<16x256xf32> to vector<16x128xf32>
    %cst_26 = arith.constant dense<0.000000e+00> : vector<32x128xf32>
    %46 = tpu.matmul %41, %45, %cst_26 {dimension_numbers = #tpu.dot_dimension_numbers<[1], [0], [0], [1], [0, 0, 1, 1], [], []>} : vector<32x16xf32>, vector<16x128xf32>, vector<32x128xf32> -> vector<32x128xf32>
    %47 = arith.addf %39, %46 : vector<32x128xf32>
    %c5 = arith.constant 5 : index
    %c0_27 = arith.constant 0 : index
    %c0_28 = arith.constant 0 : index
    %48 = vector.load %arg4[%c5, %c0_27, %c0_28] : memref<7x32x16xf32, #tpu.memory_space<vmem>>, vector<1x32x16xf32>
    %49 = vector.shape_cast %48 : vector<1x32x16xf32> to vector<32x16xf32>
    %50 = vector.extract_strided_slice %1 {offsets = [0, 5], sizes = [16, 128], strides = [1, 1]} : vector<16x256xf32> to vector<16x128xf32>
    %cst_29 = arith.constant dense<0.000000e+00> : vector<32x128xf32>
    %51 = tpu.matmul %49, %50, %cst_29 {dimension_numbers = #tpu.dot_dimension_numbers<[1], [0], [0], [1], [0, 0, 1, 1], [], []>} : vector<32x16xf32>, vector<16x128xf32>, vector<32x128xf32> -> vector<32x128xf32>
    %52 = arith.addf %44, %51 : vector<32x128xf32>
    %53 = vector.extract_strided_slice %5 {offsets = [0, 5], sizes = [16, 128], strides = [1, 1]} : vector<16x256xf32> to vector<16x128xf32>
    %cst_30 = arith.constant dense<0.000000e+00> : vector<32x128xf32>
    %54 = tpu.matmul %49, %53, %cst_30 {dimension_numbers = #tpu.dot_dimension_numbers<[1], [0], [0], [1], [0, 0, 1, 1], [], []>} : vector<32x16xf32>, vector<16x128xf32>, vector<32x128xf32> -> vector<32x128xf32>
    %55 = arith.addf %47, %54 : vector<32x128xf32>
    %c6 = arith.constant 6 : index
    %c0_31 = arith.constant 0 : index
    %c0_32 = arith.constant 0 : index
    %56 = vector.load %arg4[%c6, %c0_31, %c0_32] : memref<7x32x16xf32, #tpu.memory_space<vmem>>, vector<1x32x16xf32>
    %57 = vector.shape_cast %56 : vector<1x32x16xf32> to vector<32x16xf32>
    %58 = vector.extract_strided_slice %1 {offsets = [0, 6], sizes = [16, 128], strides = [1, 1]} : vector<16x256xf32> to vector<16x128xf32>
    %cst_33 = arith.constant dense<0.000000e+00> : vector<32x128xf32>
    %59 = tpu.matmul %57, %58, %cst_33 {dimension_numbers = #tpu.dot_dimension_numbers<[1], [0], [0], [1], [0, 0, 1, 1], [], []>} : vector<32x16xf32>, vector<16x128xf32>, vector<32x128xf32> -> vector<32x128xf32>
    %60 = arith.addf %52, %59 : vector<32x128xf32>
    %61 = vector.extract_strided_slice %5 {offsets = [0, 6], sizes = [16, 128], strides = [1, 1]} : vector<16x256xf32> to vector<16x128xf32>
    %cst_34 = arith.constant dense<0.000000e+00> : vector<32x128xf32>
    %62 = tpu.matmul %57, %61, %cst_34 {dimension_numbers = #tpu.dot_dimension_numbers<[1], [0], [0], [1], [0, 0, 1, 1], [], []>} : vector<32x16xf32>, vector<16x128xf32>, vector<32x128xf32> -> vector<32x128xf32>
    %63 = arith.addf %55, %62 : vector<32x128xf32>
    %c0_35 = arith.constant 0 : index
    %c0_36 = arith.constant 0 : index
    %64 = vector.load %arg5[%c0_35, %c0_36] : memref<32x1xf32, #tpu.memory_space<vmem>>, vector<32x1xf32>
    %65 = vector.broadcast %64 : vector<32x1xf32> to vector<32x128xf32>
    %66 = arith.addf %60, %65 : vector<32x128xf32>
    %c0_37 = arith.constant 0 : index
    %c0_38 = arith.constant 0 : index
    %67 = vector.load %arg5[%c0_37, %c0_38] : memref<32x1xf32, #tpu.memory_space<vmem>>, vector<32x1xf32>
    %68 = vector.broadcast %67 : vector<32x1xf32> to vector<32x128xf32>
    %69 = arith.addf %63, %68 : vector<32x128xf32>
    %c0_39 = arith.constant 0 : index
    %c0_40 = arith.constant 0 : index
    %c0_41 = arith.constant 0 : index
    %70 = vector.load %arg6[%c0_39, %c0_40, %c0_41] : memref<1x32x256xf32, #tpu.memory_space<vmem>>, vector<1x32x128xf32>
    %71 = vector.shape_cast %70 : vector<1x32x128xf32> to vector<32x128xf32>
    %72 = vector.shape_cast %66 : vector<32x128xf32> to vector<1x32x128xf32>
    tpu.vector_store %arg6[%c0_39, %c0_40, %c0_41], %72 {strides = array<i32>} : memref<1x32x256xf32, #tpu.memory_space<vmem>>, vector<1x32x128xf32>,
    %c0_42 = arith.constant 0 : index
    %c0_43 = arith.constant 0 : index
    %c128 = arith.constant 128 : index
    %73 = vector.load %arg6[%c0_42, %c0_43, %c128] : memref<1x32x256xf32, #tpu.memory_space<vmem>>, vector<1x32x128xf32>
    %74 = vector.shape_cast %73 : vector<1x32x128xf32> to vector<32x128xf32>
    %75 = vector.shape_cast %69 : vector<32x128xf32> to vector<1x32x128xf32>
    tpu.vector_store %arg6[%c0_42, %c0_43, %c128], %75 {strides = array<i32>} : memref<1x32x256xf32, #tpu.memory_space<vmem>>, vector<1x32x128xf32>,
    return
  }
  func.func @transform_0(%arg0: i32, %arg1: i32) -> (i32, i32, i32) {
    %c0_i32 = arith.constant 0 : i32
    %c0_i32_0 = arith.constant 0 : i32
    return %arg0, %c0_i32, %arg1 : i32, i32, i32
  }
  func.func @transform_1(%arg0: i32, %arg1: i32) -> (i32, i32, i32) {
    %c1_i32 = arith.constant 1 : i32
    %0 = arith.addi %arg1, %c1_i32 : i32
    %c2_i32 = arith.constant 2 : i32
    %1 = arith.muli %0, %c2_i32 : i32
    %c0_i32 = arith.constant 0 : i32
    %c0_i32_0 = arith.constant 0 : i32
    return %arg0, %c0_i32, %1 : i32, i32, i32
  }
  func.func @transform_2(%arg0: i32, %arg1: i32) -> (i32, i32, i32) {
    %c0_i32 = arith.constant 0 : i32
    %c0_i32_0 = arith.constant 0 : i32
    %c0_i32_1 = arith.constant 0 : i32
    %c0_i32_2 = arith.constant 0 : i32
    return %c0_i32, %c0_i32_0, %c0_i32_1 : i32, i32, i32
  }
  func.func @transform_3(%arg0: i32, %arg1: i32) -> (i32, i32) {
    %c0_i32 = arith.constant 0 : i32
    %c0_i32_0 = arith.constant 0 : i32
    %c0_i32_1 = arith.constant 0 : i32
    return %c0_i32, %c0_i32_0 : i32, i32
  }
  func.func @transform_4(%arg0: i32, %arg1: i32) -> (i32, i32, i32) {
    %c0_i32 = arith.constant 0 : i32
    %c0_i32_0 = arith.constant 0 : i32
    return %arg0, %c0_i32, %arg1 : i32, i32, i32
  }
}

module attributes {stable_mosaic.version = 11 : i64} {
  func.func @kernel(%arg0: i32, %arg1: i32, %arg2: memref<1x32x256xf32, #tpu.memory_space<vmem>>, %arg3: memref<1x32x128xf32, #tpu.memory_space<vmem>>, %arg4: memref<3x32x32xf32, #tpu.memory_space<vmem>>, %arg5: memref<32x1xf32, #tpu.memory_space<vmem>>, %arg6: memref<1x32x256xf32, #tpu.memory_space<vmem>>) attributes {dimension_semantics = [#tpu.dimension_semantics<parallel>, #tpu.dimension_semantics<parallel>], iteration_bounds = array<i64: 2, 1>, scalar_prefetch = 0 : i64, scratch_operands = 0 : i64, tpu.core_type = #tpu.core_type<tc>, window_params = [{transform_indices = @transform_0, window_bounds = array<i64: 1, 32, 256>}, {transform_indices = @transform_1, window_bounds = array<i64: 1, 32, 128>}, {pipeline_mode = #tpu.pipeline_mode<synchronous>, transform_indices = @transform_2, window_bounds = array<i64: 3, 32, 32>}, {pipeline_mode = #tpu.pipeline_mode<synchronous>, transform_indices = @transform_3, window_bounds = array<i64: 32, 1>}, {transform_indices = @transform_4, window_bounds = array<i64: 1, 32, 256>}]} {
    %c0 = arith.constant 0 : index
    %c0_0 = arith.constant 0 : index
    %c0_1 = arith.constant 0 : index
    %0 = vector.load %arg2[%c0, %c0_0, %c0_1] : memref<1x32x256xf32, #tpu.memory_space<vmem>>, vector<1x32x256xf32>
    %1 = vector.shape_cast %0 : vector<1x32x256xf32> to vector<32x256xf32>
    %c0_2 = arith.constant 0 : index
    %c0_3 = arith.constant 0 : index
    %c0_4 = arith.constant 0 : index
    %2 = vector.load %arg3[%c0_2, %c0_3, %c0_4] : memref<1x32x128xf32, #tpu.memory_space<vmem>>, vector<1x32x128xf32>
    %3 = vector.shape_cast %2 : vector<1x32x128xf32> to vector<32x128xf32>
    %cst = arith.constant 0.000000e+00 : f32
    %4 = vector.broadcast %cst : f32 to vector<32x256xf32>
    %5 = arith.cmpf oge, %1, %4 : vector<32x256xf32>
    %cst_5 = arith.constant 1.000000e-01 : f32
    %6 = vector.broadcast %cst_5 : f32 to vector<32x256xf32>
    %7 = arith.mulf %1, %6 : vector<32x256xf32>
    %8 = arith.select %5, %1, %7 : vector<32x256xi1>, vector<32x256xf32>
    %cst_6 = arith.constant 0.000000e+00 : f32
    %9 = vector.broadcast %cst_6 : f32 to vector<32x128xf32>
    %10 = arith.cmpf oge, %3, %9 : vector<32x128xf32>
    %cst_7 = arith.constant 1.000000e-01 : f32
    %11 = vector.broadcast %cst_7 : f32 to vector<32x128xf32>
    %12 = arith.mulf %3, %11 : vector<32x128xf32>
    %13 = arith.select %10, %3, %12 : vector<32x128xi1>, vector<32x128xf32>
    %14 = vector.extract_strided_slice %8 {offsets = [0, 128], sizes = [32, 128], strides = [1, 1]} : vector<32x256xf32> to vector<32x128xf32>
    %15 = tpu.concatenate %14, %13 in 1 : vector<32x128xf32>, vector<32x128xf32> -> vector<32x256xf32>
    %cst_8 = arith.constant 0.000000e+00 : f32
    %16 = vector.broadcast %cst_8 : f32 to vector<32x128xf32>
    %cst_9 = arith.constant 0.000000e+00 : f32
    %17 = vector.broadcast %cst_9 : f32 to vector<32x128xf32>
    %c0_10 = arith.constant 0 : index
    %c0_11 = arith.constant 0 : index
    %c0_12 = arith.constant 0 : index
    %18 = vector.load %arg4[%c0_10, %c0_11, %c0_12] : memref<3x32x32xf32, #tpu.memory_space<vmem>>, vector<1x32x32xf32>
    %19 = vector.shape_cast %18 : vector<1x32x32xf32> to vector<32x32xf32>
    %20 = vector.extract_strided_slice %8 {offsets = [0, 0], sizes = [32, 128], strides = [1, 1]} : vector<32x256xf32> to vector<32x128xf32>
    %cst_13 = arith.constant dense<0.000000e+00> : vector<32x128xf32>
    %21 = tpu.matmul %19, %20, %cst_13 {dimension_numbers = #tpu.dot_dimension_numbers<[1], [0], [0], [1], [0, 0, 1, 1], [], []>} : vector<32x32xf32>, vector<32x128xf32>, vector<32x128xf32> -> vector<32x128xf32>
    %22 = arith.addf %16, %21 : vector<32x128xf32>
    %23 = vector.extract_strided_slice %15 {offsets = [0, 0], sizes = [32, 128], strides = [1, 1]} : vector<32x256xf32> to vector<32x128xf32>
    %cst_14 = arith.constant dense<0.000000e+00> : vector<32x128xf32>
    %24 = tpu.matmul %19, %23, %cst_14 {dimension_numbers = #tpu.dot_dimension_numbers<[1], [0], [0], [1], [0, 0, 1, 1], [], []>} : vector<32x32xf32>, vector<32x128xf32>, vector<32x128xf32> -> vector<32x128xf32>
    %25 = arith.addf %17, %24 : vector<32x128xf32>
    %c1 = arith.constant 1 : index
    %c0_15 = arith.constant 0 : index
    %c0_16 = arith.constant 0 : index
    %26 = vector.load %arg4[%c1, %c0_15, %c0_16] : memref<3x32x32xf32, #tpu.memory_space<vmem>>, vector<1x32x32xf32>
    %27 = vector.shape_cast %26 : vector<1x32x32xf32> to vector<32x32xf32>
    %28 = vector.extract_strided_slice %8 {offsets = [0, 1], sizes = [32, 128], strides = [1, 1]} : vector<32x256xf32> to vector<32x128xf32>
    %cst_17 = arith.constant dense<0.000000e+00> : vector<32x128xf32>
    %29 = tpu.matmul %27, %28, %cst_17 {dimension_numbers = #tpu.dot_dimension_numbers<[1], [0], [0], [1], [0, 0, 1, 1], [], []>} : vector<32x32xf32>, vector<32x128xf32>, vector<32x128xf32> -> vector<32x128xf32>
    %30 = arith.addf %22, %29 : vector<32x128xf32>
    %31 = vector.extract_strided_slice %15 {offsets = [0, 1], sizes = [32, 128], strides = [1, 1]} : vector<32x256xf32> to vector<32x128xf32>
    %cst_18 = arith.constant dense<0.000000e+00> : vector<32x128xf32>
    %32 = tpu.matmul %27, %31, %cst_18 {dimension_numbers = #tpu.dot_dimension_numbers<[1], [0], [0], [1], [0, 0, 1, 1], [], []>} : vector<32x32xf32>, vector<32x128xf32>, vector<32x128xf32> -> vector<32x128xf32>
    %33 = arith.addf %25, %32 : vector<32x128xf32>
    %c2 = arith.constant 2 : index
    %c0_19 = arith.constant 0 : index
    %c0_20 = arith.constant 0 : index
    %34 = vector.load %arg4[%c2, %c0_19, %c0_20] : memref<3x32x32xf32, #tpu.memory_space<vmem>>, vector<1x32x32xf32>
    %35 = vector.shape_cast %34 : vector<1x32x32xf32> to vector<32x32xf32>
    %36 = vector.extract_strided_slice %8 {offsets = [0, 2], sizes = [32, 128], strides = [1, 1]} : vector<32x256xf32> to vector<32x128xf32>
    %cst_21 = arith.constant dense<0.000000e+00> : vector<32x128xf32>
    %37 = tpu.matmul %35, %36, %cst_21 {dimension_numbers = #tpu.dot_dimension_numbers<[1], [0], [0], [1], [0, 0, 1, 1], [], []>} : vector<32x32xf32>, vector<32x128xf32>, vector<32x128xf32> -> vector<32x128xf32>
    %38 = arith.addf %30, %37 : vector<32x128xf32>
    %39 = vector.extract_strided_slice %15 {offsets = [0, 2], sizes = [32, 128], strides = [1, 1]} : vector<32x256xf32> to vector<32x128xf32>
    %cst_22 = arith.constant dense<0.000000e+00> : vector<32x128xf32>
    %40 = tpu.matmul %35, %39, %cst_22 {dimension_numbers = #tpu.dot_dimension_numbers<[1], [0], [0], [1], [0, 0, 1, 1], [], []>} : vector<32x32xf32>, vector<32x128xf32>, vector<32x128xf32> -> vector<32x128xf32>
    %41 = arith.addf %33, %40 : vector<32x128xf32>
    %c0_23 = arith.constant 0 : index
    %c0_24 = arith.constant 0 : index
    %42 = vector.load %arg5[%c0_23, %c0_24] : memref<32x1xf32, #tpu.memory_space<vmem>>, vector<32x1xf32>
    %43 = vector.broadcast %42 : vector<32x1xf32> to vector<32x128xf32>
    %44 = arith.addf %38, %43 : vector<32x128xf32>
    %c0_25 = arith.constant 0 : index
    %c0_26 = arith.constant 0 : index
    %45 = vector.load %arg5[%c0_25, %c0_26] : memref<32x1xf32, #tpu.memory_space<vmem>>, vector<32x1xf32>
    %46 = vector.broadcast %45 : vector<32x1xf32> to vector<32x128xf32>
    %47 = arith.addf %41, %46 : vector<32x128xf32>
    %c0_27 = arith.constant 0 : index
    %c0_28 = arith.constant 0 : index
    %c0_29 = arith.constant 0 : index
    %48 = vector.load %arg6[%c0_27, %c0_28, %c0_29] : memref<1x32x256xf32, #tpu.memory_space<vmem>>, vector<1x32x128xf32>
    %49 = vector.shape_cast %48 : vector<1x32x128xf32> to vector<32x128xf32>
    %50 = vector.shape_cast %44 : vector<32x128xf32> to vector<1x32x128xf32>
    tpu.vector_store %arg6[%c0_27, %c0_28, %c0_29], %50 {strides = array<i32>} : memref<1x32x256xf32, #tpu.memory_space<vmem>>, vector<1x32x128xf32>,
    %c0_30 = arith.constant 0 : index
    %c0_31 = arith.constant 0 : index
    %c128 = arith.constant 128 : index
    %51 = vector.load %arg6[%c0_30, %c0_31, %c128] : memref<1x32x256xf32, #tpu.memory_space<vmem>>, vector<1x32x128xf32>
    %52 = vector.shape_cast %51 : vector<1x32x128xf32> to vector<32x128xf32>
    %53 = vector.shape_cast %47 : vector<32x128xf32> to vector<1x32x128xf32>
    tpu.vector_store %arg6[%c0_30, %c0_31, %c128], %53 {strides = array<i32>} : memref<1x32x256xf32, #tpu.memory_space<vmem>>, vector<1x32x128xf32>,
    return
  }
  func.func @transform_0(%arg0: i32, %arg1: i32) -> (i32, i32, i32) {
    %c0_i32 = arith.constant 0 : i32
    %c0_i32_0 = arith.constant 0 : i32
    return %arg0, %c0_i32, %arg1 : i32, i32, i32
  }
  func.func @transform_1(%arg0: i32, %arg1: i32) -> (i32, i32, i32) {
    %c1_i32 = arith.constant 1 : i32
    %0 = arith.addi %arg1, %c1_i32 : i32
    %c2_i32 = arith.constant 2 : i32
    %1 = arith.muli %0, %c2_i32 : i32
    %c0_i32 = arith.constant 0 : i32
    %c0_i32_0 = arith.constant 0 : i32
    return %arg0, %c0_i32, %1 : i32, i32, i32
  }
  func.func @transform_2(%arg0: i32, %arg1: i32) -> (i32, i32, i32) {
    %c0_i32 = arith.constant 0 : i32
    %c0_i32_0 = arith.constant 0 : i32
    %c0_i32_1 = arith.constant 0 : i32
    %c0_i32_2 = arith.constant 0 : i32
    return %c0_i32, %c0_i32_0, %c0_i32_1 : i32, i32, i32
  }
  func.func @transform_3(%arg0: i32, %arg1: i32) -> (i32, i32) {
    %c0_i32 = arith.constant 0 : i32
    %c0_i32_0 = arith.constant 0 : i32
    %c0_i32_1 = arith.constant 0 : i32
    return %c0_i32, %c0_i32_0 : i32, i32
  }
  func.func @transform_4(%arg0: i32, %arg1: i32) -> (i32, i32, i32) {
    %c0_i32 = arith.constant 0 : i32
    %c0_i32_0 = arith.constant 0 : i32
    return %arg0, %c0_i32, %arg1 : i32, i32, i32
  }
}

module attributes {stable_mosaic.version = 11 : i64} {
  func.func @kernel(%arg0: i32, %arg1: i32, %arg2: memref<1x16x256xf32, #tpu.memory_space<vmem>>, %arg3: memref<1x16x128xf32, #tpu.memory_space<vmem>>, %arg4: memref<3x16x16xf32, #tpu.memory_space<vmem>>, %arg5: memref<16x1xf32, #tpu.memory_space<vmem>>, %arg6: memref<3x16x16xf32, #tpu.memory_space<vmem>>, %arg7: memref<16x1xf32, #tpu.memory_space<vmem>>, %arg8: memref<1x16x256xf32, #tpu.memory_space<vmem>>) attributes {dimension_semantics = [#tpu.dimension_semantics<parallel>, #tpu.dimension_semantics<parallel>], iteration_bounds = array<i64: 2, 1>, scalar_prefetch = 0 : i64, scratch_operands = 0 : i64, tpu.core_type = #tpu.core_type<tc>, window_params = [{transform_indices = @transform_0, window_bounds = array<i64: 1, 16, 256>}, {transform_indices = @transform_1, window_bounds = array<i64: 1, 16, 128>}, {pipeline_mode = #tpu.pipeline_mode<synchronous>, transform_indices = @transform_2, window_bounds = array<i64: 3, 16, 16>}, {pipeline_mode = #tpu.pipeline_mode<synchronous>, transform_indices = @transform_3, window_bounds = array<i64: 16, 1>}, {pipeline_mode = #tpu.pipeline_mode<synchronous>, transform_indices = @transform_4, window_bounds = array<i64: 3, 16, 16>}, {pipeline_mode = #tpu.pipeline_mode<synchronous>, transform_indices = @transform_5, window_bounds = array<i64: 16, 1>}, {transform_indices = @transform_6, window_bounds = array<i64: 1, 16, 256>}]} {
    %c0 = arith.constant 0 : index
    %c0_0 = arith.constant 0 : index
    %c0_1 = arith.constant 0 : index
    %0 = vector.load %arg2[%c0, %c0_0, %c0_1] : memref<1x16x256xf32, #tpu.memory_space<vmem>>, vector<1x16x256xf32>
    %1 = vector.shape_cast %0 : vector<1x16x256xf32> to vector<16x256xf32>
    %c0_2 = arith.constant 0 : index
    %c0_3 = arith.constant 0 : index
    %c0_4 = arith.constant 0 : index
    %2 = vector.load %arg3[%c0_2, %c0_3, %c0_4] : memref<1x16x128xf32, #tpu.memory_space<vmem>>, vector<1x16x128xf32>
    %3 = vector.shape_cast %2 : vector<1x16x128xf32> to vector<16x128xf32>
    %4 = tpu.concatenate %1, %3 in 1 : vector<16x256xf32>, vector<16x128xf32> -> vector<16x384xf32>
    %cst = arith.constant 0.000000e+00 : f32
    %5 = vector.broadcast %cst : f32 to vector<16x384xf32>
    %6 = arith.cmpf oge, %4, %5 : vector<16x384xf32>
    %cst_5 = arith.constant 1.000000e-01 : f32
    %7 = vector.broadcast %cst_5 : f32 to vector<16x384xf32>
    %8 = arith.mulf %4, %7 : vector<16x384xf32>
    %9 = arith.select %6, %4, %8 : vector<16x384xi1>, vector<16x384xf32>
    %cst_6 = arith.constant 0.000000e+00 : f32
    %10 = vector.broadcast %cst_6 : f32 to vector<16x258xf32>
    %c0_7 = arith.constant 0 : index
    %c0_8 = arith.constant 0 : index
    %c0_9 = arith.constant 0 : index
    %11 = vector.load %arg4[%c0_7, %c0_8, %c0_9] : memref<3x16x16xf32, #tpu.memory_space<vmem>>, vector<1x16x16xf32>
    %12 = vector.shape_cast %11 : vector<1x16x16xf32> to vector<16x16xf32>
    %13 = vector.extract_strided_slice %9 {offsets = [0, 0], sizes = [16, 258], strides = [1, 1]} : vector<16x384xf32> to vector<16x258xf32>
    %cst_10 = arith.constant dense<0.000000e+00> : vector<16x258xf32>
    %14 = tpu.matmul %12, %13, %cst_10 {dimension_numbers = #tpu.dot_dimension_numbers<[1], [0], [0], [1], [0, 0, 1, 1], [], []>} : vector<16x16xf32>, vector<16x258xf32>, vector<16x258xf32> -> vector<16x258xf32>
    %15 = arith.addf %10, %14 : vector<16x258xf32>
    %c1 = arith.constant 1 : index
    %c0_11 = arith.constant 0 : index
    %c0_12 = arith.constant 0 : index
    %16 = vector.load %arg4[%c1, %c0_11, %c0_12] : memref<3x16x16xf32, #tpu.memory_space<vmem>>, vector<1x16x16xf32>
    %17 = vector.shape_cast %16 : vector<1x16x16xf32> to vector<16x16xf32>
    %18 = vector.extract_strided_slice %9 {offsets = [0, 3], sizes = [16, 258], strides = [1, 1]} : vector<16x384xf32> to vector<16x258xf32>
    %cst_13 = arith.constant dense<0.000000e+00> : vector<16x258xf32>
    %19 = tpu.matmul %17, %18, %cst_13 {dimension_numbers = #tpu.dot_dimension_numbers<[1], [0], [0], [1], [0, 0, 1, 1], [], []>} : vector<16x16xf32>, vector<16x258xf32>, vector<16x258xf32> -> vector<16x258xf32>
    %20 = arith.addf %15, %19 : vector<16x258xf32>
    %c2 = arith.constant 2 : index
    %c0_14 = arith.constant 0 : index
    %c0_15 = arith.constant 0 : index
    %21 = vector.load %arg4[%c2, %c0_14, %c0_15] : memref<3x16x16xf32, #tpu.memory_space<vmem>>, vector<1x16x16xf32>
    %22 = vector.shape_cast %21 : vector<1x16x16xf32> to vector<16x16xf32>
    %23 = vector.extract_strided_slice %9 {offsets = [0, 6], sizes = [16, 258], strides = [1, 1]} : vector<16x384xf32> to vector<16x258xf32>
    %cst_16 = arith.constant dense<0.000000e+00> : vector<16x258xf32>
    %24 = tpu.matmul %22, %23, %cst_16 {dimension_numbers = #tpu.dot_dimension_numbers<[1], [0], [0], [1], [0, 0, 1, 1], [], []>} : vector<16x16xf32>, vector<16x258xf32>, vector<16x258xf32> -> vector<16x258xf32>
    %25 = arith.addf %20, %24 : vector<16x258xf32>
    %c0_17 = arith.constant 0 : index
    %c0_18 = arith.constant 0 : index
    %26 = vector.load %arg5[%c0_17, %c0_18] : memref<16x1xf32, #tpu.memory_space<vmem>>, vector<16x1xf32>
    %27 = vector.broadcast %26 : vector<16x1xf32> to vector<16x258xf32>
    %28 = arith.addf %25, %27 : vector<16x258xf32>
    %cst_19 = arith.constant 0.000000e+00 : f32
    %29 = vector.broadcast %cst_19 : f32 to vector<16x258xf32>
    %30 = arith.cmpf oge, %28, %29 : vector<16x258xf32>
    %cst_20 = arith.constant 1.000000e-01 : f32
    %31 = vector.broadcast %cst_20 : f32 to vector<16x258xf32>
    %32 = arith.mulf %28, %31 : vector<16x258xf32>
    %33 = arith.select %30, %28, %32 : vector<16x258xi1>, vector<16x258xf32>
    %34 = tpu.iota {dimensions = array<i32: 1>} : vector<1x258xi32>
    %c256_i32 = arith.constant 256 : i32
    %35 = arith.muli %arg1, %c256_i32 : i32
    %36 = vector.broadcast %35 : i32 to vector<1x258xi32>
    %37 = arith.addi %34, %36 : vector<1x258xi32>
    %c1_i32 = arith.constant 1 : i32
    %38 = vector.broadcast %c1_i32 : i32 to vector<1x258xi32>
    %39 = arith.cmpi sge, %37, %38 : vector<1x258xi32>
    %c17_i32 = arith.constant 17 : i32
    %40 = vector.broadcast %c17_i32 : i32 to vector<1x258xi32>
    %41 = arith.cmpi slt, %37, %40 : vector<1x258xi32>
    %42 = arith.andi %39, %41 : vector<1x258xi1>
    %c0_i32 = arith.constant 0 : i32
    %43 = arith.sitofp %c0_i32 : i32 to f32
    %44 = vector.shape_cast %42 : vector<1x258xi1> to vector<1x258xi1>
    %45 = vector.broadcast %44 : vector<1x258xi1> to vector<16x258xi1>
    %46 = vector.broadcast %43 : f32 to vector<16x258xf32>
    %47 = arith.select %45, %33, %46 : vector<16x258xi1>, vector<16x258xf32>
    %cst_21 = arith.constant 0.000000e+00 : f32
    %48 = vector.broadcast %cst_21 : f32 to vector<16x256xf32>
    %c0_22 = arith.constant 0 : index
    %c0_23 = arith.constant 0 : index
    %c0_24 = arith.constant 0 : index
    %49 = vector.load %arg6[%c0_22, %c0_23, %c0_24] : memref<3x16x16xf32, #tpu.memory_space<vmem>>, vector<1x16x16xf32>
    %50 = vector.shape_cast %49 : vector<1x16x16xf32> to vector<16x16xf32>
    %51 = vector.extract_strided_slice %47 {offsets = [0, 0], sizes = [16, 256], strides = [1, 1]} : vector<16x258xf32> to vector<16x256xf32>
    %cst_25 = arith.constant dense<0.000000e+00> : vector<16x256xf32>
    %52 = tpu.matmul %50, %51, %cst_25 {dimension_numbers = #tpu.dot_dimension_numbers<[1], [0], [0], [1], [0, 0, 1, 1], [], []>} : vector<16x16xf32>, vector<16x256xf32>, vector<16x256xf32> -> vector<16x256xf32>
    %53 = arith.addf %48, %52 : vector<16x256xf32>
    %c1_26 = arith.constant 1 : index
    %c0_27 = arith.constant 0 : index
    %c0_28 = arith.constant 0 : index
    %54 = vector.load %arg6[%c1_26, %c0_27, %c0_28] : memref<3x16x16xf32, #tpu.memory_space<vmem>>, vector<1x16x16xf32>
    %55 = vector.shape_cast %54 : vector<1x16x16xf32> to vector<16x16xf32>
    %56 = vector.extract_strided_slice %47 {offsets = [0, 1], sizes = [16, 256], strides = [1, 1]} : vector<16x258xf32> to vector<16x256xf32>
    %cst_29 = arith.constant dense<0.000000e+00> : vector<16x256xf32>
    %57 = tpu.matmul %55, %56, %cst_29 {dimension_numbers = #tpu.dot_dimension_numbers<[1], [0], [0], [1], [0, 0, 1, 1], [], []>} : vector<16x16xf32>, vector<16x256xf32>, vector<16x256xf32> -> vector<16x256xf32>
    %58 = arith.addf %53, %57 : vector<16x256xf32>
    %c2_30 = arith.constant 2 : index
    %c0_31 = arith.constant 0 : index
    %c0_32 = arith.constant 0 : index
    %59 = vector.load %arg6[%c2_30, %c0_31, %c0_32] : memref<3x16x16xf32, #tpu.memory_space<vmem>>, vector<1x16x16xf32>
    %60 = vector.shape_cast %59 : vector<1x16x16xf32> to vector<16x16xf32>
    %61 = vector.extract_strided_slice %47 {offsets = [0, 2], sizes = [16, 256], strides = [1, 1]} : vector<16x258xf32> to vector<16x256xf32>
    %cst_33 = arith.constant dense<0.000000e+00> : vector<16x256xf32>
    %62 = tpu.matmul %60, %61, %cst_33 {dimension_numbers = #tpu.dot_dimension_numbers<[1], [0], [0], [1], [0, 0, 1, 1], [], []>} : vector<16x16xf32>, vector<16x256xf32>, vector<16x256xf32> -> vector<16x256xf32>
    %63 = arith.addf %58, %62 : vector<16x256xf32>
    %c0_34 = arith.constant 0 : index
    %c0_35 = arith.constant 0 : index
    %64 = vector.load %arg7[%c0_34, %c0_35] : memref<16x1xf32, #tpu.memory_space<vmem>>, vector<16x1xf32>
    %65 = vector.broadcast %64 : vector<16x1xf32> to vector<16x256xf32>
    %66 = arith.addf %63, %65 : vector<16x256xf32>
    %67 = vector.extract_strided_slice %4 {offsets = [0, 4], sizes = [16, 256], strides = [1, 1]} : vector<16x384xf32> to vector<16x256xf32>
    %68 = arith.addf %66, %67 : vector<16x256xf32>
    %c0_36 = arith.constant 0 : index
    %c0_37 = arith.constant 0 : index
    %c0_38 = arith.constant 0 : index
    %69 = vector.load %arg8[%c0_36, %c0_37, %c0_38] : memref<1x16x256xf32, #tpu.memory_space<vmem>>, vector<1x16x256xf32>
    %70 = vector.shape_cast %69 : vector<1x16x256xf32> to vector<16x256xf32>
    %71 = vector.shape_cast %68 : vector<16x256xf32> to vector<1x16x256xf32>
    tpu.vector_store %arg8[%c0_36, %c0_37, %c0_38], %71 {strides = array<i32>} : memref<1x16x256xf32, #tpu.memory_space<vmem>>, vector<1x16x256xf32>,
    return
  }
  func.func @transform_0(%arg0: i32, %arg1: i32) -> (i32, i32, i32) {
    %c0_i32 = arith.constant 0 : i32
    %c0_i32_0 = arith.constant 0 : i32
    return %arg0, %c0_i32, %arg1 : i32, i32, i32
  }
  func.func @transform_1(%arg0: i32, %arg1: i32) -> (i32, i32, i32) {
    %c1_i32 = arith.constant 1 : i32
    %0 = arith.addi %arg1, %c1_i32 : i32
    %c2_i32 = arith.constant 2 : i32
    %1 = arith.muli %0, %c2_i32 : i32
    %c0_i32 = arith.constant 0 : i32
    %c0_i32_0 = arith.constant 0 : i32
    return %arg0, %c0_i32, %1 : i32, i32, i32
  }
  func.func @transform_2(%arg0: i32, %arg1: i32) -> (i32, i32, i32) {
    %c0_i32 = arith.constant 0 : i32
    %c0_i32_0 = arith.constant 0 : i32
    %c0_i32_1 = arith.constant 0 : i32
    %c0_i32_2 = arith.constant 0 : i32
    return %c0_i32, %c0_i32_0, %c0_i32_1 : i32, i32, i32
  }
  func.func @transform_3(%arg0: i32, %arg1: i32) -> (i32, i32) {
    %c0_i32 = arith.constant 0 : i32
    %c0_i32_0 = arith.constant 0 : i32
    %c0_i32_1 = arith.constant 0 : i32
    return %c0_i32, %c0_i32_0 : i32, i32
  }
  func.func @transform_4(%arg0: i32, %arg1: i32) -> (i32, i32, i32) {
    %c0_i32 = arith.constant 0 : i32
    %c0_i32_0 = arith.constant 0 : i32
    %c0_i32_1 = arith.constant 0 : i32
    %c0_i32_2 = arith.constant 0 : i32
    return %c0_i32, %c0_i32_0, %c0_i32_1 : i32, i32, i32
  }
  func.func @transform_5(%arg0: i32, %arg1: i32) -> (i32, i32) {
    %c0_i32 = arith.constant 0 : i32
    %c0_i32_0 = arith.constant 0 : i32
    %c0_i32_1 = arith.constant 0 : i32
    return %c0_i32, %c0_i32_0 : i32, i32
  }
  func.func @transform_6(%arg0: i32, %arg1: i32) -> (i32, i32, i32) {
    %c0_i32 = arith.constant 0 : i32
    %c0_i32_0 = arith.constant 0 : i32
    return %arg0, %c0_i32, %arg1 : i32, i32, i32
  }
}

module attributes {stable_mosaic.version = 11 : i64} {
  func.func @kernel(%arg0: i32, %arg1: i32, %arg2: memref<1x16x256xf32, #tpu.memory_space<vmem>>, %arg3: memref<1x16x128xf32, #tpu.memory_space<vmem>>, %arg4: memref<3x16x16xf32, #tpu.memory_space<vmem>>, %arg5: memref<16x1xf32, #tpu.memory_space<vmem>>, %arg6: memref<3x16x16xf32, #tpu.memory_space<vmem>>, %arg7: memref<16x1xf32, #tpu.memory_space<vmem>>, %arg8: memref<1x16x256xf32, #tpu.memory_space<vmem>>) attributes {dimension_semantics = [#tpu.dimension_semantics<parallel>, #tpu.dimension_semantics<parallel>], iteration_bounds = array<i64: 2, 1>, scalar_prefetch = 0 : i64, scratch_operands = 0 : i64, tpu.core_type = #tpu.core_type<tc>, window_params = [{transform_indices = @transform_0, window_bounds = array<i64: 1, 16, 256>}, {transform_indices = @transform_1, window_bounds = array<i64: 1, 16, 128>}, {pipeline_mode = #tpu.pipeline_mode<synchronous>, transform_indices = @transform_2, window_bounds = array<i64: 3, 16, 16>}, {pipeline_mode = #tpu.pipeline_mode<synchronous>, transform_indices = @transform_3, window_bounds = array<i64: 16, 1>}, {pipeline_mode = #tpu.pipeline_mode<synchronous>, transform_indices = @transform_4, window_bounds = array<i64: 3, 16, 16>}, {pipeline_mode = #tpu.pipeline_mode<synchronous>, transform_indices = @transform_5, window_bounds = array<i64: 16, 1>}, {transform_indices = @transform_6, window_bounds = array<i64: 1, 16, 256>}]} {
    %c0 = arith.constant 0 : index
    %c0_0 = arith.constant 0 : index
    %c0_1 = arith.constant 0 : index
    %0 = vector.load %arg2[%c0, %c0_0, %c0_1] : memref<1x16x256xf32, #tpu.memory_space<vmem>>, vector<1x16x256xf32>
    %1 = vector.shape_cast %0 : vector<1x16x256xf32> to vector<16x256xf32>
    %c0_2 = arith.constant 0 : index
    %c0_3 = arith.constant 0 : index
    %c0_4 = arith.constant 0 : index
    %2 = vector.load %arg3[%c0_2, %c0_3, %c0_4] : memref<1x16x128xf32, #tpu.memory_space<vmem>>, vector<1x16x128xf32>
    %3 = vector.shape_cast %2 : vector<1x16x128xf32> to vector<16x128xf32>
    %4 = tpu.concatenate %1, %3 in 1 : vector<16x256xf32>, vector<16x128xf32> -> vector<16x384xf32>
    %cst = arith.constant 0.000000e+00 : f32
    %5 = vector.broadcast %cst : f32 to vector<16x384xf32>
    %6 = arith.cmpf oge, %4, %5 : vector<16x384xf32>
    %cst_5 = arith.constant 1.000000e-01 : f32
    %7 = vector.broadcast %cst_5 : f32 to vector<16x384xf32>
    %8 = arith.mulf %4, %7 : vector<16x384xf32>
    %9 = arith.select %6, %4, %8 : vector<16x384xi1>, vector<16x384xf32>
    %cst_6 = arith.constant 0.000000e+00 : f32
    %10 = vector.broadcast %cst_6 : f32 to vector<16x258xf32>
    %c0_7 = arith.constant 0 : index
    %c0_8 = arith.constant 0 : index
    %c0_9 = arith.constant 0 : index
    %11 = vector.load %arg4[%c0_7, %c0_8, %c0_9] : memref<3x16x16xf32, #tpu.memory_space<vmem>>, vector<1x16x16xf32>
    %12 = vector.shape_cast %11 : vector<1x16x16xf32> to vector<16x16xf32>
    %13 = vector.extract_strided_slice %9 {offsets = [0, 0], sizes = [16, 258], strides = [1, 1]} : vector<16x384xf32> to vector<16x258xf32>
    %cst_10 = arith.constant dense<0.000000e+00> : vector<16x258xf32>
    %14 = tpu.matmul %12, %13, %cst_10 {dimension_numbers = #tpu.dot_dimension_numbers<[1], [0], [0], [1], [0, 0, 1, 1], [], []>} : vector<16x16xf32>, vector<16x258xf32>, vector<16x258xf32> -> vector<16x258xf32>
    %15 = arith.addf %10, %14 : vector<16x258xf32>
    %c1 = arith.constant 1 : index
    %c0_11 = arith.constant 0 : index
    %c0_12 = arith.constant 0 : index
    %16 = vector.load %arg4[%c1, %c0_11, %c0_12] : memref<3x16x16xf32, #tpu.memory_space<vmem>>, vector<1x16x16xf32>
    %17 = vector.shape_cast %16 : vector<1x16x16xf32> to vector<16x16xf32>
    %18 = vector.extract_strided_slice %9 {offsets = [0, 1], sizes = [16, 258], strides = [1, 1]} : vector<16x384xf32> to vector<16x258xf32>
    %cst_13 = arith.constant dense<0.000000e+00> : vector<16x258xf32>
    %19 = tpu.matmul %17, %18, %cst_13 {dimension_numbers = #tpu.dot_dimension_numbers<[1], [0], [0], [1], [0, 0, 1, 1], [], []>} : vector<16x16xf32>, vector<16x258xf32>, vector<16x258xf32> -> vector<16x258xf32>
    %20 = arith.addf %15, %19 : vector<16x258xf32>
    %c2 = arith.constant 2 : index
    %c0_14 = arith.constant 0 : index
    %c0_15 = arith.constant 0 : index
    %21 = vector.load %arg4[%c2, %c0_14, %c0_15] : memref<3x16x16xf32, #tpu.memory_space<vmem>>, vector<1x16x16xf32>
    %22 = vector.shape_cast %21 : vector<1x16x16xf32> to vector<16x16xf32>
    %23 = vector.extract_strided_slice %9 {offsets = [0, 2], sizes = [16, 258], strides = [1, 1]} : vector<16x384xf32> to vector<16x258xf32>
    %cst_16 = arith.constant dense<0.000000e+00> : vector<16x258xf32>
    %24 = tpu.matmul %22, %23, %cst_16 {dimension_numbers = #tpu.dot_dimension_numbers<[1], [0], [0], [1], [0, 0, 1, 1], [], []>} : vector<16x16xf32>, vector<16x258xf32>, vector<16x258xf32> -> vector<16x258xf32>
    %25 = arith.addf %20, %24 : vector<16x258xf32>
    %c0_17 = arith.constant 0 : index
    %c0_18 = arith.constant 0 : index
    %26 = vector.load %arg5[%c0_17, %c0_18] : memref<16x1xf32, #tpu.memory_space<vmem>>, vector<16x1xf32>
    %27 = vector.broadcast %26 : vector<16x1xf32> to vector<16x258xf32>
    %28 = arith.addf %25, %27 : vector<16x258xf32>
    %cst_19 = arith.constant 0.000000e+00 : f32
    %29 = vector.broadcast %cst_19 : f32 to vector<16x258xf32>
    %30 = arith.cmpf oge, %28, %29 : vector<16x258xf32>
    %cst_20 = arith.constant 1.000000e-01 : f32
    %31 = vector.broadcast %cst_20 : f32 to vector<16x258xf32>
    %32 = arith.mulf %28, %31 : vector<16x258xf32>
    %33 = arith.select %30, %28, %32 : vector<16x258xi1>, vector<16x258xf32>
    %34 = tpu.iota {dimensions = array<i32: 1>} : vector<1x258xi32>
    %c256_i32 = arith.constant 256 : i32
    %35 = arith.muli %arg1, %c256_i32 : i32
    %36 = vector.broadcast %35 : i32 to vector<1x258xi32>
    %37 = arith.addi %34, %36 : vector<1x258xi32>
    %c1_i32 = arith.constant 1 : i32
    %38 = vector.broadcast %c1_i32 : i32 to vector<1x258xi32>
    %39 = arith.cmpi sge, %37, %38 : vector<1x258xi32>
    %c17_i32 = arith.constant 17 : i32
    %40 = vector.broadcast %c17_i32 : i32 to vector<1x258xi32>
    %41 = arith.cmpi slt, %37, %40 : vector<1x258xi32>
    %42 = arith.andi %39, %41 : vector<1x258xi1>
    %c0_i32 = arith.constant 0 : i32
    %43 = arith.sitofp %c0_i32 : i32 to f32
    %44 = vector.shape_cast %42 : vector<1x258xi1> to vector<1x258xi1>
    %45 = vector.broadcast %44 : vector<1x258xi1> to vector<16x258xi1>
    %46 = vector.broadcast %43 : f32 to vector<16x258xf32>
    %47 = arith.select %45, %33, %46 : vector<16x258xi1>, vector<16x258xf32>
    %cst_21 = arith.constant 0.000000e+00 : f32
    %48 = vector.broadcast %cst_21 : f32 to vector<16x256xf32>
    %c0_22 = arith.constant 0 : index
    %c0_23 = arith.constant 0 : index
    %c0_24 = arith.constant 0 : index
    %49 = vector.load %arg6[%c0_22, %c0_23, %c0_24] : memref<3x16x16xf32, #tpu.memory_space<vmem>>, vector<1x16x16xf32>
    %50 = vector.shape_cast %49 : vector<1x16x16xf32> to vector<16x16xf32>
    %51 = vector.extract_strided_slice %47 {offsets = [0, 0], sizes = [16, 256], strides = [1, 1]} : vector<16x258xf32> to vector<16x256xf32>
    %cst_25 = arith.constant dense<0.000000e+00> : vector<16x256xf32>
    %52 = tpu.matmul %50, %51, %cst_25 {dimension_numbers = #tpu.dot_dimension_numbers<[1], [0], [0], [1], [0, 0, 1, 1], [], []>} : vector<16x16xf32>, vector<16x256xf32>, vector<16x256xf32> -> vector<16x256xf32>
    %53 = arith.addf %48, %52 : vector<16x256xf32>
    %c1_26 = arith.constant 1 : index
    %c0_27 = arith.constant 0 : index
    %c0_28 = arith.constant 0 : index
    %54 = vector.load %arg6[%c1_26, %c0_27, %c0_28] : memref<3x16x16xf32, #tpu.memory_space<vmem>>, vector<1x16x16xf32>
    %55 = vector.shape_cast %54 : vector<1x16x16xf32> to vector<16x16xf32>
    %56 = vector.extract_strided_slice %47 {offsets = [0, 1], sizes = [16, 256], strides = [1, 1]} : vector<16x258xf32> to vector<16x256xf32>
    %cst_29 = arith.constant dense<0.000000e+00> : vector<16x256xf32>
    %57 = tpu.matmul %55, %56, %cst_29 {dimension_numbers = #tpu.dot_dimension_numbers<[1], [0], [0], [1], [0, 0, 1, 1], [], []>} : vector<16x16xf32>, vector<16x256xf32>, vector<16x256xf32> -> vector<16x256xf32>
    %58 = arith.addf %53, %57 : vector<16x256xf32>
    %c2_30 = arith.constant 2 : index
    %c0_31 = arith.constant 0 : index
    %c0_32 = arith.constant 0 : index
    %59 = vector.load %arg6[%c2_30, %c0_31, %c0_32] : memref<3x16x16xf32, #tpu.memory_space<vmem>>, vector<1x16x16xf32>
    %60 = vector.shape_cast %59 : vector<1x16x16xf32> to vector<16x16xf32>
    %61 = vector.extract_strided_slice %47 {offsets = [0, 2], sizes = [16, 256], strides = [1, 1]} : vector<16x258xf32> to vector<16x256xf32>
    %cst_33 = arith.constant dense<0.000000e+00> : vector<16x256xf32>
    %62 = tpu.matmul %60, %61, %cst_33 {dimension_numbers = #tpu.dot_dimension_numbers<[1], [0], [0], [1], [0, 0, 1, 1], [], []>} : vector<16x16xf32>, vector<16x256xf32>, vector<16x256xf32> -> vector<16x256xf32>
    %63 = arith.addf %58, %62 : vector<16x256xf32>
    %c0_34 = arith.constant 0 : index
    %c0_35 = arith.constant 0 : index
    %64 = vector.load %arg7[%c0_34, %c0_35] : memref<16x1xf32, #tpu.memory_space<vmem>>, vector<16x1xf32>
    %65 = vector.broadcast %64 : vector<16x1xf32> to vector<16x256xf32>
    %66 = arith.addf %63, %65 : vector<16x256xf32>
    %67 = vector.extract_strided_slice %4 {offsets = [0, 2], sizes = [16, 256], strides = [1, 1]} : vector<16x384xf32> to vector<16x256xf32>
    %68 = arith.addf %66, %67 : vector<16x256xf32>
    %c0_36 = arith.constant 0 : index
    %c0_37 = arith.constant 0 : index
    %c0_38 = arith.constant 0 : index
    %69 = vector.load %arg8[%c0_36, %c0_37, %c0_38] : memref<1x16x256xf32, #tpu.memory_space<vmem>>, vector<1x16x256xf32>
    %70 = vector.shape_cast %69 : vector<1x16x256xf32> to vector<16x256xf32>
    %71 = vector.shape_cast %68 : vector<16x256xf32> to vector<1x16x256xf32>
    tpu.vector_store %arg8[%c0_36, %c0_37, %c0_38], %71 {strides = array<i32>} : memref<1x16x256xf32, #tpu.memory_space<vmem>>, vector<1x16x256xf32>,
    return
  }
  func.func @transform_0(%arg0: i32, %arg1: i32) -> (i32, i32, i32) {
    %c0_i32 = arith.constant 0 : i32
    %c0_i32_0 = arith.constant 0 : i32
    return %arg0, %c0_i32, %arg1 : i32, i32, i32
  }
  func.func @transform_1(%arg0: i32, %arg1: i32) -> (i32, i32, i32) {
    %c1_i32 = arith.constant 1 : i32
    %0 = arith.addi %arg1, %c1_i32 : i32
    %c2_i32 = arith.constant 2 : i32
    %1 = arith.muli %0, %c2_i32 : i32
    %c0_i32 = arith.constant 0 : i32
    %c0_i32_0 = arith.constant 0 : i32
    return %arg0, %c0_i32, %1 : i32, i32, i32
  }
  func.func @transform_2(%arg0: i32, %arg1: i32) -> (i32, i32, i32) {
    %c0_i32 = arith.constant 0 : i32
    %c0_i32_0 = arith.constant 0 : i32
    %c0_i32_1 = arith.constant 0 : i32
    %c0_i32_2 = arith.constant 0 : i32
    return %c0_i32, %c0_i32_0, %c0_i32_1 : i32, i32, i32
  }
  func.func @transform_3(%arg0: i32, %arg1: i32) -> (i32, i32) {
    %c0_i32 = arith.constant 0 : i32
    %c0_i32_0 = arith.constant 0 : i32
    %c0_i32_1 = arith.constant 0 : i32
    return %c0_i32, %c0_i32_0 : i32, i32
  }
  func.func @transform_4(%arg0: i32, %arg1: i32) -> (i32, i32, i32) {
    %c0_i32 = arith.constant 0 : i32
    %c0_i32_0 = arith.constant 0 : i32
    %c0_i32_1 = arith.constant 0 : i32
    %c0_i32_2 = arith.constant 0 : i32
    return %c0_i32, %c0_i32_0, %c0_i32_1 : i32, i32, i32
  }
  func.func @transform_5(%arg0: i32, %arg1: i32) -> (i32, i32) {
    %c0_i32 = arith.constant 0 : i32
    %c0_i32_0 = arith.constant 0 : i32
    %c0_i32_1 = arith.constant 0 : i32
    return %c0_i32, %c0_i32_0 : i32, i32
  }
  func.func @transform_6(%arg0: i32, %arg1: i32) -> (i32, i32, i32) {
    %c0_i32 = arith.constant 0 : i32
    %c0_i32_0 = arith.constant 0 : i32
    return %arg0, %c0_i32, %arg1 : i32, i32, i32
  }
}

module attributes {stable_mosaic.version = 11 : i64} {
  func.func @kernel(%arg0: i32, %arg1: i32, %arg2: memref<1x16x256xf32, #tpu.memory_space<vmem>>, %arg3: memref<1x16x128xf32, #tpu.memory_space<vmem>>, %arg4: memref<3x16x16xf32, #tpu.memory_space<vmem>>, %arg5: memref<16x1xf32, #tpu.memory_space<vmem>>, %arg6: memref<3x16x16xf32, #tpu.memory_space<vmem>>, %arg7: memref<16x1xf32, #tpu.memory_space<vmem>>, %arg8: memref<1x16x256xf32, #tpu.memory_space<vmem>>) attributes {dimension_semantics = [#tpu.dimension_semantics<parallel>, #tpu.dimension_semantics<parallel>], iteration_bounds = array<i64: 2, 1>, scalar_prefetch = 0 : i64, scratch_operands = 0 : i64, tpu.core_type = #tpu.core_type<tc>, window_params = [{transform_indices = @transform_0, window_bounds = array<i64: 1, 16, 256>}, {transform_indices = @transform_1, window_bounds = array<i64: 1, 16, 128>}, {pipeline_mode = #tpu.pipeline_mode<synchronous>, transform_indices = @transform_2, window_bounds = array<i64: 3, 16, 16>}, {pipeline_mode = #tpu.pipeline_mode<synchronous>, transform_indices = @transform_3, window_bounds = array<i64: 16, 1>}, {pipeline_mode = #tpu.pipeline_mode<synchronous>, transform_indices = @transform_4, window_bounds = array<i64: 3, 16, 16>}, {pipeline_mode = #tpu.pipeline_mode<synchronous>, transform_indices = @transform_5, window_bounds = array<i64: 16, 1>}, {transform_indices = @transform_6, window_bounds = array<i64: 1, 16, 256>}]} {
    %c0 = arith.constant 0 : index
    %c0_0 = arith.constant 0 : index
    %c0_1 = arith.constant 0 : index
    %0 = vector.load %arg2[%c0, %c0_0, %c0_1] : memref<1x16x256xf32, #tpu.memory_space<vmem>>, vector<1x16x256xf32>
    %1 = vector.shape_cast %0 : vector<1x16x256xf32> to vector<16x256xf32>
    %c0_2 = arith.constant 0 : index
    %c0_3 = arith.constant 0 : index
    %c0_4 = arith.constant 0 : index
    %2 = vector.load %arg3[%c0_2, %c0_3, %c0_4] : memref<1x16x128xf32, #tpu.memory_space<vmem>>, vector<1x16x128xf32>
    %3 = vector.shape_cast %2 : vector<1x16x128xf32> to vector<16x128xf32>
    %4 = tpu.concatenate %1, %3 in 1 : vector<16x256xf32>, vector<16x128xf32> -> vector<16x384xf32>
    %cst = arith.constant 0.000000e+00 : f32
    %5 = vector.broadcast %cst : f32 to vector<16x384xf32>
    %6 = arith.cmpf oge, %4, %5 : vector<16x384xf32>
    %cst_5 = arith.constant 1.000000e-01 : f32
    %7 = vector.broadcast %cst_5 : f32 to vector<16x384xf32>
    %8 = arith.mulf %4, %7 : vector<16x384xf32>
    %9 = arith.select %6, %4, %8 : vector<16x384xi1>, vector<16x384xf32>
    %cst_6 = arith.constant 0.000000e+00 : f32
    %10 = vector.broadcast %cst_6 : f32 to vector<16x258xf32>
    %c0_7 = arith.constant 0 : index
    %c0_8 = arith.constant 0 : index
    %c0_9 = arith.constant 0 : index
    %11 = vector.load %arg4[%c0_7, %c0_8, %c0_9] : memref<3x16x16xf32, #tpu.memory_space<vmem>>, vector<1x16x16xf32>
    %12 = vector.shape_cast %11 : vector<1x16x16xf32> to vector<16x16xf32>
    %13 = vector.extract_strided_slice %9 {offsets = [0, 0], sizes = [16, 258], strides = [1, 1]} : vector<16x384xf32> to vector<16x258xf32>
    %cst_10 = arith.constant dense<0.000000e+00> : vector<16x258xf32>
    %14 = tpu.matmul %12, %13, %cst_10 {dimension_numbers = #tpu.dot_dimension_numbers<[1], [0], [0], [1], [0, 0, 1, 1], [], []>} : vector<16x16xf32>, vector<16x258xf32>, vector<16x258xf32> -> vector<16x258xf32>
    %15 = arith.addf %10, %14 : vector<16x258xf32>
    %c1 = arith.constant 1 : index
    %c0_11 = arith.constant 0 : index
    %c0_12 = arith.constant 0 : index
    %16 = vector.load %arg4[%c1, %c0_11, %c0_12] : memref<3x16x16xf32, #tpu.memory_space<vmem>>, vector<1x16x16xf32>
    %17 = vector.shape_cast %16 : vector<1x16x16xf32> to vector<16x16xf32>
    %18 = vector.extract_strided_slice %9 {offsets = [0, 5], sizes = [16, 258], strides = [1, 1]} : vector<16x384xf32> to vector<16x258xf32>
    %cst_13 = arith.constant dense<0.000000e+00> : vector<16x258xf32>
    %19 = tpu.matmul %17, %18, %cst_13 {dimension_numbers = #tpu.dot_dimension_numbers<[1], [0], [0], [1], [0, 0, 1, 1], [], []>} : vector<16x16xf32>, vector<16x258xf32>, vector<16x258xf32> -> vector<16x258xf32>
    %20 = arith.addf %15, %19 : vector<16x258xf32>
    %c2 = arith.constant 2 : index
    %c0_14 = arith.constant 0 : index
    %c0_15 = arith.constant 0 : index
    %21 = vector.load %arg4[%c2, %c0_14, %c0_15] : memref<3x16x16xf32, #tpu.memory_space<vmem>>, vector<1x16x16xf32>
    %22 = vector.shape_cast %21 : vector<1x16x16xf32> to vector<16x16xf32>
    %23 = vector.extract_strided_slice %9 {offsets = [0, 10], sizes = [16, 258], strides = [1, 1]} : vector<16x384xf32> to vector<16x258xf32>
    %cst_16 = arith.constant dense<0.000000e+00> : vector<16x258xf32>
    %24 = tpu.matmul %22, %23, %cst_16 {dimension_numbers = #tpu.dot_dimension_numbers<[1], [0], [0], [1], [0, 0, 1, 1], [], []>} : vector<16x16xf32>, vector<16x258xf32>, vector<16x258xf32> -> vector<16x258xf32>
    %25 = arith.addf %20, %24 : vector<16x258xf32>
    %c0_17 = arith.constant 0 : index
    %c0_18 = arith.constant 0 : index
    %26 = vector.load %arg5[%c0_17, %c0_18] : memref<16x1xf32, #tpu.memory_space<vmem>>, vector<16x1xf32>
    %27 = vector.broadcast %26 : vector<16x1xf32> to vector<16x258xf32>
    %28 = arith.addf %25, %27 : vector<16x258xf32>
    %cst_19 = arith.constant 0.000000e+00 : f32
    %29 = vector.broadcast %cst_19 : f32 to vector<16x258xf32>
    %30 = arith.cmpf oge, %28, %29 : vector<16x258xf32>
    %cst_20 = arith.constant 1.000000e-01 : f32
    %31 = vector.broadcast %cst_20 : f32 to vector<16x258xf32>
    %32 = arith.mulf %28, %31 : vector<16x258xf32>
    %33 = arith.select %30, %28, %32 : vector<16x258xi1>, vector<16x258xf32>
    %34 = tpu.iota {dimensions = array<i32: 1>} : vector<1x258xi32>
    %c256_i32 = arith.constant 256 : i32
    %35 = arith.muli %arg1, %c256_i32 : i32
    %36 = vector.broadcast %35 : i32 to vector<1x258xi32>
    %37 = arith.addi %34, %36 : vector<1x258xi32>
    %c1_i32 = arith.constant 1 : i32
    %38 = vector.broadcast %c1_i32 : i32 to vector<1x258xi32>
    %39 = arith.cmpi sge, %37, %38 : vector<1x258xi32>
    %c17_i32 = arith.constant 17 : i32
    %40 = vector.broadcast %c17_i32 : i32 to vector<1x258xi32>
    %41 = arith.cmpi slt, %37, %40 : vector<1x258xi32>
    %42 = arith.andi %39, %41 : vector<1x258xi1>
    %c0_i32 = arith.constant 0 : i32
    %43 = arith.sitofp %c0_i32 : i32 to f32
    %44 = vector.shape_cast %42 : vector<1x258xi1> to vector<1x258xi1>
    %45 = vector.broadcast %44 : vector<1x258xi1> to vector<16x258xi1>
    %46 = vector.broadcast %43 : f32 to vector<16x258xf32>
    %47 = arith.select %45, %33, %46 : vector<16x258xi1>, vector<16x258xf32>
    %cst_21 = arith.constant 0.000000e+00 : f32
    %48 = vector.broadcast %cst_21 : f32 to vector<16x256xf32>
    %c0_22 = arith.constant 0 : index
    %c0_23 = arith.constant 0 : index
    %c0_24 = arith.constant 0 : index
    %49 = vector.load %arg6[%c0_22, %c0_23, %c0_24] : memref<3x16x16xf32, #tpu.memory_space<vmem>>, vector<1x16x16xf32>
    %50 = vector.shape_cast %49 : vector<1x16x16xf32> to vector<16x16xf32>
    %51 = vector.extract_strided_slice %47 {offsets = [0, 0], sizes = [16, 256], strides = [1, 1]} : vector<16x258xf32> to vector<16x256xf32>
    %cst_25 = arith.constant dense<0.000000e+00> : vector<16x256xf32>
    %52 = tpu.matmul %50, %51, %cst_25 {dimension_numbers = #tpu.dot_dimension_numbers<[1], [0], [0], [1], [0, 0, 1, 1], [], []>} : vector<16x16xf32>, vector<16x256xf32>, vector<16x256xf32> -> vector<16x256xf32>
    %53 = arith.addf %48, %52 : vector<16x256xf32>
    %c1_26 = arith.constant 1 : index
    %c0_27 = arith.constant 0 : index
    %c0_28 = arith.constant 0 : index
    %54 = vector.load %arg6[%c1_26, %c0_27, %c0_28] : memref<3x16x16xf32, #tpu.memory_space<vmem>>, vector<1x16x16xf32>
    %55 = vector.shape_cast %54 : vector<1x16x16xf32> to vector<16x16xf32>
    %56 = vector.extract_strided_slice %47 {offsets = [0, 1], sizes = [16, 256], strides = [1, 1]} : vector<16x258xf32> to vector<16x256xf32>
    %cst_29 = arith.constant dense<0.000000e+00> : vector<16x256xf32>
    %57 = tpu.matmul %55, %56, %cst_29 {dimension_numbers = #tpu.dot_dimension_numbers<[1], [0], [0], [1], [0, 0, 1, 1], [], []>} : vector<16x16xf32>, vector<16x256xf32>, vector<16x256xf32> -> vector<16x256xf32>
    %58 = arith.addf %53, %57 : vector<16x256xf32>
    %c2_30 = arith.constant 2 : index
    %c0_31 = arith.constant 0 : index
    %c0_32 = arith.constant 0 : index
    %59 = vector.load %arg6[%c2_30, %c0_31, %c0_32] : memref<3x16x16xf32, #tpu.memory_space<vmem>>, vector<1x16x16xf32>
    %60 = vector.shape_cast %59 : vector<1x16x16xf32> to vector<16x16xf32>
    %61 = vector.extract_strided_slice %47 {offsets = [0, 2], sizes = [16, 256], strides = [1, 1]} : vector<16x258xf32> to vector<16x256xf32>
    %cst_33 = arith.constant dense<0.000000e+00> : vector<16x256xf32>
    %62 = tpu.matmul %60, %61, %cst_33 {dimension_numbers = #tpu.dot_dimension_numbers<[1], [0], [0], [1], [0, 0, 1, 1], [], []>} : vector<16x16xf32>, vector<16x256xf32>, vector<16x256xf32> -> vector<16x256xf32>
    %63 = arith.addf %58, %62 : vector<16x256xf32>
    %c0_34 = arith.constant 0 : index
    %c0_35 = arith.constant 0 : index
    %64 = vector.load %arg7[%c0_34, %c0_35] : memref<16x1xf32, #tpu.memory_space<vmem>>, vector<16x1xf32>
    %65 = vector.broadcast %64 : vector<16x1xf32> to vector<16x256xf32>
    %66 = arith.addf %63, %65 : vector<16x256xf32>
    %67 = vector.extract_strided_slice %4 {offsets = [0, 6], sizes = [16, 256], strides = [1, 1]} : vector<16x384xf32> to vector<16x256xf32>
    %68 = arith.addf %66, %67 : vector<16x256xf32>
    %c0_36 = arith.constant 0 : index
    %c0_37 = arith.constant 0 : index
    %c0_38 = arith.constant 0 : index
    %69 = vector.load %arg8[%c0_36, %c0_37, %c0_38] : memref<1x16x256xf32, #tpu.memory_space<vmem>>, vector<1x16x256xf32>
    %70 = vector.shape_cast %69 : vector<1x16x256xf32> to vector<16x256xf32>
    %71 = vector.shape_cast %68 : vector<16x256xf32> to vector<1x16x256xf32>
    tpu.vector_store %arg8[%c0_36, %c0_37, %c0_38], %71 {strides = array<i32>} : memref<1x16x256xf32, #tpu.memory_space<vmem>>, vector<1x16x256xf32>,
    return
  }
  func.func @transform_0(%arg0: i32, %arg1: i32) -> (i32, i32, i32) {
    %c0_i32 = arith.constant 0 : i32
    %c0_i32_0 = arith.constant 0 : i32
    return %arg0, %c0_i32, %arg1 : i32, i32, i32
  }
  func.func @transform_1(%arg0: i32, %arg1: i32) -> (i32, i32, i32) {
    %c1_i32 = arith.constant 1 : i32
    %0 = arith.addi %arg1, %c1_i32 : i32
    %c2_i32 = arith.constant 2 : i32
    %1 = arith.muli %0, %c2_i32 : i32
    %c0_i32 = arith.constant 0 : i32
    %c0_i32_0 = arith.constant 0 : i32
    return %arg0, %c0_i32, %1 : i32, i32, i32
  }
  func.func @transform_2(%arg0: i32, %arg1: i32) -> (i32, i32, i32) {
    %c0_i32 = arith.constant 0 : i32
    %c0_i32_0 = arith.constant 0 : i32
    %c0_i32_1 = arith.constant 0 : i32
    %c0_i32_2 = arith.constant 0 : i32
    return %c0_i32, %c0_i32_0, %c0_i32_1 : i32, i32, i32
  }
  func.func @transform_3(%arg0: i32, %arg1: i32) -> (i32, i32) {
    %c0_i32 = arith.constant 0 : i32
    %c0_i32_0 = arith.constant 0 : i32
    %c0_i32_1 = arith.constant 0 : i32
    return %c0_i32, %c0_i32_0 : i32, i32
  }
  func.func @transform_4(%arg0: i32, %arg1: i32) -> (i32, i32, i32) {
    %c0_i32 = arith.constant 0 : i32
    %c0_i32_0 = arith.constant 0 : i32
    %c0_i32_1 = arith.constant 0 : i32
    %c0_i32_2 = arith.constant 0 : i32
    return %c0_i32, %c0_i32_0, %c0_i32_1 : i32, i32, i32
  }
  func.func @transform_5(%arg0: i32, %arg1: i32) -> (i32, i32) {
    %c0_i32 = arith.constant 0 : i32
    %c0_i32_0 = arith.constant 0 : i32
    %c0_i32_1 = arith.constant 0 : i32
    return %c0_i32, %c0_i32_0 : i32, i32
  }
  func.func @transform_6(%arg0: i32, %arg1: i32) -> (i32, i32, i32) {
    %c0_i32 = arith.constant 0 : i32
    %c0_i32_0 = arith.constant 0 : i32
    return %arg0, %c0_i32, %arg1 : i32, i32, i32
  }
}

module attributes {stable_mosaic.version = 11 : i64} {
  func.func @kernel(%arg0: i32, %arg1: i32, %arg2: memref<1x16x256xf32, #tpu.memory_space<vmem>>, %arg3: memref<1x16x128xf32, #tpu.memory_space<vmem>>, %arg4: memref<1x16x256xf32, #tpu.memory_space<vmem>>, %arg5: memref<3x16x16xf32, #tpu.memory_space<vmem>>, %arg6: memref<16x1xf32, #tpu.memory_space<vmem>>, %arg7: memref<3x16x16xf32, #tpu.memory_space<vmem>>, %arg8: memref<16x1xf32, #tpu.memory_space<vmem>>, %arg9: memref<1x16x256xf32, #tpu.memory_space<vmem>>) attributes {dimension_semantics = [#tpu.dimension_semantics<parallel>, #tpu.dimension_semantics<parallel>], iteration_bounds = array<i64: 2, 1>, scalar_prefetch = 0 : i64, scratch_operands = 0 : i64, tpu.core_type = #tpu.core_type<tc>, window_params = [{transform_indices = @transform_0, window_bounds = array<i64: 1, 16, 256>}, {transform_indices = @transform_1, window_bounds = array<i64: 1, 16, 128>}, {transform_indices = @transform_2, window_bounds = array<i64: 1, 16, 256>}, {pipeline_mode = #tpu.pipeline_mode<synchronous>, transform_indices = @transform_3, window_bounds = array<i64: 3, 16, 16>}, {pipeline_mode = #tpu.pipeline_mode<synchronous>, transform_indices = @transform_4, window_bounds = array<i64: 16, 1>}, {pipeline_mode = #tpu.pipeline_mode<synchronous>, transform_indices = @transform_5, window_bounds = array<i64: 3, 16, 16>}, {pipeline_mode = #tpu.pipeline_mode<synchronous>, transform_indices = @transform_6, window_bounds = array<i64: 16, 1>}, {transform_indices = @transform_7, window_bounds = array<i64: 1, 16, 256>}]} {
    %c0 = arith.constant 0 : index
    %c0_0 = arith.constant 0 : index
    %c0_1 = arith.constant 0 : index
    %0 = vector.load %arg2[%c0, %c0_0, %c0_1] : memref<1x16x256xf32, #tpu.memory_space<vmem>>, vector<1x16x256xf32>
    %1 = vector.shape_cast %0 : vector<1x16x256xf32> to vector<16x256xf32>
    %c0_2 = arith.constant 0 : index
    %c0_3 = arith.constant 0 : index
    %c0_4 = arith.constant 0 : index
    %2 = vector.load %arg3[%c0_2, %c0_3, %c0_4] : memref<1x16x128xf32, #tpu.memory_space<vmem>>, vector<1x16x128xf32>
    %3 = vector.shape_cast %2 : vector<1x16x128xf32> to vector<16x128xf32>
    %4 = tpu.concatenate %1, %3 in 1 : vector<16x256xf32>, vector<16x128xf32> -> vector<16x384xf32>
    %cst = arith.constant 0.000000e+00 : f32
    %5 = vector.broadcast %cst : f32 to vector<16x384xf32>
    %6 = arith.cmpf oge, %4, %5 : vector<16x384xf32>
    %cst_5 = arith.constant 1.000000e-01 : f32
    %7 = vector.broadcast %cst_5 : f32 to vector<16x384xf32>
    %8 = arith.mulf %4, %7 : vector<16x384xf32>
    %9 = arith.select %6, %4, %8 : vector<16x384xi1>, vector<16x384xf32>
    %cst_6 = arith.constant 0.000000e+00 : f32
    %10 = vector.broadcast %cst_6 : f32 to vector<16x258xf32>
    %c0_7 = arith.constant 0 : index
    %c0_8 = arith.constant 0 : index
    %c0_9 = arith.constant 0 : index
    %11 = vector.load %arg5[%c0_7, %c0_8, %c0_9] : memref<3x16x16xf32, #tpu.memory_space<vmem>>, vector<1x16x16xf32>
    %12 = vector.shape_cast %11 : vector<1x16x16xf32> to vector<16x16xf32>
    %13 = vector.extract_strided_slice %9 {offsets = [0, 0], sizes = [16, 258], strides = [1, 1]} : vector<16x384xf32> to vector<16x258xf32>
    %cst_10 = arith.constant dense<0.000000e+00> : vector<16x258xf32>
    %14 = tpu.matmul %12, %13, %cst_10 {dimension_numbers = #tpu.dot_dimension_numbers<[1], [0], [0], [1], [0, 0, 1, 1], [], []>} : vector<16x16xf32>, vector<16x258xf32>, vector<16x258xf32> -> vector<16x258xf32>
    %15 = arith.addf %10, %14 : vector<16x258xf32>
    %c1 = arith.constant 1 : index
    %c0_11 = arith.constant 0 : index
    %c0_12 = arith.constant 0 : index
    %16 = vector.load %arg5[%c1, %c0_11, %c0_12] : memref<3x16x16xf32, #tpu.memory_space<vmem>>, vector<1x16x16xf32>
    %17 = vector.shape_cast %16 : vector<1x16x16xf32> to vector<16x16xf32>
    %18 = vector.extract_strided_slice %9 {offsets = [0, 5], sizes = [16, 258], strides = [1, 1]} : vector<16x384xf32> to vector<16x258xf32>
    %cst_13 = arith.constant dense<0.000000e+00> : vector<16x258xf32>
    %19 = tpu.matmul %17, %18, %cst_13 {dimension_numbers = #tpu.dot_dimension_numbers<[1], [0], [0], [1], [0, 0, 1, 1], [], []>} : vector<16x16xf32>, vector<16x258xf32>, vector<16x258xf32> -> vector<16x258xf32>
    %20 = arith.addf %15, %19 : vector<16x258xf32>
    %c2 = arith.constant 2 : index
    %c0_14 = arith.constant 0 : index
    %c0_15 = arith.constant 0 : index
    %21 = vector.load %arg5[%c2, %c0_14, %c0_15] : memref<3x16x16xf32, #tpu.memory_space<vmem>>, vector<1x16x16xf32>
    %22 = vector.shape_cast %21 : vector<1x16x16xf32> to vector<16x16xf32>
    %23 = vector.extract_strided_slice %9 {offsets = [0, 10], sizes = [16, 258], strides = [1, 1]} : vector<16x384xf32> to vector<16x258xf32>
    %cst_16 = arith.constant dense<0.000000e+00> : vector<16x258xf32>
    %24 = tpu.matmul %22, %23, %cst_16 {dimension_numbers = #tpu.dot_dimension_numbers<[1], [0], [0], [1], [0, 0, 1, 1], [], []>} : vector<16x16xf32>, vector<16x258xf32>, vector<16x258xf32> -> vector<16x258xf32>
    %25 = arith.addf %20, %24 : vector<16x258xf32>
    %c0_17 = arith.constant 0 : index
    %c0_18 = arith.constant 0 : index
    %26 = vector.load %arg6[%c0_17, %c0_18] : memref<16x1xf32, #tpu.memory_space<vmem>>, vector<16x1xf32>
    %27 = vector.broadcast %26 : vector<16x1xf32> to vector<16x258xf32>
    %28 = arith.addf %25, %27 : vector<16x258xf32>
    %cst_19 = arith.constant 0.000000e+00 : f32
    %29 = vector.broadcast %cst_19 : f32 to vector<16x258xf32>
    %30 = arith.cmpf oge, %28, %29 : vector<16x258xf32>
    %cst_20 = arith.constant 1.000000e-01 : f32
    %31 = vector.broadcast %cst_20 : f32 to vector<16x258xf32>
    %32 = arith.mulf %28, %31 : vector<16x258xf32>
    %33 = arith.select %30, %28, %32 : vector<16x258xi1>, vector<16x258xf32>
    %34 = tpu.iota {dimensions = array<i32: 1>} : vector<1x258xi32>
    %c256_i32 = arith.constant 256 : i32
    %35 = arith.muli %arg1, %c256_i32 : i32
    %36 = vector.broadcast %35 : i32 to vector<1x258xi32>
    %37 = arith.addi %34, %36 : vector<1x258xi32>
    %c1_i32 = arith.constant 1 : i32
    %38 = vector.broadcast %c1_i32 : i32 to vector<1x258xi32>
    %39 = arith.cmpi sge, %37, %38 : vector<1x258xi32>
    %c17_i32 = arith.constant 17 : i32
    %40 = vector.broadcast %c17_i32 : i32 to vector<1x258xi32>
    %41 = arith.cmpi slt, %37, %40 : vector<1x258xi32>
    %42 = arith.andi %39, %41 : vector<1x258xi1>
    %c0_i32 = arith.constant 0 : i32
    %43 = arith.sitofp %c0_i32 : i32 to f32
    %44 = vector.shape_cast %42 : vector<1x258xi1> to vector<1x258xi1>
    %45 = vector.broadcast %44 : vector<1x258xi1> to vector<16x258xi1>
    %46 = vector.broadcast %43 : f32 to vector<16x258xf32>
    %47 = arith.select %45, %33, %46 : vector<16x258xi1>, vector<16x258xf32>
    %cst_21 = arith.constant 0.000000e+00 : f32
    %48 = vector.broadcast %cst_21 : f32 to vector<16x256xf32>
    %c0_22 = arith.constant 0 : index
    %c0_23 = arith.constant 0 : index
    %c0_24 = arith.constant 0 : index
    %49 = vector.load %arg7[%c0_22, %c0_23, %c0_24] : memref<3x16x16xf32, #tpu.memory_space<vmem>>, vector<1x16x16xf32>
    %50 = vector.shape_cast %49 : vector<1x16x16xf32> to vector<16x16xf32>
    %51 = vector.extract_strided_slice %47 {offsets = [0, 0], sizes = [16, 256], strides = [1, 1]} : vector<16x258xf32> to vector<16x256xf32>
    %cst_25 = arith.constant dense<0.000000e+00> : vector<16x256xf32>
    %52 = tpu.matmul %50, %51, %cst_25 {dimension_numbers = #tpu.dot_dimension_numbers<[1], [0], [0], [1], [0, 0, 1, 1], [], []>} : vector<16x16xf32>, vector<16x256xf32>, vector<16x256xf32> -> vector<16x256xf32>
    %53 = arith.addf %48, %52 : vector<16x256xf32>
    %c1_26 = arith.constant 1 : index
    %c0_27 = arith.constant 0 : index
    %c0_28 = arith.constant 0 : index
    %54 = vector.load %arg7[%c1_26, %c0_27, %c0_28] : memref<3x16x16xf32, #tpu.memory_space<vmem>>, vector<1x16x16xf32>
    %55 = vector.shape_cast %54 : vector<1x16x16xf32> to vector<16x16xf32>
    %56 = vector.extract_strided_slice %47 {offsets = [0, 1], sizes = [16, 256], strides = [1, 1]} : vector<16x258xf32> to vector<16x256xf32>
    %cst_29 = arith.constant dense<0.000000e+00> : vector<16x256xf32>
    %57 = tpu.matmul %55, %56, %cst_29 {dimension_numbers = #tpu.dot_dimension_numbers<[1], [0], [0], [1], [0, 0, 1, 1], [], []>} : vector<16x16xf32>, vector<16x256xf32>, vector<16x256xf32> -> vector<16x256xf32>
    %58 = arith.addf %53, %57 : vector<16x256xf32>
    %c2_30 = arith.constant 2 : index
    %c0_31 = arith.constant 0 : index
    %c0_32 = arith.constant 0 : index
    %59 = vector.load %arg7[%c2_30, %c0_31, %c0_32] : memref<3x16x16xf32, #tpu.memory_space<vmem>>, vector<1x16x16xf32>
    %60 = vector.shape_cast %59 : vector<1x16x16xf32> to vector<16x16xf32>
    %61 = vector.extract_strided_slice %47 {offsets = [0, 2], sizes = [16, 256], strides = [1, 1]} : vector<16x258xf32> to vector<16x256xf32>
    %cst_33 = arith.constant dense<0.000000e+00> : vector<16x256xf32>
    %62 = tpu.matmul %60, %61, %cst_33 {dimension_numbers = #tpu.dot_dimension_numbers<[1], [0], [0], [1], [0, 0, 1, 1], [], []>} : vector<16x16xf32>, vector<16x256xf32>, vector<16x256xf32> -> vector<16x256xf32>
    %63 = arith.addf %58, %62 : vector<16x256xf32>
    %c0_34 = arith.constant 0 : index
    %c0_35 = arith.constant 0 : index
    %64 = vector.load %arg8[%c0_34, %c0_35] : memref<16x1xf32, #tpu.memory_space<vmem>>, vector<16x1xf32>
    %65 = vector.broadcast %64 : vector<16x1xf32> to vector<16x256xf32>
    %66 = arith.addf %63, %65 : vector<16x256xf32>
    %67 = vector.extract_strided_slice %4 {offsets = [0, 6], sizes = [16, 256], strides = [1, 1]} : vector<16x384xf32> to vector<16x256xf32>
    %68 = arith.addf %66, %67 : vector<16x256xf32>
    %c0_36 = arith.constant 0 : index
    %c0_37 = arith.constant 0 : index
    %c0_38 = arith.constant 0 : index
    %69 = vector.load %arg4[%c0_36, %c0_37, %c0_38] : memref<1x16x256xf32, #tpu.memory_space<vmem>>, vector<1x16x256xf32>
    %70 = vector.shape_cast %69 : vector<1x16x256xf32> to vector<16x256xf32>
    %71 = arith.addf %68, %70 : vector<16x256xf32>
    %c0_39 = arith.constant 0 : index
    %c0_40 = arith.constant 0 : index
    %c0_41 = arith.constant 0 : index
    %72 = vector.load %arg9[%c0_39, %c0_40, %c0_41] : memref<1x16x256xf32, #tpu.memory_space<vmem>>, vector<1x16x256xf32>
    %73 = vector.shape_cast %72 : vector<1x16x256xf32> to vector<16x256xf32>
    %74 = vector.shape_cast %71 : vector<16x256xf32> to vector<1x16x256xf32>
    tpu.vector_store %arg9[%c0_39, %c0_40, %c0_41], %74 {strides = array<i32>} : memref<1x16x256xf32, #tpu.memory_space<vmem>>, vector<1x16x256xf32>,
    return
  }
  func.func @transform_0(%arg0: i32, %arg1: i32) -> (i32, i32, i32) {
    %c0_i32 = arith.constant 0 : i32
    %c0_i32_0 = arith.constant 0 : i32
    return %arg0, %c0_i32, %arg1 : i32, i32, i32
  }
  func.func @transform_1(%arg0: i32, %arg1: i32) -> (i32, i32, i32) {
    %c1_i32 = arith.constant 1 : i32
    %0 = arith.addi %arg1, %c1_i32 : i32
    %c2_i32 = arith.constant 2 : i32
    %1 = arith.muli %0, %c2_i32 : i32
    %c0_i32 = arith.constant 0 : i32
    %c0_i32_0 = arith.constant 0 : i32
    return %arg0, %c0_i32, %1 : i32, i32, i32
  }
  func.func @transform_2(%arg0: i32, %arg1: i32) -> (i32, i32, i32) {
    %c0_i32 = arith.constant 0 : i32
    %c0_i32_0 = arith.constant 0 : i32
    return %arg0, %c0_i32, %arg1 : i32, i32, i32
  }
  func.func @transform_3(%arg0: i32, %arg1: i32) -> (i32, i32, i32) {
    %c0_i32 = arith.constant 0 : i32
    %c0_i32_0 = arith.constant 0 : i32
    %c0_i32_1 = arith.constant 0 : i32
    %c0_i32_2 = arith.constant 0 : i32
    return %c0_i32, %c0_i32_0, %c0_i32_1 : i32, i32, i32
  }
  func.func @transform_4(%arg0: i32, %arg1: i32) -> (i32, i32) {
    %c0_i32 = arith.constant 0 : i32
    %c0_i32_0 = arith.constant 0 : i32
    %c0_i32_1 = arith.constant 0 : i32
    return %c0_i32, %c0_i32_0 : i32, i32
  }
  func.func @transform_5(%arg0: i32, %arg1: i32) -> (i32, i32, i32) {
    %c0_i32 = arith.constant 0 : i32
    %c0_i32_0 = arith.constant 0 : i32
    %c0_i32_1 = arith.constant 0 : i32
    %c0_i32_2 = arith.constant 0 : i32
    return %c0_i32, %c0_i32_0, %c0_i32_1 : i32, i32, i32
  }
  func.func @transform_6(%arg0: i32, %arg1: i32) -> (i32, i32) {
    %c0_i32 = arith.constant 0 : i32
    %c0_i32_0 = arith.constant 0 : i32
    %c0_i32_1 = arith.constant 0 : i32
    return %c0_i32, %c0_i32_0 : i32, i32
  }
  func.func @transform_7(%arg0: i32, %arg1: i32) -> (i32, i32, i32) {
    %c0_i32 = arith.constant 0 : i32
    %c0_i32_0 = arith.constant 0 : i32
    return %arg0, %c0_i32, %arg1 : i32, i32, i32
  }
}

module attributes {stable_mosaic.version = 11 : i64} {
  func.func @kernel(%arg0: i32, %arg1: i32, %arg2: memref<1x16x256xf32, #tpu.memory_space<vmem>>, %arg3: memref<1x16x128xf32, #tpu.memory_space<vmem>>, %arg4: memref<3x16x16xf32, #tpu.memory_space<vmem>>, %arg5: memref<16x1xf32, #tpu.memory_space<vmem>>, %arg6: memref<1x16x256xf32, #tpu.memory_space<vmem>>) attributes {dimension_semantics = [#tpu.dimension_semantics<parallel>, #tpu.dimension_semantics<parallel>], iteration_bounds = array<i64: 2, 1>, scalar_prefetch = 0 : i64, scratch_operands = 0 : i64, tpu.core_type = #tpu.core_type<tc>, window_params = [{transform_indices = @transform_0, window_bounds = array<i64: 1, 16, 256>}, {transform_indices = @transform_1, window_bounds = array<i64: 1, 16, 128>}, {pipeline_mode = #tpu.pipeline_mode<synchronous>, transform_indices = @transform_2, window_bounds = array<i64: 3, 16, 16>}, {pipeline_mode = #tpu.pipeline_mode<synchronous>, transform_indices = @transform_3, window_bounds = array<i64: 16, 1>}, {transform_indices = @transform_4, window_bounds = array<i64: 1, 16, 256>}]} {
    %c0 = arith.constant 0 : index
    %c0_0 = arith.constant 0 : index
    %c0_1 = arith.constant 0 : index
    %0 = vector.load %arg2[%c0, %c0_0, %c0_1] : memref<1x16x256xf32, #tpu.memory_space<vmem>>, vector<1x16x256xf32>
    %1 = vector.shape_cast %0 : vector<1x16x256xf32> to vector<16x256xf32>
    %c0_2 = arith.constant 0 : index
    %c0_3 = arith.constant 0 : index
    %c0_4 = arith.constant 0 : index
    %2 = vector.load %arg3[%c0_2, %c0_3, %c0_4] : memref<1x16x128xf32, #tpu.memory_space<vmem>>, vector<1x16x128xf32>
    %3 = vector.shape_cast %2 : vector<1x16x128xf32> to vector<16x128xf32>
    %cst = arith.constant 0.000000e+00 : f32
    %4 = vector.broadcast %cst : f32 to vector<16x256xf32>
    %5 = arith.cmpf oge, %1, %4 : vector<16x256xf32>
    %cst_5 = arith.constant 1.000000e-01 : f32
    %6 = vector.broadcast %cst_5 : f32 to vector<16x256xf32>
    %7 = arith.mulf %1, %6 : vector<16x256xf32>
    %8 = arith.select %5, %1, %7 : vector<16x256xi1>, vector<16x256xf32>
    %cst_6 = arith.constant 0.000000e+00 : f32
    %9 = vector.broadcast %cst_6 : f32 to vector<16x128xf32>
    %10 = arith.cmpf oge, %3, %9 : vector<16x128xf32>
    %cst_7 = arith.constant 1.000000e-01 : f32
    %11 = vector.broadcast %cst_7 : f32 to vector<16x128xf32>
    %12 = arith.mulf %3, %11 : vector<16x128xf32>
    %13 = arith.select %10, %3, %12 : vector<16x128xi1>, vector<16x128xf32>
    %14 = vector.extract_strided_slice %8 {offsets = [0, 128], sizes = [16, 128], strides = [1, 1]} : vector<16x256xf32> to vector<16x128xf32>
    %15 = tpu.concatenate %14, %13 in 1 : vector<16x128xf32>, vector<16x128xf32> -> vector<16x256xf32>
    %cst_8 = arith.constant 0.000000e+00 : f32
    %16 = vector.broadcast %cst_8 : f32 to vector<16x128xf32>
    %cst_9 = arith.constant 0.000000e+00 : f32
    %17 = vector.broadcast %cst_9 : f32 to vector<16x128xf32>
    %c0_10 = arith.constant 0 : index
    %c0_11 = arith.constant 0 : index
    %c0_12 = arith.constant 0 : index
    %18 = vector.load %arg4[%c0_10, %c0_11, %c0_12] : memref<3x16x16xf32, #tpu.memory_space<vmem>>, vector<1x16x16xf32>
    %19 = vector.shape_cast %18 : vector<1x16x16xf32> to vector<16x16xf32>
    %20 = vector.extract_strided_slice %8 {offsets = [0, 0], sizes = [16, 128], strides = [1, 1]} : vector<16x256xf32> to vector<16x128xf32>
    %cst_13 = arith.constant dense<0.000000e+00> : vector<16x128xf32>
    %21 = tpu.matmul %19, %20, %cst_13 {dimension_numbers = #tpu.dot_dimension_numbers<[1], [0], [0], [1], [0, 0, 1, 1], [], []>} : vector<16x16xf32>, vector<16x128xf32>, vector<16x128xf32> -> vector<16x128xf32>
    %22 = arith.addf %16, %21 : vector<16x128xf32>
    %23 = vector.extract_strided_slice %15 {offsets = [0, 0], sizes = [16, 128], strides = [1, 1]} : vector<16x256xf32> to vector<16x128xf32>
    %cst_14 = arith.constant dense<0.000000e+00> : vector<16x128xf32>
    %24 = tpu.matmul %19, %23, %cst_14 {dimension_numbers = #tpu.dot_dimension_numbers<[1], [0], [0], [1], [0, 0, 1, 1], [], []>} : vector<16x16xf32>, vector<16x128xf32>, vector<16x128xf32> -> vector<16x128xf32>
    %25 = arith.addf %17, %24 : vector<16x128xf32>
    %c1 = arith.constant 1 : index
    %c0_15 = arith.constant 0 : index
    %c0_16 = arith.constant 0 : index
    %26 = vector.load %arg4[%c1, %c0_15, %c0_16] : memref<3x16x16xf32, #tpu.memory_space<vmem>>, vector<1x16x16xf32>
    %27 = vector.shape_cast %26 : vector<1x16x16xf32> to vector<16x16xf32>
    %28 = vector.extract_strided_slice %8 {offsets = [0, 1], sizes = [16, 128], strides = [1, 1]} : vector<16x256xf32> to vector<16x128xf32>
    %cst_17 = arith.constant dense<0.000000e+00> : vector<16x128xf32>
    %29 = tpu.matmul %27, %28, %cst_17 {dimension_numbers = #tpu.dot_dimension_numbers<[1], [0], [0], [1], [0, 0, 1, 1], [], []>} : vector<16x16xf32>, vector<16x128xf32>, vector<16x128xf32> -> vector<16x128xf32>
    %30 = arith.addf %22, %29 : vector<16x128xf32>
    %31 = vector.extract_strided_slice %15 {offsets = [0, 1], sizes = [16, 128], strides = [1, 1]} : vector<16x256xf32> to vector<16x128xf32>
    %cst_18 = arith.constant dense<0.000000e+00> : vector<16x128xf32>
    %32 = tpu.matmul %27, %31, %cst_18 {dimension_numbers = #tpu.dot_dimension_numbers<[1], [0], [0], [1], [0, 0, 1, 1], [], []>} : vector<16x16xf32>, vector<16x128xf32>, vector<16x128xf32> -> vector<16x128xf32>
    %33 = arith.addf %25, %32 : vector<16x128xf32>
    %c2 = arith.constant 2 : index
    %c0_19 = arith.constant 0 : index
    %c0_20 = arith.constant 0 : index
    %34 = vector.load %arg4[%c2, %c0_19, %c0_20] : memref<3x16x16xf32, #tpu.memory_space<vmem>>, vector<1x16x16xf32>
    %35 = vector.shape_cast %34 : vector<1x16x16xf32> to vector<16x16xf32>
    %36 = vector.extract_strided_slice %8 {offsets = [0, 2], sizes = [16, 128], strides = [1, 1]} : vector<16x256xf32> to vector<16x128xf32>
    %cst_21 = arith.constant dense<0.000000e+00> : vector<16x128xf32>
    %37 = tpu.matmul %35, %36, %cst_21 {dimension_numbers = #tpu.dot_dimension_numbers<[1], [0], [0], [1], [0, 0, 1, 1], [], []>} : vector<16x16xf32>, vector<16x128xf32>, vector<16x128xf32> -> vector<16x128xf32>
    %38 = arith.addf %30, %37 : vector<16x128xf32>
    %39 = vector.extract_strided_slice %15 {offsets = [0, 2], sizes = [16, 128], strides = [1, 1]} : vector<16x256xf32> to vector<16x128xf32>
    %cst_22 = arith.constant dense<0.000000e+00> : vector<16x128xf32>
    %40 = tpu.matmul %35, %39, %cst_22 {dimension_numbers = #tpu.dot_dimension_numbers<[1], [0], [0], [1], [0, 0, 1, 1], [], []>} : vector<16x16xf32>, vector<16x128xf32>, vector<16x128xf32> -> vector<16x128xf32>
    %41 = arith.addf %33, %40 : vector<16x128xf32>
    %c0_23 = arith.constant 0 : index
    %c0_24 = arith.constant 0 : index
    %42 = vector.load %arg5[%c0_23, %c0_24] : memref<16x1xf32, #tpu.memory_space<vmem>>, vector<16x1xf32>
    %43 = vector.broadcast %42 : vector<16x1xf32> to vector<16x128xf32>
    %44 = arith.addf %38, %43 : vector<16x128xf32>
    %c0_25 = arith.constant 0 : index
    %c0_26 = arith.constant 0 : index
    %45 = vector.load %arg5[%c0_25, %c0_26] : memref<16x1xf32, #tpu.memory_space<vmem>>, vector<16x1xf32>
    %46 = vector.broadcast %45 : vector<16x1xf32> to vector<16x128xf32>
    %47 = arith.addf %41, %46 : vector<16x128xf32>
    %c0_27 = arith.constant 0 : index
    %c0_28 = arith.constant 0 : index
    %c0_29 = arith.constant 0 : index
    %48 = vector.load %arg6[%c0_27, %c0_28, %c0_29] : memref<1x16x256xf32, #tpu.memory_space<vmem>>, vector<1x16x128xf32>
    %49 = vector.shape_cast %48 : vector<1x16x128xf32> to vector<16x128xf32>
    %50 = vector.shape_cast %44 : vector<16x128xf32> to vector<1x16x128xf32>
    tpu.vector_store %arg6[%c0_27, %c0_28, %c0_29], %50 {strides = array<i32>} : memref<1x16x256xf32, #tpu.memory_space<vmem>>, vector<1x16x128xf32>,
    %c0_30 = arith.constant 0 : index
    %c0_31 = arith.constant 0 : index
    %c128 = arith.constant 128 : index
    %51 = vector.load %arg6[%c0_30, %c0_31, %c128] : memref<1x16x256xf32, #tpu.memory_space<vmem>>, vector<1x16x128xf32>
    %52 = vector.shape_cast %51 : vector<1x16x128xf32> to vector<16x128xf32>
    %53 = vector.shape_cast %47 : vector<16x128xf32> to vector<1x16x128xf32>
    tpu.vector_store %arg6[%c0_30, %c0_31, %c128], %53 {strides = array<i32>} : memref<1x16x256xf32, #tpu.memory_space<vmem>>, vector<1x16x128xf32>,
    return
  }
  func.func @transform_0(%arg0: i32, %arg1: i32) -> (i32, i32, i32) {
    %c0_i32 = arith.constant 0 : i32
    %c0_i32_0 = arith.constant 0 : i32
    return %arg0, %c0_i32, %arg1 : i32, i32, i32
  }
  func.func @transform_1(%arg0: i32, %arg1: i32) -> (i32, i32, i32) {
    %c1_i32 = arith.constant 1 : i32
    %0 = arith.addi %arg1, %c1_i32 : i32
    %c2_i32 = arith.constant 2 : i32
    %1 = arith.muli %0, %c2_i32 : i32
    %c0_i32 = arith.constant 0 : i32
    %c0_i32_0 = arith.constant 0 : i32
    return %arg0, %c0_i32, %1 : i32, i32, i32
  }
  func.func @transform_2(%arg0: i32, %arg1: i32) -> (i32, i32, i32) {
    %c0_i32 = arith.constant 0 : i32
    %c0_i32_0 = arith.constant 0 : i32
    %c0_i32_1 = arith.constant 0 : i32
    %c0_i32_2 = arith.constant 0 : i32
    return %c0_i32, %c0_i32_0, %c0_i32_1 : i32, i32, i32
  }
  func.func @transform_3(%arg0: i32, %arg1: i32) -> (i32, i32) {
    %c0_i32 = arith.constant 0 : i32
    %c0_i32_0 = arith.constant 0 : i32
    %c0_i32_1 = arith.constant 0 : i32
    return %c0_i32, %c0_i32_0 : i32, i32
  }
  func.func @transform_4(%arg0: i32, %arg1: i32) -> (i32, i32, i32) {
    %c0_i32 = arith.constant 0 : i32
    %c0_i32_0 = arith.constant 0 : i32
    return %arg0, %c0_i32, %arg1 : i32, i32, i32
  }
}

module attributes {stable_mosaic.version = 11 : i64} {
  func.func @kernel(%arg0: i32, %arg1: i32, %arg2: memref<1x8x256xf32, #tpu.memory_space<vmem>>, %arg3: memref<1x8x128xf32, #tpu.memory_space<vmem>>, %arg4: memref<3x8x8xf32, #tpu.memory_space<vmem>>, %arg5: memref<8x1xf32, #tpu.memory_space<vmem>>, %arg6: memref<3x8x8xf32, #tpu.memory_space<vmem>>, %arg7: memref<8x1xf32, #tpu.memory_space<vmem>>, %arg8: memref<1x8x256xf32, #tpu.memory_space<vmem>>) attributes {dimension_semantics = [#tpu.dimension_semantics<parallel>, #tpu.dimension_semantics<parallel>], iteration_bounds = array<i64: 2, 1>, scalar_prefetch = 0 : i64, scratch_operands = 0 : i64, tpu.core_type = #tpu.core_type<tc>, window_params = [{transform_indices = @transform_0, window_bounds = array<i64: 1, 8, 256>}, {transform_indices = @transform_1, window_bounds = array<i64: 1, 8, 128>}, {pipeline_mode = #tpu.pipeline_mode<synchronous>, transform_indices = @transform_2, window_bounds = array<i64: 3, 8, 8>}, {pipeline_mode = #tpu.pipeline_mode<synchronous>, transform_indices = @transform_3, window_bounds = array<i64: 8, 1>}, {pipeline_mode = #tpu.pipeline_mode<synchronous>, transform_indices = @transform_4, window_bounds = array<i64: 3, 8, 8>}, {pipeline_mode = #tpu.pipeline_mode<synchronous>, transform_indices = @transform_5, window_bounds = array<i64: 8, 1>}, {transform_indices = @transform_6, window_bounds = array<i64: 1, 8, 256>}]} {
    %c0 = arith.constant 0 : index
    %c0_0 = arith.constant 0 : index
    %c0_1 = arith.constant 0 : index
    %0 = vector.load %arg2[%c0, %c0_0, %c0_1] : memref<1x8x256xf32, #tpu.memory_space<vmem>>, vector<1x8x256xf32>
    %1 = vector.shape_cast %0 : vector<1x8x256xf32> to vector<8x256xf32>
    %c0_2 = arith.constant 0 : index
    %c0_3 = arith.constant 0 : index
    %c0_4 = arith.constant 0 : index
    %2 = vector.load %arg3[%c0_2, %c0_3, %c0_4] : memref<1x8x128xf32, #tpu.memory_space<vmem>>, vector<1x8x128xf32>
    %3 = vector.shape_cast %2 : vector<1x8x128xf32> to vector<8x128xf32>
    %4 = tpu.concatenate %1, %3 in 1 : vector<8x256xf32>, vector<8x128xf32> -> vector<8x384xf32>
    %cst = arith.constant 0.000000e+00 : f32
    %5 = vector.broadcast %cst : f32 to vector<8x384xf32>
    %6 = arith.cmpf oge, %4, %5 : vector<8x384xf32>
    %cst_5 = arith.constant 1.000000e-01 : f32
    %7 = vector.broadcast %cst_5 : f32 to vector<8x384xf32>
    %8 = arith.mulf %4, %7 : vector<8x384xf32>
    %9 = arith.select %6, %4, %8 : vector<8x384xi1>, vector<8x384xf32>
    %cst_6 = arith.constant 0.000000e+00 : f32
    %10 = vector.broadcast %cst_6 : f32 to vector<8x258xf32>
    %c0_7 = arith.constant 0 : index
    %c0_8 = arith.constant 0 : index
    %c0_9 = arith.constant 0 : index
    %11 = vector.load %arg4[%c0_7, %c0_8, %c0_9] : memref<3x8x8xf32, #tpu.memory_space<vmem>>, vector<1x8x8xf32>
    %12 = vector.shape_cast %11 : vector<1x8x8xf32> to vector<8x8xf32>
    %13 = vector.extract_strided_slice %9 {offsets = [0, 0], sizes = [8, 258], strides = [1, 1]} : vector<8x384xf32> to vector<8x258xf32>
    %cst_10 = arith.constant dense<0.000000e+00> : vector<8x258xf32>
    %14 = tpu.matmul %12, %13, %cst_10 {dimension_numbers = #tpu.dot_dimension_numbers<[1], [0], [0], [1], [0, 0, 1, 1], [], []>} : vector<8x8xf32>, vector<8x258xf32>, vector<8x258xf32> -> vector<8x258xf32>
    %15 = arith.addf %10, %14 : vector<8x258xf32>
    %c1 = arith.constant 1 : index
    %c0_11 = arith.constant 0 : index
    %c0_12 = arith.constant 0 : index
    %16 = vector.load %arg4[%c1, %c0_11, %c0_12] : memref<3x8x8xf32, #tpu.memory_space<vmem>>, vector<1x8x8xf32>
    %17 = vector.shape_cast %16 : vector<1x8x8xf32> to vector<8x8xf32>
    %18 = vector.extract_strided_slice %9 {offsets = [0, 1], sizes = [8, 258], strides = [1, 1]} : vector<8x384xf32> to vector<8x258xf32>
    %cst_13 = arith.constant dense<0.000000e+00> : vector<8x258xf32>
    %19 = tpu.matmul %17, %18, %cst_13 {dimension_numbers = #tpu.dot_dimension_numbers<[1], [0], [0], [1], [0, 0, 1, 1], [], []>} : vector<8x8xf32>, vector<8x258xf32>, vector<8x258xf32> -> vector<8x258xf32>
    %20 = arith.addf %15, %19 : vector<8x258xf32>
    %c2 = arith.constant 2 : index
    %c0_14 = arith.constant 0 : index
    %c0_15 = arith.constant 0 : index
    %21 = vector.load %arg4[%c2, %c0_14, %c0_15] : memref<3x8x8xf32, #tpu.memory_space<vmem>>, vector<1x8x8xf32>
    %22 = vector.shape_cast %21 : vector<1x8x8xf32> to vector<8x8xf32>
    %23 = vector.extract_strided_slice %9 {offsets = [0, 2], sizes = [8, 258], strides = [1, 1]} : vector<8x384xf32> to vector<8x258xf32>
    %cst_16 = arith.constant dense<0.000000e+00> : vector<8x258xf32>
    %24 = tpu.matmul %22, %23, %cst_16 {dimension_numbers = #tpu.dot_dimension_numbers<[1], [0], [0], [1], [0, 0, 1, 1], [], []>} : vector<8x8xf32>, vector<8x258xf32>, vector<8x258xf32> -> vector<8x258xf32>
    %25 = arith.addf %20, %24 : vector<8x258xf32>
    %c0_17 = arith.constant 0 : index
    %c0_18 = arith.constant 0 : index
    %26 = vector.load %arg5[%c0_17, %c0_18] : memref<8x1xf32, #tpu.memory_space<vmem>>, vector<8x1xf32>
    %27 = vector.broadcast %26 : vector<8x1xf32> to vector<8x258xf32>
    %28 = arith.addf %25, %27 : vector<8x258xf32>
    %cst_19 = arith.constant 0.000000e+00 : f32
    %29 = vector.broadcast %cst_19 : f32 to vector<8x258xf32>
    %30 = arith.cmpf oge, %28, %29 : vector<8x258xf32>
    %cst_20 = arith.constant 1.000000e-01 : f32
    %31 = vector.broadcast %cst_20 : f32 to vector<8x258xf32>
    %32 = arith.mulf %28, %31 : vector<8x258xf32>
    %33 = arith.select %30, %28, %32 : vector<8x258xi1>, vector<8x258xf32>
    %34 = tpu.iota {dimensions = array<i32: 1>} : vector<1x258xi32>
    %c256_i32 = arith.constant 256 : i32
    %35 = arith.muli %arg1, %c256_i32 : i32
    %36 = vector.broadcast %35 : i32 to vector<1x258xi32>
    %37 = arith.addi %34, %36 : vector<1x258xi32>
    %c1_i32 = arith.constant 1 : i32
    %38 = vector.broadcast %c1_i32 : i32 to vector<1x258xi32>
    %39 = arith.cmpi sge, %37, %38 : vector<1x258xi32>
    %c33_i32 = arith.constant 33 : i32
    %40 = vector.broadcast %c33_i32 : i32 to vector<1x258xi32>
    %41 = arith.cmpi slt, %37, %40 : vector<1x258xi32>
    %42 = arith.andi %39, %41 : vector<1x258xi1>
    %c0_i32 = arith.constant 0 : i32
    %43 = arith.sitofp %c0_i32 : i32 to f32
    %44 = vector.shape_cast %42 : vector<1x258xi1> to vector<1x258xi1>
    %45 = vector.broadcast %44 : vector<1x258xi1> to vector<8x258xi1>
    %46 = vector.broadcast %43 : f32 to vector<8x258xf32>
    %47 = arith.select %45, %33, %46 : vector<8x258xi1>, vector<8x258xf32>
    %cst_21 = arith.constant 0.000000e+00 : f32
    %48 = vector.broadcast %cst_21 : f32 to vector<8x256xf32>
    %c0_22 = arith.constant 0 : index
    %c0_23 = arith.constant 0 : index
    %c0_24 = arith.constant 0 : index
    %49 = vector.load %arg6[%c0_22, %c0_23, %c0_24] : memref<3x8x8xf32, #tpu.memory_space<vmem>>, vector<1x8x8xf32>
    %50 = vector.shape_cast %49 : vector<1x8x8xf32> to vector<8x8xf32>
    %51 = vector.extract_strided_slice %47 {offsets = [0, 0], sizes = [8, 256], strides = [1, 1]} : vector<8x258xf32> to vector<8x256xf32>
    %cst_25 = arith.constant dense<0.000000e+00> : vector<8x256xf32>
    %52 = tpu.matmul %50, %51, %cst_25 {dimension_numbers = #tpu.dot_dimension_numbers<[1], [0], [0], [1], [0, 0, 1, 1], [], []>} : vector<8x8xf32>, vector<8x256xf32>, vector<8x256xf32> -> vector<8x256xf32>
    %53 = arith.addf %48, %52 : vector<8x256xf32>
    %c1_26 = arith.constant 1 : index
    %c0_27 = arith.constant 0 : index
    %c0_28 = arith.constant 0 : index
    %54 = vector.load %arg6[%c1_26, %c0_27, %c0_28] : memref<3x8x8xf32, #tpu.memory_space<vmem>>, vector<1x8x8xf32>
    %55 = vector.shape_cast %54 : vector<1x8x8xf32> to vector<8x8xf32>
    %56 = vector.extract_strided_slice %47 {offsets = [0, 1], sizes = [8, 256], strides = [1, 1]} : vector<8x258xf32> to vector<8x256xf32>
    %cst_29 = arith.constant dense<0.000000e+00> : vector<8x256xf32>
    %57 = tpu.matmul %55, %56, %cst_29 {dimension_numbers = #tpu.dot_dimension_numbers<[1], [0], [0], [1], [0, 0, 1, 1], [], []>} : vector<8x8xf32>, vector<8x256xf32>, vector<8x256xf32> -> vector<8x256xf32>
    %58 = arith.addf %53, %57 : vector<8x256xf32>
    %c2_30 = arith.constant 2 : index
    %c0_31 = arith.constant 0 : index
    %c0_32 = arith.constant 0 : index
    %59 = vector.load %arg6[%c2_30, %c0_31, %c0_32] : memref<3x8x8xf32, #tpu.memory_space<vmem>>, vector<1x8x8xf32>
    %60 = vector.shape_cast %59 : vector<1x8x8xf32> to vector<8x8xf32>
    %61 = vector.extract_strided_slice %47 {offsets = [0, 2], sizes = [8, 256], strides = [1, 1]} : vector<8x258xf32> to vector<8x256xf32>
    %cst_33 = arith.constant dense<0.000000e+00> : vector<8x256xf32>
    %62 = tpu.matmul %60, %61, %cst_33 {dimension_numbers = #tpu.dot_dimension_numbers<[1], [0], [0], [1], [0, 0, 1, 1], [], []>} : vector<8x8xf32>, vector<8x256xf32>, vector<8x256xf32> -> vector<8x256xf32>
    %63 = arith.addf %58, %62 : vector<8x256xf32>
    %c0_34 = arith.constant 0 : index
    %c0_35 = arith.constant 0 : index
    %64 = vector.load %arg7[%c0_34, %c0_35] : memref<8x1xf32, #tpu.memory_space<vmem>>, vector<8x1xf32>
    %65 = vector.broadcast %64 : vector<8x1xf32> to vector<8x256xf32>
    %66 = arith.addf %63, %65 : vector<8x256xf32>
    %67 = vector.extract_strided_slice %4 {offsets = [0, 2], sizes = [8, 256], strides = [1, 1]} : vector<8x384xf32> to vector<8x256xf32>
    %68 = arith.addf %66, %67 : vector<8x256xf32>
    %c0_36 = arith.constant 0 : index
    %c0_37 = arith.constant 0 : index
    %c0_38 = arith.constant 0 : index
    %69 = vector.load %arg8[%c0_36, %c0_37, %c0_38] : memref<1x8x256xf32, #tpu.memory_space<vmem>>, vector<1x8x256xf32>
    %70 = vector.shape_cast %69 : vector<1x8x256xf32> to vector<8x256xf32>
    %71 = vector.shape_cast %68 : vector<8x256xf32> to vector<1x8x256xf32>
    tpu.vector_store %arg8[%c0_36, %c0_37, %c0_38], %71 {strides = array<i32>} : memref<1x8x256xf32, #tpu.memory_space<vmem>>, vector<1x8x256xf32>,
    return
  }
  func.func @transform_0(%arg0: i32, %arg1: i32) -> (i32, i32, i32) {
    %c0_i32 = arith.constant 0 : i32
    %c0_i32_0 = arith.constant 0 : i32
    return %arg0, %c0_i32, %arg1 : i32, i32, i32
  }
  func.func @transform_1(%arg0: i32, %arg1: i32) -> (i32, i32, i32) {
    %c1_i32 = arith.constant 1 : i32
    %0 = arith.addi %arg1, %c1_i32 : i32
    %c2_i32 = arith.constant 2 : i32
    %1 = arith.muli %0, %c2_i32 : i32
    %c0_i32 = arith.constant 0 : i32
    %c0_i32_0 = arith.constant 0 : i32
    return %arg0, %c0_i32, %1 : i32, i32, i32
  }
  func.func @transform_2(%arg0: i32, %arg1: i32) -> (i32, i32, i32) {
    %c0_i32 = arith.constant 0 : i32
    %c0_i32_0 = arith.constant 0 : i32
    %c0_i32_1 = arith.constant 0 : i32
    %c0_i32_2 = arith.constant 0 : i32
    return %c0_i32, %c0_i32_0, %c0_i32_1 : i32, i32, i32
  }
  func.func @transform_3(%arg0: i32, %arg1: i32) -> (i32, i32) {
    %c0_i32 = arith.constant 0 : i32
    %c0_i32_0 = arith.constant 0 : i32
    %c0_i32_1 = arith.constant 0 : i32
    return %c0_i32, %c0_i32_0 : i32, i32
  }
  func.func @transform_4(%arg0: i32, %arg1: i32) -> (i32, i32, i32) {
    %c0_i32 = arith.constant 0 : i32
    %c0_i32_0 = arith.constant 0 : i32
    %c0_i32_1 = arith.constant 0 : i32
    %c0_i32_2 = arith.constant 0 : i32
    return %c0_i32, %c0_i32_0, %c0_i32_1 : i32, i32, i32
  }
  func.func @transform_5(%arg0: i32, %arg1: i32) -> (i32, i32) {
    %c0_i32 = arith.constant 0 : i32
    %c0_i32_0 = arith.constant 0 : i32
    %c0_i32_1 = arith.constant 0 : i32
    return %c0_i32, %c0_i32_0 : i32, i32
  }
  func.func @transform_6(%arg0: i32, %arg1: i32) -> (i32, i32, i32) {
    %c0_i32 = arith.constant 0 : i32
    %c0_i32_0 = arith.constant 0 : i32
    return %arg0, %c0_i32, %arg1 : i32, i32, i32
  }
}

module attributes {stable_mosaic.version = 11 : i64} {
  func.func @kernel(%arg0: i32, %arg1: i32, %arg2: memref<1x8x256xf32, #tpu.memory_space<vmem>>, %arg3: memref<1x8x128xf32, #tpu.memory_space<vmem>>, %arg4: memref<3x8x8xf32, #tpu.memory_space<vmem>>, %arg5: memref<8x1xf32, #tpu.memory_space<vmem>>, %arg6: memref<3x8x8xf32, #tpu.memory_space<vmem>>, %arg7: memref<8x1xf32, #tpu.memory_space<vmem>>, %arg8: memref<1x8x256xf32, #tpu.memory_space<vmem>>) attributes {dimension_semantics = [#tpu.dimension_semantics<parallel>, #tpu.dimension_semantics<parallel>], iteration_bounds = array<i64: 2, 1>, scalar_prefetch = 0 : i64, scratch_operands = 0 : i64, tpu.core_type = #tpu.core_type<tc>, window_params = [{transform_indices = @transform_0, window_bounds = array<i64: 1, 8, 256>}, {transform_indices = @transform_1, window_bounds = array<i64: 1, 8, 128>}, {pipeline_mode = #tpu.pipeline_mode<synchronous>, transform_indices = @transform_2, window_bounds = array<i64: 3, 8, 8>}, {pipeline_mode = #tpu.pipeline_mode<synchronous>, transform_indices = @transform_3, window_bounds = array<i64: 8, 1>}, {pipeline_mode = #tpu.pipeline_mode<synchronous>, transform_indices = @transform_4, window_bounds = array<i64: 3, 8, 8>}, {pipeline_mode = #tpu.pipeline_mode<synchronous>, transform_indices = @transform_5, window_bounds = array<i64: 8, 1>}, {transform_indices = @transform_6, window_bounds = array<i64: 1, 8, 256>}]} {
    %c0 = arith.constant 0 : index
    %c0_0 = arith.constant 0 : index
    %c0_1 = arith.constant 0 : index
    %0 = vector.load %arg2[%c0, %c0_0, %c0_1] : memref<1x8x256xf32, #tpu.memory_space<vmem>>, vector<1x8x256xf32>
    %1 = vector.shape_cast %0 : vector<1x8x256xf32> to vector<8x256xf32>
    %c0_2 = arith.constant 0 : index
    %c0_3 = arith.constant 0 : index
    %c0_4 = arith.constant 0 : index
    %2 = vector.load %arg3[%c0_2, %c0_3, %c0_4] : memref<1x8x128xf32, #tpu.memory_space<vmem>>, vector<1x8x128xf32>
    %3 = vector.shape_cast %2 : vector<1x8x128xf32> to vector<8x128xf32>
    %4 = tpu.concatenate %1, %3 in 1 : vector<8x256xf32>, vector<8x128xf32> -> vector<8x384xf32>
    %cst = arith.constant 0.000000e+00 : f32
    %5 = vector.broadcast %cst : f32 to vector<8x384xf32>
    %6 = arith.cmpf oge, %4, %5 : vector<8x384xf32>
    %cst_5 = arith.constant 1.000000e-01 : f32
    %7 = vector.broadcast %cst_5 : f32 to vector<8x384xf32>
    %8 = arith.mulf %4, %7 : vector<8x384xf32>
    %9 = arith.select %6, %4, %8 : vector<8x384xi1>, vector<8x384xf32>
    %cst_6 = arith.constant 0.000000e+00 : f32
    %10 = vector.broadcast %cst_6 : f32 to vector<8x258xf32>
    %c0_7 = arith.constant 0 : index
    %c0_8 = arith.constant 0 : index
    %c0_9 = arith.constant 0 : index
    %11 = vector.load %arg4[%c0_7, %c0_8, %c0_9] : memref<3x8x8xf32, #tpu.memory_space<vmem>>, vector<1x8x8xf32>
    %12 = vector.shape_cast %11 : vector<1x8x8xf32> to vector<8x8xf32>
    %13 = vector.extract_strided_slice %9 {offsets = [0, 0], sizes = [8, 258], strides = [1, 1]} : vector<8x384xf32> to vector<8x258xf32>
    %cst_10 = arith.constant dense<0.000000e+00> : vector<8x258xf32>
    %14 = tpu.matmul %12, %13, %cst_10 {dimension_numbers = #tpu.dot_dimension_numbers<[1], [0], [0], [1], [0, 0, 1, 1], [], []>} : vector<8x8xf32>, vector<8x258xf32>, vector<8x258xf32> -> vector<8x258xf32>
    %15 = arith.addf %10, %14 : vector<8x258xf32>
    %c1 = arith.constant 1 : index
    %c0_11 = arith.constant 0 : index
    %c0_12 = arith.constant 0 : index
    %16 = vector.load %arg4[%c1, %c0_11, %c0_12] : memref<3x8x8xf32, #tpu.memory_space<vmem>>, vector<1x8x8xf32>
    %17 = vector.shape_cast %16 : vector<1x8x8xf32> to vector<8x8xf32>
    %18 = vector.extract_strided_slice %9 {offsets = [0, 5], sizes = [8, 258], strides = [1, 1]} : vector<8x384xf32> to vector<8x258xf32>
    %cst_13 = arith.constant dense<0.000000e+00> : vector<8x258xf32>
    %19 = tpu.matmul %17, %18, %cst_13 {dimension_numbers = #tpu.dot_dimension_numbers<[1], [0], [0], [1], [0, 0, 1, 1], [], []>} : vector<8x8xf32>, vector<8x258xf32>, vector<8x258xf32> -> vector<8x258xf32>
    %20 = arith.addf %15, %19 : vector<8x258xf32>
    %c2 = arith.constant 2 : index
    %c0_14 = arith.constant 0 : index
    %c0_15 = arith.constant 0 : index
    %21 = vector.load %arg4[%c2, %c0_14, %c0_15] : memref<3x8x8xf32, #tpu.memory_space<vmem>>, vector<1x8x8xf32>
    %22 = vector.shape_cast %21 : vector<1x8x8xf32> to vector<8x8xf32>
    %23 = vector.extract_strided_slice %9 {offsets = [0, 10], sizes = [8, 258], strides = [1, 1]} : vector<8x384xf32> to vector<8x258xf32>
    %cst_16 = arith.constant dense<0.000000e+00> : vector<8x258xf32>
    %24 = tpu.matmul %22, %23, %cst_16 {dimension_numbers = #tpu.dot_dimension_numbers<[1], [0], [0], [1], [0, 0, 1, 1], [], []>} : vector<8x8xf32>, vector<8x258xf32>, vector<8x258xf32> -> vector<8x258xf32>
    %25 = arith.addf %20, %24 : vector<8x258xf32>
    %c0_17 = arith.constant 0 : index
    %c0_18 = arith.constant 0 : index
    %26 = vector.load %arg5[%c0_17, %c0_18] : memref<8x1xf32, #tpu.memory_space<vmem>>, vector<8x1xf32>
    %27 = vector.broadcast %26 : vector<8x1xf32> to vector<8x258xf32>
    %28 = arith.addf %25, %27 : vector<8x258xf32>
    %cst_19 = arith.constant 0.000000e+00 : f32
    %29 = vector.broadcast %cst_19 : f32 to vector<8x258xf32>
    %30 = arith.cmpf oge, %28, %29 : vector<8x258xf32>
    %cst_20 = arith.constant 1.000000e-01 : f32
    %31 = vector.broadcast %cst_20 : f32 to vector<8x258xf32>
    %32 = arith.mulf %28, %31 : vector<8x258xf32>
    %33 = arith.select %30, %28, %32 : vector<8x258xi1>, vector<8x258xf32>
    %34 = tpu.iota {dimensions = array<i32: 1>} : vector<1x258xi32>
    %c256_i32 = arith.constant 256 : i32
    %35 = arith.muli %arg1, %c256_i32 : i32
    %36 = vector.broadcast %35 : i32 to vector<1x258xi32>
    %37 = arith.addi %34, %36 : vector<1x258xi32>
    %c1_i32 = arith.constant 1 : i32
    %38 = vector.broadcast %c1_i32 : i32 to vector<1x258xi32>
    %39 = arith.cmpi sge, %37, %38 : vector<1x258xi32>
    %c33_i32 = arith.constant 33 : i32
    %40 = vector.broadcast %c33_i32 : i32 to vector<1x258xi32>
    %41 = arith.cmpi slt, %37, %40 : vector<1x258xi32>
    %42 = arith.andi %39, %41 : vector<1x258xi1>
    %c0_i32 = arith.constant 0 : i32
    %43 = arith.sitofp %c0_i32 : i32 to f32
    %44 = vector.shape_cast %42 : vector<1x258xi1> to vector<1x258xi1>
    %45 = vector.broadcast %44 : vector<1x258xi1> to vector<8x258xi1>
    %46 = vector.broadcast %43 : f32 to vector<8x258xf32>
    %47 = arith.select %45, %33, %46 : vector<8x258xi1>, vector<8x258xf32>
    %cst_21 = arith.constant 0.000000e+00 : f32
    %48 = vector.broadcast %cst_21 : f32 to vector<8x256xf32>
    %c0_22 = arith.constant 0 : index
    %c0_23 = arith.constant 0 : index
    %c0_24 = arith.constant 0 : index
    %49 = vector.load %arg6[%c0_22, %c0_23, %c0_24] : memref<3x8x8xf32, #tpu.memory_space<vmem>>, vector<1x8x8xf32>
    %50 = vector.shape_cast %49 : vector<1x8x8xf32> to vector<8x8xf32>
    %51 = vector.extract_strided_slice %47 {offsets = [0, 0], sizes = [8, 256], strides = [1, 1]} : vector<8x258xf32> to vector<8x256xf32>
    %cst_25 = arith.constant dense<0.000000e+00> : vector<8x256xf32>
    %52 = tpu.matmul %50, %51, %cst_25 {dimension_numbers = #tpu.dot_dimension_numbers<[1], [0], [0], [1], [0, 0, 1, 1], [], []>} : vector<8x8xf32>, vector<8x256xf32>, vector<8x256xf32> -> vector<8x256xf32>
    %53 = arith.addf %48, %52 : vector<8x256xf32>
    %c1_26 = arith.constant 1 : index
    %c0_27 = arith.constant 0 : index
    %c0_28 = arith.constant 0 : index
    %54 = vector.load %arg6[%c1_26, %c0_27, %c0_28] : memref<3x8x8xf32, #tpu.memory_space<vmem>>, vector<1x8x8xf32>
    %55 = vector.shape_cast %54 : vector<1x8x8xf32> to vector<8x8xf32>
    %56 = vector.extract_strided_slice %47 {offsets = [0, 1], sizes = [8, 256], strides = [1, 1]} : vector<8x258xf32> to vector<8x256xf32>
    %cst_29 = arith.constant dense<0.000000e+00> : vector<8x256xf32>
    %57 = tpu.matmul %55, %56, %cst_29 {dimension_numbers = #tpu.dot_dimension_numbers<[1], [0], [0], [1], [0, 0, 1, 1], [], []>} : vector<8x8xf32>, vector<8x256xf32>, vector<8x256xf32> -> vector<8x256xf32>
    %58 = arith.addf %53, %57 : vector<8x256xf32>
    %c2_30 = arith.constant 2 : index
    %c0_31 = arith.constant 0 : index
    %c0_32 = arith.constant 0 : index
    %59 = vector.load %arg6[%c2_30, %c0_31, %c0_32] : memref<3x8x8xf32, #tpu.memory_space<vmem>>, vector<1x8x8xf32>
    %60 = vector.shape_cast %59 : vector<1x8x8xf32> to vector<8x8xf32>
    %61 = vector.extract_strided_slice %47 {offsets = [0, 2], sizes = [8, 256], strides = [1, 1]} : vector<8x258xf32> to vector<8x256xf32>
    %cst_33 = arith.constant dense<0.000000e+00> : vector<8x256xf32>
    %62 = tpu.matmul %60, %61, %cst_33 {dimension_numbers = #tpu.dot_dimension_numbers<[1], [0], [0], [1], [0, 0, 1, 1], [], []>} : vector<8x8xf32>, vector<8x256xf32>, vector<8x256xf32> -> vector<8x256xf32>
    %63 = arith.addf %58, %62 : vector<8x256xf32>
    %c0_34 = arith.constant 0 : index
    %c0_35 = arith.constant 0 : index
    %64 = vector.load %arg7[%c0_34, %c0_35] : memref<8x1xf32, #tpu.memory_space<vmem>>, vector<8x1xf32>
    %65 = vector.broadcast %64 : vector<8x1xf32> to vector<8x256xf32>
    %66 = arith.addf %63, %65 : vector<8x256xf32>
    %67 = vector.extract_strided_slice %4 {offsets = [0, 6], sizes = [8, 256], strides = [1, 1]} : vector<8x384xf32> to vector<8x256xf32>
    %68 = arith.addf %66, %67 : vector<8x256xf32>
    %c0_36 = arith.constant 0 : index
    %c0_37 = arith.constant 0 : index
    %c0_38 = arith.constant 0 : index
    %69 = vector.load %arg8[%c0_36, %c0_37, %c0_38] : memref<1x8x256xf32, #tpu.memory_space<vmem>>, vector<1x8x256xf32>
    %70 = vector.shape_cast %69 : vector<1x8x256xf32> to vector<8x256xf32>
    %71 = vector.shape_cast %68 : vector<8x256xf32> to vector<1x8x256xf32>
    tpu.vector_store %arg8[%c0_36, %c0_37, %c0_38], %71 {strides = array<i32>} : memref<1x8x256xf32, #tpu.memory_space<vmem>>, vector<1x8x256xf32>,
    return
  }
  func.func @transform_0(%arg0: i32, %arg1: i32) -> (i32, i32, i32) {
    %c0_i32 = arith.constant 0 : i32
    %c0_i32_0 = arith.constant 0 : i32
    return %arg0, %c0_i32, %arg1 : i32, i32, i32
  }
  func.func @transform_1(%arg0: i32, %arg1: i32) -> (i32, i32, i32) {
    %c1_i32 = arith.constant 1 : i32
    %0 = arith.addi %arg1, %c1_i32 : i32
    %c2_i32 = arith.constant 2 : i32
    %1 = arith.muli %0, %c2_i32 : i32
    %c0_i32 = arith.constant 0 : i32
    %c0_i32_0 = arith.constant 0 : i32
    return %arg0, %c0_i32, %1 : i32, i32, i32
  }
  func.func @transform_2(%arg0: i32, %arg1: i32) -> (i32, i32, i32) {
    %c0_i32 = arith.constant 0 : i32
    %c0_i32_0 = arith.constant 0 : i32
    %c0_i32_1 = arith.constant 0 : i32
    %c0_i32_2 = arith.constant 0 : i32
    return %c0_i32, %c0_i32_0, %c0_i32_1 : i32, i32, i32
  }
  func.func @transform_3(%arg0: i32, %arg1: i32) -> (i32, i32) {
    %c0_i32 = arith.constant 0 : i32
    %c0_i32_0 = arith.constant 0 : i32
    %c0_i32_1 = arith.constant 0 : i32
    return %c0_i32, %c0_i32_0 : i32, i32
  }
  func.func @transform_4(%arg0: i32, %arg1: i32) -> (i32, i32, i32) {
    %c0_i32 = arith.constant 0 : i32
    %c0_i32_0 = arith.constant 0 : i32
    %c0_i32_1 = arith.constant 0 : i32
    %c0_i32_2 = arith.constant 0 : i32
    return %c0_i32, %c0_i32_0, %c0_i32_1 : i32, i32, i32
  }
  func.func @transform_5(%arg0: i32, %arg1: i32) -> (i32, i32) {
    %c0_i32 = arith.constant 0 : i32
    %c0_i32_0 = arith.constant 0 : i32
    %c0_i32_1 = arith.constant 0 : i32
    return %c0_i32, %c0_i32_0 : i32, i32
  }
  func.func @transform_6(%arg0: i32, %arg1: i32) -> (i32, i32, i32) {
    %c0_i32 = arith.constant 0 : i32
    %c0_i32_0 = arith.constant 0 : i32
    return %arg0, %c0_i32, %arg1 : i32, i32, i32
  }
}

module attributes {stable_mosaic.version = 11 : i64} {
  func.func @kernel(%arg0: i32, %arg1: i32, %arg2: memref<1x8x256xf32, #tpu.memory_space<vmem>>, %arg3: memref<1x8x128xf32, #tpu.memory_space<vmem>>, %arg4: memref<1x8x256xf32, #tpu.memory_space<vmem>>, %arg5: memref<3x8x8xf32, #tpu.memory_space<vmem>>, %arg6: memref<8x1xf32, #tpu.memory_space<vmem>>, %arg7: memref<3x8x8xf32, #tpu.memory_space<vmem>>, %arg8: memref<8x1xf32, #tpu.memory_space<vmem>>, %arg9: memref<1x8x256xf32, #tpu.memory_space<vmem>>) attributes {dimension_semantics = [#tpu.dimension_semantics<parallel>, #tpu.dimension_semantics<parallel>], iteration_bounds = array<i64: 2, 1>, scalar_prefetch = 0 : i64, scratch_operands = 0 : i64, tpu.core_type = #tpu.core_type<tc>, window_params = [{transform_indices = @transform_0, window_bounds = array<i64: 1, 8, 256>}, {transform_indices = @transform_1, window_bounds = array<i64: 1, 8, 128>}, {transform_indices = @transform_2, window_bounds = array<i64: 1, 8, 256>}, {pipeline_mode = #tpu.pipeline_mode<synchronous>, transform_indices = @transform_3, window_bounds = array<i64: 3, 8, 8>}, {pipeline_mode = #tpu.pipeline_mode<synchronous>, transform_indices = @transform_4, window_bounds = array<i64: 8, 1>}, {pipeline_mode = #tpu.pipeline_mode<synchronous>, transform_indices = @transform_5, window_bounds = array<i64: 3, 8, 8>}, {pipeline_mode = #tpu.pipeline_mode<synchronous>, transform_indices = @transform_6, window_bounds = array<i64: 8, 1>}, {transform_indices = @transform_7, window_bounds = array<i64: 1, 8, 256>}]} {
    %c0 = arith.constant 0 : index
    %c0_0 = arith.constant 0 : index
    %c0_1 = arith.constant 0 : index
    %0 = vector.load %arg2[%c0, %c0_0, %c0_1] : memref<1x8x256xf32, #tpu.memory_space<vmem>>, vector<1x8x256xf32>
    %1 = vector.shape_cast %0 : vector<1x8x256xf32> to vector<8x256xf32>
    %c0_2 = arith.constant 0 : index
    %c0_3 = arith.constant 0 : index
    %c0_4 = arith.constant 0 : index
    %2 = vector.load %arg3[%c0_2, %c0_3, %c0_4] : memref<1x8x128xf32, #tpu.memory_space<vmem>>, vector<1x8x128xf32>
    %3 = vector.shape_cast %2 : vector<1x8x128xf32> to vector<8x128xf32>
    %4 = tpu.concatenate %1, %3 in 1 : vector<8x256xf32>, vector<8x128xf32> -> vector<8x384xf32>
    %cst = arith.constant 0.000000e+00 : f32
    %5 = vector.broadcast %cst : f32 to vector<8x384xf32>
    %6 = arith.cmpf oge, %4, %5 : vector<8x384xf32>
    %cst_5 = arith.constant 1.000000e-01 : f32
    %7 = vector.broadcast %cst_5 : f32 to vector<8x384xf32>
    %8 = arith.mulf %4, %7 : vector<8x384xf32>
    %9 = arith.select %6, %4, %8 : vector<8x384xi1>, vector<8x384xf32>
    %cst_6 = arith.constant 0.000000e+00 : f32
    %10 = vector.broadcast %cst_6 : f32 to vector<8x258xf32>
    %c0_7 = arith.constant 0 : index
    %c0_8 = arith.constant 0 : index
    %c0_9 = arith.constant 0 : index
    %11 = vector.load %arg5[%c0_7, %c0_8, %c0_9] : memref<3x8x8xf32, #tpu.memory_space<vmem>>, vector<1x8x8xf32>
    %12 = vector.shape_cast %11 : vector<1x8x8xf32> to vector<8x8xf32>
    %13 = vector.extract_strided_slice %9 {offsets = [0, 0], sizes = [8, 258], strides = [1, 1]} : vector<8x384xf32> to vector<8x258xf32>
    %cst_10 = arith.constant dense<0.000000e+00> : vector<8x258xf32>
    %14 = tpu.matmul %12, %13, %cst_10 {dimension_numbers = #tpu.dot_dimension_numbers<[1], [0], [0], [1], [0, 0, 1, 1], [], []>} : vector<8x8xf32>, vector<8x258xf32>, vector<8x258xf32> -> vector<8x258xf32>
    %15 = arith.addf %10, %14 : vector<8x258xf32>
    %c1 = arith.constant 1 : index
    %c0_11 = arith.constant 0 : index
    %c0_12 = arith.constant 0 : index
    %16 = vector.load %arg5[%c1, %c0_11, %c0_12] : memref<3x8x8xf32, #tpu.memory_space<vmem>>, vector<1x8x8xf32>
    %17 = vector.shape_cast %16 : vector<1x8x8xf32> to vector<8x8xf32>
    %18 = vector.extract_strided_slice %9 {offsets = [0, 5], sizes = [8, 258], strides = [1, 1]} : vector<8x384xf32> to vector<8x258xf32>
    %cst_13 = arith.constant dense<0.000000e+00> : vector<8x258xf32>
    %19 = tpu.matmul %17, %18, %cst_13 {dimension_numbers = #tpu.dot_dimension_numbers<[1], [0], [0], [1], [0, 0, 1, 1], [], []>} : vector<8x8xf32>, vector<8x258xf32>, vector<8x258xf32> -> vector<8x258xf32>
    %20 = arith.addf %15, %19 : vector<8x258xf32>
    %c2 = arith.constant 2 : index
    %c0_14 = arith.constant 0 : index
    %c0_15 = arith.constant 0 : index
    %21 = vector.load %arg5[%c2, %c0_14, %c0_15] : memref<3x8x8xf32, #tpu.memory_space<vmem>>, vector<1x8x8xf32>
    %22 = vector.shape_cast %21 : vector<1x8x8xf32> to vector<8x8xf32>
    %23 = vector.extract_strided_slice %9 {offsets = [0, 10], sizes = [8, 258], strides = [1, 1]} : vector<8x384xf32> to vector<8x258xf32>
    %cst_16 = arith.constant dense<0.000000e+00> : vector<8x258xf32>
    %24 = tpu.matmul %22, %23, %cst_16 {dimension_numbers = #tpu.dot_dimension_numbers<[1], [0], [0], [1], [0, 0, 1, 1], [], []>} : vector<8x8xf32>, vector<8x258xf32>, vector<8x258xf32> -> vector<8x258xf32>
    %25 = arith.addf %20, %24 : vector<8x258xf32>
    %c0_17 = arith.constant 0 : index
    %c0_18 = arith.constant 0 : index
    %26 = vector.load %arg6[%c0_17, %c0_18] : memref<8x1xf32, #tpu.memory_space<vmem>>, vector<8x1xf32>
    %27 = vector.broadcast %26 : vector<8x1xf32> to vector<8x258xf32>
    %28 = arith.addf %25, %27 : vector<8x258xf32>
    %cst_19 = arith.constant 0.000000e+00 : f32
    %29 = vector.broadcast %cst_19 : f32 to vector<8x258xf32>
    %30 = arith.cmpf oge, %28, %29 : vector<8x258xf32>
    %cst_20 = arith.constant 1.000000e-01 : f32
    %31 = vector.broadcast %cst_20 : f32 to vector<8x258xf32>
    %32 = arith.mulf %28, %31 : vector<8x258xf32>
    %33 = arith.select %30, %28, %32 : vector<8x258xi1>, vector<8x258xf32>
    %34 = tpu.iota {dimensions = array<i32: 1>} : vector<1x258xi32>
    %c256_i32 = arith.constant 256 : i32
    %35 = arith.muli %arg1, %c256_i32 : i32
    %36 = vector.broadcast %35 : i32 to vector<1x258xi32>
    %37 = arith.addi %34, %36 : vector<1x258xi32>
    %c1_i32 = arith.constant 1 : i32
    %38 = vector.broadcast %c1_i32 : i32 to vector<1x258xi32>
    %39 = arith.cmpi sge, %37, %38 : vector<1x258xi32>
    %c33_i32 = arith.constant 33 : i32
    %40 = vector.broadcast %c33_i32 : i32 to vector<1x258xi32>
    %41 = arith.cmpi slt, %37, %40 : vector<1x258xi32>
    %42 = arith.andi %39, %41 : vector<1x258xi1>
    %c0_i32 = arith.constant 0 : i32
    %43 = arith.sitofp %c0_i32 : i32 to f32
    %44 = vector.shape_cast %42 : vector<1x258xi1> to vector<1x258xi1>
    %45 = vector.broadcast %44 : vector<1x258xi1> to vector<8x258xi1>
    %46 = vector.broadcast %43 : f32 to vector<8x258xf32>
    %47 = arith.select %45, %33, %46 : vector<8x258xi1>, vector<8x258xf32>
    %cst_21 = arith.constant 0.000000e+00 : f32
    %48 = vector.broadcast %cst_21 : f32 to vector<8x256xf32>
    %c0_22 = arith.constant 0 : index
    %c0_23 = arith.constant 0 : index
    %c0_24 = arith.constant 0 : index
    %49 = vector.load %arg7[%c0_22, %c0_23, %c0_24] : memref<3x8x8xf32, #tpu.memory_space<vmem>>, vector<1x8x8xf32>
    %50 = vector.shape_cast %49 : vector<1x8x8xf32> to vector<8x8xf32>
    %51 = vector.extract_strided_slice %47 {offsets = [0, 0], sizes = [8, 256], strides = [1, 1]} : vector<8x258xf32> to vector<8x256xf32>
    %cst_25 = arith.constant dense<0.000000e+00> : vector<8x256xf32>
    %52 = tpu.matmul %50, %51, %cst_25 {dimension_numbers = #tpu.dot_dimension_numbers<[1], [0], [0], [1], [0, 0, 1, 1], [], []>} : vector<8x8xf32>, vector<8x256xf32>, vector<8x256xf32> -> vector<8x256xf32>
    %53 = arith.addf %48, %52 : vector<8x256xf32>
    %c1_26 = arith.constant 1 : index
    %c0_27 = arith.constant 0 : index
    %c0_28 = arith.constant 0 : index
    %54 = vector.load %arg7[%c1_26, %c0_27, %c0_28] : memref<3x8x8xf32, #tpu.memory_space<vmem>>, vector<1x8x8xf32>
    %55 = vector.shape_cast %54 : vector<1x8x8xf32> to vector<8x8xf32>
    %56 = vector.extract_strided_slice %47 {offsets = [0, 1], sizes = [8, 256], strides = [1, 1]} : vector<8x258xf32> to vector<8x256xf32>
    %cst_29 = arith.constant dense<0.000000e+00> : vector<8x256xf32>
    %57 = tpu.matmul %55, %56, %cst_29 {dimension_numbers = #tpu.dot_dimension_numbers<[1], [0], [0], [1], [0, 0, 1, 1], [], []>} : vector<8x8xf32>, vector<8x256xf32>, vector<8x256xf32> -> vector<8x256xf32>
    %58 = arith.addf %53, %57 : vector<8x256xf32>
    %c2_30 = arith.constant 2 : index
    %c0_31 = arith.constant 0 : index
    %c0_32 = arith.constant 0 : index
    %59 = vector.load %arg7[%c2_30, %c0_31, %c0_32] : memref<3x8x8xf32, #tpu.memory_space<vmem>>, vector<1x8x8xf32>
    %60 = vector.shape_cast %59 : vector<1x8x8xf32> to vector<8x8xf32>
    %61 = vector.extract_strided_slice %47 {offsets = [0, 2], sizes = [8, 256], strides = [1, 1]} : vector<8x258xf32> to vector<8x256xf32>
    %cst_33 = arith.constant dense<0.000000e+00> : vector<8x256xf32>
    %62 = tpu.matmul %60, %61, %cst_33 {dimension_numbers = #tpu.dot_dimension_numbers<[1], [0], [0], [1], [0, 0, 1, 1], [], []>} : vector<8x8xf32>, vector<8x256xf32>, vector<8x256xf32> -> vector<8x256xf32>
    %63 = arith.addf %58, %62 : vector<8x256xf32>
    %c0_34 = arith.constant 0 : index
    %c0_35 = arith.constant 0 : index
    %64 = vector.load %arg8[%c0_34, %c0_35] : memref<8x1xf32, #tpu.memory_space<vmem>>, vector<8x1xf32>
    %65 = vector.broadcast %64 : vector<8x1xf32> to vector<8x256xf32>
    %66 = arith.addf %63, %65 : vector<8x256xf32>
    %67 = vector.extract_strided_slice %4 {offsets = [0, 6], sizes = [8, 256], strides = [1, 1]} : vector<8x384xf32> to vector<8x256xf32>
    %68 = arith.addf %66, %67 : vector<8x256xf32>
    %c0_36 = arith.constant 0 : index
    %c0_37 = arith.constant 0 : index
    %c0_38 = arith.constant 0 : index
    %69 = vector.load %arg4[%c0_36, %c0_37, %c0_38] : memref<1x8x256xf32, #tpu.memory_space<vmem>>, vector<1x8x256xf32>
    %70 = vector.shape_cast %69 : vector<1x8x256xf32> to vector<8x256xf32>
    %71 = arith.addf %68, %70 : vector<8x256xf32>
    %c0_39 = arith.constant 0 : index
    %c0_40 = arith.constant 0 : index
    %c0_41 = arith.constant 0 : index
    %72 = vector.load %arg9[%c0_39, %c0_40, %c0_41] : memref<1x8x256xf32, #tpu.memory_space<vmem>>, vector<1x8x256xf32>
    %73 = vector.shape_cast %72 : vector<1x8x256xf32> to vector<8x256xf32>
    %74 = vector.shape_cast %71 : vector<8x256xf32> to vector<1x8x256xf32>
    tpu.vector_store %arg9[%c0_39, %c0_40, %c0_41], %74 {strides = array<i32>} : memref<1x8x256xf32, #tpu.memory_space<vmem>>, vector<1x8x256xf32>,
    return
  }
  func.func @transform_0(%arg0: i32, %arg1: i32) -> (i32, i32, i32) {
    %c0_i32 = arith.constant 0 : i32
    %c0_i32_0 = arith.constant 0 : i32
    return %arg0, %c0_i32, %arg1 : i32, i32, i32
  }
  func.func @transform_1(%arg0: i32, %arg1: i32) -> (i32, i32, i32) {
    %c1_i32 = arith.constant 1 : i32
    %0 = arith.addi %arg1, %c1_i32 : i32
    %c2_i32 = arith.constant 2 : i32
    %1 = arith.muli %0, %c2_i32 : i32
    %c0_i32 = arith.constant 0 : i32
    %c0_i32_0 = arith.constant 0 : i32
    return %arg0, %c0_i32, %1 : i32, i32, i32
  }
  func.func @transform_2(%arg0: i32, %arg1: i32) -> (i32, i32, i32) {
    %c0_i32 = arith.constant 0 : i32
    %c0_i32_0 = arith.constant 0 : i32
    return %arg0, %c0_i32, %arg1 : i32, i32, i32
  }
  func.func @transform_3(%arg0: i32, %arg1: i32) -> (i32, i32, i32) {
    %c0_i32 = arith.constant 0 : i32
    %c0_i32_0 = arith.constant 0 : i32
    %c0_i32_1 = arith.constant 0 : i32
    %c0_i32_2 = arith.constant 0 : i32
    return %c0_i32, %c0_i32_0, %c0_i32_1 : i32, i32, i32
  }
  func.func @transform_4(%arg0: i32, %arg1: i32) -> (i32, i32) {
    %c0_i32 = arith.constant 0 : i32
    %c0_i32_0 = arith.constant 0 : i32
    %c0_i32_1 = arith.constant 0 : i32
    return %c0_i32, %c0_i32_0 : i32, i32
  }
  func.func @transform_5(%arg0: i32, %arg1: i32) -> (i32, i32, i32) {
    %c0_i32 = arith.constant 0 : i32
    %c0_i32_0 = arith.constant 0 : i32
    %c0_i32_1 = arith.constant 0 : i32
    %c0_i32_2 = arith.constant 0 : i32
    return %c0_i32, %c0_i32_0, %c0_i32_1 : i32, i32, i32
  }
  func.func @transform_6(%arg0: i32, %arg1: i32) -> (i32, i32) {
    %c0_i32 = arith.constant 0 : i32
    %c0_i32_0 = arith.constant 0 : i32
    %c0_i32_1 = arith.constant 0 : i32
    return %c0_i32, %c0_i32_0 : i32, i32
  }
  func.func @transform_7(%arg0: i32, %arg1: i32) -> (i32, i32, i32) {
    %c0_i32 = arith.constant 0 : i32
    %c0_i32_0 = arith.constant 0 : i32
    return %arg0, %c0_i32, %arg1 : i32, i32, i32
  }
}

module attributes {stable_mosaic.version = 11 : i64} {
  func.func @kernel(%arg0: i32, %arg1: i32, %arg2: memref<1x8x256xf32, #tpu.memory_space<vmem>>, %arg3: memref<1x8x128xf32, #tpu.memory_space<vmem>>, %arg4: memref<3x8x8xf32, #tpu.memory_space<vmem>>, %arg5: memref<8x1xf32, #tpu.memory_space<vmem>>, %arg6: memref<3x8x8xf32, #tpu.memory_space<vmem>>, %arg7: memref<8x1xf32, #tpu.memory_space<vmem>>, %arg8: memref<1x8x256xf32, #tpu.memory_space<vmem>>) attributes {dimension_semantics = [#tpu.dimension_semantics<parallel>, #tpu.dimension_semantics<parallel>], iteration_bounds = array<i64: 2, 1>, scalar_prefetch = 0 : i64, scratch_operands = 0 : i64, tpu.core_type = #tpu.core_type<tc>, window_params = [{transform_indices = @transform_0, window_bounds = array<i64: 1, 8, 256>}, {transform_indices = @transform_1, window_bounds = array<i64: 1, 8, 128>}, {pipeline_mode = #tpu.pipeline_mode<synchronous>, transform_indices = @transform_2, window_bounds = array<i64: 3, 8, 8>}, {pipeline_mode = #tpu.pipeline_mode<synchronous>, transform_indices = @transform_3, window_bounds = array<i64: 8, 1>}, {pipeline_mode = #tpu.pipeline_mode<synchronous>, transform_indices = @transform_4, window_bounds = array<i64: 3, 8, 8>}, {pipeline_mode = #tpu.pipeline_mode<synchronous>, transform_indices = @transform_5, window_bounds = array<i64: 8, 1>}, {transform_indices = @transform_6, window_bounds = array<i64: 1, 8, 256>}]} {
    %c0 = arith.constant 0 : index
    %c0_0 = arith.constant 0 : index
    %c0_1 = arith.constant 0 : index
    %0 = vector.load %arg2[%c0, %c0_0, %c0_1] : memref<1x8x256xf32, #tpu.memory_space<vmem>>, vector<1x8x256xf32>
    %1 = vector.shape_cast %0 : vector<1x8x256xf32> to vector<8x256xf32>
    %c0_2 = arith.constant 0 : index
    %c0_3 = arith.constant 0 : index
    %c0_4 = arith.constant 0 : index
    %2 = vector.load %arg3[%c0_2, %c0_3, %c0_4] : memref<1x8x128xf32, #tpu.memory_space<vmem>>, vector<1x8x128xf32>
    %3 = vector.shape_cast %2 : vector<1x8x128xf32> to vector<8x128xf32>
    %4 = tpu.concatenate %1, %3 in 1 : vector<8x256xf32>, vector<8x128xf32> -> vector<8x384xf32>
    %cst = arith.constant 0.000000e+00 : f32
    %5 = vector.broadcast %cst : f32 to vector<8x384xf32>
    %6 = arith.cmpf oge, %4, %5 : vector<8x384xf32>
    %cst_5 = arith.constant 1.000000e-01 : f32
    %7 = vector.broadcast %cst_5 : f32 to vector<8x384xf32>
    %8 = arith.mulf %4, %7 : vector<8x384xf32>
    %9 = arith.select %6, %4, %8 : vector<8x384xi1>, vector<8x384xf32>
    %cst_6 = arith.constant 0.000000e+00 : f32
    %10 = vector.broadcast %cst_6 : f32 to vector<8x258xf32>
    %c0_7 = arith.constant 0 : index
    %c0_8 = arith.constant 0 : index
    %c0_9 = arith.constant 0 : index
    %11 = vector.load %arg4[%c0_7, %c0_8, %c0_9] : memref<3x8x8xf32, #tpu.memory_space<vmem>>, vector<1x8x8xf32>
    %12 = vector.shape_cast %11 : vector<1x8x8xf32> to vector<8x8xf32>
    %13 = vector.extract_strided_slice %9 {offsets = [0, 0], sizes = [8, 258], strides = [1, 1]} : vector<8x384xf32> to vector<8x258xf32>
    %cst_10 = arith.constant dense<0.000000e+00> : vector<8x258xf32>
    %14 = tpu.matmul %12, %13, %cst_10 {dimension_numbers = #tpu.dot_dimension_numbers<[1], [0], [0], [1], [0, 0, 1, 1], [], []>} : vector<8x8xf32>, vector<8x258xf32>, vector<8x258xf32> -> vector<8x258xf32>
    %15 = arith.addf %10, %14 : vector<8x258xf32>
    %c1 = arith.constant 1 : index
    %c0_11 = arith.constant 0 : index
    %c0_12 = arith.constant 0 : index
    %16 = vector.load %arg4[%c1, %c0_11, %c0_12] : memref<3x8x8xf32, #tpu.memory_space<vmem>>, vector<1x8x8xf32>
    %17 = vector.shape_cast %16 : vector<1x8x8xf32> to vector<8x8xf32>
    %18 = vector.extract_strided_slice %9 {offsets = [0, 3], sizes = [8, 258], strides = [1, 1]} : vector<8x384xf32> to vector<8x258xf32>
    %cst_13 = arith.constant dense<0.000000e+00> : vector<8x258xf32>
    %19 = tpu.matmul %17, %18, %cst_13 {dimension_numbers = #tpu.dot_dimension_numbers<[1], [0], [0], [1], [0, 0, 1, 1], [], []>} : vector<8x8xf32>, vector<8x258xf32>, vector<8x258xf32> -> vector<8x258xf32>
    %20 = arith.addf %15, %19 : vector<8x258xf32>
    %c2 = arith.constant 2 : index
    %c0_14 = arith.constant 0 : index
    %c0_15 = arith.constant 0 : index
    %21 = vector.load %arg4[%c2, %c0_14, %c0_15] : memref<3x8x8xf32, #tpu.memory_space<vmem>>, vector<1x8x8xf32>
    %22 = vector.shape_cast %21 : vector<1x8x8xf32> to vector<8x8xf32>
    %23 = vector.extract_strided_slice %9 {offsets = [0, 6], sizes = [8, 258], strides = [1, 1]} : vector<8x384xf32> to vector<8x258xf32>
    %cst_16 = arith.constant dense<0.000000e+00> : vector<8x258xf32>
    %24 = tpu.matmul %22, %23, %cst_16 {dimension_numbers = #tpu.dot_dimension_numbers<[1], [0], [0], [1], [0, 0, 1, 1], [], []>} : vector<8x8xf32>, vector<8x258xf32>, vector<8x258xf32> -> vector<8x258xf32>
    %25 = arith.addf %20, %24 : vector<8x258xf32>
    %c0_17 = arith.constant 0 : index
    %c0_18 = arith.constant 0 : index
    %26 = vector.load %arg5[%c0_17, %c0_18] : memref<8x1xf32, #tpu.memory_space<vmem>>, vector<8x1xf32>
    %27 = vector.broadcast %26 : vector<8x1xf32> to vector<8x258xf32>
    %28 = arith.addf %25, %27 : vector<8x258xf32>
    %cst_19 = arith.constant 0.000000e+00 : f32
    %29 = vector.broadcast %cst_19 : f32 to vector<8x258xf32>
    %30 = arith.cmpf oge, %28, %29 : vector<8x258xf32>
    %cst_20 = arith.constant 1.000000e-01 : f32
    %31 = vector.broadcast %cst_20 : f32 to vector<8x258xf32>
    %32 = arith.mulf %28, %31 : vector<8x258xf32>
    %33 = arith.select %30, %28, %32 : vector<8x258xi1>, vector<8x258xf32>
    %34 = tpu.iota {dimensions = array<i32: 1>} : vector<1x258xi32>
    %c256_i32 = arith.constant 256 : i32
    %35 = arith.muli %arg1, %c256_i32 : i32
    %36 = vector.broadcast %35 : i32 to vector<1x258xi32>
    %37 = arith.addi %34, %36 : vector<1x258xi32>
    %c1_i32 = arith.constant 1 : i32
    %38 = vector.broadcast %c1_i32 : i32 to vector<1x258xi32>
    %39 = arith.cmpi sge, %37, %38 : vector<1x258xi32>
    %c33_i32 = arith.constant 33 : i32
    %40 = vector.broadcast %c33_i32 : i32 to vector<1x258xi32>
    %41 = arith.cmpi slt, %37, %40 : vector<1x258xi32>
    %42 = arith.andi %39, %41 : vector<1x258xi1>
    %c0_i32 = arith.constant 0 : i32
    %43 = arith.sitofp %c0_i32 : i32 to f32
    %44 = vector.shape_cast %42 : vector<1x258xi1> to vector<1x258xi1>
    %45 = vector.broadcast %44 : vector<1x258xi1> to vector<8x258xi1>
    %46 = vector.broadcast %43 : f32 to vector<8x258xf32>
    %47 = arith.select %45, %33, %46 : vector<8x258xi1>, vector<8x258xf32>
    %cst_21 = arith.constant 0.000000e+00 : f32
    %48 = vector.broadcast %cst_21 : f32 to vector<8x256xf32>
    %c0_22 = arith.constant 0 : index
    %c0_23 = arith.constant 0 : index
    %c0_24 = arith.constant 0 : index
    %49 = vector.load %arg6[%c0_22, %c0_23, %c0_24] : memref<3x8x8xf32, #tpu.memory_space<vmem>>, vector<1x8x8xf32>
    %50 = vector.shape_cast %49 : vector<1x8x8xf32> to vector<8x8xf32>
    %51 = vector.extract_strided_slice %47 {offsets = [0, 0], sizes = [8, 256], strides = [1, 1]} : vector<8x258xf32> to vector<8x256xf32>
    %cst_25 = arith.constant dense<0.000000e+00> : vector<8x256xf32>
    %52 = tpu.matmul %50, %51, %cst_25 {dimension_numbers = #tpu.dot_dimension_numbers<[1], [0], [0], [1], [0, 0, 1, 1], [], []>} : vector<8x8xf32>, vector<8x256xf32>, vector<8x256xf32> -> vector<8x256xf32>
    %53 = arith.addf %48, %52 : vector<8x256xf32>
    %c1_26 = arith.constant 1 : index
    %c0_27 = arith.constant 0 : index
    %c0_28 = arith.constant 0 : index
    %54 = vector.load %arg6[%c1_26, %c0_27, %c0_28] : memref<3x8x8xf32, #tpu.memory_space<vmem>>, vector<1x8x8xf32>
    %55 = vector.shape_cast %54 : vector<1x8x8xf32> to vector<8x8xf32>
    %56 = vector.extract_strided_slice %47 {offsets = [0, 1], sizes = [8, 256], strides = [1, 1]} : vector<8x258xf32> to vector<8x256xf32>
    %cst_29 = arith.constant dense<0.000000e+00> : vector<8x256xf32>
    %57 = tpu.matmul %55, %56, %cst_29 {dimension_numbers = #tpu.dot_dimension_numbers<[1], [0], [0], [1], [0, 0, 1, 1], [], []>} : vector<8x8xf32>, vector<8x256xf32>, vector<8x256xf32> -> vector<8x256xf32>
    %58 = arith.addf %53, %57 : vector<8x256xf32>
    %c2_30 = arith.constant 2 : index
    %c0_31 = arith.constant 0 : index
    %c0_32 = arith.constant 0 : index
    %59 = vector.load %arg6[%c2_30, %c0_31, %c0_32] : memref<3x8x8xf32, #tpu.memory_space<vmem>>, vector<1x8x8xf32>
    %60 = vector.shape_cast %59 : vector<1x8x8xf32> to vector<8x8xf32>
    %61 = vector.extract_strided_slice %47 {offsets = [0, 2], sizes = [8, 256], strides = [1, 1]} : vector<8x258xf32> to vector<8x256xf32>
    %cst_33 = arith.constant dense<0.000000e+00> : vector<8x256xf32>
    %62 = tpu.matmul %60, %61, %cst_33 {dimension_numbers = #tpu.dot_dimension_numbers<[1], [0], [0], [1], [0, 0, 1, 1], [], []>} : vector<8x8xf32>, vector<8x256xf32>, vector<8x256xf32> -> vector<8x256xf32>
    %63 = arith.addf %58, %62 : vector<8x256xf32>
    %c0_34 = arith.constant 0 : index
    %c0_35 = arith.constant 0 : index
    %64 = vector.load %arg7[%c0_34, %c0_35] : memref<8x1xf32, #tpu.memory_space<vmem>>, vector<8x1xf32>
    %65 = vector.broadcast %64 : vector<8x1xf32> to vector<8x256xf32>
    %66 = arith.addf %63, %65 : vector<8x256xf32>
    %67 = vector.extract_strided_slice %4 {offsets = [0, 4], sizes = [8, 256], strides = [1, 1]} : vector<8x384xf32> to vector<8x256xf32>
    %68 = arith.addf %66, %67 : vector<8x256xf32>
    %c0_36 = arith.constant 0 : index
    %c0_37 = arith.constant 0 : index
    %c0_38 = arith.constant 0 : index
    %69 = vector.load %arg8[%c0_36, %c0_37, %c0_38] : memref<1x8x256xf32, #tpu.memory_space<vmem>>, vector<1x8x256xf32>
    %70 = vector.shape_cast %69 : vector<1x8x256xf32> to vector<8x256xf32>
    %71 = vector.shape_cast %68 : vector<8x256xf32> to vector<1x8x256xf32>
    tpu.vector_store %arg8[%c0_36, %c0_37, %c0_38], %71 {strides = array<i32>} : memref<1x8x256xf32, #tpu.memory_space<vmem>>, vector<1x8x256xf32>,
    return
  }
  func.func @transform_0(%arg0: i32, %arg1: i32) -> (i32, i32, i32) {
    %c0_i32 = arith.constant 0 : i32
    %c0_i32_0 = arith.constant 0 : i32
    return %arg0, %c0_i32, %arg1 : i32, i32, i32
  }
  func.func @transform_1(%arg0: i32, %arg1: i32) -> (i32, i32, i32) {
    %c1_i32 = arith.constant 1 : i32
    %0 = arith.addi %arg1, %c1_i32 : i32
    %c2_i32 = arith.constant 2 : i32
    %1 = arith.muli %0, %c2_i32 : i32
    %c0_i32 = arith.constant 0 : i32
    %c0_i32_0 = arith.constant 0 : i32
    return %arg0, %c0_i32, %1 : i32, i32, i32
  }
  func.func @transform_2(%arg0: i32, %arg1: i32) -> (i32, i32, i32) {
    %c0_i32 = arith.constant 0 : i32
    %c0_i32_0 = arith.constant 0 : i32
    %c0_i32_1 = arith.constant 0 : i32
    %c0_i32_2 = arith.constant 0 : i32
    return %c0_i32, %c0_i32_0, %c0_i32_1 : i32, i32, i32
  }
  func.func @transform_3(%arg0: i32, %arg1: i32) -> (i32, i32) {
    %c0_i32 = arith.constant 0 : i32
    %c0_i32_0 = arith.constant 0 : i32
    %c0_i32_1 = arith.constant 0 : i32
    return %c0_i32, %c0_i32_0 : i32, i32
  }
  func.func @transform_4(%arg0: i32, %arg1: i32) -> (i32, i32, i32) {
    %c0_i32 = arith.constant 0 : i32
    %c0_i32_0 = arith.constant 0 : i32
    %c0_i32_1 = arith.constant 0 : i32
    %c0_i32_2 = arith.constant 0 : i32
    return %c0_i32, %c0_i32_0, %c0_i32_1 : i32, i32, i32
  }
  func.func @transform_5(%arg0: i32, %arg1: i32) -> (i32, i32) {
    %c0_i32 = arith.constant 0 : i32
    %c0_i32_0 = arith.constant 0 : i32
    %c0_i32_1 = arith.constant 0 : i32
    return %c0_i32, %c0_i32_0 : i32, i32
  }
  func.func @transform_6(%arg0: i32, %arg1: i32) -> (i32, i32, i32) {
    %c0_i32 = arith.constant 0 : i32
    %c0_i32_0 = arith.constant 0 : i32
    return %arg0, %c0_i32, %arg1 : i32, i32, i32
  }
}

module attributes {stable_mosaic.version = 11 : i64} {
  func.func @kernel(%arg0: i32, %arg1: i32, %arg2: memref<1x8x256xf32, #tpu.memory_space<vmem>>, %arg3: memref<1x8x128xf32, #tpu.memory_space<vmem>>, %arg4: memref<7x8x8xf32, #tpu.memory_space<vmem>>, %arg5: memref<8x1xf32, #tpu.memory_space<vmem>>, %arg6: memref<1x8x256xf32, #tpu.memory_space<vmem>>) attributes {dimension_semantics = [#tpu.dimension_semantics<parallel>, #tpu.dimension_semantics<parallel>], iteration_bounds = array<i64: 2, 1>, scalar_prefetch = 0 : i64, scratch_operands = 0 : i64, tpu.core_type = #tpu.core_type<tc>, window_params = [{transform_indices = @transform_0, window_bounds = array<i64: 1, 8, 256>}, {transform_indices = @transform_1, window_bounds = array<i64: 1, 8, 128>}, {pipeline_mode = #tpu.pipeline_mode<synchronous>, transform_indices = @transform_2, window_bounds = array<i64: 7, 8, 8>}, {pipeline_mode = #tpu.pipeline_mode<synchronous>, transform_indices = @transform_3, window_bounds = array<i64: 8, 1>}, {transform_indices = @transform_4, window_bounds = array<i64: 1, 8, 256>}]} {
    %c0 = arith.constant 0 : index
    %c0_0 = arith.constant 0 : index
    %c0_1 = arith.constant 0 : index
    %0 = vector.load %arg2[%c0, %c0_0, %c0_1] : memref<1x8x256xf32, #tpu.memory_space<vmem>>, vector<1x8x256xf32>
    %1 = vector.shape_cast %0 : vector<1x8x256xf32> to vector<8x256xf32>
    %c0_2 = arith.constant 0 : index
    %c0_3 = arith.constant 0 : index
    %c0_4 = arith.constant 0 : index
    %2 = vector.load %arg3[%c0_2, %c0_3, %c0_4] : memref<1x8x128xf32, #tpu.memory_space<vmem>>, vector<1x8x128xf32>
    %3 = vector.shape_cast %2 : vector<1x8x128xf32> to vector<8x128xf32>
    %cst = arith.constant 0.000000e+00 : f32
    %4 = vector.broadcast %cst : f32 to vector<8x256xf32>
    %5 = arith.cmpf oge, %1, %4 : vector<8x256xf32>
    %cst_5 = arith.constant 0.00999999977 : f32
    %6 = vector.broadcast %cst_5 : f32 to vector<8x256xf32>
    %7 = arith.mulf %1, %6 : vector<8x256xf32>
    %8 = arith.select %5, %1, %7 : vector<8x256xi1>, vector<8x256xf32>
    %cst_6 = arith.constant 0.000000e+00 : f32
    %9 = vector.broadcast %cst_6 : f32 to vector<8x128xf32>
    %10 = arith.cmpf oge, %3, %9 : vector<8x128xf32>
    %cst_7 = arith.constant 0.00999999977 : f32
    %11 = vector.broadcast %cst_7 : f32 to vector<8x128xf32>
    %12 = arith.mulf %3, %11 : vector<8x128xf32>
    %13 = arith.select %10, %3, %12 : vector<8x128xi1>, vector<8x128xf32>
    %14 = vector.extract_strided_slice %8 {offsets = [0, 128], sizes = [8, 128], strides = [1, 1]} : vector<8x256xf32> to vector<8x128xf32>
    %15 = tpu.concatenate %14, %13 in 1 : vector<8x128xf32>, vector<8x128xf32> -> vector<8x256xf32>
    %cst_8 = arith.constant 0.000000e+00 : f32
    %16 = vector.broadcast %cst_8 : f32 to vector<8x128xf32>
    %cst_9 = arith.constant 0.000000e+00 : f32
    %17 = vector.broadcast %cst_9 : f32 to vector<8x128xf32>
    %c0_10 = arith.constant 0 : index
    %c0_11 = arith.constant 0 : index
    %c0_12 = arith.constant 0 : index
    %18 = vector.load %arg4[%c0_10, %c0_11, %c0_12] : memref<7x8x8xf32, #tpu.memory_space<vmem>>, vector<1x8x8xf32>
    %19 = vector.shape_cast %18 : vector<1x8x8xf32> to vector<8x8xf32>
    %20 = vector.extract_strided_slice %8 {offsets = [0, 0], sizes = [8, 128], strides = [1, 1]} : vector<8x256xf32> to vector<8x128xf32>
    %cst_13 = arith.constant dense<0.000000e+00> : vector<8x128xf32>
    %21 = tpu.matmul %19, %20, %cst_13 {dimension_numbers = #tpu.dot_dimension_numbers<[1], [0], [0], [1], [0, 0, 1, 1], [], []>} : vector<8x8xf32>, vector<8x128xf32>, vector<8x128xf32> -> vector<8x128xf32>
    %22 = arith.addf %16, %21 : vector<8x128xf32>
    %23 = vector.extract_strided_slice %15 {offsets = [0, 0], sizes = [8, 128], strides = [1, 1]} : vector<8x256xf32> to vector<8x128xf32>
    %cst_14 = arith.constant dense<0.000000e+00> : vector<8x128xf32>
    %24 = tpu.matmul %19, %23, %cst_14 {dimension_numbers = #tpu.dot_dimension_numbers<[1], [0], [0], [1], [0, 0, 1, 1], [], []>} : vector<8x8xf32>, vector<8x128xf32>, vector<8x128xf32> -> vector<8x128xf32>
    %25 = arith.addf %17, %24 : vector<8x128xf32>
    %c1 = arith.constant 1 : index
    %c0_15 = arith.constant 0 : index
    %c0_16 = arith.constant 0 : index
    %26 = vector.load %arg4[%c1, %c0_15, %c0_16] : memref<7x8x8xf32, #tpu.memory_space<vmem>>, vector<1x8x8xf32>
    %27 = vector.shape_cast %26 : vector<1x8x8xf32> to vector<8x8xf32>
    %28 = vector.extract_strided_slice %8 {offsets = [0, 1], sizes = [8, 128], strides = [1, 1]} : vector<8x256xf32> to vector<8x128xf32>
    %cst_17 = arith.constant dense<0.000000e+00> : vector<8x128xf32>
    %29 = tpu.matmul %27, %28, %cst_17 {dimension_numbers = #tpu.dot_dimension_numbers<[1], [0], [0], [1], [0, 0, 1, 1], [], []>} : vector<8x8xf32>, vector<8x128xf32>, vector<8x128xf32> -> vector<8x128xf32>
    %30 = arith.addf %22, %29 : vector<8x128xf32>
    %31 = vector.extract_strided_slice %15 {offsets = [0, 1], sizes = [8, 128], strides = [1, 1]} : vector<8x256xf32> to vector<8x128xf32>
    %cst_18 = arith.constant dense<0.000000e+00> : vector<8x128xf32>
    %32 = tpu.matmul %27, %31, %cst_18 {dimension_numbers = #tpu.dot_dimension_numbers<[1], [0], [0], [1], [0, 0, 1, 1], [], []>} : vector<8x8xf32>, vector<8x128xf32>, vector<8x128xf32> -> vector<8x128xf32>
    %33 = arith.addf %25, %32 : vector<8x128xf32>
    %c2 = arith.constant 2 : index
    %c0_19 = arith.constant 0 : index
    %c0_20 = arith.constant 0 : index
    %34 = vector.load %arg4[%c2, %c0_19, %c0_20] : memref<7x8x8xf32, #tpu.memory_space<vmem>>, vector<1x8x8xf32>
    %35 = vector.shape_cast %34 : vector<1x8x8xf32> to vector<8x8xf32>
    %36 = vector.extract_strided_slice %8 {offsets = [0, 2], sizes = [8, 128], strides = [1, 1]} : vector<8x256xf32> to vector<8x128xf32>
    %cst_21 = arith.constant dense<0.000000e+00> : vector<8x128xf32>
    %37 = tpu.matmul %35, %36, %cst_21 {dimension_numbers = #tpu.dot_dimension_numbers<[1], [0], [0], [1], [0, 0, 1, 1], [], []>} : vector<8x8xf32>, vector<8x128xf32>, vector<8x128xf32> -> vector<8x128xf32>
    %38 = arith.addf %30, %37 : vector<8x128xf32>
    %39 = vector.extract_strided_slice %15 {offsets = [0, 2], sizes = [8, 128], strides = [1, 1]} : vector<8x256xf32> to vector<8x128xf32>
    %cst_22 = arith.constant dense<0.000000e+00> : vector<8x128xf32>
    %40 = tpu.matmul %35, %39, %cst_22 {dimension_numbers = #tpu.dot_dimension_numbers<[1], [0], [0], [1], [0, 0, 1, 1], [], []>} : vector<8x8xf32>, vector<8x128xf32>, vector<8x128xf32> -> vector<8x128xf32>
    %41 = arith.addf %33, %40 : vector<8x128xf32>
    %c3 = arith.constant 3 : index
    %c0_23 = arith.constant 0 : index
    %c0_24 = arith.constant 0 : index
    %42 = vector.load %arg4[%c3, %c0_23, %c0_24] : memref<7x8x8xf32, #tpu.memory_space<vmem>>, vector<1x8x8xf32>
    %43 = vector.shape_cast %42 : vector<1x8x8xf32> to vector<8x8xf32>
    %44 = vector.extract_strided_slice %8 {offsets = [0, 3], sizes = [8, 128], strides = [1, 1]} : vector<8x256xf32> to vector<8x128xf32>
    %cst_25 = arith.constant dense<0.000000e+00> : vector<8x128xf32>
    %45 = tpu.matmul %43, %44, %cst_25 {dimension_numbers = #tpu.dot_dimension_numbers<[1], [0], [0], [1], [0, 0, 1, 1], [], []>} : vector<8x8xf32>, vector<8x128xf32>, vector<8x128xf32> -> vector<8x128xf32>
    %46 = arith.addf %38, %45 : vector<8x128xf32>
    %47 = vector.extract_strided_slice %15 {offsets = [0, 3], sizes = [8, 128], strides = [1, 1]} : vector<8x256xf32> to vector<8x128xf32>
    %cst_26 = arith.constant dense<0.000000e+00> : vector<8x128xf32>
    %48 = tpu.matmul %43, %47, %cst_26 {dimension_numbers = #tpu.dot_dimension_numbers<[1], [0], [0], [1], [0, 0, 1, 1], [], []>} : vector<8x8xf32>, vector<8x128xf32>, vector<8x128xf32> -> vector<8x128xf32>
    %49 = arith.addf %41, %48 : vector<8x128xf32>
    %c4 = arith.constant 4 : index
    %c0_27 = arith.constant 0 : index
    %c0_28 = arith.constant 0 : index
    %50 = vector.load %arg4[%c4, %c0_27, %c0_28] : memref<7x8x8xf32, #tpu.memory_space<vmem>>, vector<1x8x8xf32>
    %51 = vector.shape_cast %50 : vector<1x8x8xf32> to vector<8x8xf32>
    %52 = vector.extract_strided_slice %8 {offsets = [0, 4], sizes = [8, 128], strides = [1, 1]} : vector<8x256xf32> to vector<8x128xf32>
    %cst_29 = arith.constant dense<0.000000e+00> : vector<8x128xf32>
    %53 = tpu.matmul %51, %52, %cst_29 {dimension_numbers = #tpu.dot_dimension_numbers<[1], [0], [0], [1], [0, 0, 1, 1], [], []>} : vector<8x8xf32>, vector<8x128xf32>, vector<8x128xf32> -> vector<8x128xf32>
    %54 = arith.addf %46, %53 : vector<8x128xf32>
    %55 = vector.extract_strided_slice %15 {offsets = [0, 4], sizes = [8, 128], strides = [1, 1]} : vector<8x256xf32> to vector<8x128xf32>
    %cst_30 = arith.constant dense<0.000000e+00> : vector<8x128xf32>
    %56 = tpu.matmul %51, %55, %cst_30 {dimension_numbers = #tpu.dot_dimension_numbers<[1], [0], [0], [1], [0, 0, 1, 1], [], []>} : vector<8x8xf32>, vector<8x128xf32>, vector<8x128xf32> -> vector<8x128xf32>
    %57 = arith.addf %49, %56 : vector<8x128xf32>
    %c5 = arith.constant 5 : index
    %c0_31 = arith.constant 0 : index
    %c0_32 = arith.constant 0 : index
    %58 = vector.load %arg4[%c5, %c0_31, %c0_32] : memref<7x8x8xf32, #tpu.memory_space<vmem>>, vector<1x8x8xf32>
    %59 = vector.shape_cast %58 : vector<1x8x8xf32> to vector<8x8xf32>
    %60 = vector.extract_strided_slice %8 {offsets = [0, 5], sizes = [8, 128], strides = [1, 1]} : vector<8x256xf32> to vector<8x128xf32>
    %cst_33 = arith.constant dense<0.000000e+00> : vector<8x128xf32>
    %61 = tpu.matmul %59, %60, %cst_33 {dimension_numbers = #tpu.dot_dimension_numbers<[1], [0], [0], [1], [0, 0, 1, 1], [], []>} : vector<8x8xf32>, vector<8x128xf32>, vector<8x128xf32> -> vector<8x128xf32>
    %62 = arith.addf %54, %61 : vector<8x128xf32>
    %63 = vector.extract_strided_slice %15 {offsets = [0, 5], sizes = [8, 128], strides = [1, 1]} : vector<8x256xf32> to vector<8x128xf32>
    %cst_34 = arith.constant dense<0.000000e+00> : vector<8x128xf32>
    %64 = tpu.matmul %59, %63, %cst_34 {dimension_numbers = #tpu.dot_dimension_numbers<[1], [0], [0], [1], [0, 0, 1, 1], [], []>} : vector<8x8xf32>, vector<8x128xf32>, vector<8x128xf32> -> vector<8x128xf32>
    %65 = arith.addf %57, %64 : vector<8x128xf32>
    %c6 = arith.constant 6 : index
    %c0_35 = arith.constant 0 : index
    %c0_36 = arith.constant 0 : index
    %66 = vector.load %arg4[%c6, %c0_35, %c0_36] : memref<7x8x8xf32, #tpu.memory_space<vmem>>, vector<1x8x8xf32>
    %67 = vector.shape_cast %66 : vector<1x8x8xf32> to vector<8x8xf32>
    %68 = vector.extract_strided_slice %8 {offsets = [0, 6], sizes = [8, 128], strides = [1, 1]} : vector<8x256xf32> to vector<8x128xf32>
    %cst_37 = arith.constant dense<0.000000e+00> : vector<8x128xf32>
    %69 = tpu.matmul %67, %68, %cst_37 {dimension_numbers = #tpu.dot_dimension_numbers<[1], [0], [0], [1], [0, 0, 1, 1], [], []>} : vector<8x8xf32>, vector<8x128xf32>, vector<8x128xf32> -> vector<8x128xf32>
    %70 = arith.addf %62, %69 : vector<8x128xf32>
    %71 = vector.extract_strided_slice %15 {offsets = [0, 6], sizes = [8, 128], strides = [1, 1]} : vector<8x256xf32> to vector<8x128xf32>
    %cst_38 = arith.constant dense<0.000000e+00> : vector<8x128xf32>
    %72 = tpu.matmul %67, %71, %cst_38 {dimension_numbers = #tpu.dot_dimension_numbers<[1], [0], [0], [1], [0, 0, 1, 1], [], []>} : vector<8x8xf32>, vector<8x128xf32>, vector<8x128xf32> -> vector<8x128xf32>
    %73 = arith.addf %65, %72 : vector<8x128xf32>
    %c0_39 = arith.constant 0 : index
    %c0_40 = arith.constant 0 : index
    %74 = vector.load %arg5[%c0_39, %c0_40] : memref<8x1xf32, #tpu.memory_space<vmem>>, vector<8x1xf32>
    %75 = vector.broadcast %74 : vector<8x1xf32> to vector<8x128xf32>
    %76 = arith.addf %70, %75 : vector<8x128xf32>
    %c0_41 = arith.constant 0 : index
    %c0_42 = arith.constant 0 : index
    %77 = vector.load %arg5[%c0_41, %c0_42] : memref<8x1xf32, #tpu.memory_space<vmem>>, vector<8x1xf32>
    %78 = vector.broadcast %77 : vector<8x1xf32> to vector<8x128xf32>
    %79 = arith.addf %73, %78 : vector<8x128xf32>
    %80 = math.tanh %76 : vector<8x128xf32>
    %81 = math.tanh %79 : vector<8x128xf32>
    %c0_43 = arith.constant 0 : index
    %c0_44 = arith.constant 0 : index
    %c0_45 = arith.constant 0 : index
    %82 = vector.load %arg6[%c0_43, %c0_44, %c0_45] : memref<1x8x256xf32, #tpu.memory_space<vmem>>, vector<1x8x128xf32>
    %83 = vector.shape_cast %82 : vector<1x8x128xf32> to vector<8x128xf32>
    %84 = vector.shape_cast %80 : vector<8x128xf32> to vector<1x8x128xf32>
    tpu.vector_store %arg6[%c0_43, %c0_44, %c0_45], %84 {strides = array<i32>} : memref<1x8x256xf32, #tpu.memory_space<vmem>>, vector<1x8x128xf32>,
    %c0_46 = arith.constant 0 : index
    %c0_47 = arith.constant 0 : index
    %c128 = arith.constant 128 : index
    %85 = vector.load %arg6[%c0_46, %c0_47, %c128] : memref<1x8x256xf32, #tpu.memory_space<vmem>>, vector<1x8x128xf32>
    %86 = vector.shape_cast %85 : vector<1x8x128xf32> to vector<8x128xf32>
    %87 = vector.shape_cast %81 : vector<8x128xf32> to vector<1x8x128xf32>
    tpu.vector_store %arg6[%c0_46, %c0_47, %c128], %87 {strides = array<i32>} : memref<1x8x256xf32, #tpu.memory_space<vmem>>, vector<1x8x128xf32>,
    return
  }
  func.func @transform_0(%arg0: i32, %arg1: i32) -> (i32, i32, i32) {
    %c0_i32 = arith.constant 0 : i32
    %c0_i32_0 = arith.constant 0 : i32
    return %arg0, %c0_i32, %arg1 : i32, i32, i32
  }
  func.func @transform_1(%arg0: i32, %arg1: i32) -> (i32, i32, i32) {
    %c1_i32 = arith.constant 1 : i32
    %0 = arith.addi %arg1, %c1_i32 : i32
    %c2_i32 = arith.constant 2 : i32
    %1 = arith.muli %0, %c2_i32 : i32
    %c0_i32 = arith.constant 0 : i32
    %c0_i32_0 = arith.constant 0 : i32
    return %arg0, %c0_i32, %1 : i32, i32, i32
  }
  func.func @transform_2(%arg0: i32, %arg1: i32) -> (i32, i32, i32) {
    %c0_i32 = arith.constant 0 : i32
    %c0_i32_0 = arith.constant 0 : i32
    %c0_i32_1 = arith.constant 0 : i32
    %c0_i32_2 = arith.constant 0 : i32
    return %c0_i32, %c0_i32_0, %c0_i32_1 : i32, i32, i32
  }
  func.func @transform_3(%arg0: i32, %arg1: i32) -> (i32, i32) {
    %c0_i32 = arith.constant 0 : i32
    %c0_i32_0 = arith.constant 0 : i32
    %c0_i32_1 = arith.constant 0 : i32
    return %c0_i32, %c0_i32_0 : i32, i32
  }
  func.func @transform_4(%arg0: i32, %arg1: i32) -> (i32, i32, i32) {
    %c0_i32 = arith.constant 0 : i32
    %c0_i32_0 = arith.constant 0 : i32
    return %arg0, %c0_i32, %arg1 : i32, i32, i32
  }
}

</mosaic_0001>

<bundles_post_ra>
// kernel: _lambda_.19
= control target key start
LH: loop header
LB: loop body
LE: loop exit
PB: predicated region body
PF: predicated region fallthrough
CT: control target
= control target key end

     0   :  { %s2352_s21 = smov 0   ;;  %s2354_s22 = smov 0   ;;  %s2596_s0 = inlined_call_operand.vmem [shape: f32[2,16,384], index: 0, kind: input, shape index: {}, may-alias: {0,1}]   ;;  %s2597_s1 = inlined_call_operand.vmem [shape: f32[2,16,384], index: 1, kind: input, shape index: {}, may-alias: {0,1}]   ;;  %s2598_s2 = inlined_call_operand.vmem [shape: f32[3,16,16], index: 2, kind: input, shape index: {}]   ;;  %s2599_s3 = inlined_call_operand.vmem [shape: f32[16,1], index: 3, kind: input, shape index: {}]   ;;  %s2600_s4 = inlined_call_operand.vmem [shape: f32[3,16,16], index: 4, kind: input, shape index: {}]   ;;  %s2601_s5 = inlined_call_operand.vmem [shape: f32[16,1], index: 5, kind: input, shape index: {}]   ;;  %s2602_s6 = inlined_call_operand.vmem [shape: f32[2,16,256], index: 6, kind: output, shape index: {}]  }
   0x1   :  { %s2356_s23 = smov 0   ;;  %s2358_s24 = smov 0  }
   0x2   :  { %s2360_s25 = smov 0  }
   0x3 LB: > { %s28_s26 = sadd.s32 1, %s2288_s24  ;;  %p44_p1 = scmp.ne.s32.totalorder %s2280_s22, %s2276_s21  ;;  %s2292_s25 = sphi %s2360_s25, %s16_s25   ;;  %s2288_s24 = sphi %s2358_s24, %s2607_s24   ;;  %s2284_s23 = sphi %s2356_s23, %s2606_s23   ;;  %s2280_s22 = sphi %s2354_s22, %s2605_s22   ;;  %s2276_s21 = sphi %s2352_s21, %s2604_s21  }
   0x4   : > { %p30_p0 = scmp.ge.s32.totalorder %s28_s26, 2  ;;  %p45_p2 = scmp.eq.s32.totalorder %s2292_s25, 0 }
   0x5   : > { %s37_s29 = sadd.s32 1, %s2280_s22  ;;  %p1959_p5 = scmp.ge.s32.totalorder %s2292_s25, 2 }
   0x6   : > { %s2609_s26 = smov (%p30_p0, %s28_s26), 0  ;;  %p2383_p3 = por %p45_p2, %p44_p1 }
   0x7   : > { %s32_s28 = ssub.s32 %s2288_s24, %s2609_s26  ;;  %226 = sbr.rel (%p1959_p5) target bundleno = 38 (0x26), region = 32 }
   0x8   : > { %p35_p4 = scmp.eq.s32.totalorder %s32_s28, 0 }
   0xa   : > { %s2391_s30 = scalar_select %p35_p4, %s2280_s22, %s37_s29  }
   0xe   : > { %229 = sbr.rel (!%p2383_p3) target bundleno = 31 (0x1f), region = 36  ;;  %s231_s7 = sand.u32 (%p2383_p3), 1, %s2280_s22  }
   0xf   : > { %s2096_s8 = smul.u32 (%p2383_p3), 48, %s2288_s24  ;;  %s1960_s9 = sshll.u32 (%p2383_p3), %s231_s7, 5 }
  0x10   : > { %s233_s13 = scalar_lea.vmem (%p2383_p3), [#allocation2], %s1960_s9   ;;  %s2302_s16 = smov (%p2383_p3), 0  }
  0x11   : > { %s243_s12 = scalar_lea.vmem (%p2383_p3), %s2596_s0, %s2096_s8   ;;  %s2294_s14 = smov (%p2383_p3), %s233_s13  }
  0x12   : > { %s2298_s15 = smov (%p2383_p3), %s243_s12   ;;  %s2306_s17 = smov (%p2383_p3), 0  }
  0x15 LB: >> { %v441_v0 = vld [vmem:[%s2300_s15] sm:$0xff]  ;;  %v443_v1 = vld [vmem:[%s2300_s15 + $0x18] sm:$0xff]  ;;  %s445_s18 = sadd.s32 1, %s2304_s16  ;;  %s435_s17 = sadd.s32 1, %s2308_s17   ;;  %s2308_s17 = sphi %s2306_s17, %s435_s17   ;;  %s2304_s16 = sphi %s2302_s16, %s2303_s16   ;;  %s2300_s15 = sphi %s2298_s15, %s450_s15   ;;  %s2296_s14 = sphi %s2294_s14, %s451_s14  }
  0x16   : >> { %442 = vst [vmem:[%s2296_s14] sm:$0xff] %v441_v0  ;;  %444 = vst [vmem:[%s2296_s14 + $0x10] sm:$0xff] %v443_v1  ;;  %p446_p6 = scmp.ge.s32.totalorder %s445_s18, 2  ;;  %p434_p7 = scmp.ge.s32.totalorder %s435_s17, 2 }
  0x18   : >> { %s2611_s18 = smov (%p446_p6, %s445_s18), 0  ;;  %437 = sbr.rel (!%p434_p7) target bundleno = 21 (0x15), region = 224 }
  0x19   : >> { %s1964_s19 = sshll.u32 %s2611_s18, 3  ;;  %s2303_s16 = smov %s2611_s18  }
  0x1a   : >> { %s450_s15 = scalar_lea.vmem %s243_s12, %s1964_s19   ;;  %s451_s14 = scalar_lea.vmem %s233_s13, %s1964_s19 [#allocation2]  }
  0x1f PF: > { %655 = sbr.rel (!%p2383_p3) target bundleno = 38 (0x26), region = 102  ;;  %s657_s20 = sand.u32 (%p2383_p3), 1, %s2280_s22  }
  0x20   : > { %s1973_s28 = smul.u32 (%p2383_p3), 48, %s2288_s24  ;;  %s1972_s29 = sshll.u32 (%p2383_p3), %s657_s20, 4 }
  0x21   : > { %s659_s10 = scalar_lea.vmem (%p2383_p3), [#allocation3], %s1972_s29 }
  0x22   : > { %s1827_s9 = scalar_lea.vmem (%p2383_p3), %s2597_s1, %s1973_s28 }
  0x23   : > { %v1974_v2 = vld [vmem:[%s1827_s9 + $0x10] sm:$0xff] (%p2383_p3)  ;;  %v1975_v3 = vld [vmem:[%s1827_s9 + $0x28] sm:$0xff] (%p2383_p3) }
  0x24   : > { %696 = vst [vmem:[%s659_s10] sm:$0xff] (%p2383_p3), %v1974_v2  ;;  %698 = vst [vmem:[%s659_s10 + $0x8] sm:$0xff] (%p2383_p3), %v1975_v3 }
  0x26 PF: > { %p1976_p8 = scmp.ge.s32.totalorder %s2292_s25, 1  ;;  %p703_p9 = scmp.lt.s32.totalorder %s2292_s25, 3 }
  0x28   : > { %p704_p10 = pnand %p1976_p8, %p703_p9 }
  0x29   : > { %s710_s27 = sand.u32 (!%p704_p10), 1, %s2276_s21   ;;  %s2310_s21 = smov (!%p704_p10), 125   ;;  %v2311_v26 = vmov (!%p704_p10), 0.0   ;;  %v1336_v29 = vld [vmem:[%s2599_s3] sm:$0xff] (!%p704_p10)  ;;  %v1337_v30 = vld [vmem:[%s2599_s3 + $0x8] sm:$0xff] (!%p704_p10)  ;;  %v2313_v31 = vmov (!%p704_p10), 0  }
  0x2a   : > { %707 = sbr.rel (%p704_p10) target bundleno = 768 (0x300), region = 140  ;;  %s1977_s11 = sshll.u32 (!%p704_p10), %s710_s27, 5  ;;  %906 = vmatprep.mubr.f32.mxu1 (!%p704_p10), %v2311_v26  ;;  %900 = vmatprep.mubr.f32.mxu0 (!%p704_p10), %v2311_v26  ;;  %vm818_vm6 = vcmask (!%p704_p10), 1022976   ;;  %vm1161_vm7 = vcmask (!%p704_p10), 998400   ;;  %v1982_v56 = vld [vmem:[%s2598_s2 + $0x18] sm:$0xff] (!%p704_p10)  ;;  %vm829_vm8 = vcmask (!%p704_p10), 130048  }
  0x2b   : > { %s1978_s12 = sshll.u32 (!%p704_p10), %s710_s27, 4  ;;  %s712_s13 = scalar_lea.vmem (!%p704_p10), [#allocation2], %s1977_s11  ;;  %2206 = vset.pattern.permute.xlu0 (!%p704_p10), %v2313_v31  ;;  %2207 = vset.pattern.permute.xlu1 (!%p704_p10), %v2313_v31  ;;  %v1981_v57 = vld [vmem:[%s2598_s2 + $0x10] sm:$0xff] (!%p704_p10)  ;;  %v795_v0 = vld [vmem:[%s2598_s2] sm:$0xff] (!%p704_p10)  ;;  %v796_v1 = vld [vmem:[%s2598_s2 + $0x8] sm:$0xff] (!%p704_p10)  ;;  %vm1425_vm9 = vcmask (!%p704_p10), 1039360  }
  0x2c   : > { %v2411_v4 = vld [vmem:[%s712_s13 + $0x8] sm:$0xff] (!%p704_p10)  ;;  %s719_s14 = scalar_lea.vmem (!%p704_p10), [#allocation3], %s1978_s12  ;;  %v2421_v9 = vld [vmem:[%s712_s13] sm:$0xff] (!%p704_p10)  ;;  %v2423_v10 = vld [vmem:[%s712_s13 + $0x10] sm:$0xff] (!%p704_p10)  ;;  %s2312_s15 = smov (!%p704_p10), 122  }
  0x2d   : > { %v2413_v5 = vld [vmem:[%s719_s14] sm:$0xff] (!%p704_p10)  ;;  %v2415_v6 = vld [vmem:[%s719_s14 + $0x8] sm:$0xff] (!%p704_p10)  ;;  %vm778_vm0 = vcmp.ge.f32.partialorder (!%p704_p10), %v2411_v4, 0.0  ;;  %v784_v7 = vmul.f32 (!%p704_p10), 0.1, %v2411_v4  ;;  %vm777_vm3 = vcmp.ge.f32.partialorder (!%p704_p10), %v2421_v9, 0.0 }
  0x2e   : > { %vm779_vm1 = vcmp.ge.f32.partialorder (!%p704_p10), %v2413_v5, 0.0  ;;  %v785_v8 = vmul.f32 (!%p704_p10), 0.1, %v2413_v5  ;;  %v2425_v11 = vld [vmem:[%s712_s13 + $0x18] sm:$0xff] (!%p704_p10)  ;;  %vm782_vm2 = vcmp.ge.f32.partialorder (!%p704_p10), %v2415_v6, 0.0  ;;  %vm780_vm4 = vcmp.ge.f32.partialorder (!%p704_p10), %v2423_v10, 0.0 }
  0x2f   : > { %v788_v12 = vmul.f32 (!%p704_p10), 0.1, %v2415_v6  ;;  %v2430_v13 = vsel (!%p704_p10), %vm778_vm0, %v2411_v4, %v784_v7  ;;  %v783_v16 = vmul.f32 (!%p704_p10), 0.1, %v2421_v9  ;;  %v786_v17 = vmul.f32 (!%p704_p10), 0.1, %v2423_v10 }
  0x30   : > { %v791_v14 = vsel (!%p704_p10), %vm779_vm1, %v2413_v5, %v785_v8  ;;  %vm781_vm5 = vcmp.ge.f32.partialorder (!%p704_p10), %v2425_v11, 0.0  ;;  %v787_v18 = vmul.f32 (!%p704_p10), 0.1, %v2425_v11  ;;  %v1991_v7 = vld [vmem:[%s2598_s2 + $0x20] sm:$0xff] (!%p704_p10)  ;;  %v1992_v8 = vld [vmem:[%s2598_s2 + $0x28] sm:$0xff] (!%p704_p10)  ;;  %s2316_s8 = smov (!%p704_p10), 124  }
  0x31   : > { %v2176_v15 = vpack.i.bf16 %v791_v14, %v2430_v13  ;;  %v794_v19 = vsel %vm782_vm2, %v2415_v6, %v788_v12  ;;  %v2442_v20 = vsel %vm777_vm3, %v2421_v9, %v783_v16  ;;  %v2445_v21 = vsel %vm780_vm4, %v2423_v10, %v786_v17  ;;  %p762_p11 = scmp.lt.s32.totalorder %s2284_s23, 1 }
  0x32   : > { %v2186_v22 = vpack.i.bf16 %v2445_v21, %v2442_v20  ;;  %v2066_v23 = vpack.c.bf16 %v2445_v21, %v2442_v20  ;;  %v2452_v24 = vsel %vm781_vm5, %v2425_v11, %v787_v18  ;;  %v2068_v27 = vpack.c.bf16 %v794_v19, %v791_v14 }
  0x33   : > { %2177 = vrot.lane.b32.xlu0 %v2176_v15, %s2310_s21  ;;  %v2181_v25 = vpack.i.bf16 %v794_v19, %v2452_v24  ;;  %v2064_v28 = vpack.c.bf16 %v2452_v24, %v2430_v13  ;;  %vm1615_vm0 = vcmask 1031168   ;;  %s2613_s23 = smov (!%p762_p11, %s2284_s23), 1  ;;  %vm1745_vm1 = vcmask 1014784  }
  0x34   : > { %2187 = vrot.lane.b32.xlu1 %v2186_v22, %s2310_s21 }
  0x37   : > { %2182 = vrot.lane.b32.xlu0 %v2181_v25, %s2310_s21  ;;  %s2314_s21 = smov 127  }
  0x38   : > { %2192 = vrot.lane.b32.xlu1 %v2176_v15, %s2312_s15 }
  0x3b   : > { %2197 = vrot.lane.b32.xlu0 %v2181_v25, %s2312_s15  ;;  %v1372_v25 = vlaneseq }
  0x3c   : > { %2202 = vrot.lane.b32.xlu1 %v2186_v22, %s2312_s15  ;;  %s2315_s15 = smov 126  }
  0x3f   : > { %1340 = vperm.xlu0 %2206, %v1336_v29  }
  0x40   : > { %1345 = vperm.xlu1 %2207, %v1337_v30  }
  0x43   : > { %2214 = vrot.lane.b32.xlu0 %v2311_v26, %s2314_s21 }
  0x44   : > { %2209 = vrot.lane.b32.xlu1 %v2311_v26, %s2314_s21 }
  0x47   : > { %2219 = vrot.lane.b32.xlu0 %v2311_v26, %s2315_s15 }
  0xa5   : > { %v2178_v32 = vpop.permute.xlu0 %2177 }
  0xa6   : > { %v2180_v33 = vunpack.i.h.bf16 %v2178_v32  ;;  %v2179_v34 = vunpack.i.l.bf16 %v2178_v32  ;;  %v2188_v35 = vpop.permute.xlu1 %2187 }
  0xa7   : > { %v2190_v36 = vunpack.i.h.bf16 %v2188_v35  ;;  %v2189_v37 = vunpack.i.l.bf16 %v2188_v35 }
  0xa8   : > { %v820_v42 = vsel %vm818_vm6, %v2179_v34, %v2180_v33 }
  0xa9   : > { %v2183_v38 = vpop.permute.xlu0 %2182  ;;  %v819_v44 = vsel %vm818_vm6, %v2189_v37, %v2179_v34  ;;  %v1373_v37 = vand.u32 127, %v1372_v25 }
  0xaa   : > { %v2185_v39 = vunpack.i.h.bf16 %v2183_v38  ;;  %v2184_v40 = vunpack.i.l.bf16 %v2183_v38  ;;  %v2193_v41 = vpop.permute.xlu1 %2192 }
  0xab   : > { %v2195_v46 = vunpack.i.h.bf16 %v2193_v41  ;;  %v2194_v47 = vunpack.i.l.bf16 %v2193_v41  ;;  %vm1381_vm11 = vcmp.ge.s32.totalorder %v1373_v37, 1  ;;  %vm1384_vm12 = vcmp.lt.s32.totalorder %v1373_v37, 17 }
  0xac   : > { %v822_v43 = vsel %vm818_vm6, %v2184_v40, %v2185_v39  ;;  %v821_v45 = vsel %vm818_vm6, %v2190_v36, %v2184_v40  ;;  %v2060_v53 = vpack.c.bf16 %v2185_v39, %v2180_v33  ;;  %vm1387_vm14 = vmand %vm1381_vm11, %vm1384_vm12 }
  0xad   : > { %v2056_v48 = vpack.c.bf16 %v822_v43, %v820_v42  ;;  %v2198_v49 = vpop.permute.xlu0 %2197  ;;  %v2058_v50 = vpack.c.bf16 %v821_v45, %v819_v44  ;;  %v1163_v54 = vsel %vm1161_vm7, %v2194_v47, %v2195_v46  ;;  %vm2085_vm15 = vmpackc.low %vm1387_vm14, %vm1387_vm14 }
  0xae   : > { %v2200_v51 = vunpack.i.h.bf16 %v2198_v49  ;;  %v2199_v52 = vunpack.i.l.bf16 %v2198_v49  ;;  %v2203_v55 = vpop.permute.xlu1 %2202 }
  0xaf   : > { %2057 = vmatprep.subr.bf16.mxu0 %v2056_v48  ;;  %2094 = vmatprep.subr.bf16.mxu1 %v2056_v48  ;;  %v2205_v59 = vunpack.i.h.bf16 %v2203_v55  ;;  %v2204_v60 = vunpack.i.l.bf16 %v2203_v55 }
  0xb0   : > { %2059 = vmatpush1.bf16.msra.mxu0 %v2058_v50  ;;  %2095 = vmatpush1.bf16.msra.mxu1 %v2058_v50  ;;  %v1165_v58 = vsel %vm1161_vm7, %v2199_v52, %v2200_v51  ;;  %v2076_v3 = vpack.c.bf16 %v2200_v51, %v2195_v46 }
  0xb1   : > { %2061 = vmatprep.subr.bf16.mxu1 %v2060_v53  ;;  %2069 = vmatprep.subr.bf16.mxu0 %v2068_v27  ;;  %v2072_v61 = vpack.c.bf16 %v1165_v58, %v1163_v54  ;;  %v1164_v62 = vsel %vm1161_vm7, %v2205_v59, %v2199_v52  ;;  %v1162_v63 = vsel %vm1161_vm7, %v2204_v60, %v2194_v47  ;;  %v1402_v54 = vld [vmem:[%s2600_s4] sm:$0xff]  ;;  %v1403_v59 = vld [vmem:[%s2600_s4 + $0x8] sm:$0xff] }
  0xb2   : > { %v2074_v2 = vpack.c.bf16 %v1164_v62, %v1162_v63  ;;  %v1712_v60 = vld [vmem:[%s2601_s5 + $0x8] sm:$0xff] }
  0xb3   : > { %1984 = vmatmul.mubr.msk.f32.vlgmr.msra.gmra.mrb[0].mxu1 %vm829_vm8, %v1982_v56  ;;  %1983 = vmatmul.mubr.msk.f32.vlgmr.msra.gmra.mrb[0].mxu0 %vm829_vm8, %v1981_v57 }
  0xb4   : > { %2063 = vmatpush3.bf16.msra.mxu1 %v2060_v53  ;;  %2071 = vmatpush3.bf16.msra.mxu0 %v2068_v27 }
  0xb5   : > { %2032 = vmatprep.mubr.msk.f32.mxu1 %vm829_vm8, %v1981_v57  ;;  %2073 = vmatprep.subr.bf16.mxu0 %v2072_v61  ;;  %v1711_v61 = vld [vmem:[%s2601_s5] sm:$0xff] }
  0xb6   : > { %2065 = vmatprep.subr.bf16.mxu1 %v2064_v28  ;;  %2039 = vmatprep.mubr.msk.f32.mxu0 %vm829_vm8, %v795_v0 }
  0xb7   : > { %2033 = vmatmul.mubr.msk.f32.vlgmr.msra.gmra.mrb[2].mxu1 %vm829_vm8, %v1982_v56  ;;  %2040 = vmatmul.mubr.msk.f32.vlgmr.msra.gmra.mrb[2].mxu0 %vm829_vm8, %v796_v1 }
  0xb8   : > { %2067 = vmatpush1.bf16.msra.mxu1 %v2066_v23  ;;  %2075 = vmatpush1.bf16.msra.mxu0 %v2074_v2 }
  0xb9   : > { %2077 = vmatprep.subr.bf16.mxu1 %v2076_v3  ;;  %1058 = vmatprep.mubr.f32.mxu1 %v2311_v26 }
  0xba   : > { %1242 = vmatprep.mubr.f32.mxu0 %v2311_v26 }
  0xbb   : > { %1987 = vmatmul.mubr.msk.f32.vlgmr.msra.gmra.mrb[4].mxu1 %vm829_vm8, %v795_v0  ;;  %1993 = vmatmul.mubr.msk.f32.vlgmr.msra.gmra.mrb[4].mxu0 %vm829_vm8, %v1991_v7 }
  0xbc   : > { %2079 = vmatpush3.bf16.msra.mxu1 %v2076_v3  ;;  %1064 = vmatprep.mubr.f32.mxu1 %v2311_v26 }
  0xbd   : > { %1248 = vmatprep.mubr.f32.mxu0 %v2311_v26 }
  0xbe   : > { %v1341_v16 = vpop.permute.xlu0 %1340 }
  0xbf   : > { %1988 = vmatmul.mubr.msk.f32.gmra.mrb[6].mxu1 %vm829_vm8, %v796_v1  ;;  %1994 = vmatmul.mubr.msk.f32.gmra.mrb[6].mxu0 %vm829_vm8, %v1992_v8  ;;  %v1346_v21 = vpop.permute.xlu1 %1345 }
  0xc0   : > { %2046 = vmatprep.mubr.msk.f32.mxu1 %vm829_vm8, %v1991_v7  ;;  %2053 = vmatprep.mubr.msk.f32.mxu0 %vm829_vm8, %v1402_v54 }
  0xc2   : > { %v2513_v22 = vpop.permute.xlu0 %2214 }
  0xc3   : > { %2047 = vmatmul.mubr.msk.f32.vlgmr.msra.gmra.mrb[8].mxu1 %vm829_vm8, %v1992_v8  ;;  %v2217_v30 = vunpack.i.h.bf16 %v2513_v22  ;;  %v2216_v31 = vunpack.i.l.bf16 %v2513_v22  ;;  %v2517_v32 = vpop.permute.xlu1 %2209  ;;  %v2006_v22 = vld [vmem:[%s2600_s4 + $0x28] sm:$0xff] }
  0xc4   : > { %1504 = vmatprep.mubr.f32.mxu1 %v2311_v26  ;;  %v2212_v34 = vunpack.i.h.bf16 %v2517_v32  ;;  %v2211_v38 = vunpack.i.l.bf16 %v2517_v32 }
  0xc5   : > { %v1429_v43 = vsel %vm1425_vm9, %v2216_v31, %v2217_v30 }
  0xc6   : > { %v1427_v44 = vsel %vm1425_vm9, %v2211_v38, %v2212_v34  ;;  %v2220_v62 = vpop.permute.xlu0 %2219 }
  0xc7   : > { %v2080_v47 = vpack.c.bf16 %v1429_v43, %v1427_v44  ;;  %v2222_v3 = vunpack.i.h.bf16 %v2220_v62  ;;  %v2221_v7 = vunpack.i.l.bf16 %v2220_v62 }
  0xc9   : > { %2081 = vmatprep.subr.bf16.mxu1 %v2080_v47 }
 0x186   : > { %v908_v12 = vpop.f32.mrb[0].mxu1  ;;  %v902_v13 = vpop.f32.mrb[0].mxu0 }
 0x187   : > { %v910_v14 = vpop.f32.mrb[1].mxu1  ;;  %v904_v15 = vpop.f32.mrb[1].mxu0 }
 0x18a   : > { %v2034_v17 = vpop.f32.mrb[2].mxu1  ;;  %v2041_v18 = vpop.f32.mrb[2].mxu0 }
 0x18b   : > { %v979_v19 = vpop.f32.mrb[3].mxu1  ;;  %v1137_v20 = vpop.f32.mrb[3].mxu0 }
 0x18c   : > { %v1998_v20 = vld [vmem:[%s2600_s4 + $0x18] sm:$0xff] }
 0x18e   : > { %v1060_v23 = vpop.f32.mrb[4].mxu1  ;;  %v1244_v24 = vpop.f32.mrb[4].mxu0 }
 0x18f   : > { %v1061_v27 = vadd.f32 %v1060_v23, %v902_v13  ;;  %v1062_v28 = vpop.f32.mrb[5].mxu1  ;;  %v1246_v29 = vpop.f32.mrb[5].mxu0  ;;  %v1997_v13 = vld [vmem:[%s2600_s4 + $0x10] sm:$0xff] }
 0x191   : > { %v1330_v33 = vadd.f32 %v1244_v24, %v1061_v27 }
 0x192   : > { %v1066_v35 = vpop.f32.mrb[6].mxu1  ;;  %v1250_v36 = vpop.f32.mrb[6].mxu0 }
 0x193   : > { %v1348_v39 = vadd.f32 %v1341_v16, %v1330_v33  ;;  %v1067_v40 = vadd.f32 %v1066_v35, %v908_v12  ;;  %v1068_v41 = vpop.f32.mrb[7].mxu1  ;;  %v1252_v42 = vpop.f32.mrb[7].mxu0  ;;  %v1617_v16 = vsel %vm1615_vm0, %v2221_v7, %v2222_v3 }
 0x195   : > { %v1360_v45 = vmul.f32 0.1, %v1348_v39  ;;  %v1333_v46 = vadd.f32 %v1250_v36, %v1067_v40  ;;  %vm1354_vm10 = vcmp.ge.f32.partialorder %v1348_v39, 0.0 }
 0x196   : > { %v2048_v48 = vpop.f32.mrb[8].mxu1 }
 0x197   : > { %v1351_v49 = vadd.f32 %v1346_v21, %v1333_v46  ;;  %v1321_v50 = vpop.f32.mrb[9].mxu1  ;;  %v1366_v51 = vsel %vm1354_vm10, %v1348_v39, %v1360_v45  ;;  %v2005_v21 = vld [vmem:[%s2600_s4 + $0x20] sm:$0xff] }
 0x198   : > { %v1396_v56 = vsel %vm1387_vm14, %v1366_v51, 0.0 }
 0x199   : > { %vm1357_vm13 = vcmp.ge.f32.partialorder %v1351_v49, 0.0  ;;  %v1363_v52 = vmul.f32 0.1, %v1351_v49 }
 0x19b   : > { %v1369_v53 = vsel %vm1357_vm13, %v1351_v49, %v1363_v52 }
 0x19c   : > { %v2084_v55 = vpack.c.bf16 %v1369_v53, %v1366_v51  ;;  %v1399_v57 = vsel %vm1387_vm14, %v1369_v53, 0.0 }
 0x19d   : > { %v2233_v58 = vpack.i.bf16 %v1399_v57, %v1396_v56 }
 0x19e   : > { %2086 = vmatprep.subr.msk.bf16.mxu0 %vm2085_vm15, %v2084_v55 }
 0x19f   : > { %2089 = vmatpush3.bf16.msk.msra.mxu0 %vm2085_vm15, %v2084_v55  ;;  %2234 = vrot.lane.b32.xlu0 %v2233_v58, %s2315_s15 }
 0x1a0   : > { %2224 = vrot.lane.b32.xlu1 %v2233_v58, %s2314_s21 }
 0x1a2   : > { %2054 = vmatmul.mubr.msk.f32.vlgmr.msra.gmra.mrb[8].mxu0 %vm829_vm8, %v1403_v59 }
 0x1a3   : > { %1720 = vperm.xlu0 %2206, %v1712_v60   ;;  %1694 = vmatprep.mubr.f32.mxu0 %v2311_v26 }
 0x1a4   : > { %2229 = vrot.lane.b32.xlu1 %v2311_v26, %s2315_s15  ;;  %s2011_s15 = sshll.u32 %s2613_s23, 5 }
 0x1a5   : > { %s769_s18 = scalar_lea.vmem %s2602_s6, %s2011_s15 }
 0x1a7   : > { %1735 = vrot.lane.b32.xlu0 %v2411_v4, %s2316_s8 }
 0x1a8   : > { %1715 = vperm.xlu1 %2207, %v1711_v61  }
 0x1ab   : > { %1739 = vrot.lane.b32.xlu0 %v2423_v10, %s2316_s8 }
 0x1ac   : > { %1733 = vrot.lane.b32.xlu1 %v2421_v9, %s2316_s8 }
 0x1af   : > { %1743 = vrot.lane.b32.xlu0 %v2415_v6, %s2316_s8 }
 0x1b0   : > { %1737 = vrot.lane.b32.xlu1 %v2413_v5, %s2316_s8 }
 0x1b4   : > { %1741 = vrot.lane.b32.xlu1 %v2425_v11, %s2316_s8 }
 0x211   : > { %v2235_v63 = vpop.permute.xlu0 %2234 }
 0x212   : > { %v2225_v0 = vpop.permute.xlu1 %2224  ;;  %v2236_v8 = vunpack.i.l.bf16 %v2235_v63  ;;  %v2237_v6 = vunpack.i.h.bf16 %v2235_v63 }
 0x213   : > { %v2227_v1 = vunpack.i.h.bf16 %v2225_v0  ;;  %v2226_v2 = vunpack.i.l.bf16 %v2225_v0 }
 0x214   : > { %v1616_v14 = vsel %vm1615_vm0, %v2236_v8, %v2221_v7 }
 0x215   : > { %v1428_v4 = vsel %vm1425_vm9, %v2227_v1, %v2216_v31  ;;  %v1426_v9 = vsel %vm1425_vm9, %v2226_v2, %v2211_v38 }
 0x216   : > { %v2082_v5 = vpack.c.bf16 %v1428_v4, %v1426_v9  ;;  %v2230_v10 = vpop.permute.xlu1 %2229 }
 0x217   : > { %v2232_v12 = vunpack.i.h.bf16 %v2230_v10  ;;  %v2231_v11 = vunpack.i.l.bf16 %v2230_v10 }
 0x218   : > { %2083 = vmatpush1.bf16.msra.mxu1 %v2082_v5 }
 0x219   : > { %v1618_v15 = vsel %vm1615_vm0, %v2237_v6, %v2231_v11  ;;  %v1619_v17 = vsel %vm1615_vm0, %v2231_v11, %v2232_v12 }
 0x21a   : > { %v2092_v18 = vpack.c.bf16 %v1618_v15, %v1616_v14  ;;  %v2090_v19 = vpack.c.bf16 %v1619_v17, %v1617_v16 }
 0x21b   : > { %1999 = vmatmul.mubr.msk.f32.vlgmr.msra.gmra.mrb[10].mxu1 %vm829_vm8, %v1997_v13 }
 0x21c   : > { %2091 = vmatprep.subr.bf16.mxu0 %v2090_v19  ;;  %1510 = vmatprep.mubr.f32.mxu1 %v2311_v26 }
 0x21d   : > { %2093 = vmatpush1.bf16.msra.mxu0 %v2092_v18 }
 0x21f   : > { %2000 = vmatmul.mubr.msk.f32.gmra.mrb[12].mxu1 %vm829_vm8, %v1998_v20 }
 0x220   : > { %2007 = vmatmul.mubr.msk.f32.vlgmr.msra.gmra.mrb[10].mxu0 %vm829_vm8, %v2005_v21 }
 0x221   : > { %1700 = vmatprep.mubr.f32.mxu0 %v2311_v26 }
 0x222   : > { %v1721_v25 = vpop.permute.xlu0 %1720 }
 0x224   : > { %2008 = vmatmul.mubr.msk.f32.gmra.mrb[12].mxu0 %vm829_vm8, %v2006_v22 }
 0x226   : > { %v1736_v28 = vpop.permute.xlu0 %1735 }
 0x227   : > { %v1716_v27 = vpop.permute.xlu1 %1715 }
 0x22a   : > { %v1740_v33 = vpop.permute.xlu0 %1739 }
 0x22b   : > { %v1734_v29 = vpop.permute.xlu1 %1733 }
 0x22c   : > { %v1746_v42 = vsel %vm1745_vm1, %v1734_v29, %v1736_v28 }
 0x22e   : > { %v1744_v45 = vpop.permute.xlu0 %1743 }
 0x22f   : > { %v1738_v26 = vpop.permute.xlu1 %1737 }
 0x230   : > { %v1747_v47 = vsel %vm1745_vm1, %v1736_v28, %v1738_v26 }
 0x233   : > { %v1742_v49 = vpop.permute.xlu1 %1741 }
 0x234   : > { %v1749_v54 = vsel %vm1745_vm1, %v1742_v49, %v1744_v45  ;;  %v1748_v55 = vsel %vm1745_vm1, %v1740_v33, %v1742_v49 }
 0x275   : > { %v2055_v23 = vpop.f32.mrb[8].mxu0 }
 0x276   : > { %v1589_v24 = vpop.f32.mrb[9].mxu0 }
 0x2ee   : > { %v1506_v30 = vpop.f32.mrb[10].mxu1 }
 0x2ef   : > { %v1590_v31 = vadd.f32 %v1589_v24, %v1506_v30  ;;  %v1508_v32 = vpop.f32.mrb[11].mxu1 }
 0x2f2   : > { %v1512_v34 = vpop.f32.mrb[12].mxu1 }
 0x2f3   : > { %v1596_v35 = vadd.f32 %v2055_v23, %v1512_v34  ;;  %v1696_v36 = vpop.f32.mrb[10].mxu0  ;;  %v1514_v37 = vpop.f32.mrb[13].mxu1 }
 0x2f4   : > { %v1707_v38 = vadd.f32 %v1696_v36, %v1590_v31  ;;  %v1698_v39 = vpop.f32.mrb[11].mxu0 }
 0x2f5   : > { %v1708_v40 = vadd.f32 %v1698_v39, %v1508_v32 }
 0x2f6   : > { %v1723_v41 = vadd.f32 %v1716_v27, %v1707_v38 }
 0x2f7   : > { %v1724_v43 = vadd.f32 %v1716_v27, %v1708_v40  ;;  %v1702_v44 = vpop.f32.mrb[12].mxu0 }
 0x2f8   : > { %v1754_v46 = vadd.f32 %v1746_v42, %v1723_v41  ;;  %v1709_v48 = vadd.f32 %v1702_v44, %v1596_v35  ;;  %v1704_v50 = vpop.f32.mrb[13].mxu0 }
 0x2f9   : > { %v1755_v51 = vadd.f32 %v1747_v47, %v1724_v43  ;;  %v1710_v52 = vadd.f32 %v1704_v50, %v1514_v37 }
 0x2fa   : > { %1758 = vst [vmem:[%s769_s18] sm:$0xff] %v1754_v46  ;;  %v1725_v53 = vadd.f32 %v1721_v25, %v1709_v48 }
 0x2fb   : > { %1759 = vst [vmem:[%s769_s18 + $0x8] sm:$0xff] %v1755_v51  ;;  %v1726_v56 = vadd.f32 %v1721_v25, %v1710_v52 }
 0x2fc   : > { %v1756_v57 = vadd.f32 %v1748_v55, %v1725_v53 }
 0x2fd   : > { %v1757_v58 = vadd.f32 %v1749_v54, %v1726_v56 }
 0x2fe   : > { %1760 = vst [vmem:[%s769_s18 + $0x10] sm:$0xff] %v1756_v57 }
 0x2ff   : > { %1761 = vst [vmem:[%s769_s18 + $0x18] sm:$0xff] %v1757_v58 }
 0x300 PF: > { %s16_s25 = sadd.s32 1, %s2292_s25   ;;  %s2604_s21 = smov %s2280_s22 }
 0x301   : > { %p13_p12 = scmp.ge.s32.totalorder %s16_s25, 4   ;;  %s2605_s22 = smov %s2391_s30 }
 0x302   : > { %s2606_s23 = smov %s2288_s24  ;;  %s2607_s24 = smov %s2609_s26 }
 0x303   :  { %15 = sbr.rel (!%p13_p12) target bundleno = 3 (0x3), region = 257 }

// kernel: _lambda_.17
= control target key start
LH: loop header
LB: loop body
LE: loop exit
PB: predicated region body
PF: predicated region fallthrough
CT: control target
= control target key end

     0   :  { %s2184_s15 = smov 0   ;;  %s2186_s16 = smov 0   ;;  %s2409_s0 = inlined_call_operand.vmem [shape: f32[2,32,384], index: 0, kind: input, shape index: {}, may-alias: {0,1}]   ;;  %s2410_s1 = inlined_call_operand.vmem [shape: f32[2,32,384], index: 1, kind: input, shape index: {}, may-alias: {0,1}]   ;;  %s2411_s2 = inlined_call_operand.vmem [shape: f32[3,32,32], index: 2, kind: input, shape index: {}]   ;;  %s2412_s3 = inlined_call_operand.vmem [shape: f32[32,1], index: 3, kind: input, shape index: {}]   ;;  %s2413_s4 = inlined_call_operand.vmem [shape: f32[2,32,256], index: 4, kind: output, shape index: {}]  }
   0x1   :  { %s2188_s17 = smov 0   ;;  %s2190_s18 = smov 0  }
   0x2   :  { %s2192_s19 = smov 0  }
   0x3 LB: > { %s26_s20 = sadd.s32 1, %s2134_s18  ;;  %p42_p1 = scmp.ne.s32.totalorder %s2126_s16, %s2122_s15  ;;  %s2138_s19 = sphi %s2192_s19, %s14_s19   ;;  %s2134_s18 = sphi %s2190_s18, %s2421_s18   ;;  %s2130_s17 = sphi %s2188_s17, %s2420_s17   ;;  %s2126_s16 = sphi %s2186_s16, %s2419_s16   ;;  %s2122_s15 = sphi %s2184_s15, %s2418_s15  }
   0x4   : > { %p28_p0 = scmp.ge.s32.totalorder %s26_s20, 2  ;;  %p43_p2 = scmp.eq.s32.totalorder %s2138_s19, 0 }
   0x5   : > { %s35_s23 = sadd.s32 1, %s2126_s16  ;;  %p1689_p5 = scmp.ge.s32.totalorder %s2138_s19, 2 }
   0x6   : > { %s2423_s20 = smov (%p28_p0, %s26_s20), 0  ;;  %p2215_p3 = por %p43_p2, %p42_p1 }
   0x7   : > { %s30_s22 = ssub.s32 %s2134_s18, %s2423_s20  ;;  %176 = sbr.rel (%p1689_p5) target bundleno = 38 (0x26), region = 24 }
   0x8   : > { %p33_p4 = scmp.eq.s32.totalorder %s30_s22, 0 }
   0xa   : > { %s2223_s24 = scalar_select %p33_p4, %s2126_s16, %s35_s23  }
   0xe   : > { %179 = sbr.rel (!%p2215_p3) target bundleno = 31 (0x1f), region = 28  ;;  %s181_s25 = sand.u32 (%p2215_p3), 1, %s2126_s16  }
   0xf   : > { %s1946_s26 = smul.u32 (%p2215_p3), 96, %s2134_s18  ;;  %s2230_s27 = sshll.u32 (%p2215_p3), %s181_s25, 6 }
  0x10   : > { %s183_s5 = scalar_lea.vmem (%p2215_p3), [#allocation2], %s2230_s27   ;;  %s2245_s8 = smov (%p2215_p3), 0  }
  0x11   : > { %s2235_s30 = scalar_lea.vmem (%p2215_p3), %s2409_s0, %s1946_s26   ;;  %s2415_s6 = smov (%p2215_p3), %s183_s5 }
  0x12   : > { %s2416_s7 = smov (%p2215_p3), %s2235_s30  ;;  %s2152_s9 = smov (%p2215_p3), 0  }
  0x15 LB: >> { %v395_v0 = vld [vmem:[%s2146_s7] sm:$0xff]  ;;  %v397_v1 = vld [vmem:[%s2146_s7 + $0x18] sm:$0xff]  ;;  %v399_v2 = vld [vmem:[%s2146_s7 + $0x30] sm:$0xff]  ;;  %s403_s10 = sadd.s32 1, %s2150_s8  ;;  %s389_s9 = sadd.s32 1, %s2154_s9   ;;  %s2154_s9 = sphi %s2152_s9, %s389_s9   ;;  %s2150_s8 = sphi %s2245_s8, %s2417_s8   ;;  %s2146_s7 = sphi %s2416_s7, %s408_s7   ;;  %s2142_s6 = sphi %s2415_s6, %s409_s6  }
  0x16   : >> { %396 = vst [vmem:[%s2142_s6] sm:$0xff] %v395_v0  ;;  %398 = vst [vmem:[%s2142_s6 + $0x10] sm:$0xff] %v397_v1  ;;  %v401_v3 = vld [vmem:[%s2146_s7 + $0x48] sm:$0xff]  ;;  %p404_p6 = scmp.ge.s32.totalorder %s403_s10, 2  ;;  %p388_p7 = scmp.ge.s32.totalorder %s389_s9, 2 }
  0x17   : >> { %400 = vst [vmem:[%s2142_s6 + $0x20] sm:$0xff] %v399_v2  ;;  %402 = vst [vmem:[%s2142_s6 + $0x30] sm:$0xff] %v401_v3 }
  0x18   : >> { %s2425_s10 = smov (%p404_p6, %s403_s10), 0  ;;  %391 = sbr.rel (!%p388_p7) target bundleno = 21 (0x15), region = 214 }
  0x19   : >> { %s1694_s11 = sshll.u32 %s2425_s10, 3  ;;  %s2417_s8 = smov %s2425_s10 }
  0x1a   : >> { %s408_s7 = scalar_lea.vmem %s2235_s30, %s1694_s11   ;;  %s409_s6 = scalar_lea.vmem %s183_s5, %s1694_s11 [#allocation2]  }
  0x1f PF: > { %621 = sbr.rel (!%p2215_p3) target bundleno = 38 (0x26), region = 94  ;;  %s623_s12 = sand.u32 (%p2215_p3), 1, %s2126_s16  }
  0x20   : > { %s1705_s13 = smul.u32 (%p2215_p3), 96, %s2134_s18  ;;  %s1704_s14 = sshll.u32 (%p2215_p3), %s623_s12, 5 }
  0x21   : > { %s625_s26 = scalar_lea.vmem (%p2215_p3), [#allocation3], %s1704_s14 }
  0x22   : > { %s1557_s25 = scalar_lea.vmem (%p2215_p3), %s2410_s1, %s1705_s13 }
  0x23   : > { %v1706_v4 = vld [vmem:[%s1557_s25 + $0x10] sm:$0xff] (%p2215_p3)  ;;  %v1707_v5 = vld [vmem:[%s1557_s25 + $0x28] sm:$0xff] (%p2215_p3)  ;;  %v1708_v6 = vld [vmem:[%s1557_s25 + $0x40] sm:$0xff] (%p2215_p3) }
  0x24   : > { %666 = vst [vmem:[%s625_s26] sm:$0xff] (%p2215_p3), %v1706_v4  ;;  %668 = vst [vmem:[%s625_s26 + $0x8] sm:$0xff] (%p2215_p3), %v1707_v5  ;;  %v1709_v7 = vld [vmem:[%s1557_s25 + $0x58] sm:$0xff] (%p2215_p3) }
  0x25   : > { %670 = vst [vmem:[%s625_s26 + $0x10] sm:$0xff] (%p2215_p3), %v1708_v6  ;;  %672 = vst [vmem:[%s625_s26 + $0x18] sm:$0xff] (%p2215_p3), %v1709_v7 }
  0x26 PF: > { %p1710_p8 = scmp.ge.s32.totalorder %s2138_s19, 1  ;;  %p677_p9 = scmp.lt.s32.totalorder %s2138_s19, 3 }
  0x28   : > { %p678_p10 = pnand %p1710_p8, %p677_p9 }
  0x29   : > { %s684_s21 = sand.u32 (!%p678_p10), 1, %s2122_s15   ;;  %s2156_s15 = smov (!%p678_p10), 127   ;;  %v1715_v46 = vld [vmem:[%s2411_s2 + $0x20] sm:$0xff] (!%p678_p10)  ;;  %vm831_vm12 = vcmask (!%p678_p10), 261120   ;;  %v1453_v55 = vld [vmem:[%s2412_s3 + $0x8] sm:$0xff] (!%p678_p10)  ;;  %v2158_v57 = vmov (!%p678_p10), 0  }
  0x2a   : > { %681 = sbr.rel (%p678_p10) target bundleno = 420 (0x1a4), region = 132  ;;  %s1712_s27 = sshll.u32 (!%p678_p10), %s684_s21, 5  ;;  %1806 = vmatprep.mubr.msk.f32.mxu0 (!%p678_p10), %vm831_vm12, %v1715_v46  ;;  %1834 = vmatprep.mubr.msk.f32.mxu1 (!%p678_p10), %vm831_vm12, %v1715_v46  ;;  %v1452_v56 = vld [vmem:[%s2412_s3] sm:$0xff] (!%p678_p10)  ;;  %v1454_v58 = vld [vmem:[%s2412_s3 + $0x10] sm:$0xff] (!%p678_p10)  ;;  %v1455_v59 = vld [vmem:[%s2412_s3 + $0x18] sm:$0xff] (!%p678_p10)  ;;  %vm822_vm13 = vcmask (!%p678_p10), 1039360  }
  0x2b   : > { %s1711_s28 = sshll.u32 (!%p678_p10), %s684_s21, 6  ;;  %s693_s29 = scalar_lea.vmem (!%p678_p10), [#allocation3], %s1712_s27  ;;  %2083 = vset.pattern.permute.xlu1 (!%p678_p10), %v2158_v57  ;;  %2082 = vset.pattern.permute.xlu0 (!%p678_p10), %v2158_v57  ;;  %vm1237_vm14 = vcmask (!%p678_p10), 1031168   ;;  %v790_v57 = vld [vmem:[%s2411_s2 + $0x8] sm:$0xff] (!%p678_p10) }
  0x2c   : > { %v749_v8 = vld [vmem:[%s693_s29] sm:$0xff] (!%p678_p10)  ;;  %v750_v9 = vld [vmem:[%s693_s29 + $0x8] sm:$0xff] (!%p678_p10)  ;;  %s2269_s30 = scalar_lea.vmem (!%p678_p10), [#allocation2], %s1711_s28  ;;  %v751_v24 = vld [vmem:[%s693_s29 + $0x10] sm:$0xff] (!%p678_p10)  ;;  %s2157_s7 = smov (!%p678_p10), 126  }
  0x2d   : > { %v741_v10 = vld [vmem:[%s2269_s30] sm:$0xff] (!%p678_p10)  ;;  %vm777_vm0 = vcmp.ge.f32.partialorder (!%p678_p10), %v749_v8, 0.0  ;;  %vm778_vm1 = vcmp.ge.f32.partialorder (!%p678_p10), %v750_v9, 0.0  ;;  %v781_v11 = vmul.f32 (!%p678_p10), 0.1, %v749_v8  ;;  %v742_v13 = vld [vmem:[%s2269_s30 + $0x8] sm:$0xff] (!%p678_p10) }
  0x2e   : > { %v782_v12 = vmul.f32 (!%p678_p10), 0.1, %v750_v9  ;;  %vm753_vm2 = vcmp.ge.f32.partialorder (!%p678_p10), %v741_v10, 0.0  ;;  %v761_v14 = vmul.f32 (!%p678_p10), 0.1, %v741_v10  ;;  %v745_v15 = vld [vmem:[%s2269_s30 + $0x20] sm:$0xff] (!%p678_p10) }
  0x2f   : > { %v746_v16 = vld [vmem:[%s2269_s30 + $0x28] sm:$0xff] (!%p678_p10)  ;;  %v785_v17 = vsel (!%p678_p10), %vm777_vm0, %v749_v8, %v781_v11  ;;  %vm754_vm3 = vcmp.ge.f32.partialorder (!%p678_p10), %v742_v13, 0.0  ;;  %v762_v19 = vmul.f32 (!%p678_p10), 0.1, %v742_v13  ;;  %v743_v20 = vld [vmem:[%s2269_s30 + $0x10] sm:$0xff] (!%p678_p10)  ;;  %v744_v21 = vld [vmem:[%s2269_s30 + $0x18] sm:$0xff] (!%p678_p10) }
  0x30   : > { %v786_v18 = vsel (!%p678_p10), %vm778_vm1, %v750_v9, %v782_v12  ;;  %v769_v23 = vsel (!%p678_p10), %vm753_vm2, %v741_v10, %v761_v14  ;;  %vm757_vm4 = vcmp.ge.f32.partialorder (!%p678_p10), %v745_v15, 0.0  ;;  %vm758_vm5 = vcmp.ge.f32.partialorder (!%p678_p10), %v746_v16, 0.0  ;;  %v752_v28 = vld [vmem:[%s693_s29 + $0x18] sm:$0xff] (!%p678_p10)  ;;  %v747_v31 = vld [vmem:[%s2269_s30 + $0x30] sm:$0xff] (!%p678_p10)  ;;  %p732_p11 = scmp.lt.s32.totalorder (!%p678_p10), %s2130_s17, 1 }
  0x31   : > { %v2032_v22 = vpack.i.bf16 %v786_v18, %v785_v17  ;;  %v770_v25 = vsel %vm754_vm3, %v742_v13, %v762_v19  ;;  %v765_v26 = vmul.f32 0.1, %v745_v15  ;;  %v766_v27 = vmul.f32 0.1, %v746_v16  ;;  %v748_v32 = vld [vmem:[%s2269_s30 + $0x38] sm:$0xff] }
  0x32   : > { %v2022_v29 = vpack.i.bf16 %v770_v25, %v769_v23  ;;  %vm755_vm6 = vcmp.ge.f32.partialorder %v743_v20, 0.0  ;;  %vm756_vm7 = vcmp.ge.f32.partialorder %v744_v21, 0.0  ;;  %v763_v30 = vmul.f32 0.1, %v743_v20  ;;  %s2427_s17 = smov (!%p732_p11, %s2130_s17), 1 }
  0x33   : > { %2033 = vrot.lane.b32.xlu1 %v2032_v22, %s2156_s15  ;;  %v773_v33 = vsel %vm757_vm4, %v745_v15, %v765_v26  ;;  %v774_v34 = vsel %vm758_vm5, %v746_v16, %v766_v27  ;;  %v764_v35 = vmul.f32 0.1, %v744_v21  ;;  %vm779_vm8 = vcmp.ge.f32.partialorder %v751_v24, 0.0  ;;  %s1749_s26 = sshll.u32 %s2427_s17, 6 }
  0x34   : > { %2023 = vrot.lane.b32.xlu0 %v2022_v29, %s2156_s15  ;;  %v2037_v36 = vpack.i.bf16 %v774_v34, %v773_v33  ;;  %v771_v37 = vsel %vm755_vm6, %v743_v20, %v763_v30  ;;  %vm780_vm9 = vcmp.ge.f32.partialorder %v752_v28, 0.0  ;;  %v783_v38 = vmul.f32 0.1, %v751_v24  ;;  %s739_s28 = scalar_lea.vmem %s2413_s4, %s1749_s26 }
  0x35   : > { %v772_v39 = vsel %vm756_vm7, %v744_v21, %v764_v35  ;;  %v784_v40 = vmul.f32 0.1, %v752_v28  ;;  %vm759_vm10 = vcmp.ge.f32.partialorder %v747_v31, 0.0  ;;  %vm760_vm11 = vcmp.ge.f32.partialorder %v748_v32, 0.0 }
  0x36   : > { %v2027_v41 = vpack.i.bf16 %v772_v39, %v771_v37  ;;  %v787_v42 = vsel %vm779_vm8, %v751_v24, %v783_v38  ;;  %v767_v43 = vmul.f32 0.1, %v747_v31  ;;  %v768_v44 = vmul.f32 0.1, %v748_v32 }
  0x37   : > { %2038 = vrot.lane.b32.xlu1 %v2037_v36, %s2156_s15  ;;  %v788_v45 = vsel %vm780_vm9, %v752_v28, %v784_v40  ;;  %v2286_v51 = vpack.c.bf16 %v771_v37, %v769_v23  ;;  %v2290_v52 = vpack.c.bf16 %v772_v39, %v770_v25  ;;  %v1717_v37 = vld [vmem:[%s2411_s2 + $0x30] sm:$0xff] }
  0x38   : > { %2028 = vrot.lane.b32.xlu0 %v2027_v41, %s2156_s15  ;;  %v2047_v47 = vpack.i.bf16 %v788_v45, %v787_v42  ;;  %v775_v48 = vsel %vm759_vm10, %v747_v31, %v767_v43  ;;  %v776_v49 = vsel %vm760_vm11, %v748_v32, %v768_v44  ;;  %v1718_v45 = vld [vmem:[%s2411_s2 + $0x38] sm:$0xff] }
  0x39   : > { %v2042_v50 = vpack.i.bf16 %v776_v49, %v775_v48  ;;  %v2292_v53 = vpack.c.bf16 %v775_v48, %v773_v33  ;;  %v2294_v54 = vpack.c.bf16 %v776_v49, %v774_v34  ;;  %v1716_v33 = vld [vmem:[%s2411_s2 + $0x28] sm:$0xff] }
  0x3b   : > { %2048 = vrot.lane.b32.xlu1 %v2047_v47, %s2156_s15 }
  0x3c   : > { %2043 = vrot.lane.b32.xlu0 %v2042_v50, %s2156_s15 }
  0x3f   : > { %2058 = vrot.lane.b32.xlu1 %v2027_v41, %s2157_s7 }
  0x40   : > { %2053 = vrot.lane.b32.xlu0 %v2022_v29, %s2157_s7 }
  0x43   : > { %2068 = vrot.lane.b32.xlu1 %v2037_v36, %s2157_s7 }
  0x44   : > { %2063 = vrot.lane.b32.xlu0 %v2032_v22, %s2157_s7 }
  0x47   : > { %2078 = vrot.lane.b32.xlu1 %v2047_v47, %s2157_s7 }
  0x48   : > { %2073 = vrot.lane.b32.xlu0 %v2042_v50, %s2157_s7 }
  0x4b   : > { %1463 = vperm.xlu1 %2083, %v1453_v55   ;;  %v789_v55 = vld [vmem:[%s2411_s2] sm:$0xff] }
  0x4c   : > { %1458 = vperm.xlu0 %2082, %v1452_v56  }
  0x4f   : > { %1468 = vperm.xlu1 %2083, %v1454_v58  }
  0x50   : > { %1473 = vperm.xlu0 %2082, %v1455_v59  }
  0xa5   : > { %v2034_v60 = vpop.permute.xlu1 %2033 }
  0xa6   : > { %v2024_v61 = vpop.permute.xlu0 %2023  ;;  %v2035_v62 = vunpack.i.l.bf16 %v2034_v60  ;;  %v2036_v3 = vunpack.i.h.bf16 %v2034_v60 }
  0xa7   : > { %v2026_v63 = vunpack.i.h.bf16 %v2024_v61  ;;  %v2025_v0 = vunpack.i.l.bf16 %v2024_v61  ;;  %v791_v61 = vld [vmem:[%s2411_s2 + $0x10] sm:$0xff] }
  0xa9   : > { %v2039_v1 = vpop.permute.xlu1 %2038  ;;  %v823_v9 = vsel %vm822_vm13, %v2025_v0, %v2026_v63  ;;  %v1038_v10 = vsel %vm822_vm13, %v2026_v63, %v2035_v62  ;;  %v792_v62 = vld [vmem:[%s2411_s2 + $0x18] sm:$0xff]  ;;  %v1735_v63 = vld [vmem:[%s2411_s2 + $0x40] sm:$0xff]  ;;  %v1736_v0 = vld [vmem:[%s2411_s2 + $0x48] sm:$0xff] }
  0xaa   : > { %v2029_v2 = vpop.permute.xlu0 %2028  ;;  %v2041_v6 = vunpack.i.h.bf16 %v2039_v1  ;;  %v2040_v7 = vunpack.i.l.bf16 %v2039_v1  ;;  %v1737_v1 = vld [vmem:[%s2411_s2 + $0x50] sm:$0xff] }
  0xab   : > { %v2031_v4 = vunpack.i.h.bf16 %v2029_v2  ;;  %v2030_v5 = vunpack.i.l.bf16 %v2029_v2  ;;  %v1738_v2 = vld [vmem:[%s2411_s2 + $0x58] sm:$0xff] }
  0xac   : > { %v825_v22 = vsel %vm822_vm13, %v2040_v7, %v2041_v6 }
  0xad   : > { %v2049_v8 = vpop.permute.xlu1 %2048  ;;  %v824_v13 = vsel %vm822_vm13, %v2030_v5, %v2031_v4  ;;  %v1039_v14 = vsel %vm822_vm13, %v2031_v4, %v2036_v3 }
  0xae   : > { %v2051_v11 = vunpack.i.h.bf16 %v2049_v8  ;;  %v2050_v12 = vunpack.i.l.bf16 %v2049_v8  ;;  %v2044_v15 = vpop.permute.xlu0 %2043  ;;  %v1882_v16 = vpack.c.bf16 %v824_v13, %v823_v9  ;;  %v1898_v17 = vpack.c.bf16 %v1039_v14, %v1038_v10 }
  0xaf   : > { %v2046_v18 = vunpack.i.h.bf16 %v2044_v15  ;;  %v2045_v19 = vunpack.i.l.bf16 %v2044_v15 }
  0xb0   : > { %v1040_v20 = vsel %vm822_vm13, %v2041_v6, %v2050_v12  ;;  %1883 = vmatprep.subr.bf16.mxu0 %v1882_v16  ;;  %1899 = vmatprep.subr.bf16.mxu1 %v1898_v17 }
  0xb1   : > { %v2059_v21 = vpop.permute.xlu1 %2058  ;;  %1885 = vmatpush3.bf16.msra.mxu0 %v1882_v16  ;;  %1901 = vmatpush3.bf16.msra.mxu1 %v1898_v17  ;;  %v826_v23 = vsel %vm822_vm13, %v2045_v19, %v2046_v18  ;;  %v1041_v24 = vsel %vm822_vm13, %v2046_v18, %v2051_v11 }
  0xb2   : > { %v2054_v25 = vpop.permute.xlu0 %2053  ;;  %v1886_v26 = vpack.c.bf16 %v826_v23, %v825_v22  ;;  %v1902_v27 = vpack.c.bf16 %v1041_v24, %v1040_v20  ;;  %v2061_v28 = vunpack.i.h.bf16 %v2059_v21  ;;  %v2060_v29 = vunpack.i.l.bf16 %v2059_v21 }
  0xb3   : > { %v2056_v30 = vunpack.i.h.bf16 %v2054_v25  ;;  %v2055_v31 = vunpack.i.l.bf16 %v2054_v25 }
  0xb4   : > { %1887 = vmatprep.subr.bf16.mxu0 %v1886_v26  ;;  %1903 = vmatprep.subr.bf16.mxu1 %v1902_v27  ;;  %v1239_v42 = vsel %vm1237_vm14, %v2060_v29, %v2061_v28 }
  0xb5   : > { %v2069_v32 = vpop.permute.xlu1 %2068  ;;  %1889 = vmatpush3.bf16.msra.mxu0 %v1886_v26  ;;  %1905 = vmatpush3.bf16.msra.mxu1 %v1902_v27  ;;  %v1238_v41 = vsel %vm1237_vm14, %v2055_v31, %v2056_v30 }
  0xb6   : > { %v2064_v34 = vpop.permute.xlu0 %2063  ;;  %1891 = vmatprep.subr.bf16.mxu0 %v2286_v51  ;;  %1907 = vmatprep.subr.bf16.mxu1 %v2290_v52  ;;  %v2071_v38 = vunpack.i.h.bf16 %v2069_v32  ;;  %v2070_v39 = vunpack.i.l.bf16 %v2069_v32 }
  0xb7   : > { %v2066_v35 = vunpack.i.h.bf16 %v2064_v34  ;;  %v2065_v36 = vunpack.i.l.bf16 %v2064_v34 }
  0xb8   : > { %1807 = vmatmul.mubr.msk.f32.vlgmr.msra.gmra.mrb[0].mxu0 %vm831_vm12, %v1716_v33  ;;  %1835 = vmatmul.mubr.msk.f32.vlgmr.msra.gmra.mrb[0].mxu1 %vm831_vm12, %v1716_v33  ;;  %v1240_v56 = vsel %vm1237_vm14, %v2070_v39, %v2071_v38 }
  0xb9   : > { %v2079_v40 = vpop.permute.xlu1 %2078  ;;  %1893 = vmatpush3.bf16.msra.mxu0 %v2286_v51  ;;  %1909 = vmatpush3.bf16.msra.mxu1 %v2290_v52  ;;  %v1355_v46 = vsel %vm1237_vm14, %v2056_v30, %v2065_v36  ;;  %v1356_v47 = vsel %vm1237_vm14, %v2061_v28, %v2066_v35  ;;  %v1914_v51 = vpack.c.bf16 %v1239_v42, %v1238_v41 }
  0xba   : > { %v2081_v43 = vunpack.i.h.bf16 %v2079_v40  ;;  %v2080_v44 = vunpack.i.l.bf16 %v2079_v40  ;;  %v2074_v48 = vpop.permute.xlu0 %2073  ;;  %1809 = vmatprep.mubr.msk.f32.mxu0 %vm831_vm12, %v1717_v37  ;;  %1837 = vmatprep.mubr.msk.f32.mxu1 %vm831_vm12, %v1717_v37  ;;  %v1922_v52 = vpack.c.bf16 %v1356_v47, %v1355_v46 }
  0xbb   : > { %v2076_v49 = vunpack.i.h.bf16 %v2074_v48  ;;  %v2075_v50 = vunpack.i.l.bf16 %v2074_v48  ;;  %1895 = vmatprep.subr.bf16.mxu0 %v2292_v53  ;;  %1911 = vmatprep.subr.bf16.mxu1 %v2294_v54 }
  0xbc   : > { %1810 = vmatmul.mubr.msk.f32.gmra.mrb[2].mxu0 %vm831_vm12, %v1718_v45  ;;  %1838 = vmatmul.mubr.msk.f32.gmra.mrb[2].mxu1 %vm831_vm12, %v1718_v45  ;;  %v1357_v59 = vsel %vm1237_vm14, %v2071_v38, %v2080_v44 }
  0xbd   : > { %1897 = vmatpush3.bf16.msra.mxu0 %v2292_v53  ;;  %1913 = vmatpush3.bf16.msra.mxu1 %v2294_v54  ;;  %v1241_v58 = vsel %vm1237_vm14, %v2075_v50, %v2076_v49  ;;  %v1358_v60 = vsel %vm1237_vm14, %v2076_v49, %v2081_v43 }
  0xbe   : > { %1915 = vmatprep.subr.bf16.mxu0 %v1914_v51  ;;  %1923 = vmatprep.subr.bf16.mxu1 %v1922_v52  ;;  %v1918_v53 = vpack.c.bf16 %v1241_v58, %v1240_v56  ;;  %v1926_v54 = vpack.c.bf16 %v1358_v60, %v1357_v59 }
  0xbf   : > { %1820 = vmatprep.mubr.msk.f32.mxu0 %vm831_vm12, %v789_v55  ;;  %1848 = vmatprep.mubr.msk.f32.mxu1 %vm831_vm12, %v789_v55 }
  0xc0   : > { %1821 = vmatmul.mubr.msk.f32.vlgmr.msra.gmra.mrb[0].mxu0 %vm831_vm12, %v790_v57  ;;  %1849 = vmatmul.mubr.msk.f32.vlgmr.msra.gmra.mrb[0].mxu1 %vm831_vm12, %v790_v57 }
  0xc1   : > { %1917 = vmatpush3.bf16.msra.mxu0 %v1914_v51  ;;  %1925 = vmatpush3.bf16.msra.mxu1 %v1922_v52 }
  0xc2   : > { %1919 = vmatprep.subr.bf16.mxu0 %v1918_v53  ;;  %1927 = vmatprep.subr.bf16.mxu1 %v1926_v54 }
  0xc3   : > { %1823 = vmatprep.mubr.msk.f32.mxu0 %vm831_vm12, %v791_v61  ;;  %1851 = vmatprep.mubr.msk.f32.mxu1 %vm831_vm12, %v791_v61 }
  0xc4   : > { %1824 = vmatmul.mubr.msk.f32.gmra.mrb[2].mxu0 %vm831_vm12, %v792_v62  ;;  %1852 = vmatmul.mubr.msk.f32.gmra.mrb[2].mxu1 %vm831_vm12, %v792_v62 }
  0xc5   : > { %1921 = vmatpush3.bf16.msra.mxu0 %v1918_v53  ;;  %1929 = vmatpush3.bf16.msra.mxu1 %v1926_v54 }
  0xc6   : > { %1862 = vmatprep.mubr.msk.f32.mxu0 %vm831_vm12, %v1735_v63  ;;  %1876 = vmatprep.mubr.msk.f32.mxu1 %vm831_vm12, %v1735_v63 }
  0xc8   : > { %1863 = vmatmul.mubr.msk.f32.vlgmr.msra.gmra.mrb[0].mxu0 %vm831_vm12, %v1736_v0  ;;  %1877 = vmatmul.mubr.msk.f32.vlgmr.msra.gmra.mrb[0].mxu1 %vm831_vm12, %v1736_v0 }
  0xc9   : > { %1865 = vmatprep.mubr.msk.f32.mxu0 %vm831_vm12, %v1737_v1  ;;  %1879 = vmatprep.mubr.msk.f32.mxu1 %vm831_vm12, %v1737_v1 }
  0xca   : > { %v1464_v3 = vpop.permute.xlu1 %1463 }
  0xcb   : > { %v1459_v4 = vpop.permute.xlu0 %1458 }
  0xcc   : > { %1866 = vmatmul.mubr.msk.f32.gmra.mrb[2].mxu0 %vm831_vm12, %v1738_v2  ;;  %1880 = vmatmul.mubr.msk.f32.gmra.mrb[2].mxu1 %vm831_vm12, %v1738_v2 }
  0xce   : > { %v1469_v13 = vpop.permute.xlu1 %1468 }
  0xcf   : > { %v1474_v14 = vpop.permute.xlu0 %1473 }
 0x19b   : > { %v1864_v5 = vpop.f32.mrb[0].mxu0  ;;  %v1878_v6 = vpop.f32.mrb[0].mxu1 }
 0x19c   : > { %v1477_v7 = vadd.f32 %v1864_v5, %v1464_v3  ;;  %v1481_v8 = vadd.f32 %v1878_v6, %v1464_v3  ;;  %v1324_v9 = vpop.f32.mrb[1].mxu0  ;;  %v1429_v10 = vpop.f32.mrb[1].mxu1 }
 0x19d   : > { %v1476_v11 = vadd.f32 %v1459_v4, %v1324_v9  ;;  %v1480_v12 = vadd.f32 %v1459_v4, %v1429_v10 }
 0x19e   : > { %1485 = vst [vmem:[%s739_s28 + $0x10] sm:$0xff] %v1477_v7  ;;  %1489 = vst [vmem:[%s739_s28 + $0x18] sm:$0xff] %v1481_v8 }
 0x19f   : > { %1484 = vst [vmem:[%s739_s28] sm:$0xff] %v1476_v11  ;;  %1488 = vst [vmem:[%s739_s28 + $0x8] sm:$0xff] %v1480_v12  ;;  %v1867_v15 = vpop.f32.mrb[2].mxu0  ;;  %v1881_v16 = vpop.f32.mrb[2].mxu1 }
 0x1a0   : > { %v1479_v17 = vadd.f32 %v1867_v15, %v1474_v14  ;;  %v1483_v18 = vadd.f32 %v1881_v16, %v1474_v14  ;;  %v1334_v19 = vpop.f32.mrb[3].mxu0  ;;  %v1439_v20 = vpop.f32.mrb[3].mxu1 }
 0x1a1   : > { %v1478_v21 = vadd.f32 %v1469_v13, %v1334_v19  ;;  %v1482_v22 = vadd.f32 %v1469_v13, %v1439_v20 }
 0x1a2   : > { %1487 = vst [vmem:[%s739_s28 + $0x30] sm:$0xff] %v1479_v17  ;;  %1491 = vst [vmem:[%s739_s28 + $0x38] sm:$0xff] %v1483_v18 }
 0x1a3   : > { %1486 = vst [vmem:[%s739_s28 + $0x20] sm:$0xff] %v1478_v21  ;;  %1490 = vst [vmem:[%s739_s28 + $0x28] sm:$0xff] %v1482_v22 }
 0x1a4 PF: > { %s14_s19 = sadd.s32 1, %s2138_s19   ;;  %s2418_s15 = smov %s2126_s16 }
 0x1a5   : > { %p11_p12 = scmp.ge.s32.totalorder %s14_s19, 4   ;;  %s2419_s16 = smov %s2223_s24 }
 0x1a6   : > { %s2420_s17 = smov %s2134_s18  ;;  %s2421_s18 = smov %s2423_s20 }
 0x1a7   :  { %13 = sbr.rel (!%p11_p12) target bundleno = 3 (0x3), region = 247 }

// kernel: _lambda_.16
= control target key start
LH: loop header
LB: loop body
LE: loop exit
PB: predicated region body
PF: predicated region fallthrough
CT: control target
= control target key end

     0   :  { %s3150_s15 = smov 0   ;;  %s3152_s16 = smov 0   ;;  %s3409_s0 = inlined_call_operand.vmem [shape: f32[2,16,384], index: 0, kind: input, shape index: {}, may-alias: {0,1}]   ;;  %s3410_s1 = inlined_call_operand.vmem [shape: f32[2,16,384], index: 1, kind: input, shape index: {}, may-alias: {0,1}]   ;;  %s3411_s2 = inlined_call_operand.vmem [shape: f32[7,32,16], index: 2, kind: input, shape index: {}]   ;;  %s3412_s3 = inlined_call_operand.vmem [shape: f32[32,1], index: 3, kind: input, shape index: {}]   ;;  %s3413_s4 = inlined_call_operand.vmem [shape: f32[2,32,256], index: 4, kind: output, shape index: {}]  }
   0x1   :  { %s3154_s17 = smov 0   ;;  %s3156_s18 = smov 0  }
   0x2   :  { %s3158_s19 = smov 0  }
   0x3 LB: > { %s26_s20 = sadd.s32 1, %s3096_s18  ;;  %p42_p1 = scmp.ne.s32.totalorder %s3088_s16, %s3084_s15  ;;  %s3100_s19 = sphi %s3158_s19, %s14_s19   ;;  %s3096_s18 = sphi %s3156_s18, %s3418_s18   ;;  %s3092_s17 = sphi %s3154_s17, %s3417_s17   ;;  %s3088_s16 = sphi %s3152_s16, %s3416_s16   ;;  %s3084_s15 = sphi %s3150_s15, %s3415_s15  }
   0x4   : > { %p28_p0 = scmp.ge.s32.totalorder %s26_s20, 2  ;;  %p43_p2 = scmp.eq.s32.totalorder %s3100_s19, 0 }
   0x5   : > { %s35_s23 = sadd.s32 1, %s3088_s16  ;;  %p2441_p5 = scmp.ge.s32.totalorder %s3100_s19, 2 }
   0x6   : > { %s3420_s20 = smov (%p28_p0, %s26_s20), 0  ;;  %p3181_p3 = por %p43_p2, %p42_p1 }
   0x7   : > { %s30_s22 = ssub.s32 %s3096_s18, %s3420_s20  ;;  %176 = sbr.rel (%p2441_p5) target bundleno = 38 (0x26), region = 24 }
   0x8   : > { %p33_p4 = scmp.eq.s32.totalorder %s30_s22, 0 }
   0xa   : > { %s3189_s24 = scalar_select %p33_p4, %s3088_s16, %s35_s23  }
   0xe   : > { %179 = sbr.rel (!%p3181_p3) target bundleno = 31 (0x1f), region = 28  ;;  %s181_s25 = sand.u32 (%p3181_p3), 1, %s3088_s16  }
   0xf   : > { %s2874_s26 = smul.u32 (%p3181_p3), 48, %s3096_s18  ;;  %s2442_s27 = sshll.u32 (%p3181_p3), %s181_s25, 5 }
  0x10   : > { %s183_s5 = scalar_lea.vmem (%p3181_p3), [#allocation2], %s2442_s27   ;;  %s3110_s8 = smov (%p3181_p3), 0  }
  0x11   : > { %s193_s30 = scalar_lea.vmem (%p3181_p3), %s3409_s0, %s2874_s26   ;;  %s3102_s6 = smov (%p3181_p3), %s183_s5  }
  0x12   : > { %s3106_s7 = smov (%p3181_p3), %s193_s30   ;;  %s3114_s9 = smov (%p3181_p3), 0  }
  0x15 LB: >> { %v391_v0 = vld [vmem:[%s3108_s7] sm:$0xff]  ;;  %v393_v1 = vld [vmem:[%s3108_s7 + $0x18] sm:$0xff]  ;;  %s395_s10 = sadd.s32 1, %s3112_s8  ;;  %s385_s9 = sadd.s32 1, %s3116_s9   ;;  %s3116_s9 = sphi %s3114_s9, %s385_s9   ;;  %s3112_s8 = sphi %s3110_s8, %s3111_s8   ;;  %s3108_s7 = sphi %s3106_s7, %s400_s7   ;;  %s3104_s6 = sphi %s3102_s6, %s401_s6  }
  0x16   : >> { %392 = vst [vmem:[%s3104_s6] sm:$0xff] %v391_v0  ;;  %394 = vst [vmem:[%s3104_s6 + $0x10] sm:$0xff] %v393_v1  ;;  %p396_p6 = scmp.ge.s32.totalorder %s395_s10, 2  ;;  %p384_p7 = scmp.ge.s32.totalorder %s385_s9, 2 }
  0x18   : >> { %s3422_s10 = smov (%p396_p6, %s395_s10), 0  ;;  %387 = sbr.rel (!%p384_p7) target bundleno = 21 (0x15), region = 218 }
  0x19   : >> { %s2446_s11 = sshll.u32 %s3422_s10, 3  ;;  %s3111_s8 = smov %s3422_s10  }
  0x1a   : >> { %s400_s7 = scalar_lea.vmem %s193_s30, %s2446_s11   ;;  %s401_s6 = scalar_lea.vmem %s183_s5, %s2446_s11 [#allocation2]  }
  0x1f PF: > { %605 = sbr.rel (!%p3181_p3) target bundleno = 38 (0x26), region = 94  ;;  %s607_s12 = sand.u32 (%p3181_p3), 1, %s3088_s16  }
  0x20   : > { %s2455_s13 = smul.u32 (%p3181_p3), 48, %s3096_s18  ;;  %s2454_s14 = sshll.u32 (%p3181_p3), %s607_s12, 4 }
  0x21   : > { %s609_s26 = scalar_lea.vmem (%p3181_p3), [#allocation3], %s2454_s14 }
  0x22   : > { %s2309_s25 = scalar_lea.vmem (%p3181_p3), %s3410_s1, %s2455_s13 }
  0x23   : > { %v2456_v2 = vld [vmem:[%s2309_s25 + $0x10] sm:$0xff] (%p3181_p3)  ;;  %v2457_v3 = vld [vmem:[%s2309_s25 + $0x28] sm:$0xff] (%p3181_p3) }
  0x24   : > { %646 = vst [vmem:[%s609_s26] sm:$0xff] (%p3181_p3), %v2456_v2  ;;  %648 = vst [vmem:[%s609_s26 + $0x8] sm:$0xff] (%p3181_p3), %v2457_v3 }
  0x26 PF: > { %p2458_p8 = scmp.ge.s32.totalorder %s3100_s19, 1  ;;  %p653_p9 = scmp.lt.s32.totalorder %s3100_s19, 3 }
  0x28   : > { %p654_p10 = pnand %p2458_p8, %p653_p9 }
  0x29   : > { %s660_s21 = sand.u32 (!%p654_p10), 1, %s3084_s15   ;;  %s3118_s5 = smov (!%p654_p10), 127   ;;  %v2463_v12 = vld [vmem:[%s3411_s2 + $0x20] sm:$0xff] (!%p654_p10)  ;;  %vm749_vm0 = vcmask (!%p654_p10), 130048   ;;  %v2205_v16 = vld [vmem:[%s3412_s3 + $0x8] sm:$0xff] (!%p654_p10)  ;;  %v3124_v18 = vmov (!%p654_p10), 0  }
  0x2a   : > { %657 = sbr.rel (%p654_p10) target bundleno = 444 (0x1bc), region = 132  ;;  %s2460_s27 = sshll.u32 (!%p654_p10), %s660_s21, 4  ;;  %2634 = vmatprep.mubr.msk.f32.mxu0 (!%p654_p10), %vm749_vm0, %v2463_v12  ;;  %2654 = vmatprep.mubr.msk.f32.mxu1 (!%p654_p10), %vm749_vm0, %v2463_v12  ;;  %v2204_v17 = vld [vmem:[%s3412_s3] sm:$0xff] (!%p654_p10)  ;;  %v2206_v19 = vld [vmem:[%s3412_s3 + $0x10] sm:$0xff] (!%p654_p10)  ;;  %v2207_v20 = vld [vmem:[%s3412_s3 + $0x18] sm:$0xff] (!%p654_p10)  ;;  %vm744_vm1 = vcmask (!%p654_p10), 1039360  }
  0x2b   : > { %s2459_s28 = sshll.u32 (!%p654_p10), %s660_s21, 5  ;;  %s669_s29 = scalar_lea.vmem (!%p654_p10), [#allocation3], %s2460_s27  ;;  %3045 = vset.pattern.permute.xlu1 (!%p654_p10), %v3124_v18  ;;  %3044 = vset.pattern.permute.xlu0 (!%p654_p10), %v3124_v18  ;;  %vm1137_vm2 = vcmask (!%p654_p10), 1031168   ;;  %v2464_v47 = vld [vmem:[%s3411_s2 + $0x28] sm:$0xff] (!%p654_p10)  ;;  %v2465_v52 = vld [vmem:[%s3411_s2 + $0x30] sm:$0xff] (!%p654_p10)  ;;  %v2466_v59 = vld [vmem:[%s3411_s2 + $0x38] sm:$0xff] (!%p654_p10) }
  0x2c   : > { %v721_v4 = vld [vmem:[%s669_s29] sm:$0xff] (!%p654_p10)  ;;  %v722_v5 = vld [vmem:[%s669_s29 + $0x8] sm:$0xff] (!%p654_p10)  ;;  %s662_s30 = scalar_lea.vmem (!%p654_p10), [#allocation2], %s2459_s28  ;;  %s3119_s15 = smov (!%p654_p10), 126   ;;  %vm1353_vm3 = vcmask (!%p654_p10), 1022976   ;;  %vm1569_vm4 = vcmask (!%p654_p10), 1014784  }
  0x2d   : > { %v717_v6 = vld [vmem:[%s662_s30] sm:$0xff] (!%p654_p10)  ;;  %v2964_v7 = vpack.i.bf16 (!%p654_p10), %v722_v5, %v721_v4  ;;  %v718_v8 = vld [vmem:[%s662_s30 + $0x8] sm:$0xff] (!%p654_p10)  ;;  %v719_v9 = vld [vmem:[%s662_s30 + $0x10] sm:$0xff] (!%p654_p10)  ;;  %s3120_s8 = smov (!%p654_p10), 125   ;;  %s3121_s9 = smov (!%p654_p10), 124   ;;  %vm1785_vm5 = vcmask (!%p654_p10), 1006592  }
  0x2e   : > { %v720_v10 = vld [vmem:[%s662_s30 + $0x18] sm:$0xff] (!%p654_p10)  ;;  %v2954_v11 = vpack.i.bf16 (!%p654_p10), %v718_v8, %v717_v6  ;;  %v3212_v14 = vpack.c.bf16 (!%p654_p10), %v719_v9, %v717_v6  ;;  %s3122_s10 = smov (!%p654_p10), 123   ;;  %s3123_s11 = smov (!%p654_p10), 122   ;;  %v723_v62 = vld [vmem:[%s3411_s2] sm:$0xff] (!%p654_p10)  ;;  %v724_v3 = vld [vmem:[%s3411_s2 + $0x8] sm:$0xff] (!%p654_p10)  ;;  %vm2001_vm6 = vcmask (!%p654_p10), 998400  }
  0x2f   : > { %2965 = vrot.lane.b32.xlu1 (!%p654_p10), %v2964_v7, %s3118_s5  ;;  %v2959_v13 = vpack.i.bf16 (!%p654_p10), %v720_v10, %v719_v9  ;;  %v3216_v15 = vpack.c.bf16 (!%p654_p10), %v720_v10, %v718_v8  ;;  %v725_v10 = vld [vmem:[%s3411_s2 + $0x10] sm:$0xff] (!%p654_p10)  ;;  %p708_p11 = scmp.lt.s32.totalorder (!%p654_p10), %s3092_s17, 1 }
  0x30   : > { %2955 = vrot.lane.b32.xlu0 (!%p654_p10), %v2954_v11, %s3118_s5 }
  0x31   : > { %s3424_s17 = smov (!%p708_p11, %s3092_s17), 1 }
  0x32   : > { %s2545_s14 = sshll.u32 %s3424_s17, 6 }
  0x33   : > { %2970 = vrot.lane.b32.xlu1 %v2954_v11, %s3119_s15  ;;  %s715_s25 = scalar_lea.vmem %s3413_s4, %s2545_s14 }
  0x34   : > { %2960 = vrot.lane.b32.xlu0 %v2959_v13, %s3118_s5 }
  0x37   : > { %2980 = vrot.lane.b32.xlu1 %v2964_v7, %s3119_s15 }
  0x38   : > { %2975 = vrot.lane.b32.xlu0 %v2959_v13, %s3119_s15 }
  0x3b   : > { %2990 = vrot.lane.b32.xlu1 %v2959_v13, %s3120_s8 }
  0x3c   : > { %2985 = vrot.lane.b32.xlu0 %v2954_v11, %s3120_s8 }
  0x3f   : > { %3000 = vrot.lane.b32.xlu1 %v2954_v11, %s3121_s9 }
  0x40   : > { %2995 = vrot.lane.b32.xlu0 %v2964_v7, %s3120_s8 }
  0x43   : > { %3010 = vrot.lane.b32.xlu1 %v2964_v7, %s3121_s9 }
  0x44   : > { %3005 = vrot.lane.b32.xlu0 %v2959_v13, %s3121_s9 }
  0x47   : > { %3020 = vrot.lane.b32.xlu1 %v2959_v13, %s3122_s10 }
  0x48   : > { %3015 = vrot.lane.b32.xlu0 %v2954_v11, %s3122_s10 }
  0x4b   : > { %3030 = vrot.lane.b32.xlu1 %v2954_v11, %s3123_s11 }
  0x4c   : > { %3025 = vrot.lane.b32.xlu0 %v2964_v7, %s3122_s10 }
  0x4f   : > { %3040 = vrot.lane.b32.xlu1 %v2964_v7, %s3123_s11 }
  0x50   : > { %3035 = vrot.lane.b32.xlu0 %v2959_v13, %s3123_s11 }
  0x53   : > { %2215 = vperm.xlu1 %3045, %v2205_v16  }
  0x54   : > { %2210 = vperm.xlu0 %3044, %v2204_v17   ;;  %v726_v17 = vld [vmem:[%s3411_s2 + $0x18] sm:$0xff] }
  0x57   : > { %2220 = vperm.xlu1 %3045, %v2206_v19   ;;  %v2483_v19 = vld [vmem:[%s3411_s2 + $0x40] sm:$0xff] }
  0x58   : > { %2225 = vperm.xlu0 %3044, %v2207_v20  }
  0xa1   : > { %v2966_v21 = vpop.permute.xlu1 %2965 }
  0xa2   : > { %v2956_v22 = vpop.permute.xlu0 %2955  ;;  %v2968_v23 = vunpack.i.h.bf16 %v2966_v21  ;;  %v2967_v24 = vunpack.i.l.bf16 %v2966_v21 }
  0xa3   : > { %v2958_v25 = vunpack.i.h.bf16 %v2956_v22  ;;  %v2957_v26 = vunpack.i.l.bf16 %v2956_v22 }
  0xa5   : > { %v2971_v27 = vpop.permute.xlu1 %2970  ;;  %v745_v33 = vsel %vm744_vm1, %v2957_v26, %v2958_v25  ;;  %v950_v35 = vsel %vm744_vm1, %v2958_v25, %v2967_v24  ;;  %v2484_v25 = vld [vmem:[%s3411_s2 + $0x48] sm:$0xff] }
  0xa6   : > { %v2961_v28 = vpop.permute.xlu0 %2960  ;;  %v2973_v31 = vunpack.i.h.bf16 %v2971_v27  ;;  %v2972_v32 = vunpack.i.l.bf16 %v2971_v27  ;;  %v2485_v27 = vld [vmem:[%s3411_s2 + $0x50] sm:$0xff] }
  0xa7   : > { %v2963_v29 = vunpack.i.h.bf16 %v2961_v28  ;;  %v2962_v30 = vunpack.i.l.bf16 %v2961_v28 }
  0xa8   : > { %v1138_v45 = vsel %vm1137_vm2, %v2972_v32, %v2973_v31 }
  0xa9   : > { %v746_v34 = vsel %vm744_vm1, %v2962_v30, %v2963_v29  ;;  %v951_v36 = vsel %vm744_vm1, %v2963_v29, %v2968_v23  ;;  %v2981_v37 = vpop.permute.xlu1 %2980 }
  0xaa   : > { %v2770_v38 = vpack.c.bf16 %v746_v34, %v745_v33  ;;  %v2778_v39 = vpack.c.bf16 %v951_v36, %v950_v35  ;;  %v2983_v40 = vunpack.i.h.bf16 %v2981_v37  ;;  %v2982_v41 = vunpack.i.l.bf16 %v2981_v37  ;;  %v2976_v42 = vpop.permute.xlu0 %2975  ;;  %v2486_v37 = vld [vmem:[%s3411_s2 + $0x58] sm:$0xff] }
  0xab   : > { %v2978_v43 = vunpack.i.h.bf16 %v2976_v42  ;;  %v2977_v44 = vunpack.i.l.bf16 %v2976_v42 }
  0xac   : > { %2771 = vmatprep.subr.bf16.mxu0 %v2770_v38  ;;  %2779 = vmatprep.subr.bf16.mxu1 %v2778_v39  ;;  %v1247_v46 = vsel %vm1137_vm2, %v2973_v31, %v2982_v41 }
  0xad   : > { %2773 = vmatpush3.bf16.msra.mxu0 %v2770_v38  ;;  %2781 = vmatpush3.bf16.msra.mxu1 %v2778_v39  ;;  %v1139_v48 = vsel %vm1137_vm2, %v2977_v44, %v2978_v43  ;;  %v1248_v49 = vsel %vm1137_vm2, %v2978_v43, %v2983_v40  ;;  %v2991_v50 = vpop.permute.xlu1 %2990  ;;  %v2495_v38 = vld [vmem:[%s3411_s2 + $0x60] sm:$0xff]  ;;  %v2496_v43 = vld [vmem:[%s3411_s2 + $0x68] sm:$0xff] }
  0xae   : > { %2775 = vmatprep.subr.bf16.mxu0 %v3212_v14  ;;  %2783 = vmatprep.subr.bf16.mxu1 %v3216_v15  ;;  %v2986_v51 = vpop.permute.xlu0 %2985  ;;  %v2786_v53 = vpack.c.bf16 %v1139_v48, %v1138_v45  ;;  %v2790_v54 = vpack.c.bf16 %v1248_v49, %v1247_v46  ;;  %v2993_v57 = vunpack.i.h.bf16 %v2991_v50  ;;  %v2992_v58 = vunpack.i.l.bf16 %v2991_v50  ;;  %v2497_v48 = vld [vmem:[%s3411_s2 + $0x70] sm:$0xff] }
  0xaf   : > { %v2988_v55 = vunpack.i.h.bf16 %v2986_v51  ;;  %v2987_v56 = vunpack.i.l.bf16 %v2986_v51 }
  0xb0   : > { %2635 = vmatmul.mubr.msk.f32.vlgmr.msra.gmra.mrb[0].mxu0 %vm749_vm0, %v2464_v47  ;;  %2655 = vmatmul.mubr.msk.f32.vlgmr.msra.gmra.mrb[0].mxu1 %vm749_vm0, %v2464_v47  ;;  %v1355_v2 = vsel %vm1353_vm3, %v2992_v58, %v2993_v57 }
  0xb1   : > { %2777 = vmatpush3.bf16.msra.mxu0 %v3212_v14  ;;  %2785 = vmatpush3.bf16.msra.mxu1 %v3216_v15  ;;  %v3001_v60 = vpop.permute.xlu1 %3000  ;;  %v1354_v1 = vsel %vm1353_vm3, %v2987_v56, %v2988_v55  ;;  %v2507_v56 = vld [vmem:[%s3411_s2 + $0x80] sm:$0xff] }
  0xb2   : > { %2637 = vmatprep.mubr.msk.f32.mxu0 %vm749_vm0, %v2465_v52  ;;  %2657 = vmatprep.mubr.msk.f32.mxu1 %vm749_vm0, %v2465_v52  ;;  %v2996_v61 = vpop.permute.xlu0 %2995  ;;  %v3003_v8 = vunpack.i.h.bf16 %v3001_v60  ;;  %v3002_v9 = vunpack.i.l.bf16 %v3001_v60  ;;  %v2794_v11 = vpack.c.bf16 %v1355_v2, %v1354_v1  ;;  %v2510_v1 = vld [vmem:[%s3411_s2 + $0x98] sm:$0xff]  ;;  %v2519_v2 = vld [vmem:[%s3411_s2 + $0xa0] sm:$0xff] }
  0xb3   : > { %2787 = vmatprep.subr.bf16.mxu0 %v2786_v53  ;;  %2791 = vmatprep.subr.bf16.mxu1 %v2790_v54  ;;  %v2998_v63 = vunpack.i.h.bf16 %v2996_v61  ;;  %v2997_v0 = vunpack.i.l.bf16 %v2996_v61  ;;  %v2508_v61 = vld [vmem:[%s3411_s2 + $0x88] sm:$0xff] }
  0xb4   : > { %2638 = vmatmul.mubr.msk.f32.gmra.mrb[2].mxu0 %vm749_vm0, %v2466_v59  ;;  %2658 = vmatmul.mubr.msk.f32.gmra.mrb[2].mxu1 %vm749_vm0, %v2466_v59  ;;  %v1570_v21 = vsel %vm1569_vm4, %v3002_v9, %v3003_v8  ;;  %v2534_v9 = vld [vmem:[%s3411_s2 + $0xd8] sm:$0xff] }
  0xb5   : > { %2644 = vmatprep.mubr.msk.f32.mxu0 %vm749_vm0, %v723_v62  ;;  %2664 = vmatprep.mubr.msk.f32.mxu1 %vm749_vm0, %v723_v62  ;;  %v1463_v4 = vsel %vm1353_vm3, %v2988_v55, %v2997_v0  ;;  %v1464_v5 = vsel %vm1353_vm3, %v2993_v57, %v2998_v63  ;;  %v3011_v6 = vpop.permute.xlu1 %3010  ;;  %v2498_v55 = vld [vmem:[%s3411_s2 + $0x78] sm:$0xff]  ;;  %v2509_v62 = vld [vmem:[%s3411_s2 + $0x90] sm:$0xff] }
  0xb6   : > { %v3006_v7 = vpop.permute.xlu0 %3005  ;;  %v2798_v12 = vpack.c.bf16 %v1464_v5, %v1463_v4  ;;  %v3013_v13 = vunpack.i.h.bf16 %v3011_v6  ;;  %v3012_v14 = vunpack.i.l.bf16 %v3011_v6  ;;  %v2521_v4 = vld [vmem:[%s3411_s2 + $0xb0] sm:$0xff]  ;;  %v2522_v5 = vld [vmem:[%s3411_s2 + $0xb8] sm:$0xff]  ;;  %v2531_v6 = vld [vmem:[%s3411_s2 + $0xc0] sm:$0xff] }
  0xb7   : > { %v3008_v15 = vunpack.i.h.bf16 %v3006_v7  ;;  %v3007_v16 = vunpack.i.l.bf16 %v3006_v7  ;;  %v2532_v7 = vld [vmem:[%s3411_s2 + $0xc8] sm:$0xff] }
  0xb8   : > { %2645 = vmatmul.mubr.msk.f32.vlgmr.msra.gmra.mrb[0].mxu0 %vm749_vm0, %v724_v3  ;;  %2665 = vmatmul.mubr.msk.f32.vlgmr.msra.gmra.mrb[0].mxu1 %vm749_vm0, %v724_v3  ;;  %v1679_v23 = vsel %vm1569_vm4, %v3003_v8, %v3012_v14  ;;  %v2520_v3 = vld [vmem:[%s3411_s2 + $0xa8] sm:$0xff]  ;;  %v2533_v8 = vld [vmem:[%s3411_s2 + $0xd0] sm:$0xff] }
  0xb9   : > { %2789 = vmatpush3.bf16.msra.mxu0 %v2786_v53  ;;  %2793 = vmatpush3.bf16.msra.mxu1 %v2790_v54  ;;  %v3021_v18 = vpop.permute.xlu1 %3020  ;;  %v1571_v22 = vsel %vm1569_vm4, %v3007_v16, %v3008_v15  ;;  %v1680_v24 = vsel %vm1569_vm4, %v3008_v15, %v3013_v13 }
  0xba   : > { %2647 = vmatprep.mubr.msk.f32.mxu0 %vm749_vm0, %v725_v10  ;;  %2667 = vmatprep.mubr.msk.f32.mxu1 %vm749_vm0, %v725_v10  ;;  %v3016_v20 = vpop.permute.xlu0 %3015  ;;  %v2802_v28 = vpack.c.bf16 %v1571_v22, %v1570_v21  ;;  %v2806_v29 = vpack.c.bf16 %v1680_v24, %v1679_v23  ;;  %v3023_v30 = vunpack.i.h.bf16 %v3021_v18  ;;  %v3022_v31 = vunpack.i.l.bf16 %v3021_v18 }
  0xbb   : > { %2795 = vmatprep.subr.bf16.mxu0 %v2794_v11  ;;  %2799 = vmatprep.subr.bf16.mxu1 %v2798_v12  ;;  %v3018_v33 = vunpack.i.h.bf16 %v3016_v20  ;;  %v3017_v34 = vunpack.i.l.bf16 %v3016_v20 }
  0xbc   : > { %2648 = vmatmul.mubr.msk.f32.gmra.mrb[2].mxu0 %vm749_vm0, %v726_v17  ;;  %2668 = vmatmul.mubr.msk.f32.gmra.mrb[2].mxu1 %vm749_vm0, %v726_v17  ;;  %v1787_v39 = vsel %vm1785_vm5, %v3022_v31, %v3023_v30 }
  0xbd   : > { %2674 = vmatprep.mubr.msk.f32.mxu0 %vm749_vm0, %v2483_v19  ;;  %2684 = vmatprep.mubr.msk.f32.mxu1 %vm749_vm0, %v2483_v19  ;;  %v3031_v32 = vpop.permute.xlu1 %3030  ;;  %v1786_v40 = vsel %vm1785_vm5, %v3017_v34, %v3018_v33 }
  0xbe   : > { %v3026_v26 = vpop.permute.xlu0 %3025  ;;  %v3033_v46 = vunpack.i.h.bf16 %v3031_v32  ;;  %v3032_v47 = vunpack.i.l.bf16 %v3031_v32  ;;  %v2810_v49 = vpack.c.bf16 %v1787_v39, %v1786_v40 }
  0xbf   : > { %v3028_v35 = vunpack.i.h.bf16 %v3026_v26  ;;  %v3027_v36 = vunpack.i.l.bf16 %v3026_v26 }
  0xc0   : > { %2675 = vmatmul.mubr.msk.f32.vlgmr.msra.gmra.mrb[0].mxu0 %vm749_vm0, %v2484_v25  ;;  %2685 = vmatmul.mubr.msk.f32.vlgmr.msra.gmra.mrb[0].mxu1 %vm749_vm0, %v2484_v25  ;;  %v2002_v57 = vsel %vm2001_vm6, %v3032_v47, %v3033_v46 }
  0xc1   : > { %2797 = vmatpush3.bf16.msra.mxu0 %v2794_v11  ;;  %2801 = vmatpush3.bf16.msra.mxu1 %v2798_v12  ;;  %v1895_v41 = vsel %vm1785_vm5, %v3018_v33, %v3027_v36  ;;  %v1896_v42 = vsel %vm1785_vm5, %v3023_v30, %v3028_v35  ;;  %v3041_v44 = vpop.permute.xlu1 %3040 }
  0xc2   : > { %2677 = vmatprep.mubr.msk.f32.mxu0 %vm749_vm0, %v2485_v27  ;;  %2687 = vmatprep.mubr.msk.f32.mxu1 %vm749_vm0, %v2485_v27  ;;  %v3036_v45 = vpop.permute.xlu0 %3035  ;;  %v2814_v50 = vpack.c.bf16 %v1896_v42, %v1895_v41  ;;  %v3043_v51 = vunpack.i.h.bf16 %v3041_v44  ;;  %v3042_v52 = vunpack.i.l.bf16 %v3041_v44 }
  0xc3   : > { %2803 = vmatprep.subr.bf16.mxu0 %v2802_v28  ;;  %2807 = vmatprep.subr.bf16.mxu1 %v2806_v29  ;;  %v3038_v53 = vunpack.i.h.bf16 %v3036_v45  ;;  %v3037_v54 = vunpack.i.l.bf16 %v3036_v45 }
  0xc4   : > { %2678 = vmatmul.mubr.msk.f32.gmra.mrb[2].mxu0 %vm749_vm0, %v2486_v37  ;;  %2688 = vmatmul.mubr.msk.f32.gmra.mrb[2].mxu1 %vm749_vm0, %v2486_v37  ;;  %v2111_v59 = vsel %vm2001_vm6, %v3033_v46, %v3042_v52 }
  0xc5   : > { %2694 = vmatprep.mubr.msk.f32.mxu0 %vm749_vm0, %v2495_v38  ;;  %2704 = vmatprep.mubr.msk.f32.mxu1 %vm749_vm0, %v2495_v38  ;;  %v2003_v58 = vsel %vm2001_vm6, %v3037_v54, %v3038_v53  ;;  %v2112_v60 = vsel %vm2001_vm6, %v3038_v53, %v3043_v51 }
  0xc6   : > { %v2818_v63 = vpack.c.bf16 %v2003_v58, %v2002_v57  ;;  %v2822_v0 = vpack.c.bf16 %v2112_v60, %v2111_v59 }
  0xc8   : > { %2695 = vmatmul.mubr.msk.f32.vlgmr.msra.gmra.mrb[0].mxu0 %vm749_vm0, %v2496_v43  ;;  %2705 = vmatmul.mubr.msk.f32.vlgmr.msra.gmra.mrb[0].mxu1 %vm749_vm0, %v2496_v43 }
  0xc9   : > { %2805 = vmatpush3.bf16.msra.mxu0 %v2802_v28  ;;  %2809 = vmatpush3.bf16.msra.mxu1 %v2806_v29 }
  0xca   : > { %2697 = vmatprep.mubr.msk.f32.mxu0 %vm749_vm0, %v2497_v48  ;;  %2707 = vmatprep.mubr.msk.f32.mxu1 %vm749_vm0, %v2497_v48 }
  0xcb   : > { %2811 = vmatprep.subr.bf16.mxu0 %v2810_v49  ;;  %2815 = vmatprep.subr.bf16.mxu1 %v2814_v50 }
  0xcc   : > { %2698 = vmatmul.mubr.msk.f32.gmra.mrb[2].mxu0 %vm749_vm0, %v2498_v55  ;;  %2708 = vmatmul.mubr.msk.f32.gmra.mrb[2].mxu1 %vm749_vm0, %v2498_v55 }
  0xcd   : > { %2714 = vmatprep.mubr.msk.f32.mxu0 %vm749_vm0, %v2507_v56  ;;  %2724 = vmatprep.mubr.msk.f32.mxu1 %vm749_vm0, %v2507_v56 }
  0xd0   : > { %2715 = vmatmul.mubr.msk.f32.vlgmr.msra.gmra.mrb[0].mxu0 %vm749_vm0, %v2508_v61  ;;  %2725 = vmatmul.mubr.msk.f32.vlgmr.msra.gmra.mrb[0].mxu1 %vm749_vm0, %v2508_v61 }
  0xd1   : > { %2813 = vmatpush3.bf16.msra.mxu0 %v2810_v49  ;;  %2817 = vmatpush3.bf16.msra.mxu1 %v2814_v50 }
  0xd2   : > { %2717 = vmatprep.mubr.msk.f32.mxu0 %vm749_vm0, %v2509_v62  ;;  %2727 = vmatprep.mubr.msk.f32.mxu1 %vm749_vm0, %v2509_v62  ;;  %v2216_v10 = vpop.permute.xlu1 %2215 }
  0xd3   : > { %2819 = vmatprep.subr.bf16.mxu0 %v2818_v63  ;;  %2823 = vmatprep.subr.bf16.mxu1 %v2822_v0  ;;  %v2211_v11 = vpop.permute.xlu0 %2210 }
  0xd4   : > { %2718 = vmatmul.mubr.msk.f32.gmra.mrb[2].mxu0 %vm749_vm0, %v2510_v1  ;;  %2728 = vmatmul.mubr.msk.f32.gmra.mrb[2].mxu1 %vm749_vm0, %v2510_v1 }
  0xd5   : > { %2734 = vmatprep.mubr.msk.f32.mxu0 %vm749_vm0, %v2519_v2  ;;  %2744 = vmatprep.mubr.msk.f32.mxu1 %vm749_vm0, %v2519_v2 }
  0xd6   : > { %v2221_v20 = vpop.permute.xlu1 %2220 }
  0xd7   : > { %v2226_v21 = vpop.permute.xlu0 %2225 }
  0xd8   : > { %2735 = vmatmul.mubr.msk.f32.vlgmr.msra.gmra.mrb[0].mxu0 %vm749_vm0, %v2520_v3  ;;  %2745 = vmatmul.mubr.msk.f32.vlgmr.msra.gmra.mrb[0].mxu1 %vm749_vm0, %v2520_v3 }
  0xd9   : > { %2821 = vmatpush3.bf16.msra.mxu0 %v2818_v63  ;;  %2825 = vmatpush3.bf16.msra.mxu1 %v2822_v0 }
  0xda   : > { %2737 = vmatprep.mubr.msk.f32.mxu0 %vm749_vm0, %v2521_v4  ;;  %2747 = vmatprep.mubr.msk.f32.mxu1 %vm749_vm0, %v2521_v4 }
  0xdc   : > { %2738 = vmatmul.mubr.msk.f32.gmra.mrb[2].mxu0 %vm749_vm0, %v2522_v5  ;;  %2748 = vmatmul.mubr.msk.f32.gmra.mrb[2].mxu1 %vm749_vm0, %v2522_v5 }
  0xdd   : > { %2754 = vmatprep.mubr.msk.f32.mxu0 %vm749_vm0, %v2531_v6  ;;  %2764 = vmatprep.mubr.msk.f32.mxu1 %vm749_vm0, %v2531_v6 }
  0xe0   : > { %2755 = vmatmul.mubr.msk.f32.vlgmr.msra.gmra.mrb[0].mxu0 %vm749_vm0, %v2532_v7  ;;  %2765 = vmatmul.mubr.msk.f32.vlgmr.msra.gmra.mrb[0].mxu1 %vm749_vm0, %v2532_v7 }
  0xe1   : > { %2757 = vmatprep.mubr.msk.f32.mxu0 %vm749_vm0, %v2533_v8  ;;  %2767 = vmatprep.mubr.msk.f32.mxu1 %vm749_vm0, %v2533_v8 }
  0xe4   : > { %2758 = vmatmul.mubr.msk.f32.gmra.mrb[2].mxu0 %vm749_vm0, %v2534_v9  ;;  %2768 = vmatmul.mubr.msk.f32.gmra.mrb[2].mxu1 %vm749_vm0, %v2534_v9 }
 0x1b3   : > { %v2756_v12 = vpop.f32.mrb[0].mxu0  ;;  %v2766_v13 = vpop.f32.mrb[0].mxu1 }
 0x1b4   : > { %v2229_v14 = vadd.f32 %v2756_v12, %v2216_v10  ;;  %v2233_v15 = vadd.f32 %v2766_v13, %v2216_v10  ;;  %v2084_v16 = vpop.f32.mrb[1].mxu0  ;;  %v2181_v17 = vpop.f32.mrb[1].mxu1 }
 0x1b5   : > { %v2228_v18 = vadd.f32 %v2211_v11, %v2084_v16  ;;  %v2232_v19 = vadd.f32 %v2211_v11, %v2181_v17 }
 0x1b6   : > { %2237 = vst [vmem:[%s715_s25 + $0x10] sm:$0xff] %v2229_v14  ;;  %2241 = vst [vmem:[%s715_s25 + $0x18] sm:$0xff] %v2233_v15 }
 0x1b7   : > { %2236 = vst [vmem:[%s715_s25] sm:$0xff] %v2228_v18  ;;  %2240 = vst [vmem:[%s715_s25 + $0x8] sm:$0xff] %v2232_v19  ;;  %v2759_v22 = vpop.f32.mrb[2].mxu0  ;;  %v2769_v23 = vpop.f32.mrb[2].mxu1 }
 0x1b8   : > { %v2231_v24 = vadd.f32 %v2759_v22, %v2226_v21  ;;  %v2235_v25 = vadd.f32 %v2769_v23, %v2226_v21  ;;  %v2094_v26 = vpop.f32.mrb[3].mxu0  ;;  %v2191_v27 = vpop.f32.mrb[3].mxu1 }
 0x1b9   : > { %v2230_v28 = vadd.f32 %v2221_v20, %v2094_v26  ;;  %v2234_v29 = vadd.f32 %v2221_v20, %v2191_v27 }
 0x1ba   : > { %2239 = vst [vmem:[%s715_s25 + $0x30] sm:$0xff] %v2231_v24  ;;  %2243 = vst [vmem:[%s715_s25 + $0x38] sm:$0xff] %v2235_v25 }
 0x1bb   : > { %2238 = vst [vmem:[%s715_s25 + $0x20] sm:$0xff] %v2230_v28  ;;  %2242 = vst [vmem:[%s715_s25 + $0x28] sm:$0xff] %v2234_v29 }
 0x1bc PF: > { %s14_s19 = sadd.s32 1, %s3100_s19   ;;  %s3415_s15 = smov %s3088_s16 }
 0x1bd   : > { %p11_p12 = scmp.ge.s32.totalorder %s14_s19, 4   ;;  %s3416_s16 = smov %s3189_s24 }
 0x1be   : > { %s3417_s17 = smov %s3096_s18  ;;  %s3418_s18 = smov %s3420_s20 }
 0x1bf   :  { %13 = sbr.rel (!%p11_p12) target bundleno = 3 (0x3), region = 251 }

// kernel: _lambda_.18
= control target key start
LH: loop header
LB: loop body
LE: loop exit
PB: predicated region body
PF: predicated region fallthrough
CT: control target
= control target key end

     0   :  { %s2343_s21 = smov 0   ;;  %s2345_s22 = smov 0   ;;  %s2607_s0 = inlined_call_operand.vmem [shape: f32[2,16,384], index: 0, kind: input, shape index: {}, may-alias: {0,1}]   ;;  %s2608_s1 = inlined_call_operand.vmem [shape: f32[2,16,384], index: 1, kind: input, shape index: {}, may-alias: {0,1}]   ;;  %s2609_s2 = inlined_call_operand.vmem [shape: f32[3,16,16], index: 2, kind: input, shape index: {}]   ;;  %s2610_s3 = inlined_call_operand.vmem [shape: f32[16,1], index: 3, kind: input, shape index: {}]   ;;  %s2611_s4 = inlined_call_operand.vmem [shape: f32[3,16,16], index: 4, kind: input, shape index: {}]   ;;  %s2612_s5 = inlined_call_operand.vmem [shape: f32[16,1], index: 5, kind: input, shape index: {}]   ;;  %s2613_s6 = inlined_call_operand.vmem [shape: f32[2,16,256], index: 6, kind: output, shape index: {}]  }
   0x1   :  { %s2347_s23 = smov 0   ;;  %s2349_s24 = smov 0  }
   0x2   :  { %s2351_s25 = smov 0  }
   0x3 LB: > { %s28_s26 = sadd.s32 1, %s2282_s24  ;;  %p44_p1 = scmp.ne.s32.totalorder %s2274_s22, %s2270_s21  ;;  %s2286_s25 = sphi %s2351_s25, %s16_s25   ;;  %s2282_s24 = sphi %s2349_s24, %s2618_s24   ;;  %s2278_s23 = sphi %s2347_s23, %s2617_s23   ;;  %s2274_s22 = sphi %s2345_s22, %s2616_s22   ;;  %s2270_s21 = sphi %s2343_s21, %s2615_s21  }
   0x4   : > { %p30_p0 = scmp.ge.s32.totalorder %s28_s26, 2  ;;  %p45_p2 = scmp.eq.s32.totalorder %s2286_s25, 0 }
   0x5   : > { %s37_s29 = sadd.s32 1, %s2274_s22  ;;  %p1956_p5 = scmp.ge.s32.totalorder %s2286_s25, 2 }
   0x6   : > { %s2620_s26 = smov (%p30_p0, %s28_s26), 0  ;;  %p2374_p3 = por %p45_p2, %p44_p1 }
   0x7   : > { %s32_s28 = ssub.s32 %s2282_s24, %s2620_s26  ;;  %226 = sbr.rel (%p1956_p5) target bundleno = 38 (0x26), region = 32 }
   0x8   : > { %p35_p4 = scmp.eq.s32.totalorder %s32_s28, 0 }
   0xa   : > { %s2382_s30 = scalar_select %p35_p4, %s2274_s22, %s37_s29  }
   0xe   : > { %229 = sbr.rel (!%p2374_p3) target bundleno = 31 (0x1f), region = 36  ;;  %s231_s7 = sand.u32 (%p2374_p3), 1, %s2274_s22  }
   0xf   : > { %s2093_s8 = smul.u32 (%p2374_p3), 48, %s2282_s24  ;;  %s1957_s9 = sshll.u32 (%p2374_p3), %s231_s7, 5 }
  0x10   : > { %s233_s13 = scalar_lea.vmem (%p2374_p3), [#allocation2], %s1957_s9   ;;  %s2296_s16 = smov (%p2374_p3), 0  }
  0x11   : > { %s243_s12 = scalar_lea.vmem (%p2374_p3), %s2607_s0, %s2093_s8   ;;  %s2288_s14 = smov (%p2374_p3), %s233_s13  }
  0x12   : > { %s2292_s15 = smov (%p2374_p3), %s243_s12   ;;  %s2300_s17 = smov (%p2374_p3), 0  }
  0x15 LB: >> { %v441_v0 = vld [vmem:[%s2294_s15] sm:$0xff]  ;;  %v443_v1 = vld [vmem:[%s2294_s15 + $0x18] sm:$0xff]  ;;  %s445_s18 = sadd.s32 1, %s2298_s16  ;;  %s435_s17 = sadd.s32 1, %s2302_s17   ;;  %s2302_s17 = sphi %s2300_s17, %s435_s17   ;;  %s2298_s16 = sphi %s2296_s16, %s2297_s16   ;;  %s2294_s15 = sphi %s2292_s15, %s450_s15   ;;  %s2290_s14 = sphi %s2288_s14, %s451_s14  }
  0x16   : >> { %442 = vst [vmem:[%s2290_s14] sm:$0xff] %v441_v0  ;;  %444 = vst [vmem:[%s2290_s14 + $0x10] sm:$0xff] %v443_v1  ;;  %p446_p6 = scmp.ge.s32.totalorder %s445_s18, 2  ;;  %p434_p7 = scmp.ge.s32.totalorder %s435_s17, 2 }
  0x18   : >> { %s2622_s18 = smov (%p446_p6, %s445_s18), 0  ;;  %437 = sbr.rel (!%p434_p7) target bundleno = 21 (0x15), region = 224 }
  0x19   : >> { %s1961_s19 = sshll.u32 %s2622_s18, 3  ;;  %s2297_s16 = smov %s2622_s18  }
  0x1a   : >> { %s450_s15 = scalar_lea.vmem %s243_s12, %s1961_s19   ;;  %s451_s14 = scalar_lea.vmem %s233_s13, %s1961_s19 [#allocation2]  }
  0x1f PF: > { %655 = sbr.rel (!%p2374_p3) target bundleno = 38 (0x26), region = 102  ;;  %s657_s20 = sand.u32 (%p2374_p3), 1, %s2274_s22  }
  0x20   : > { %s1970_s28 = smul.u32 (%p2374_p3), 48, %s2282_s24  ;;  %s1969_s29 = sshll.u32 (%p2374_p3), %s657_s20, 4 }
  0x21   : > { %s659_s10 = scalar_lea.vmem (%p2374_p3), [#allocation3], %s1969_s29 }
  0x22   : > { %s1824_s9 = scalar_lea.vmem (%p2374_p3), %s2608_s1, %s1970_s28 }
  0x23   : > { %v1971_v2 = vld [vmem:[%s1824_s9 + $0x10] sm:$0xff] (%p2374_p3)  ;;  %v1972_v3 = vld [vmem:[%s1824_s9 + $0x28] sm:$0xff] (%p2374_p3) }
  0x24   : > { %696 = vst [vmem:[%s659_s10] sm:$0xff] (%p2374_p3), %v1971_v2  ;;  %698 = vst [vmem:[%s659_s10 + $0x8] sm:$0xff] (%p2374_p3), %v1972_v3 }
  0x26 PF: > { %p1973_p8 = scmp.ge.s32.totalorder %s2286_s25, 1  ;;  %p703_p9 = scmp.lt.s32.totalorder %s2286_s25, 3 }
  0x28   : > { %p704_p10 = pnand %p1973_p8, %p703_p9 }
  0x29   : > { %s710_s27 = sand.u32 (!%p704_p10), 1, %s2270_s21   ;;  %s2304_s21 = smov (!%p704_p10), 127   ;;  %v2305_v26 = vmov (!%p704_p10), 0.0   ;;  %v1336_v29 = vld [vmem:[%s2610_s3] sm:$0xff] (!%p704_p10)  ;;  %v1337_v30 = vld [vmem:[%s2610_s3 + $0x8] sm:$0xff] (!%p704_p10)  ;;  %v2307_v31 = vmov (!%p704_p10), 0  }
  0x2a   : > { %707 = sbr.rel (%p704_p10) target bundleno = 768 (0x300), region = 140  ;;  %s1974_s11 = sshll.u32 (!%p704_p10), %s710_s27, 5  ;;  %906 = vmatprep.mubr.f32.mxu1 (!%p704_p10), %v2305_v26  ;;  %900 = vmatprep.mubr.f32.mxu0 (!%p704_p10), %v2305_v26  ;;  %vm818_vm6 = vcmask (!%p704_p10), 1039360   ;;  %vm1161_vm7 = vcmask (!%p704_p10), 1031168   ;;  %v1979_v56 = vld [vmem:[%s2609_s2 + $0x18] sm:$0xff] (!%p704_p10)  ;;  %vm829_vm8 = vcmask (!%p704_p10), 130048  }
  0x2b   : > { %s1975_s12 = sshll.u32 (!%p704_p10), %s710_s27, 4  ;;  %s712_s13 = scalar_lea.vmem (!%p704_p10), [#allocation2], %s1974_s11  ;;  %2200 = vset.pattern.permute.xlu0 (!%p704_p10), %v2307_v31  ;;  %2201 = vset.pattern.permute.xlu1 (!%p704_p10), %v2307_v31  ;;  %v1978_v57 = vld [vmem:[%s2609_s2 + $0x10] sm:$0xff] (!%p704_p10)  ;;  %v795_v0 = vld [vmem:[%s2609_s2] sm:$0xff] (!%p704_p10)  ;;  %v796_v1 = vld [vmem:[%s2609_s2 + $0x8] sm:$0xff] (!%p704_p10) }
  0x2c   : > { %v2402_v4 = vld [vmem:[%s712_s13 + $0x8] sm:$0xff] (!%p704_p10)  ;;  %s719_s14 = scalar_lea.vmem (!%p704_p10), [#allocation3], %s1975_s12  ;;  %v2412_v9 = vld [vmem:[%s712_s13] sm:$0xff] (!%p704_p10)  ;;  %v2414_v10 = vld [vmem:[%s712_s13 + $0x10] sm:$0xff] (!%p704_p10)  ;;  %s2306_s15 = smov (!%p704_p10), 126  }
  0x2d   : > { %v2404_v5 = vld [vmem:[%s719_s14] sm:$0xff] (!%p704_p10)  ;;  %v2406_v6 = vld [vmem:[%s719_s14 + $0x8] sm:$0xff] (!%p704_p10)  ;;  %vm778_vm0 = vcmp.ge.f32.partialorder (!%p704_p10), %v2402_v4, 0.0  ;;  %v784_v7 = vmul.f32 (!%p704_p10), 0.1, %v2402_v4  ;;  %vm777_vm3 = vcmp.ge.f32.partialorder (!%p704_p10), %v2412_v9, 0.0 }
  0x2e   : > { %vm779_vm1 = vcmp.ge.f32.partialorder (!%p704_p10), %v2404_v5, 0.0  ;;  %v785_v8 = vmul.f32 (!%p704_p10), 0.1, %v2404_v5  ;;  %v2416_v11 = vld [vmem:[%s712_s13 + $0x18] sm:$0xff] (!%p704_p10)  ;;  %vm782_vm2 = vcmp.ge.f32.partialorder (!%p704_p10), %v2406_v6, 0.0  ;;  %vm780_vm4 = vcmp.ge.f32.partialorder (!%p704_p10), %v2414_v10, 0.0 }
  0x2f   : > { %v788_v12 = vmul.f32 (!%p704_p10), 0.1, %v2406_v6  ;;  %v2421_v13 = vsel (!%p704_p10), %vm778_vm0, %v2402_v4, %v784_v7  ;;  %v783_v16 = vmul.f32 (!%p704_p10), 0.1, %v2412_v9  ;;  %v786_v17 = vmul.f32 (!%p704_p10), 0.1, %v2414_v10 }
  0x30   : > { %v791_v14 = vsel (!%p704_p10), %vm779_vm1, %v2404_v5, %v785_v8  ;;  %vm781_vm5 = vcmp.ge.f32.partialorder (!%p704_p10), %v2416_v11, 0.0  ;;  %v787_v18 = vmul.f32 (!%p704_p10), 0.1, %v2416_v11  ;;  %v1988_v7 = vld [vmem:[%s2609_s2 + $0x20] sm:$0xff] (!%p704_p10)  ;;  %v1989_v8 = vld [vmem:[%s2609_s2 + $0x28] sm:$0xff] (!%p704_p10)  ;;  %p762_p11 = scmp.lt.s32.totalorder (!%p704_p10), %s2278_s23, 1 }
  0x31   : > { %v2170_v15 = vpack.i.bf16 %v791_v14, %v2421_v13  ;;  %v794_v19 = vsel %vm782_vm2, %v2406_v6, %v788_v12  ;;  %v2434_v20 = vsel %vm777_vm3, %v2412_v9, %v783_v16  ;;  %v2437_v21 = vsel %vm780_vm4, %v2414_v10, %v786_v17 }
  0x32   : > { %v2180_v22 = vpack.i.bf16 %v2437_v21, %v2434_v20  ;;  %v2063_v23 = vpack.c.bf16 %v2437_v21, %v2434_v20  ;;  %v2444_v24 = vsel %vm781_vm5, %v2416_v11, %v787_v18  ;;  %v2065_v27 = vpack.c.bf16 %v794_v19, %v791_v14  ;;  %s2624_s23 = smov (!%p762_p11, %s2278_s23), 1 }
  0x33   : > { %2171 = vrot.lane.b32.xlu0 %v2170_v15, %s2304_s21  ;;  %v2175_v25 = vpack.i.bf16 %v794_v19, %v2444_v24  ;;  %v2061_v28 = vpack.c.bf16 %v2444_v24, %v2421_v13  ;;  %s2008_s13 = sshll.u32 %s2624_s23, 5 }
  0x34   : > { %2181 = vrot.lane.b32.xlu1 %v2180_v22, %s2304_s21  ;;  %s769_s17 = scalar_lea.vmem %s2613_s6, %s2008_s13 }
  0x37   : > { %2176 = vrot.lane.b32.xlu0 %v2175_v25, %s2304_s21 }
  0x38   : > { %2186 = vrot.lane.b32.xlu1 %v2170_v15, %s2306_s15 }
  0x3b   : > { %2191 = vrot.lane.b32.xlu0 %v2175_v25, %s2306_s15  ;;  %v1372_v25 = vlaneseq }
  0x3c   : > { %2196 = vrot.lane.b32.xlu1 %v2180_v22, %s2306_s15 }
  0x3f   : > { %1340 = vperm.xlu0 %2200, %v1336_v29  }
  0x40   : > { %1345 = vperm.xlu1 %2201, %v1337_v30  }
  0x43   : > { %2208 = vrot.lane.b32.xlu0 %v2305_v26, %s2304_s21 }
  0x44   : > { %2203 = vrot.lane.b32.xlu1 %v2305_v26, %s2304_s21 }
  0x47   : > { %2213 = vrot.lane.b32.xlu0 %v2305_v26, %s2306_s15 }
  0xa5   : > { %v2172_v32 = vpop.permute.xlu0 %2171 }
  0xa6   : > { %v2174_v33 = vunpack.i.h.bf16 %v2172_v32  ;;  %v2173_v34 = vunpack.i.l.bf16 %v2172_v32  ;;  %v2182_v35 = vpop.permute.xlu1 %2181 }
  0xa7   : > { %v2184_v36 = vunpack.i.h.bf16 %v2182_v35  ;;  %v2183_v37 = vunpack.i.l.bf16 %v2182_v35 }
  0xa8   : > { %v820_v42 = vsel %vm818_vm6, %v2173_v34, %v2174_v33 }
  0xa9   : > { %v2177_v38 = vpop.permute.xlu0 %2176  ;;  %v819_v44 = vsel %vm818_vm6, %v2183_v37, %v2173_v34  ;;  %v1373_v37 = vand.u32 127, %v1372_v25 }
  0xaa   : > { %v2179_v39 = vunpack.i.h.bf16 %v2177_v38  ;;  %v2178_v40 = vunpack.i.l.bf16 %v2177_v38  ;;  %v2187_v41 = vpop.permute.xlu1 %2186 }
  0xab   : > { %v2189_v46 = vunpack.i.h.bf16 %v2187_v41  ;;  %v2188_v47 = vunpack.i.l.bf16 %v2187_v41  ;;  %vm1381_vm10 = vcmp.ge.s32.totalorder %v1373_v37, 1  ;;  %vm1384_vm11 = vcmp.lt.s32.totalorder %v1373_v37, 17 }
  0xac   : > { %v822_v43 = vsel %vm818_vm6, %v2178_v40, %v2179_v39  ;;  %v821_v45 = vsel %vm818_vm6, %v2184_v36, %v2178_v40  ;;  %v2057_v53 = vpack.c.bf16 %v2179_v39, %v2174_v33  ;;  %vm1387_vm13 = vmand %vm1381_vm10, %vm1384_vm11 }
  0xad   : > { %v2053_v48 = vpack.c.bf16 %v822_v43, %v820_v42  ;;  %v2192_v49 = vpop.permute.xlu0 %2191  ;;  %v2055_v50 = vpack.c.bf16 %v821_v45, %v819_v44  ;;  %v1163_v54 = vsel %vm1161_vm7, %v2188_v47, %v2189_v46  ;;  %vm2082_vm14 = vmpackc.low %vm1387_vm13, %vm1387_vm13 }
  0xae   : > { %v2194_v51 = vunpack.i.h.bf16 %v2192_v49  ;;  %v2193_v52 = vunpack.i.l.bf16 %v2192_v49  ;;  %v2197_v55 = vpop.permute.xlu1 %2196 }
  0xaf   : > { %2054 = vmatprep.subr.bf16.mxu0 %v2053_v48  ;;  %2091 = vmatprep.subr.bf16.mxu1 %v2053_v48  ;;  %v2199_v59 = vunpack.i.h.bf16 %v2197_v55  ;;  %v2198_v60 = vunpack.i.l.bf16 %v2197_v55 }
  0xb0   : > { %2056 = vmatpush1.bf16.msra.mxu0 %v2055_v50  ;;  %2092 = vmatpush1.bf16.msra.mxu1 %v2055_v50  ;;  %v1165_v58 = vsel %vm1161_vm7, %v2193_v52, %v2194_v51  ;;  %v2073_v3 = vpack.c.bf16 %v2194_v51, %v2189_v46 }
  0xb1   : > { %2058 = vmatprep.subr.bf16.mxu1 %v2057_v53  ;;  %2066 = vmatprep.subr.bf16.mxu0 %v2065_v27  ;;  %v2069_v61 = vpack.c.bf16 %v1165_v58, %v1163_v54  ;;  %v1164_v62 = vsel %vm1161_vm7, %v2199_v59, %v2193_v52  ;;  %v1162_v63 = vsel %vm1161_vm7, %v2198_v60, %v2188_v47  ;;  %v1402_v54 = vld [vmem:[%s2611_s4] sm:$0xff]  ;;  %v1403_v59 = vld [vmem:[%s2611_s4 + $0x8] sm:$0xff] }
  0xb2   : > { %v2071_v2 = vpack.c.bf16 %v1164_v62, %v1162_v63  ;;  %v1710_v60 = vld [vmem:[%s2612_s5 + $0x8] sm:$0xff] }
  0xb3   : > { %1981 = vmatmul.mubr.msk.f32.vlgmr.msra.gmra.mrb[0].mxu1 %vm829_vm8, %v1979_v56  ;;  %1980 = vmatmul.mubr.msk.f32.vlgmr.msra.gmra.mrb[0].mxu0 %vm829_vm8, %v1978_v57 }
  0xb4   : > { %2060 = vmatpush3.bf16.msra.mxu1 %v2057_v53  ;;  %2068 = vmatpush3.bf16.msra.mxu0 %v2065_v27 }
  0xb5   : > { %2029 = vmatprep.mubr.msk.f32.mxu1 %vm829_vm8, %v1978_v57  ;;  %2070 = vmatprep.subr.bf16.mxu0 %v2069_v61  ;;  %v1709_v61 = vld [vmem:[%s2612_s5] sm:$0xff] }
  0xb6   : > { %2062 = vmatprep.subr.bf16.mxu1 %v2061_v28  ;;  %2036 = vmatprep.mubr.msk.f32.mxu0 %vm829_vm8, %v795_v0 }
  0xb7   : > { %2030 = vmatmul.mubr.msk.f32.vlgmr.msra.gmra.mrb[2].mxu1 %vm829_vm8, %v1979_v56  ;;  %2037 = vmatmul.mubr.msk.f32.vlgmr.msra.gmra.mrb[2].mxu0 %vm829_vm8, %v796_v1 }
  0xb8   : > { %2064 = vmatpush1.bf16.msra.mxu1 %v2063_v23  ;;  %2072 = vmatpush1.bf16.msra.mxu0 %v2071_v2 }
  0xb9   : > { %2074 = vmatprep.subr.bf16.mxu1 %v2073_v3  ;;  %1058 = vmatprep.mubr.f32.mxu1 %v2305_v26 }
  0xba   : > { %1242 = vmatprep.mubr.f32.mxu0 %v2305_v26 }
  0xbb   : > { %1984 = vmatmul.mubr.msk.f32.vlgmr.msra.gmra.mrb[4].mxu1 %vm829_vm8, %v795_v0  ;;  %1990 = vmatmul.mubr.msk.f32.vlgmr.msra.gmra.mrb[4].mxu0 %vm829_vm8, %v1988_v7 }
  0xbc   : > { %2076 = vmatpush3.bf16.msra.mxu1 %v2073_v3  ;;  %1064 = vmatprep.mubr.f32.mxu1 %v2305_v26 }
  0xbd   : > { %1248 = vmatprep.mubr.f32.mxu0 %v2305_v26 }
  0xbe   : > { %v1341_v16 = vpop.permute.xlu0 %1340 }
  0xbf   : > { %1985 = vmatmul.mubr.msk.f32.gmra.mrb[6].mxu1 %vm829_vm8, %v796_v1  ;;  %1991 = vmatmul.mubr.msk.f32.gmra.mrb[6].mxu0 %vm829_vm8, %v1989_v8  ;;  %v1346_v21 = vpop.permute.xlu1 %1345 }
  0xc0   : > { %2043 = vmatprep.mubr.msk.f32.mxu1 %vm829_vm8, %v1988_v7  ;;  %2050 = vmatprep.mubr.msk.f32.mxu0 %vm829_vm8, %v1402_v54 }
  0xc2   : > { %v2514_v22 = vpop.permute.xlu0 %2208 }
  0xc3   : > { %2044 = vmatmul.mubr.msk.f32.vlgmr.msra.gmra.mrb[8].mxu1 %vm829_vm8, %v1989_v8  ;;  %v2211_v30 = vunpack.i.h.bf16 %v2514_v22  ;;  %v2210_v31 = vunpack.i.l.bf16 %v2514_v22  ;;  %v2518_v32 = vpop.permute.xlu1 %2203  ;;  %v2003_v22 = vld [vmem:[%s2611_s4 + $0x28] sm:$0xff] }
  0xc4   : > { %1503 = vmatprep.mubr.f32.mxu1 %v2305_v26  ;;  %v2206_v34 = vunpack.i.h.bf16 %v2518_v32  ;;  %v2205_v38 = vunpack.i.l.bf16 %v2518_v32 }
  0xc5   : > { %v1428_v43 = vsel %vm818_vm6, %v2210_v31, %v2211_v30 }
  0xc6   : > { %v1426_v44 = vsel %vm818_vm6, %v2205_v38, %v2206_v34  ;;  %v2214_v62 = vpop.permute.xlu0 %2213 }
  0xc7   : > { %v2077_v47 = vpack.c.bf16 %v1428_v43, %v1426_v44  ;;  %v2216_v2 = vunpack.i.h.bf16 %v2214_v62  ;;  %v2215_v3 = vunpack.i.l.bf16 %v2214_v62 }
  0xc9   : > { %2078 = vmatprep.subr.bf16.mxu1 %v2077_v47 }
 0x186   : > { %v908_v12 = vpop.f32.mrb[0].mxu1  ;;  %v902_v13 = vpop.f32.mrb[0].mxu0 }
 0x187   : > { %v910_v14 = vpop.f32.mrb[1].mxu1  ;;  %v904_v15 = vpop.f32.mrb[1].mxu0 }
 0x18a   : > { %v2031_v17 = vpop.f32.mrb[2].mxu1  ;;  %v2038_v18 = vpop.f32.mrb[2].mxu0 }
 0x18b   : > { %v979_v19 = vpop.f32.mrb[3].mxu1  ;;  %v1137_v20 = vpop.f32.mrb[3].mxu0 }
 0x18c   : > { %v1995_v20 = vld [vmem:[%s2611_s4 + $0x18] sm:$0xff] }
 0x18e   : > { %v1060_v23 = vpop.f32.mrb[4].mxu1  ;;  %v1244_v24 = vpop.f32.mrb[4].mxu0 }
 0x18f   : > { %v1061_v27 = vadd.f32 %v1060_v23, %v902_v13  ;;  %v1062_v28 = vpop.f32.mrb[5].mxu1  ;;  %v1246_v29 = vpop.f32.mrb[5].mxu0 }
 0x191   : > { %v1330_v33 = vadd.f32 %v1244_v24, %v1061_v27 }
 0x192   : > { %v1066_v35 = vpop.f32.mrb[6].mxu1  ;;  %v1250_v36 = vpop.f32.mrb[6].mxu0 }
 0x193   : > { %v1348_v39 = vadd.f32 %v1341_v16, %v1330_v33  ;;  %v1067_v40 = vadd.f32 %v1066_v35, %v908_v12  ;;  %v1068_v41 = vpop.f32.mrb[7].mxu1  ;;  %v1252_v42 = vpop.f32.mrb[7].mxu0  ;;  %v1615_v16 = vsel %vm1161_vm7, %v2215_v3, %v2216_v2 }
 0x195   : > { %v1360_v45 = vmul.f32 0.1, %v1348_v39  ;;  %v1333_v46 = vadd.f32 %v1250_v36, %v1067_v40  ;;  %vm1354_vm9 = vcmp.ge.f32.partialorder %v1348_v39, 0.0 }
 0x196   : > { %v2045_v48 = vpop.f32.mrb[8].mxu1 }
 0x197   : > { %v1351_v49 = vadd.f32 %v1346_v21, %v1333_v46  ;;  %v1321_v50 = vpop.f32.mrb[9].mxu1  ;;  %v1366_v51 = vsel %vm1354_vm9, %v1348_v39, %v1360_v45  ;;  %v2002_v21 = vld [vmem:[%s2611_s4 + $0x20] sm:$0xff] }
 0x198   : > { %v1396_v56 = vsel %vm1387_vm13, %v1366_v51, 0.0 }
 0x199   : > { %vm1357_vm12 = vcmp.ge.f32.partialorder %v1351_v49, 0.0  ;;  %v1363_v52 = vmul.f32 0.1, %v1351_v49 }
 0x19b   : > { %v1369_v53 = vsel %vm1357_vm12, %v1351_v49, %v1363_v52 }
 0x19c   : > { %v2081_v55 = vpack.c.bf16 %v1369_v53, %v1366_v51  ;;  %v1399_v57 = vsel %vm1387_vm13, %v1369_v53, 0.0 }
 0x19d   : > { %v2227_v58 = vpack.i.bf16 %v1399_v57, %v1396_v56 }
 0x19e   : > { %2083 = vmatprep.subr.msk.bf16.mxu0 %vm2082_vm14, %v2081_v55 }
 0x19f   : > { %2086 = vmatpush3.bf16.msk.msra.mxu0 %vm2082_vm14, %v2081_v55  ;;  %2228 = vrot.lane.b32.xlu0 %v2227_v58, %s2306_s15 }
 0x1a0   : > { %2218 = vrot.lane.b32.xlu1 %v2227_v58, %s2304_s21 }
 0x1a2   : > { %2051 = vmatmul.mubr.msk.f32.vlgmr.msra.gmra.mrb[8].mxu0 %vm829_vm8, %v1403_v59 }
 0x1a3   : > { %1718 = vperm.xlu0 %2200, %v1710_v60   ;;  %1692 = vmatprep.mubr.f32.mxu0 %v2305_v26 }
 0x1a4   : > { %2223 = vrot.lane.b32.xlu1 %v2305_v26, %s2306_s15 }
 0x1a7   : > { %1733 = vrot.lane.b32.xlu0 %v2402_v4, %s2306_s15 }
 0x1a8   : > { %1713 = vperm.xlu1 %2201, %v1709_v61  }
 0x1ab   : > { %1737 = vrot.lane.b32.xlu0 %v2414_v10, %s2306_s15 }
 0x1ac   : > { %1731 = vrot.lane.b32.xlu1 %v2412_v9, %s2306_s15 }
 0x1af   : > { %1741 = vrot.lane.b32.xlu0 %v2406_v6, %s2306_s15 }
 0x1b0   : > { %1735 = vrot.lane.b32.xlu1 %v2404_v5, %s2306_s15 }
 0x1b4   : > { %1739 = vrot.lane.b32.xlu1 %v2416_v11, %s2306_s15  ;;  %v1994_v11 = vld [vmem:[%s2611_s4 + $0x10] sm:$0xff] }
 0x211   : > { %v2229_v63 = vpop.permute.xlu0 %2228 }
 0x212   : > { %v2219_v0 = vpop.permute.xlu1 %2218  ;;  %v2230_v10 = vunpack.i.l.bf16 %v2229_v63  ;;  %v2231_v5 = vunpack.i.h.bf16 %v2229_v63 }
 0x213   : > { %v2221_v4 = vunpack.i.h.bf16 %v2219_v0  ;;  %v2220_v1 = vunpack.i.l.bf16 %v2219_v0 }
 0x214   : > { %v1614_v14 = vsel %vm1161_vm7, %v2230_v10, %v2215_v3 }
 0x215   : > { %v1427_v9 = vsel %vm818_vm6, %v2221_v4, %v2210_v31  ;;  %v1425_v6 = vsel %vm818_vm6, %v2220_v1, %v2205_v38 }
 0x216   : > { %v2079_v7 = vpack.c.bf16 %v1427_v9, %v1425_v6  ;;  %v2224_v8 = vpop.permute.xlu1 %2223 }
 0x217   : > { %v2226_v12 = vunpack.i.h.bf16 %v2224_v8  ;;  %v2225_v13 = vunpack.i.l.bf16 %v2224_v8 }
 0x218   : > { %2080 = vmatpush1.bf16.msra.mxu1 %v2079_v7 }
 0x219   : > { %v1616_v15 = vsel %vm1161_vm7, %v2231_v5, %v2225_v13  ;;  %v1617_v17 = vsel %vm1161_vm7, %v2225_v13, %v2226_v12 }
 0x21a   : > { %v2089_v18 = vpack.c.bf16 %v1616_v15, %v1614_v14  ;;  %v2087_v19 = vpack.c.bf16 %v1617_v17, %v1615_v16 }
 0x21b   : > { %1996 = vmatmul.mubr.msk.f32.vlgmr.msra.gmra.mrb[10].mxu1 %vm829_vm8, %v1994_v11 }
 0x21c   : > { %2088 = vmatprep.subr.bf16.mxu0 %v2087_v19  ;;  %1509 = vmatprep.mubr.f32.mxu1 %v2305_v26 }
 0x21d   : > { %2090 = vmatpush1.bf16.msra.mxu0 %v2089_v18 }
 0x21f   : > { %1997 = vmatmul.mubr.msk.f32.gmra.mrb[12].mxu1 %vm829_vm8, %v1995_v20 }
 0x220   : > { %2004 = vmatmul.mubr.msk.f32.vlgmr.msra.gmra.mrb[10].mxu0 %vm829_vm8, %v2002_v21 }
 0x221   : > { %1698 = vmatprep.mubr.f32.mxu0 %v2305_v26 }
 0x222   : > { %v1719_v25 = vpop.permute.xlu0 %1718 }
 0x224   : > { %2005 = vmatmul.mubr.msk.f32.gmra.mrb[12].mxu0 %vm829_vm8, %v2003_v22 }
 0x226   : > { %v1734_v28 = vpop.permute.xlu0 %1733 }
 0x227   : > { %v1714_v27 = vpop.permute.xlu1 %1713 }
 0x22a   : > { %v1738_v33 = vpop.permute.xlu0 %1737 }
 0x22b   : > { %v1732_v29 = vpop.permute.xlu1 %1731 }
 0x22c   : > { %v1743_v42 = vsel %vm1161_vm7, %v1732_v29, %v1734_v28 }
 0x22e   : > { %v1742_v45 = vpop.permute.xlu0 %1741 }
 0x22f   : > { %v1736_v26 = vpop.permute.xlu1 %1735 }
 0x230   : > { %v1744_v47 = vsel %vm1161_vm7, %v1734_v28, %v1736_v26 }
 0x233   : > { %v1740_v49 = vpop.permute.xlu1 %1739 }
 0x234   : > { %v1746_v54 = vsel %vm1161_vm7, %v1740_v49, %v1742_v45  ;;  %v1745_v55 = vsel %vm1161_vm7, %v1738_v33, %v1740_v49 }
 0x275   : > { %v2052_v23 = vpop.f32.mrb[8].mxu0 }
 0x276   : > { %v1588_v24 = vpop.f32.mrb[9].mxu0 }
 0x2ee   : > { %v1505_v30 = vpop.f32.mrb[10].mxu1 }
 0x2ef   : > { %v1589_v31 = vadd.f32 %v1588_v24, %v1505_v30  ;;  %v1507_v32 = vpop.f32.mrb[11].mxu1 }
 0x2f2   : > { %v1511_v34 = vpop.f32.mrb[12].mxu1 }
 0x2f3   : > { %v1595_v35 = vadd.f32 %v2052_v23, %v1511_v34  ;;  %v1694_v36 = vpop.f32.mrb[10].mxu0  ;;  %v1513_v37 = vpop.f32.mrb[13].mxu1 }
 0x2f4   : > { %v1705_v38 = vadd.f32 %v1694_v36, %v1589_v31  ;;  %v1696_v39 = vpop.f32.mrb[11].mxu0 }
 0x2f5   : > { %v1706_v40 = vadd.f32 %v1696_v39, %v1507_v32 }
 0x2f6   : > { %v1721_v41 = vadd.f32 %v1714_v27, %v1705_v38 }
 0x2f7   : > { %v1722_v43 = vadd.f32 %v1714_v27, %v1706_v40  ;;  %v1700_v44 = vpop.f32.mrb[12].mxu0 }
 0x2f8   : > { %v1751_v46 = vadd.f32 %v1743_v42, %v1721_v41  ;;  %v1707_v48 = vadd.f32 %v1700_v44, %v1595_v35  ;;  %v1702_v50 = vpop.f32.mrb[13].mxu0 }
 0x2f9   : > { %v1752_v51 = vadd.f32 %v1744_v47, %v1722_v43  ;;  %v1708_v52 = vadd.f32 %v1702_v50, %v1513_v37 }
 0x2fa   : > { %1755 = vst [vmem:[%s769_s17] sm:$0xff] %v1751_v46  ;;  %v1723_v53 = vadd.f32 %v1719_v25, %v1707_v48 }
 0x2fb   : > { %1756 = vst [vmem:[%s769_s17 + $0x8] sm:$0xff] %v1752_v51  ;;  %v1724_v56 = vadd.f32 %v1719_v25, %v1708_v52 }
 0x2fc   : > { %v1753_v57 = vadd.f32 %v1745_v55, %v1723_v53 }
 0x2fd   : > { %v1754_v58 = vadd.f32 %v1746_v54, %v1724_v56 }
 0x2fe   : > { %1757 = vst [vmem:[%s769_s17 + $0x10] sm:$0xff] %v1753_v57 }
 0x2ff   : > { %1758 = vst [vmem:[%s769_s17 + $0x18] sm:$0xff] %v1754_v58 }
 0x300 PF: > { %s16_s25 = sadd.s32 1, %s2286_s25   ;;  %s2615_s21 = smov %s2274_s22 }
 0x301   : > { %p13_p12 = scmp.ge.s32.totalorder %s16_s25, 4   ;;  %s2616_s22 = smov %s2382_s30 }
 0x302   : > { %s2617_s23 = smov %s2282_s24  ;;  %s2618_s24 = smov %s2620_s26 }
 0x303   :  { %15 = sbr.rel (!%p13_p12) target bundleno = 3 (0x3), region = 257 }

// kernel: _lambda_.24
= control target key start
LH: loop header
LB: loop body
LE: loop exit
PB: predicated region body
PF: predicated region fallthrough
CT: control target
= control target key end

     0   :  { %s1834_s15 = smov 0   ;;  %s1836_s16 = smov 0   ;;  %s1953_s0 = inlined_call_operand.vmem [shape: f32[2,16,384], index: 0, kind: input, shape index: {}, may-alias: {0,1}]   ;;  %s1954_s1 = inlined_call_operand.vmem [shape: f32[2,16,384], index: 1, kind: input, shape index: {}, may-alias: {0,1}]   ;;  %s1955_s2 = inlined_call_operand.vmem [shape: f32[3,16,16], index: 2, kind: input, shape index: {}]   ;;  %s1956_s3 = inlined_call_operand.vmem [shape: f32[16,1], index: 3, kind: input, shape index: {}]   ;;  %s1957_s4 = inlined_call_operand.vmem [shape: f32[2,16,256], index: 4, kind: output, shape index: {}]  }
   0x1   :  { %s1838_s17 = smov 0   ;;  %s1840_s18 = smov 0  }
   0x2   :  { %s1842_s19 = smov 0  }
   0x3 LB: > { %s26_s20 = sadd.s32 1, %s1784_s18  ;;  %p42_p1 = scmp.ne.s32.totalorder %s1776_s16, %s1772_s15  ;;  %s1788_s19 = sphi %s1842_s19, %s14_s19   ;;  %s1784_s18 = sphi %s1840_s18, %s1962_s18   ;;  %s1780_s17 = sphi %s1838_s17, %s1961_s17   ;;  %s1776_s16 = sphi %s1836_s16, %s1960_s16   ;;  %s1772_s15 = sphi %s1834_s15, %s1959_s15  }
   0x4   : > { %p28_p0 = scmp.ge.s32.totalorder %s26_s20, 2  ;;  %p43_p2 = scmp.eq.s32.totalorder %s1788_s19, 0 }
   0x5   : > { %s35_s23 = sadd.s32 1, %s1776_s16  ;;  %p1487_p5 = scmp.ge.s32.totalorder %s1788_s19, 2 }
   0x6   : > { %s1964_s20 = smov (%p28_p0, %s26_s20), 0  ;;  %p1865_p3 = por %p43_p2, %p42_p1 }
   0x7   : > { %s30_s22 = ssub.s32 %s1784_s18, %s1964_s20  ;;  %176 = sbr.rel (%p1487_p5) target bundleno = 38 (0x26), region = 24 }
   0x8   : > { %p33_p4 = scmp.eq.s32.totalorder %s30_s22, 0 }
   0xa   : > { %s1873_s24 = scalar_select %p33_p4, %s1776_s16, %s35_s23  }
   0xe   : > { %179 = sbr.rel (!%p1865_p3) target bundleno = 31 (0x1f), region = 28  ;;  %s181_s25 = sand.u32 (%p1865_p3), 1, %s1776_s16  }
   0xf   : > { %s1626_s26 = smul.u32 (%p1865_p3), 48, %s1784_s18  ;;  %s1488_s27 = sshll.u32 (%p1865_p3), %s181_s25, 5 }
  0x10   : > { %s183_s5 = scalar_lea.vmem (%p1865_p3), [#allocation2], %s1488_s27   ;;  %s1798_s8 = smov (%p1865_p3), 0  }
  0x11   : > { %s193_s30 = scalar_lea.vmem (%p1865_p3), %s1953_s0, %s1626_s26   ;;  %s1790_s6 = smov (%p1865_p3), %s183_s5  }
  0x12   : > { %s1794_s7 = smov (%p1865_p3), %s193_s30   ;;  %s1802_s9 = smov (%p1865_p3), 0  }
  0x15 LB: >> { %v391_v0 = vld [vmem:[%s1796_s7] sm:$0xff]  ;;  %v393_v1 = vld [vmem:[%s1796_s7 + $0x18] sm:$0xff]  ;;  %s395_s10 = sadd.s32 1, %s1800_s8  ;;  %s385_s9 = sadd.s32 1, %s1804_s9   ;;  %s1804_s9 = sphi %s1802_s9, %s385_s9   ;;  %s1800_s8 = sphi %s1798_s8, %s1799_s8   ;;  %s1796_s7 = sphi %s1794_s7, %s400_s7   ;;  %s1792_s6 = sphi %s1790_s6, %s401_s6  }
  0x16   : >> { %392 = vst [vmem:[%s1792_s6] sm:$0xff] %v391_v0  ;;  %394 = vst [vmem:[%s1792_s6 + $0x10] sm:$0xff] %v393_v1  ;;  %p396_p6 = scmp.ge.s32.totalorder %s395_s10, 2  ;;  %p384_p7 = scmp.ge.s32.totalorder %s385_s9, 2 }
  0x18   : >> { %s1966_s10 = smov (%p396_p6, %s395_s10), 0  ;;  %387 = sbr.rel (!%p384_p7) target bundleno = 21 (0x15), region = 214 }
  0x19   : >> { %s1492_s11 = sshll.u32 %s1966_s10, 3  ;;  %s1799_s8 = smov %s1966_s10  }
  0x1a   : >> { %s400_s7 = scalar_lea.vmem %s193_s30, %s1492_s11   ;;  %s401_s6 = scalar_lea.vmem %s183_s5, %s1492_s11 [#allocation2]  }
  0x1f PF: > { %605 = sbr.rel (!%p1865_p3) target bundleno = 38 (0x26), region = 94  ;;  %s607_s12 = sand.u32 (%p1865_p3), 1, %s1776_s16  }
  0x20   : > { %s1501_s13 = smul.u32 (%p1865_p3), 48, %s1784_s18  ;;  %s1500_s14 = sshll.u32 (%p1865_p3), %s607_s12, 4 }
  0x21   : > { %s609_s26 = scalar_lea.vmem (%p1865_p3), [#allocation3], %s1500_s14 }
  0x22   : > { %s1355_s25 = scalar_lea.vmem (%p1865_p3), %s1954_s1, %s1501_s13 }
  0x23   : > { %v1502_v2 = vld [vmem:[%s1355_s25 + $0x10] sm:$0xff] (%p1865_p3)  ;;  %v1503_v3 = vld [vmem:[%s1355_s25 + $0x28] sm:$0xff] (%p1865_p3) }
  0x24   : > { %646 = vst [vmem:[%s609_s26] sm:$0xff] (%p1865_p3), %v1502_v2  ;;  %648 = vst [vmem:[%s609_s26 + $0x8] sm:$0xff] (%p1865_p3), %v1503_v3 }
  0x26 PF: > { %p1504_p8 = scmp.ge.s32.totalorder %s1788_s19, 1  ;;  %p653_p9 = scmp.lt.s32.totalorder %s1788_s19, 3 }
  0x28   : > { %p654_p10 = pnand %p1504_p8, %p653_p9 }
  0x29   : > { %s660_s21 = sand.u32 (!%p654_p10), 1, %s1772_s15   ;;  %v1509_v21 = vld [vmem:[%s1955_s2 + $0x10] sm:$0xff] (!%p654_p10)  ;;  %s1806_s6 = smov (!%p654_p10), 127   ;;  %vm763_vm6 = vcmask (!%p654_p10), 130048   ;;  %v1271_v28 = vld [vmem:[%s1956_s3 + $0x8] sm:$0xff] (!%p654_p10)  ;;  %v1270_v29 = vld [vmem:[%s1956_s3] sm:$0xff] (!%p654_p10) }
  0x2a   : > { %657 = sbr.rel (%p654_p10) target bundleno = 412 (0x19c), region = 132  ;;  %s1506_s27 = sshll.u32 (!%p654_p10), %s660_s21, 4  ;;  %1556 = vmatprep.mubr.msk.f32.mxu0 (!%p654_p10), %vm763_vm6, %v1509_v21  ;;  %1570 = vmatprep.mubr.msk.f32.mxu1 (!%p654_p10), %vm763_vm6, %v1509_v21  ;;  %v1808_v30 = vmov (!%p654_p10), 0   ;;  %vm758_vm7 = vcmask (!%p654_p10), 1039360   ;;  %vm1097_vm8 = vcmask (!%p654_p10), 1031168   ;;  %v1510_v57 = vld [vmem:[%s1955_s2 + $0x18] sm:$0xff] (!%p654_p10) }
  0x2b   : > { %s1505_s28 = sshll.u32 (!%p654_p10), %s660_s21, 5  ;;  %s669_s29 = scalar_lea.vmem (!%p654_p10), [#allocation3], %s1506_s27  ;;  %1733 = vset.pattern.permute.xlu1 (!%p654_p10), %v1808_v30  ;;  %1732 = vset.pattern.permute.xlu0 (!%p654_p10), %v1808_v30  ;;  %v741_v62 = vld [vmem:[%s1955_s2] sm:$0xff] (!%p654_p10)  ;;  %v742_v63 = vld [vmem:[%s1955_s2 + $0x8] sm:$0xff] (!%p654_p10) }
  0x2c   : > { %v721_v4 = vld [vmem:[%s669_s29] sm:$0xff] (!%p654_p10)  ;;  %v722_v5 = vld [vmem:[%s669_s29 + $0x8] sm:$0xff] (!%p654_p10)  ;;  %s662_s30 = scalar_lea.vmem (!%p654_p10), [#allocation2], %s1505_s28  ;;  %s1807_s7 = smov (!%p654_p10), 126  }
  0x2d   : > { %v717_v6 = vld [vmem:[%s662_s30] sm:$0xff] (!%p654_p10)  ;;  %vm735_vm0 = vcmp.ge.f32.partialorder (!%p654_p10), %v721_v4, 0.0  ;;  %vm736_vm1 = vcmp.ge.f32.partialorder (!%p654_p10), %v722_v5, 0.0  ;;  %v737_v7 = vmul.f32 (!%p654_p10), 0.1, %v721_v4  ;;  %v718_v9 = vld [vmem:[%s662_s30 + $0x8] sm:$0xff] (!%p654_p10) }
  0x2e   : > { %v738_v8 = vmul.f32 (!%p654_p10), 0.1, %v722_v5  ;;  %vm723_vm2 = vcmp.ge.f32.partialorder (!%p654_p10), %v717_v6, 0.0  ;;  %v727_v10 = vmul.f32 (!%p654_p10), 0.1, %v717_v6  ;;  %v719_v11 = vld [vmem:[%s662_s30 + $0x10] sm:$0xff] (!%p654_p10) }
  0x2f   : > { %v720_v12 = vld [vmem:[%s662_s30 + $0x18] sm:$0xff] (!%p654_p10)  ;;  %v739_v13 = vsel (!%p654_p10), %vm735_vm0, %v721_v4, %v737_v7  ;;  %vm724_vm3 = vcmp.ge.f32.partialorder (!%p654_p10), %v718_v9, 0.0  ;;  %v728_v15 = vmul.f32 (!%p654_p10), 0.1, %v718_v9  ;;  %vm725_vm4 = vcmp.ge.f32.partialorder (!%p654_p10), %v719_v11, 0.0  ;;  %v1519_v0 = vld [vmem:[%s1955_s2 + $0x20] sm:$0xff] (!%p654_p10) }
  0x30   : > { %v740_v14 = vsel (!%p654_p10), %vm736_vm1, %v722_v5, %v738_v8  ;;  %v731_v17 = vsel (!%p654_p10), %vm723_vm2, %v717_v6, %v727_v10  ;;  %vm726_vm5 = vcmp.ge.f32.partialorder (!%p654_p10), %v720_v12, 0.0  ;;  %v729_v19 = vmul.f32 (!%p654_p10), 0.1, %v719_v11  ;;  %v1520_v1 = vld [vmem:[%s1955_s2 + $0x28] sm:$0xff] (!%p654_p10)  ;;  %p708_p11 = scmp.lt.s32.totalorder (!%p654_p10), %s1780_s17, 1 }
  0x31   : > { %v1712_v16 = vpack.i.bf16 %v740_v14, %v739_v13  ;;  %v732_v18 = vsel %vm724_vm3, %v718_v9, %v728_v15  ;;  %v730_v20 = vmul.f32 0.1, %v720_v12 }
  0x32   : > { %v1702_v22 = vpack.i.bf16 %v732_v18, %v731_v17  ;;  %v733_v23 = vsel %vm725_vm4, %v719_v11, %v729_v19  ;;  %s1968_s17 = smov (!%p708_p11, %s1780_s17), 1 }
  0x33   : > { %1713 = vrot.lane.b32.xlu1 %v1712_v16, %s1806_s6  ;;  %v734_v24 = vsel %vm726_vm5, %v720_v12, %v730_v20  ;;  %v1598_v26 = vpack.c.bf16 %v733_v23, %v731_v17  ;;  %s1527_s29 = sshll.u32 %s1968_s17, 5 }
  0x34   : > { %1703 = vrot.lane.b32.xlu0 %v1702_v22, %s1806_s6  ;;  %v1707_v25 = vpack.i.bf16 %v734_v24, %v733_v23  ;;  %v1606_v27 = vpack.c.bf16 %v734_v24, %v732_v18  ;;  %s715_s5 = scalar_lea.vmem %s1957_s4, %s1527_s29 }
  0x37   : > { %1718 = vrot.lane.b32.xlu1 %v1702_v22, %s1807_s7 }
  0x38   : > { %1708 = vrot.lane.b32.xlu0 %v1707_v25, %s1806_s6 }
  0x3b   : > { %1728 = vrot.lane.b32.xlu1 %v1712_v16, %s1807_s7 }
  0x3c   : > { %1723 = vrot.lane.b32.xlu0 %v1707_v25, %s1807_s7 }
  0x3f   : > { %1279 = vperm.xlu1 %1733, %v1271_v28  }
  0x40   : > { %1274 = vperm.xlu0 %1732, %v1270_v29  }
  0xa5   : > { %v1714_v31 = vpop.permute.xlu1 %1713 }
  0xa6   : > { %v1704_v32 = vpop.permute.xlu0 %1703  ;;  %v1715_v33 = vunpack.i.l.bf16 %v1714_v31  ;;  %v1716_v37 = vunpack.i.h.bf16 %v1714_v31 }
  0xa7   : > { %v1706_v34 = vunpack.i.h.bf16 %v1704_v32  ;;  %v1705_v35 = vunpack.i.l.bf16 %v1704_v32 }
  0xa9   : > { %v1719_v36 = vpop.permute.xlu1 %1718  ;;  %v759_v43 = vsel %vm758_vm7, %v1705_v35, %v1706_v34  ;;  %v932_v44 = vsel %vm758_vm7, %v1706_v34, %v1715_v33 }
  0xaa   : > { %v1709_v38 = vpop.permute.xlu0 %1708  ;;  %v1721_v41 = vunpack.i.h.bf16 %v1719_v36  ;;  %v1720_v42 = vunpack.i.l.bf16 %v1719_v36 }
  0xab   : > { %v1711_v39 = vunpack.i.h.bf16 %v1709_v38  ;;  %v1710_v40 = vunpack.i.l.bf16 %v1709_v38 }
  0xac   : > { %v1098_v55 = vsel %vm1097_vm8, %v1720_v42, %v1721_v41 }
  0xad   : > { %v1729_v45 = vpop.permute.xlu1 %1728  ;;  %v760_v46 = vsel %vm758_vm7, %v1710_v40, %v1711_v39  ;;  %v933_v47 = vsel %vm758_vm7, %v1711_v39, %v1716_v37 }
  0xae   : > { %v1731_v48 = vunpack.i.h.bf16 %v1729_v45  ;;  %v1730_v49 = vunpack.i.l.bf16 %v1729_v45  ;;  %v1594_v50 = vpack.c.bf16 %v760_v46, %v759_v43  ;;  %v1602_v51 = vpack.c.bf16 %v933_v47, %v932_v44  ;;  %v1724_v52 = vpop.permute.xlu0 %1723 }
  0xaf   : > { %v1726_v53 = vunpack.i.h.bf16 %v1724_v52  ;;  %v1725_v54 = vunpack.i.l.bf16 %v1724_v52 }
  0xb0   : > { %v1189_v56 = vsel %vm1097_vm8, %v1721_v41, %v1730_v49  ;;  %1595 = vmatprep.subr.bf16.mxu0 %v1594_v50  ;;  %1603 = vmatprep.subr.bf16.mxu1 %v1602_v51 }
  0xb1   : > { %1597 = vmatpush3.bf16.msra.mxu0 %v1594_v50  ;;  %1605 = vmatpush3.bf16.msra.mxu1 %v1602_v51  ;;  %v1099_v58 = vsel %vm1097_vm8, %v1725_v54, %v1726_v53  ;;  %v1190_v59 = vsel %vm1097_vm8, %v1726_v53, %v1731_v48 }
  0xb2   : > { %1599 = vmatprep.subr.bf16.mxu0 %v1598_v26  ;;  %1607 = vmatprep.subr.bf16.mxu1 %v1606_v27  ;;  %v1610_v60 = vpack.c.bf16 %v1099_v58, %v1098_v55  ;;  %v1614_v61 = vpack.c.bf16 %v1190_v59, %v1189_v56 }
  0xb4   : > { %1557 = vmatmul.mubr.msk.f32.vlgmr.msra.gmra.mrb[0].mxu0 %vm763_vm6, %v1510_v57  ;;  %1571 = vmatmul.mubr.msk.f32.vlgmr.msra.gmra.mrb[0].mxu1 %vm763_vm6, %v1510_v57 }
  0xb5   : > { %1601 = vmatpush3.bf16.msra.mxu0 %v1598_v26  ;;  %1609 = vmatpush3.bf16.msra.mxu1 %v1606_v27 }
  0xb6   : > { %1611 = vmatprep.subr.bf16.mxu0 %v1610_v60  ;;  %1615 = vmatprep.subr.bf16.mxu1 %v1614_v61 }
  0xb7   : > { %1563 = vmatprep.mubr.msk.f32.mxu0 %vm763_vm6, %v741_v62  ;;  %1577 = vmatprep.mubr.msk.f32.mxu1 %vm763_vm6, %v741_v62 }
  0xbc   : > { %1564 = vmatmul.mubr.msk.f32.vlgmr.msra.gmra.mrb[0].mxu0 %vm763_vm6, %v742_v63  ;;  %1578 = vmatmul.mubr.msk.f32.vlgmr.msra.gmra.mrb[0].mxu1 %vm763_vm6, %v742_v63 }
  0xbd   : > { %1613 = vmatpush3.bf16.msra.mxu0 %v1610_v60  ;;  %1617 = vmatpush3.bf16.msra.mxu1 %v1614_v61 }
  0xbe   : > { %1584 = vmatprep.mubr.msk.f32.mxu0 %vm763_vm6, %v1519_v0  ;;  %1591 = vmatprep.mubr.msk.f32.mxu1 %vm763_vm6, %v1519_v0  ;;  %v1280_v2 = vpop.permute.xlu1 %1279 }
  0xbf   : > { %v1275_v3 = vpop.permute.xlu0 %1274 }
  0xc4   : > { %1585 = vmatmul.mubr.msk.f32.vlgmr.msra.gmra.mrb[0].mxu0 %vm763_vm6, %v1520_v1  ;;  %1592 = vmatmul.mubr.msk.f32.vlgmr.msra.gmra.mrb[0].mxu1 %vm763_vm6, %v1520_v1 }
 0x197   : > { %v1586_v4 = vpop.f32.mrb[0].mxu0  ;;  %v1593_v5 = vpop.f32.mrb[0].mxu1 }
 0x198   : > { %v1283_v6 = vadd.f32 %v1586_v4, %v1280_v2  ;;  %v1285_v7 = vadd.f32 %v1593_v5, %v1280_v2  ;;  %v1174_v8 = vpop.f32.mrb[1].mxu0  ;;  %v1259_v9 = vpop.f32.mrb[1].mxu1 }
 0x199   : > { %v1282_v10 = vadd.f32 %v1275_v3, %v1174_v8  ;;  %v1284_v11 = vadd.f32 %v1275_v3, %v1259_v9 }
 0x19a   : > { %1287 = vst [vmem:[%s715_s5 + $0x10] sm:$0xff] %v1283_v6  ;;  %1289 = vst [vmem:[%s715_s5 + $0x18] sm:$0xff] %v1285_v7 }
 0x19b   : > { %1286 = vst [vmem:[%s715_s5] sm:$0xff] %v1282_v10  ;;  %1288 = vst [vmem:[%s715_s5 + $0x8] sm:$0xff] %v1284_v11 }
 0x19c PF: > { %s14_s19 = sadd.s32 1, %s1788_s19   ;;  %s1959_s15 = smov %s1776_s16 }
 0x19d   : > { %p11_p12 = scmp.ge.s32.totalorder %s14_s19, 4   ;;  %s1960_s16 = smov %s1873_s24 }
 0x19e   : > { %s1961_s17 = smov %s1784_s18  ;;  %s1962_s18 = smov %s1964_s20 }
 0x19f   :  { %13 = sbr.rel (!%p11_p12) target bundleno = 3 (0x3), region = 247 }

// kernel: _lambda_.20
= control target key start
LH: loop header
LB: loop body
LE: loop exit
PB: predicated region body
PF: predicated region fallthrough
CT: control target
= control target key end

     0   :  { %s2352_s21 = smov 0   ;;  %s2354_s22 = smov 0   ;;  %s2596_s0 = inlined_call_operand.vmem [shape: f32[2,16,384], index: 0, kind: input, shape index: {}, may-alias: {0,1}]   ;;  %s2597_s1 = inlined_call_operand.vmem [shape: f32[2,16,384], index: 1, kind: input, shape index: {}, may-alias: {0,1}]   ;;  %s2598_s2 = inlined_call_operand.vmem [shape: f32[3,16,16], index: 2, kind: input, shape index: {}]   ;;  %s2599_s3 = inlined_call_operand.vmem [shape: f32[16,1], index: 3, kind: input, shape index: {}]   ;;  %s2600_s4 = inlined_call_operand.vmem [shape: f32[3,16,16], index: 4, kind: input, shape index: {}]   ;;  %s2601_s5 = inlined_call_operand.vmem [shape: f32[16,1], index: 5, kind: input, shape index: {}]   ;;  %s2602_s6 = inlined_call_operand.vmem [shape: f32[2,16,256], index: 6, kind: output, shape index: {}]  }
   0x1   :  { %s2356_s23 = smov 0   ;;  %s2358_s24 = smov 0  }
   0x2   :  { %s2360_s25 = smov 0  }
   0x3 LB: > { %s28_s26 = sadd.s32 1, %s2288_s24  ;;  %p44_p1 = scmp.ne.s32.totalorder %s2280_s22, %s2276_s21  ;;  %s2292_s25 = sphi %s2360_s25, %s16_s25   ;;  %s2288_s24 = sphi %s2358_s24, %s2607_s24   ;;  %s2284_s23 = sphi %s2356_s23, %s2606_s23   ;;  %s2280_s22 = sphi %s2354_s22, %s2605_s22   ;;  %s2276_s21 = sphi %s2352_s21, %s2604_s21  }
   0x4   : > { %p30_p0 = scmp.ge.s32.totalorder %s28_s26, 2  ;;  %p45_p2 = scmp.eq.s32.totalorder %s2292_s25, 0 }
   0x5   : > { %s37_s29 = sadd.s32 1, %s2280_s22  ;;  %p1959_p5 = scmp.ge.s32.totalorder %s2292_s25, 2 }
   0x6   : > { %s2609_s26 = smov (%p30_p0, %s28_s26), 0  ;;  %p2383_p3 = por %p45_p2, %p44_p1 }
   0x7   : > { %s32_s28 = ssub.s32 %s2288_s24, %s2609_s26  ;;  %226 = sbr.rel (%p1959_p5) target bundleno = 38 (0x26), region = 32 }
   0x8   : > { %p35_p4 = scmp.eq.s32.totalorder %s32_s28, 0 }
   0xa   : > { %s2391_s30 = scalar_select %p35_p4, %s2280_s22, %s37_s29  }
   0xe   : > { %229 = sbr.rel (!%p2383_p3) target bundleno = 31 (0x1f), region = 36  ;;  %s231_s7 = sand.u32 (%p2383_p3), 1, %s2280_s22  }
   0xf   : > { %s2096_s8 = smul.u32 (%p2383_p3), 48, %s2288_s24  ;;  %s1960_s9 = sshll.u32 (%p2383_p3), %s231_s7, 5 }
  0x10   : > { %s233_s13 = scalar_lea.vmem (%p2383_p3), [#allocation2], %s1960_s9   ;;  %s2302_s16 = smov (%p2383_p3), 0  }
  0x11   : > { %s243_s12 = scalar_lea.vmem (%p2383_p3), %s2596_s0, %s2096_s8   ;;  %s2294_s14 = smov (%p2383_p3), %s233_s13  }
  0x12   : > { %s2298_s15 = smov (%p2383_p3), %s243_s12   ;;  %s2306_s17 = smov (%p2383_p3), 0  }
  0x15 LB: >> { %v441_v0 = vld [vmem:[%s2300_s15] sm:$0xff]  ;;  %v443_v1 = vld [vmem:[%s2300_s15 + $0x18] sm:$0xff]  ;;  %s445_s18 = sadd.s32 1, %s2304_s16  ;;  %s435_s17 = sadd.s32 1, %s2308_s17   ;;  %s2308_s17 = sphi %s2306_s17, %s435_s17   ;;  %s2304_s16 = sphi %s2302_s16, %s2303_s16   ;;  %s2300_s15 = sphi %s2298_s15, %s450_s15   ;;  %s2296_s14 = sphi %s2294_s14, %s451_s14  }
  0x16   : >> { %442 = vst [vmem:[%s2296_s14] sm:$0xff] %v441_v0  ;;  %444 = vst [vmem:[%s2296_s14 + $0x10] sm:$0xff] %v443_v1  ;;  %p446_p6 = scmp.ge.s32.totalorder %s445_s18, 2  ;;  %p434_p7 = scmp.ge.s32.totalorder %s435_s17, 2 }
  0x18   : >> { %s2611_s18 = smov (%p446_p6, %s445_s18), 0  ;;  %437 = sbr.rel (!%p434_p7) target bundleno = 21 (0x15), region = 224 }
  0x19   : >> { %s1964_s19 = sshll.u32 %s2611_s18, 3  ;;  %s2303_s16 = smov %s2611_s18  }
  0x1a   : >> { %s450_s15 = scalar_lea.vmem %s243_s12, %s1964_s19   ;;  %s451_s14 = scalar_lea.vmem %s233_s13, %s1964_s19 [#allocation2]  }
  0x1f PF: > { %655 = sbr.rel (!%p2383_p3) target bundleno = 38 (0x26), region = 102  ;;  %s657_s20 = sand.u32 (%p2383_p3), 1, %s2280_s22  }
  0x20   : > { %s1973_s28 = smul.u32 (%p2383_p3), 48, %s2288_s24  ;;  %s1972_s29 = sshll.u32 (%p2383_p3), %s657_s20, 4 }
  0x21   : > { %s659_s10 = scalar_lea.vmem (%p2383_p3), [#allocation3], %s1972_s29 }
  0x22   : > { %s1827_s9 = scalar_lea.vmem (%p2383_p3), %s2597_s1, %s1973_s28 }
  0x23   : > { %v1974_v2 = vld [vmem:[%s1827_s9 + $0x10] sm:$0xff] (%p2383_p3)  ;;  %v1975_v3 = vld [vmem:[%s1827_s9 + $0x28] sm:$0xff] (%p2383_p3) }
  0x24   : > { %696 = vst [vmem:[%s659_s10] sm:$0xff] (%p2383_p3), %v1974_v2  ;;  %698 = vst [vmem:[%s659_s10 + $0x8] sm:$0xff] (%p2383_p3), %v1975_v3 }
  0x26 PF: > { %p1976_p8 = scmp.ge.s32.totalorder %s2292_s25, 1  ;;  %p703_p9 = scmp.lt.s32.totalorder %s2292_s25, 3 }
  0x28   : > { %p704_p10 = pnand %p1976_p8, %p703_p9 }
  0x29   : > { %s710_s27 = sand.u32 (!%p704_p10), 1, %s2276_s21   ;;  %s2310_s21 = smov (!%p704_p10), 123   ;;  %v2311_v26 = vmov (!%p704_p10), 0.0   ;;  %v1336_v29 = vld [vmem:[%s2599_s3] sm:$0xff] (!%p704_p10)  ;;  %v1337_v30 = vld [vmem:[%s2599_s3 + $0x8] sm:$0xff] (!%p704_p10)  ;;  %v2313_v31 = vmov (!%p704_p10), 0  }
  0x2a   : > { %707 = sbr.rel (%p704_p10) target bundleno = 768 (0x300), region = 140  ;;  %s1977_s11 = sshll.u32 (!%p704_p10), %s710_s27, 5  ;;  %906 = vmatprep.mubr.f32.mxu1 (!%p704_p10), %v2311_v26  ;;  %900 = vmatprep.mubr.f32.mxu0 (!%p704_p10), %v2311_v26  ;;  %vm818_vm6 = vcmask (!%p704_p10), 1006592   ;;  %vm1161_vm7 = vcmask (!%p704_p10), 965632   ;;  %v1982_v56 = vld [vmem:[%s2598_s2 + $0x18] sm:$0xff] (!%p704_p10)  ;;  %vm829_vm8 = vcmask (!%p704_p10), 130048  }
  0x2b   : > { %s1978_s12 = sshll.u32 (!%p704_p10), %s710_s27, 4  ;;  %s712_s13 = scalar_lea.vmem (!%p704_p10), [#allocation2], %s1977_s11  ;;  %2206 = vset.pattern.permute.xlu0 (!%p704_p10), %v2313_v31  ;;  %2207 = vset.pattern.permute.xlu1 (!%p704_p10), %v2313_v31  ;;  %v1981_v57 = vld [vmem:[%s2598_s2 + $0x10] sm:$0xff] (!%p704_p10)  ;;  %v795_v0 = vld [vmem:[%s2598_s2] sm:$0xff] (!%p704_p10)  ;;  %v796_v1 = vld [vmem:[%s2598_s2 + $0x8] sm:$0xff] (!%p704_p10)  ;;  %vm1425_vm9 = vcmask (!%p704_p10), 1039360  }
  0x2c   : > { %v2411_v4 = vld [vmem:[%s712_s13 + $0x8] sm:$0xff] (!%p704_p10)  ;;  %s719_s14 = scalar_lea.vmem (!%p704_p10), [#allocation3], %s1978_s12  ;;  %v2421_v9 = vld [vmem:[%s712_s13] sm:$0xff] (!%p704_p10)  ;;  %v2423_v10 = vld [vmem:[%s712_s13 + $0x10] sm:$0xff] (!%p704_p10)  ;;  %s2312_s15 = smov (!%p704_p10), 118  }
  0x2d   : > { %v2413_v5 = vld [vmem:[%s719_s14] sm:$0xff] (!%p704_p10)  ;;  %v2415_v6 = vld [vmem:[%s719_s14 + $0x8] sm:$0xff] (!%p704_p10)  ;;  %vm778_vm0 = vcmp.ge.f32.partialorder (!%p704_p10), %v2411_v4, 0.0  ;;  %v784_v7 = vmul.f32 (!%p704_p10), 0.1, %v2411_v4  ;;  %vm777_vm3 = vcmp.ge.f32.partialorder (!%p704_p10), %v2421_v9, 0.0 }
  0x2e   : > { %vm779_vm1 = vcmp.ge.f32.partialorder (!%p704_p10), %v2413_v5, 0.0  ;;  %v785_v8 = vmul.f32 (!%p704_p10), 0.1, %v2413_v5  ;;  %v2425_v11 = vld [vmem:[%s712_s13 + $0x18] sm:$0xff] (!%p704_p10)  ;;  %vm782_vm2 = vcmp.ge.f32.partialorder (!%p704_p10), %v2415_v6, 0.0  ;;  %vm780_vm4 = vcmp.ge.f32.partialorder (!%p704_p10), %v2423_v10, 0.0 }
  0x2f   : > { %v788_v12 = vmul.f32 (!%p704_p10), 0.1, %v2415_v6  ;;  %v2430_v13 = vsel (!%p704_p10), %vm778_vm0, %v2411_v4, %v784_v7  ;;  %v783_v16 = vmul.f32 (!%p704_p10), 0.1, %v2421_v9  ;;  %v786_v17 = vmul.f32 (!%p704_p10), 0.1, %v2423_v10 }
  0x30   : > { %v791_v14 = vsel (!%p704_p10), %vm779_vm1, %v2413_v5, %v785_v8  ;;  %vm781_vm5 = vcmp.ge.f32.partialorder (!%p704_p10), %v2425_v11, 0.0  ;;  %v787_v18 = vmul.f32 (!%p704_p10), 0.1, %v2425_v11  ;;  %v1991_v7 = vld [vmem:[%s2598_s2 + $0x20] sm:$0xff] (!%p704_p10)  ;;  %v1992_v8 = vld [vmem:[%s2598_s2 + $0x28] sm:$0xff] (!%p704_p10)  ;;  %s2316_s8 = smov (!%p704_p10), 122  }
  0x31   : > { %v2176_v15 = vpack.i.bf16 %v791_v14, %v2430_v13  ;;  %v794_v19 = vsel %vm782_vm2, %v2415_v6, %v788_v12  ;;  %v2442_v20 = vsel %vm777_vm3, %v2421_v9, %v783_v16  ;;  %v2445_v21 = vsel %vm780_vm4, %v2423_v10, %v786_v17  ;;  %p762_p11 = scmp.lt.s32.totalorder %s2284_s23, 1 }
  0x32   : > { %v2186_v22 = vpack.i.bf16 %v2445_v21, %v2442_v20  ;;  %v2066_v23 = vpack.c.bf16 %v2445_v21, %v2442_v20  ;;  %v2452_v24 = vsel %vm781_vm5, %v2425_v11, %v787_v18  ;;  %v2068_v27 = vpack.c.bf16 %v794_v19, %v791_v14 }
  0x33   : > { %2177 = vrot.lane.b32.xlu0 %v2176_v15, %s2310_s21  ;;  %v2181_v25 = vpack.i.bf16 %v794_v19, %v2452_v24  ;;  %v2064_v28 = vpack.c.bf16 %v2452_v24, %v2430_v13  ;;  %vm1615_vm0 = vcmask 1031168   ;;  %s2613_s23 = smov (!%p762_p11, %s2284_s23), 1  ;;  %vm1745_vm1 = vcmask 998400  }
  0x34   : > { %2187 = vrot.lane.b32.xlu1 %v2186_v22, %s2310_s21 }
  0x37   : > { %2182 = vrot.lane.b32.xlu0 %v2181_v25, %s2310_s21  ;;  %s2314_s21 = smov 127  }
  0x38   : > { %2192 = vrot.lane.b32.xlu1 %v2176_v15, %s2312_s15 }
  0x3b   : > { %2197 = vrot.lane.b32.xlu0 %v2181_v25, %s2312_s15  ;;  %v1372_v25 = vlaneseq }
  0x3c   : > { %2202 = vrot.lane.b32.xlu1 %v2186_v22, %s2312_s15  ;;  %s2315_s15 = smov 126  }
  0x3f   : > { %1340 = vperm.xlu0 %2206, %v1336_v29  }
  0x40   : > { %1345 = vperm.xlu1 %2207, %v1337_v30  }
  0x43   : > { %2214 = vrot.lane.b32.xlu0 %v2311_v26, %s2314_s21 }
  0x44   : > { %2209 = vrot.lane.b32.xlu1 %v2311_v26, %s2314_s21 }
  0x47   : > { %2219 = vrot.lane.b32.xlu0 %v2311_v26, %s2315_s15 }
  0xa5   : > { %v2178_v32 = vpop.permute.xlu0 %2177 }
  0xa6   : > { %v2180_v33 = vunpack.i.h.bf16 %v2178_v32  ;;  %v2179_v34 = vunpack.i.l.bf16 %v2178_v32  ;;  %v2188_v35 = vpop.permute.xlu1 %2187 }
  0xa7   : > { %v2190_v36 = vunpack.i.h.bf16 %v2188_v35  ;;  %v2189_v37 = vunpack.i.l.bf16 %v2188_v35 }
  0xa8   : > { %v820_v42 = vsel %vm818_vm6, %v2179_v34, %v2180_v33 }
  0xa9   : > { %v2183_v38 = vpop.permute.xlu0 %2182  ;;  %v819_v44 = vsel %vm818_vm6, %v2189_v37, %v2179_v34  ;;  %v1373_v37 = vand.u32 127, %v1372_v25 }
  0xaa   : > { %v2185_v39 = vunpack.i.h.bf16 %v2183_v38  ;;  %v2184_v40 = vunpack.i.l.bf16 %v2183_v38  ;;  %v2193_v41 = vpop.permute.xlu1 %2192 }
  0xab   : > { %v2195_v46 = vunpack.i.h.bf16 %v2193_v41  ;;  %v2194_v47 = vunpack.i.l.bf16 %v2193_v41  ;;  %vm1381_vm11 = vcmp.ge.s32.totalorder %v1373_v37, 1  ;;  %vm1384_vm12 = vcmp.lt.s32.totalorder %v1373_v37, 17 }
  0xac   : > { %v822_v43 = vsel %vm818_vm6, %v2184_v40, %v2185_v39  ;;  %v821_v45 = vsel %vm818_vm6, %v2190_v36, %v2184_v40  ;;  %v2060_v53 = vpack.c.bf16 %v2185_v39, %v2180_v33  ;;  %vm1387_vm14 = vmand %vm1381_vm11, %vm1384_vm12 }
  0xad   : > { %v2056_v48 = vpack.c.bf16 %v822_v43, %v820_v42  ;;  %v2198_v49 = vpop.permute.xlu0 %2197  ;;  %v2058_v50 = vpack.c.bf16 %v821_v45, %v819_v44  ;;  %v1163_v54 = vsel %vm1161_vm7, %v2194_v47, %v2195_v46  ;;  %vm2085_vm15 = vmpackc.low %vm1387_vm14, %vm1387_vm14 }
  0xae   : > { %v2200_v51 = vunpack.i.h.bf16 %v2198_v49  ;;  %v2199_v52 = vunpack.i.l.bf16 %v2198_v49  ;;  %v2203_v55 = vpop.permute.xlu1 %2202 }
  0xaf   : > { %2057 = vmatprep.subr.bf16.mxu0 %v2056_v48  ;;  %2094 = vmatprep.subr.bf16.mxu1 %v2056_v48  ;;  %v2205_v59 = vunpack.i.h.bf16 %v2203_v55  ;;  %v2204_v60 = vunpack.i.l.bf16 %v2203_v55 }
  0xb0   : > { %2059 = vmatpush1.bf16.msra.mxu0 %v2058_v50  ;;  %2095 = vmatpush1.bf16.msra.mxu1 %v2058_v50  ;;  %v1165_v58 = vsel %vm1161_vm7, %v2199_v52, %v2200_v51  ;;  %v2076_v3 = vpack.c.bf16 %v2200_v51, %v2195_v46 }
  0xb1   : > { %2061 = vmatprep.subr.bf16.mxu1 %v2060_v53  ;;  %2069 = vmatprep.subr.bf16.mxu0 %v2068_v27  ;;  %v2072_v61 = vpack.c.bf16 %v1165_v58, %v1163_v54  ;;  %v1164_v62 = vsel %vm1161_vm7, %v2205_v59, %v2199_v52  ;;  %v1162_v63 = vsel %vm1161_vm7, %v2204_v60, %v2194_v47  ;;  %v1402_v54 = vld [vmem:[%s2600_s4] sm:$0xff]  ;;  %v1403_v59 = vld [vmem:[%s2600_s4 + $0x8] sm:$0xff] }
  0xb2   : > { %v2074_v2 = vpack.c.bf16 %v1164_v62, %v1162_v63  ;;  %v1712_v60 = vld [vmem:[%s2601_s5 + $0x8] sm:$0xff] }
  0xb3   : > { %1984 = vmatmul.mubr.msk.f32.vlgmr.msra.gmra.mrb[0].mxu1 %vm829_vm8, %v1982_v56  ;;  %1983 = vmatmul.mubr.msk.f32.vlgmr.msra.gmra.mrb[0].mxu0 %vm829_vm8, %v1981_v57 }
  0xb4   : > { %2063 = vmatpush3.bf16.msra.mxu1 %v2060_v53  ;;  %2071 = vmatpush3.bf16.msra.mxu0 %v2068_v27 }
  0xb5   : > { %2032 = vmatprep.mubr.msk.f32.mxu1 %vm829_vm8, %v1981_v57  ;;  %2073 = vmatprep.subr.bf16.mxu0 %v2072_v61  ;;  %v1711_v61 = vld [vmem:[%s2601_s5] sm:$0xff] }
  0xb6   : > { %2065 = vmatprep.subr.bf16.mxu1 %v2064_v28  ;;  %2039 = vmatprep.mubr.msk.f32.mxu0 %vm829_vm8, %v795_v0 }
  0xb7   : > { %2033 = vmatmul.mubr.msk.f32.vlgmr.msra.gmra.mrb[2].mxu1 %vm829_vm8, %v1982_v56  ;;  %2040 = vmatmul.mubr.msk.f32.vlgmr.msra.gmra.mrb[2].mxu0 %vm829_vm8, %v796_v1 }
  0xb8   : > { %2067 = vmatpush1.bf16.msra.mxu1 %v2066_v23  ;;  %2075 = vmatpush1.bf16.msra.mxu0 %v2074_v2 }
  0xb9   : > { %2077 = vmatprep.subr.bf16.mxu1 %v2076_v3  ;;  %1058 = vmatprep.mubr.f32.mxu1 %v2311_v26 }
  0xba   : > { %1242 = vmatprep.mubr.f32.mxu0 %v2311_v26 }
  0xbb   : > { %1987 = vmatmul.mubr.msk.f32.vlgmr.msra.gmra.mrb[4].mxu1 %vm829_vm8, %v795_v0  ;;  %1993 = vmatmul.mubr.msk.f32.vlgmr.msra.gmra.mrb[4].mxu0 %vm829_vm8, %v1991_v7 }
  0xbc   : > { %2079 = vmatpush3.bf16.msra.mxu1 %v2076_v3  ;;  %1064 = vmatprep.mubr.f32.mxu1 %v2311_v26 }
  0xbd   : > { %1248 = vmatprep.mubr.f32.mxu0 %v2311_v26 }
  0xbe   : > { %v1341_v16 = vpop.permute.xlu0 %1340 }
  0xbf   : > { %1988 = vmatmul.mubr.msk.f32.gmra.mrb[6].mxu1 %vm829_vm8, %v796_v1  ;;  %1994 = vmatmul.mubr.msk.f32.gmra.mrb[6].mxu0 %vm829_vm8, %v1992_v8  ;;  %v1346_v21 = vpop.permute.xlu1 %1345 }
  0xc0   : > { %2046 = vmatprep.mubr.msk.f32.mxu1 %vm829_vm8, %v1991_v7  ;;  %2053 = vmatprep.mubr.msk.f32.mxu0 %vm829_vm8, %v1402_v54 }
  0xc2   : > { %v2513_v22 = vpop.permute.xlu0 %2214 }
  0xc3   : > { %2047 = vmatmul.mubr.msk.f32.vlgmr.msra.gmra.mrb[8].mxu1 %vm829_vm8, %v1992_v8  ;;  %v2217_v30 = vunpack.i.h.bf16 %v2513_v22  ;;  %v2216_v31 = vunpack.i.l.bf16 %v2513_v22  ;;  %v2517_v32 = vpop.permute.xlu1 %2209  ;;  %v2006_v22 = vld [vmem:[%s2600_s4 + $0x28] sm:$0xff] }
  0xc4   : > { %1504 = vmatprep.mubr.f32.mxu1 %v2311_v26  ;;  %v2212_v34 = vunpack.i.h.bf16 %v2517_v32  ;;  %v2211_v38 = vunpack.i.l.bf16 %v2517_v32 }
  0xc5   : > { %v1429_v43 = vsel %vm1425_vm9, %v2216_v31, %v2217_v30 }
  0xc6   : > { %v1427_v44 = vsel %vm1425_vm9, %v2211_v38, %v2212_v34  ;;  %v2220_v62 = vpop.permute.xlu0 %2219 }
  0xc7   : > { %v2080_v47 = vpack.c.bf16 %v1429_v43, %v1427_v44  ;;  %v2222_v3 = vunpack.i.h.bf16 %v2220_v62  ;;  %v2221_v7 = vunpack.i.l.bf16 %v2220_v62 }
  0xc9   : > { %2081 = vmatprep.subr.bf16.mxu1 %v2080_v47 }
 0x186   : > { %v908_v12 = vpop.f32.mrb[0].mxu1  ;;  %v902_v13 = vpop.f32.mrb[0].mxu0 }
 0x187   : > { %v910_v14 = vpop.f32.mrb[1].mxu1  ;;  %v904_v15 = vpop.f32.mrb[1].mxu0 }
 0x18a   : > { %v2034_v17 = vpop.f32.mrb[2].mxu1  ;;  %v2041_v18 = vpop.f32.mrb[2].mxu0 }
 0x18b   : > { %v979_v19 = vpop.f32.mrb[3].mxu1  ;;  %v1137_v20 = vpop.f32.mrb[3].mxu0 }
 0x18c   : > { %v1998_v20 = vld [vmem:[%s2600_s4 + $0x18] sm:$0xff] }
 0x18e   : > { %v1060_v23 = vpop.f32.mrb[4].mxu1  ;;  %v1244_v24 = vpop.f32.mrb[4].mxu0 }
 0x18f   : > { %v1061_v27 = vadd.f32 %v1060_v23, %v902_v13  ;;  %v1062_v28 = vpop.f32.mrb[5].mxu1  ;;  %v1246_v29 = vpop.f32.mrb[5].mxu0  ;;  %v1997_v13 = vld [vmem:[%s2600_s4 + $0x10] sm:$0xff] }
 0x191   : > { %v1330_v33 = vadd.f32 %v1244_v24, %v1061_v27 }
 0x192   : > { %v1066_v35 = vpop.f32.mrb[6].mxu1  ;;  %v1250_v36 = vpop.f32.mrb[6].mxu0 }
 0x193   : > { %v1348_v39 = vadd.f32 %v1341_v16, %v1330_v33  ;;  %v1067_v40 = vadd.f32 %v1066_v35, %v908_v12  ;;  %v1068_v41 = vpop.f32.mrb[7].mxu1  ;;  %v1252_v42 = vpop.f32.mrb[7].mxu0  ;;  %v1617_v16 = vsel %vm1615_vm0, %v2221_v7, %v2222_v3 }
 0x195   : > { %v1360_v45 = vmul.f32 0.1, %v1348_v39  ;;  %v1333_v46 = vadd.f32 %v1250_v36, %v1067_v40  ;;  %vm1354_vm10 = vcmp.ge.f32.partialorder %v1348_v39, 0.0 }
 0x196   : > { %v2048_v48 = vpop.f32.mrb[8].mxu1 }
 0x197   : > { %v1351_v49 = vadd.f32 %v1346_v21, %v1333_v46  ;;  %v1321_v50 = vpop.f32.mrb[9].mxu1  ;;  %v1366_v51 = vsel %vm1354_vm10, %v1348_v39, %v1360_v45  ;;  %v2005_v21 = vld [vmem:[%s2600_s4 + $0x20] sm:$0xff] }
 0x198   : > { %v1396_v56 = vsel %vm1387_vm14, %v1366_v51, 0.0 }
 0x199   : > { %vm1357_vm13 = vcmp.ge.f32.partialorder %v1351_v49, 0.0  ;;  %v1363_v52 = vmul.f32 0.1, %v1351_v49 }
 0x19b   : > { %v1369_v53 = vsel %vm1357_vm13, %v1351_v49, %v1363_v52 }
 0x19c   : > { %v2084_v55 = vpack.c.bf16 %v1369_v53, %v1366_v51  ;;  %v1399_v57 = vsel %vm1387_vm14, %v1369_v53, 0.0 }
 0x19d   : > { %v2233_v58 = vpack.i.bf16 %v1399_v57, %v1396_v56 }
 0x19e   : > { %2086 = vmatprep.subr.msk.bf16.mxu0 %vm2085_vm15, %v2084_v55 }
 0x19f   : > { %2089 = vmatpush3.bf16.msk.msra.mxu0 %vm2085_vm15, %v2084_v55  ;;  %2234 = vrot.lane.b32.xlu0 %v2233_v58, %s2315_s15 }
 0x1a0   : > { %2224 = vrot.lane.b32.xlu1 %v2233_v58, %s2314_s21 }
 0x1a2   : > { %2054 = vmatmul.mubr.msk.f32.vlgmr.msra.gmra.mrb[8].mxu0 %vm829_vm8, %v1403_v59 }
 0x1a3   : > { %1720 = vperm.xlu0 %2206, %v1712_v60   ;;  %1694 = vmatprep.mubr.f32.mxu0 %v2311_v26 }
 0x1a4   : > { %2229 = vrot.lane.b32.xlu1 %v2311_v26, %s2315_s15  ;;  %s2011_s15 = sshll.u32 %s2613_s23, 5 }
 0x1a5   : > { %s769_s18 = scalar_lea.vmem %s2602_s6, %s2011_s15 }
 0x1a7   : > { %1735 = vrot.lane.b32.xlu0 %v2411_v4, %s2316_s8 }
 0x1a8   : > { %1715 = vperm.xlu1 %2207, %v1711_v61  }
 0x1ab   : > { %1739 = vrot.lane.b32.xlu0 %v2423_v10, %s2316_s8 }
 0x1ac   : > { %1733 = vrot.lane.b32.xlu1 %v2421_v9, %s2316_s8 }
 0x1af   : > { %1743 = vrot.lane.b32.xlu0 %v2415_v6, %s2316_s8 }
 0x1b0   : > { %1737 = vrot.lane.b32.xlu1 %v2413_v5, %s2316_s8 }
 0x1b4   : > { %1741 = vrot.lane.b32.xlu1 %v2425_v11, %s2316_s8 }
 0x211   : > { %v2235_v63 = vpop.permute.xlu0 %2234 }
 0x212   : > { %v2225_v0 = vpop.permute.xlu1 %2224  ;;  %v2236_v8 = vunpack.i.l.bf16 %v2235_v63  ;;  %v2237_v6 = vunpack.i.h.bf16 %v2235_v63 }
 0x213   : > { %v2227_v1 = vunpack.i.h.bf16 %v2225_v0  ;;  %v2226_v2 = vunpack.i.l.bf16 %v2225_v0 }
 0x214   : > { %v1616_v14 = vsel %vm1615_vm0, %v2236_v8, %v2221_v7 }
 0x215   : > { %v1428_v4 = vsel %vm1425_vm9, %v2227_v1, %v2216_v31  ;;  %v1426_v9 = vsel %vm1425_vm9, %v2226_v2, %v2211_v38 }
 0x216   : > { %v2082_v5 = vpack.c.bf16 %v1428_v4, %v1426_v9  ;;  %v2230_v10 = vpop.permute.xlu1 %2229 }
 0x217   : > { %v2232_v12 = vunpack.i.h.bf16 %v2230_v10  ;;  %v2231_v11 = vunpack.i.l.bf16 %v2230_v10 }
 0x218   : > { %2083 = vmatpush1.bf16.msra.mxu1 %v2082_v5 }
 0x219   : > { %v1618_v15 = vsel %vm1615_vm0, %v2237_v6, %v2231_v11  ;;  %v1619_v17 = vsel %vm1615_vm0, %v2231_v11, %v2232_v12 }
 0x21a   : > { %v2092_v18 = vpack.c.bf16 %v1618_v15, %v1616_v14  ;;  %v2090_v19 = vpack.c.bf16 %v1619_v17, %v1617_v16 }
 0x21b   : > { %1999 = vmatmul.mubr.msk.f32.vlgmr.msra.gmra.mrb[10].mxu1 %vm829_vm8, %v1997_v13 }
 0x21c   : > { %2091 = vmatprep.subr.bf16.mxu0 %v2090_v19  ;;  %1510 = vmatprep.mubr.f32.mxu1 %v2311_v26 }
 0x21d   : > { %2093 = vmatpush1.bf16.msra.mxu0 %v2092_v18 }
 0x21f   : > { %2000 = vmatmul.mubr.msk.f32.gmra.mrb[12].mxu1 %vm829_vm8, %v1998_v20 }
 0x220   : > { %2007 = vmatmul.mubr.msk.f32.vlgmr.msra.gmra.mrb[10].mxu0 %vm829_vm8, %v2005_v21 }
 0x221   : > { %1700 = vmatprep.mubr.f32.mxu0 %v2311_v26 }
 0x222   : > { %v1721_v25 = vpop.permute.xlu0 %1720 }
 0x224   : > { %2008 = vmatmul.mubr.msk.f32.gmra.mrb[12].mxu0 %vm829_vm8, %v2006_v22 }
 0x226   : > { %v1736_v28 = vpop.permute.xlu0 %1735 }
 0x227   : > { %v1716_v27 = vpop.permute.xlu1 %1715 }
 0x22a   : > { %v1740_v33 = vpop.permute.xlu0 %1739 }
 0x22b   : > { %v1734_v29 = vpop.permute.xlu1 %1733 }
 0x22c   : > { %v1746_v42 = vsel %vm1745_vm1, %v1734_v29, %v1736_v28 }
 0x22e   : > { %v1744_v45 = vpop.permute.xlu0 %1743 }
 0x22f   : > { %v1738_v26 = vpop.permute.xlu1 %1737 }
 0x230   : > { %v1747_v47 = vsel %vm1745_vm1, %v1736_v28, %v1738_v26 }
 0x233   : > { %v1742_v49 = vpop.permute.xlu1 %1741 }
 0x234   : > { %v1749_v54 = vsel %vm1745_vm1, %v1742_v49, %v1744_v45  ;;  %v1748_v55 = vsel %vm1745_vm1, %v1740_v33, %v1742_v49 }
 0x275   : > { %v2055_v23 = vpop.f32.mrb[8].mxu0 }
 0x276   : > { %v1589_v24 = vpop.f32.mrb[9].mxu0 }
 0x2ee   : > { %v1506_v30 = vpop.f32.mrb[10].mxu1 }
 0x2ef   : > { %v1590_v31 = vadd.f32 %v1589_v24, %v1506_v30  ;;  %v1508_v32 = vpop.f32.mrb[11].mxu1 }
 0x2f2   : > { %v1512_v34 = vpop.f32.mrb[12].mxu1 }
 0x2f3   : > { %v1596_v35 = vadd.f32 %v2055_v23, %v1512_v34  ;;  %v1696_v36 = vpop.f32.mrb[10].mxu0  ;;  %v1514_v37 = vpop.f32.mrb[13].mxu1 }
 0x2f4   : > { %v1707_v38 = vadd.f32 %v1696_v36, %v1590_v31  ;;  %v1698_v39 = vpop.f32.mrb[11].mxu0 }
 0x2f5   : > { %v1708_v40 = vadd.f32 %v1698_v39, %v1508_v32 }
 0x2f6   : > { %v1723_v41 = vadd.f32 %v1716_v27, %v1707_v38 }
 0x2f7   : > { %v1724_v43 = vadd.f32 %v1716_v27, %v1708_v40  ;;  %v1702_v44 = vpop.f32.mrb[12].mxu0 }
 0x2f8   : > { %v1754_v46 = vadd.f32 %v1746_v42, %v1723_v41  ;;  %v1709_v48 = vadd.f32 %v1702_v44, %v1596_v35  ;;  %v1704_v50 = vpop.f32.mrb[13].mxu0 }
 0x2f9   : > { %v1755_v51 = vadd.f32 %v1747_v47, %v1724_v43  ;;  %v1710_v52 = vadd.f32 %v1704_v50, %v1514_v37 }
 0x2fa   : > { %1758 = vst [vmem:[%s769_s18] sm:$0xff] %v1754_v46  ;;  %v1725_v53 = vadd.f32 %v1721_v25, %v1709_v48 }
 0x2fb   : > { %1759 = vst [vmem:[%s769_s18 + $0x8] sm:$0xff] %v1755_v51  ;;  %v1726_v56 = vadd.f32 %v1721_v25, %v1710_v52 }
 0x2fc   : > { %v1756_v57 = vadd.f32 %v1748_v55, %v1725_v53 }
 0x2fd   : > { %v1757_v58 = vadd.f32 %v1749_v54, %v1726_v56 }
 0x2fe   : > { %1760 = vst [vmem:[%s769_s18 + $0x10] sm:$0xff] %v1756_v57 }
 0x2ff   : > { %1761 = vst [vmem:[%s769_s18 + $0x18] sm:$0xff] %v1757_v58 }
 0x300 PF: > { %s16_s25 = sadd.s32 1, %s2292_s25   ;;  %s2604_s21 = smov %s2280_s22 }
 0x301   : > { %p13_p12 = scmp.ge.s32.totalorder %s16_s25, 4   ;;  %s2605_s22 = smov %s2391_s30 }
 0x302   : > { %s2606_s23 = smov %s2288_s24  ;;  %s2607_s24 = smov %s2609_s26 }
 0x303   :  { %15 = sbr.rel (!%p13_p12) target bundleno = 3 (0x3), region = 257 }

// kernel: _lambda_.23
= control target key start
LH: loop header
LB: loop body
LE: loop exit
PB: predicated region body
PF: predicated region fallthrough
CT: control target
= control target key end

     0   :  { %s2449_s24 = smov 0   ;;  %s2451_s25 = smov 0   ;;  %s2699_s0 = inlined_call_operand.vmem [shape: f32[2,16,384], index: 0, kind: input, shape index: {}, may-alias: {0,1}]   ;;  %s2700_s1 = inlined_call_operand.vmem [shape: f32[2,16,384], index: 1, kind: input, shape index: {}, may-alias: {0,1}]   ;;  %s2701_s2 = inlined_call_operand.vmem [shape: f32[2,16,256], index: 2, kind: input, shape index: {}]   ;;  %s2702_s3 = inlined_call_operand.vmem [shape: f32[3,16,16], index: 3, kind: input, shape index: {}]   ;;  %s2703_s4 = inlined_call_operand.vmem [shape: f32[16,1], index: 4, kind: input, shape index: {}]   ;;  %s2704_s5 = inlined_call_operand.vmem [shape: f32[3,16,16], index: 5, kind: input, shape index: {}]   ;;  %s2705_s6 = inlined_call_operand.vmem [shape: f32[16,1], index: 6, kind: input, shape index: {}]   ;;  %s2706_s7 = inlined_call_operand.vmem [shape: f32[2,16,256], index: 7, kind: output, shape index: {}]  }
   0x1   :  { %s2453_s26 = smov 0   ;;  %s2455_s27 = smov 0  }
   0x2   :  { %s2457_s28 = smov 0  }
   0x3 LB: > { %s29_s29 = sadd.s32 1, %s2380_s27  ;;  %p45_p1 = scmp.ne.s32.totalorder %s2372_s25, %s2368_s24  ;;  %s2384_s28 = sphi %s2457_s28, %s17_s28   ;;  %s2380_s27 = sphi %s2455_s27, %s2711_s27   ;;  %s2376_s26 = sphi %s2453_s26, %s2710_s26   ;;  %s2372_s25 = sphi %s2451_s25, %s2709_s25   ;;  %s2368_s24 = sphi %s2449_s24, %s2708_s24  }
   0x4   : > { %p31_p0 = scmp.ge.s32.totalorder %s29_s29, 2  ;;  %p46_p2 = scmp.eq.s32.totalorder %s2384_s28, 0 }
   0x5   : > { %s38_s9 = sadd.s32 1, %s2372_s25  ;;  %p2048_p5 = scmp.ge.s32.totalorder %s2384_s28, 2 }
   0x6   : > { %s2713_s29 = smov (%p31_p0, %s29_s29), 0  ;;  %p2480_p3 = por %p46_p2, %p45_p1 }
   0x7   : > { %s33_s8 = ssub.s32 %s2380_s27, %s2713_s29  ;;  %255 = sbr.rel (%p2048_p5) target bundleno = 38 (0x26), region = 32 }
   0x8   : > { %p36_p4 = scmp.eq.s32.totalorder %s33_s8, 0 }
   0xa   : > { %s2488_s10 = scalar_select %p36_p4, %s2372_s25, %s38_s9  }
   0xe   : > { %258 = sbr.rel (!%p2480_p3) target bundleno = 31 (0x1f), region = 36  ;;  %s260_s11 = sand.u32 (%p2480_p3), 1, %s2372_s25  }
   0xf   : > { %s2188_s12 = smul.u32 (%p2480_p3), 48, %s2380_s27  ;;  %s2049_s13 = sshll.u32 (%p2480_p3), %s260_s11, 5 }
  0x10   : > { %s262_s17 = scalar_lea.vmem (%p2480_p3), [#allocation2], %s2049_s13   ;;  %s2394_s20 = smov (%p2480_p3), 0  }
  0x11   : > { %s272_s16 = scalar_lea.vmem (%p2480_p3), %s2699_s0, %s2188_s12   ;;  %s2386_s18 = smov (%p2480_p3), %s262_s17  }
  0x12   : > { %s2390_s19 = smov (%p2480_p3), %s272_s16   ;;  %s2398_s21 = smov (%p2480_p3), 0  }
  0x15 LB: >> { %v470_v0 = vld [vmem:[%s2392_s19] sm:$0xff]  ;;  %v472_v1 = vld [vmem:[%s2392_s19 + $0x18] sm:$0xff]  ;;  %s474_s22 = sadd.s32 1, %s2396_s20  ;;  %s464_s21 = sadd.s32 1, %s2400_s21   ;;  %s2400_s21 = sphi %s2398_s21, %s464_s21   ;;  %s2396_s20 = sphi %s2394_s20, %s2395_s20   ;;  %s2392_s19 = sphi %s2390_s19, %s479_s19   ;;  %s2388_s18 = sphi %s2386_s18, %s480_s18  }
  0x16   : >> { %471 = vst [vmem:[%s2388_s18] sm:$0xff] %v470_v0  ;;  %473 = vst [vmem:[%s2388_s18 + $0x10] sm:$0xff] %v472_v1  ;;  %p475_p6 = scmp.ge.s32.totalorder %s474_s22, 2  ;;  %p463_p7 = scmp.ge.s32.totalorder %s464_s21, 2 }
  0x18   : >> { %s2715_s22 = smov (%p475_p6, %s474_s22), 0  ;;  %466 = sbr.rel (!%p463_p7) target bundleno = 21 (0x15), region = 231 }
  0x19   : >> { %s2053_s23 = sshll.u32 %s2715_s22, 3  ;;  %s2395_s20 = smov %s2715_s22  }
  0x1a   : >> { %s479_s19 = scalar_lea.vmem %s272_s16, %s2053_s23   ;;  %s480_s18 = scalar_lea.vmem %s262_s17, %s2053_s23 [#allocation2]  }
  0x1f PF: > { %684 = sbr.rel (!%p2480_p3) target bundleno = 38 (0x26), region = 102  ;;  %s686_s8 = sand.u32 (%p2480_p3), 1, %s2372_s25  }
  0x20   : > { %s2062_s9 = smul.u32 (%p2480_p3), 48, %s2380_s27  ;;  %s2061_s11 = sshll.u32 (%p2480_p3), %s686_s8, 4 }
  0x21   : > { %s688_s15 = scalar_lea.vmem (%p2480_p3), [#allocation3], %s2061_s11 }
  0x22   : > { %s1898_s14 = scalar_lea.vmem (%p2480_p3), %s2700_s1, %s2062_s9 }
  0x23   : > { %v2063_v2 = vld [vmem:[%s1898_s14 + $0x10] sm:$0xff] (%p2480_p3)  ;;  %v2064_v3 = vld [vmem:[%s1898_s14 + $0x28] sm:$0xff] (%p2480_p3) }
  0x24   : > { %725 = vst [vmem:[%s688_s15] sm:$0xff] (%p2480_p3), %v2063_v2  ;;  %727 = vst [vmem:[%s688_s15 + $0x8] sm:$0xff] (%p2480_p3), %v2064_v3 }
  0x26 PF: > { %p2065_p8 = scmp.ge.s32.totalorder %s2384_s28, 1  ;;  %p745_p9 = scmp.lt.s32.totalorder %s2384_s28, 3 }
  0x28   : > { %p746_p10 = pnand %p2065_p8, %p745_p9 }
  0x29   : > { %s752_s30 = sand.u32 (!%p746_p10), 1, %s2368_s24   ;;  %s2402_s24 = smov (!%p746_p10), 123   ;;  %v2403_v26 = vmov (!%p746_p10), 0.0   ;;  %v1399_v29 = vld [vmem:[%s2703_s4] sm:$0xff] (!%p746_p10)  ;;  %v1400_v30 = vld [vmem:[%s2703_s4 + $0x8] sm:$0xff] (!%p746_p10)  ;;  %v2405_v31 = vmov (!%p746_p10), 0  }
  0x2a   : > { %749 = sbr.rel (%p746_p10) target bundleno = 770 (0x302), region = 144  ;;  %s2066_s16 = sshll.u32 (!%p746_p10), %s752_s30, 5  ;;  %969 = vmatprep.mubr.f32.mxu1 (!%p746_p10), %v2403_v26  ;;  %963 = vmatprep.mubr.f32.mxu0 (!%p746_p10), %v2403_v26  ;;  %vm881_vm6 = vcmask (!%p746_p10), 1006592   ;;  %vm1224_vm7 = vcmask (!%p746_p10), 965632   ;;  %v2073_v56 = vld [vmem:[%s2702_s3 + $0x18] sm:$0xff] (!%p746_p10)  ;;  %vm892_vm8 = vcmask (!%p746_p10), 130048  }
  0x2b   : > { %s2067_s17 = sshll.u32 (!%p746_p10), %s752_s30, 4  ;;  %s754_s18 = scalar_lea.vmem (!%p746_p10), [#allocation2], %s2066_s16  ;;  %2298 = vset.pattern.permute.xlu0 (!%p746_p10), %v2405_v31  ;;  %2299 = vset.pattern.permute.xlu1 (!%p746_p10), %v2405_v31  ;;  %v2072_v57 = vld [vmem:[%s2702_s3 + $0x10] sm:$0xff] (!%p746_p10)  ;;  %v858_v0 = vld [vmem:[%s2702_s3] sm:$0xff] (!%p746_p10)  ;;  %v859_v1 = vld [vmem:[%s2702_s3 + $0x8] sm:$0xff] (!%p746_p10)  ;;  %vm1488_vm9 = vcmask (!%p746_p10), 1039360  }
  0x2c   : > { %v2508_v4 = vld [vmem:[%s754_s18 + $0x8] sm:$0xff] (!%p746_p10)  ;;  %s761_s19 = scalar_lea.vmem (!%p746_p10), [#allocation3], %s2067_s17  ;;  %v2518_v9 = vld [vmem:[%s754_s18] sm:$0xff] (!%p746_p10)  ;;  %v2520_v10 = vld [vmem:[%s754_s18 + $0x10] sm:$0xff] (!%p746_p10)  ;;  %s2404_s20 = smov (!%p746_p10), 118  }
  0x2d   : > { %v2510_v5 = vld [vmem:[%s761_s19] sm:$0xff] (!%p746_p10)  ;;  %v2512_v6 = vld [vmem:[%s761_s19 + $0x8] sm:$0xff] (!%p746_p10)  ;;  %vm841_vm0 = vcmp.ge.f32.partialorder (!%p746_p10), %v2508_v4, 0.0  ;;  %v847_v7 = vmul.f32 (!%p746_p10), 0.1, %v2508_v4  ;;  %vm840_vm3 = vcmp.ge.f32.partialorder (!%p746_p10), %v2518_v9, 0.0 }
  0x2e   : > { %vm842_vm1 = vcmp.ge.f32.partialorder (!%p746_p10), %v2510_v5, 0.0  ;;  %v848_v8 = vmul.f32 (!%p746_p10), 0.1, %v2510_v5  ;;  %v2522_v11 = vld [vmem:[%s754_s18 + $0x18] sm:$0xff] (!%p746_p10)  ;;  %vm845_vm2 = vcmp.ge.f32.partialorder (!%p746_p10), %v2512_v6, 0.0  ;;  %vm843_vm4 = vcmp.ge.f32.partialorder (!%p746_p10), %v2520_v10, 0.0 }
  0x2f   : > { %v851_v12 = vmul.f32 (!%p746_p10), 0.1, %v2512_v6  ;;  %v2527_v13 = vsel (!%p746_p10), %vm841_vm0, %v2508_v4, %v847_v7  ;;  %v846_v16 = vmul.f32 (!%p746_p10), 0.1, %v2518_v9  ;;  %v849_v17 = vmul.f32 (!%p746_p10), 0.1, %v2520_v10 }
  0x30   : > { %v854_v14 = vsel (!%p746_p10), %vm842_vm1, %v2510_v5, %v848_v8  ;;  %vm844_vm5 = vcmp.ge.f32.partialorder (!%p746_p10), %v2522_v11, 0.0  ;;  %v850_v18 = vmul.f32 (!%p746_p10), 0.1, %v2522_v11  ;;  %v2082_v7 = vld [vmem:[%s2702_s3 + $0x20] sm:$0xff] (!%p746_p10)  ;;  %v2083_v8 = vld [vmem:[%s2702_s3 + $0x28] sm:$0xff] (!%p746_p10)  ;;  %s2407_s21 = smov (!%p746_p10), 126  }
  0x31   : > { %v2268_v15 = vpack.i.bf16 %v854_v14, %v2527_v13  ;;  %v857_v19 = vsel %vm845_vm2, %v2512_v6, %v851_v12  ;;  %v2539_v20 = vsel %vm840_vm3, %v2518_v9, %v846_v16  ;;  %v2542_v21 = vsel %vm843_vm4, %v2520_v10, %v849_v17  ;;  %s2408_s15 = smov 122   ;;  %p815_p11 = scmp.lt.s32.totalorder %s2376_s26, 1 }
  0x32   : > { %v2278_v22 = vpack.i.bf16 %v2542_v21, %v2539_v20  ;;  %v2158_v23 = vpack.c.bf16 %v2542_v21, %v2539_v20  ;;  %v2549_v24 = vsel %vm844_vm5, %v2522_v11, %v850_v18  ;;  %v2160_v27 = vpack.c.bf16 %v857_v19, %v854_v14 }
  0x33   : > { %2269 = vrot.lane.b32.xlu0 %v2268_v15, %s2402_s24  ;;  %v2273_v25 = vpack.i.bf16 %v857_v19, %v2549_v24  ;;  %v2156_v28 = vpack.c.bf16 %v2549_v24, %v2527_v13  ;;  %vm1678_vm0 = vcmask 1031168   ;;  %s2717_s26 = smov (!%p815_p11, %s2376_s26), 1  ;;  %vm1808_vm1 = vcmask 998400  }
  0x34   : > { %2279 = vrot.lane.b32.xlu1 %v2278_v22, %s2402_s24  ;;  %s2102_s22 = sshll.u32 %s2717_s26, 5 }
  0x35   : > { %s822_s9 = scalar_lea.vmem %s2701_s2, %s2102_s22  ;;  %s832_s12 = scalar_lea.vmem %s2706_s7, %s2102_s22 }
  0x37   : > { %2274 = vrot.lane.b32.xlu0 %v2273_v25, %s2402_s24 }
  0x38   : > { %2284 = vrot.lane.b32.xlu1 %v2268_v15, %s2404_s20 }
  0x3b   : > { %2289 = vrot.lane.b32.xlu0 %v2273_v25, %s2404_s20  ;;  %v1435_v25 = vlaneseq }
  0x3c   : > { %2294 = vrot.lane.b32.xlu1 %v2278_v22, %s2404_s20  ;;  %s2406_s20 = smov 127  }
  0x3f   : > { %1403 = vperm.xlu0 %2298, %v1399_v29  }
  0x40   : > { %1408 = vperm.xlu1 %2299, %v1400_v30  }
  0x43   : > { %2306 = vrot.lane.b32.xlu0 %v2403_v26, %s2406_s20 }
  0x44   : > { %2301 = vrot.lane.b32.xlu1 %v2403_v26, %s2406_s20 }
  0x47   : > { %2311 = vrot.lane.b32.xlu0 %v2403_v26, %s2407_s21 }
  0xa5   : > { %v2270_v32 = vpop.permute.xlu0 %2269 }
  0xa6   : > { %v2272_v33 = vunpack.i.h.bf16 %v2270_v32  ;;  %v2271_v34 = vunpack.i.l.bf16 %v2270_v32  ;;  %v2280_v35 = vpop.permute.xlu1 %2279 }
  0xa7   : > { %v2282_v36 = vunpack.i.h.bf16 %v2280_v35  ;;  %v2281_v37 = vunpack.i.l.bf16 %v2280_v35 }
  0xa8   : > { %v883_v42 = vsel %vm881_vm6, %v2271_v34, %v2272_v33 }
  0xa9   : > { %v2275_v38 = vpop.permute.xlu0 %2274  ;;  %v882_v44 = vsel %vm881_vm6, %v2281_v37, %v2271_v34  ;;  %v1436_v37 = vand.u32 127, %v1435_v25 }
  0xaa   : > { %v2277_v39 = vunpack.i.h.bf16 %v2275_v38  ;;  %v2276_v40 = vunpack.i.l.bf16 %v2275_v38  ;;  %v2285_v41 = vpop.permute.xlu1 %2284 }
  0xab   : > { %v2287_v46 = vunpack.i.h.bf16 %v2285_v41  ;;  %v2286_v47 = vunpack.i.l.bf16 %v2285_v41  ;;  %vm1444_vm11 = vcmp.ge.s32.totalorder %v1436_v37, 1  ;;  %vm1447_vm12 = vcmp.lt.s32.totalorder %v1436_v37, 17 }
  0xac   : > { %v885_v43 = vsel %vm881_vm6, %v2276_v40, %v2277_v39  ;;  %v884_v45 = vsel %vm881_vm6, %v2282_v36, %v2276_v40  ;;  %v2152_v53 = vpack.c.bf16 %v2277_v39, %v2272_v33  ;;  %vm1450_vm14 = vmand %vm1444_vm11, %vm1447_vm12 }
  0xad   : > { %v2148_v48 = vpack.c.bf16 %v885_v43, %v883_v42  ;;  %v2290_v49 = vpop.permute.xlu0 %2289  ;;  %v2150_v50 = vpack.c.bf16 %v884_v45, %v882_v44  ;;  %v1226_v54 = vsel %vm1224_vm7, %v2286_v47, %v2287_v46  ;;  %vm2177_vm15 = vmpackc.low %vm1450_vm14, %vm1450_vm14 }
  0xae   : > { %v2292_v51 = vunpack.i.h.bf16 %v2290_v49  ;;  %v2291_v52 = vunpack.i.l.bf16 %v2290_v49  ;;  %v2295_v55 = vpop.permute.xlu1 %2294 }
  0xaf   : > { %2149 = vmatprep.subr.bf16.mxu0 %v2148_v48  ;;  %2186 = vmatprep.subr.bf16.mxu1 %v2148_v48  ;;  %v2297_v59 = vunpack.i.h.bf16 %v2295_v55  ;;  %v2296_v60 = vunpack.i.l.bf16 %v2295_v55 }
  0xb0   : > { %2151 = vmatpush1.bf16.msra.mxu0 %v2150_v50  ;;  %2187 = vmatpush1.bf16.msra.mxu1 %v2150_v50  ;;  %v1228_v58 = vsel %vm1224_vm7, %v2291_v52, %v2292_v51  ;;  %v2168_v3 = vpack.c.bf16 %v2292_v51, %v2287_v46 }
  0xb1   : > { %2153 = vmatprep.subr.bf16.mxu1 %v2152_v53  ;;  %2161 = vmatprep.subr.bf16.mxu0 %v2160_v27  ;;  %v2164_v61 = vpack.c.bf16 %v1228_v58, %v1226_v54  ;;  %v1227_v62 = vsel %vm1224_vm7, %v2297_v59, %v2291_v52  ;;  %v1225_v63 = vsel %vm1224_vm7, %v2296_v60, %v2286_v47  ;;  %v1465_v54 = vld [vmem:[%s2704_s5] sm:$0xff]  ;;  %v1466_v59 = vld [vmem:[%s2704_s5 + $0x8] sm:$0xff] }
  0xb2   : > { %v2166_v2 = vpack.c.bf16 %v1227_v62, %v1225_v63  ;;  %v1775_v60 = vld [vmem:[%s2705_s6 + $0x8] sm:$0xff] }
  0xb3   : > { %2075 = vmatmul.mubr.msk.f32.vlgmr.msra.gmra.mrb[0].mxu1 %vm892_vm8, %v2073_v56  ;;  %2074 = vmatmul.mubr.msk.f32.vlgmr.msra.gmra.mrb[0].mxu0 %vm892_vm8, %v2072_v57 }
  0xb4   : > { %2155 = vmatpush3.bf16.msra.mxu1 %v2152_v53  ;;  %2163 = vmatpush3.bf16.msra.mxu0 %v2160_v27 }
  0xb5   : > { %2124 = vmatprep.mubr.msk.f32.mxu1 %vm892_vm8, %v2072_v57  ;;  %2165 = vmatprep.subr.bf16.mxu0 %v2164_v61  ;;  %v1774_v61 = vld [vmem:[%s2705_s6] sm:$0xff] }
  0xb6   : > { %2157 = vmatprep.subr.bf16.mxu1 %v2156_v28  ;;  %2131 = vmatprep.mubr.msk.f32.mxu0 %vm892_vm8, %v858_v0 }
  0xb7   : > { %2125 = vmatmul.mubr.msk.f32.vlgmr.msra.gmra.mrb[2].mxu1 %vm892_vm8, %v2073_v56  ;;  %2132 = vmatmul.mubr.msk.f32.vlgmr.msra.gmra.mrb[2].mxu0 %vm892_vm8, %v859_v1 }
  0xb8   : > { %2159 = vmatpush1.bf16.msra.mxu1 %v2158_v23  ;;  %2167 = vmatpush1.bf16.msra.mxu0 %v2166_v2 }
  0xb9   : > { %2169 = vmatprep.subr.bf16.mxu1 %v2168_v3  ;;  %1121 = vmatprep.mubr.f32.mxu1 %v2403_v26 }
  0xba   : > { %1305 = vmatprep.mubr.f32.mxu0 %v2403_v26 }
  0xbb   : > { %2078 = vmatmul.mubr.msk.f32.vlgmr.msra.gmra.mrb[4].mxu1 %vm892_vm8, %v858_v0  ;;  %2084 = vmatmul.mubr.msk.f32.vlgmr.msra.gmra.mrb[4].mxu0 %vm892_vm8, %v2082_v7 }
  0xbc   : > { %2171 = vmatpush3.bf16.msra.mxu1 %v2168_v3  ;;  %1127 = vmatprep.mubr.f32.mxu1 %v2403_v26 }
  0xbd   : > { %1311 = vmatprep.mubr.f32.mxu0 %v2403_v26 }
  0xbe   : > { %v1404_v16 = vpop.permute.xlu0 %1403 }
  0xbf   : > { %2079 = vmatmul.mubr.msk.f32.gmra.mrb[6].mxu1 %vm892_vm8, %v859_v1  ;;  %2085 = vmatmul.mubr.msk.f32.gmra.mrb[6].mxu0 %vm892_vm8, %v2083_v8  ;;  %v1409_v21 = vpop.permute.xlu1 %1408 }
  0xc0   : > { %2138 = vmatprep.mubr.msk.f32.mxu1 %vm892_vm8, %v2082_v7  ;;  %2145 = vmatprep.mubr.msk.f32.mxu0 %vm892_vm8, %v1465_v54 }
  0xc2   : > { %v2610_v22 = vpop.permute.xlu0 %2306 }
  0xc3   : > { %2139 = vmatmul.mubr.msk.f32.vlgmr.msra.gmra.mrb[8].mxu1 %vm892_vm8, %v2083_v8  ;;  %v2309_v30 = vunpack.i.h.bf16 %v2610_v22  ;;  %v2308_v31 = vunpack.i.l.bf16 %v2610_v22  ;;  %v2614_v32 = vpop.permute.xlu1 %2301  ;;  %v2097_v22 = vld [vmem:[%s2704_s5 + $0x28] sm:$0xff] }
  0xc4   : > { %1567 = vmatprep.mubr.f32.mxu1 %v2403_v26  ;;  %v2304_v34 = vunpack.i.h.bf16 %v2614_v32  ;;  %v2303_v38 = vunpack.i.l.bf16 %v2614_v32 }
  0xc5   : > { %v1492_v43 = vsel %vm1488_vm9, %v2308_v31, %v2309_v30 }
  0xc6   : > { %v1490_v44 = vsel %vm1488_vm9, %v2303_v38, %v2304_v34  ;;  %v2312_v62 = vpop.permute.xlu0 %2311 }
  0xc7   : > { %v2172_v47 = vpack.c.bf16 %v1492_v43, %v1490_v44  ;;  %v2314_v3 = vunpack.i.h.bf16 %v2312_v62  ;;  %v2313_v7 = vunpack.i.l.bf16 %v2312_v62  ;;  %v1821_v43 = vld [vmem:[%s822_s9] sm:$0xff] }
  0xc9   : > { %2173 = vmatprep.subr.bf16.mxu1 %v2172_v47 }
 0x186   : > { %v971_v12 = vpop.f32.mrb[0].mxu1  ;;  %v965_v13 = vpop.f32.mrb[0].mxu0 }
 0x187   : > { %v973_v14 = vpop.f32.mrb[1].mxu1  ;;  %v967_v15 = vpop.f32.mrb[1].mxu0 }
 0x18a   : > { %v2126_v17 = vpop.f32.mrb[2].mxu1  ;;  %v2133_v18 = vpop.f32.mrb[2].mxu0 }
 0x18b   : > { %v1042_v19 = vpop.f32.mrb[3].mxu1  ;;  %v1200_v20 = vpop.f32.mrb[3].mxu0 }
 0x18c   : > { %v2089_v20 = vld [vmem:[%s2704_s5 + $0x18] sm:$0xff] }
 0x18e   : > { %v1123_v23 = vpop.f32.mrb[4].mxu1  ;;  %v1307_v24 = vpop.f32.mrb[4].mxu0 }
 0x18f   : > { %v1124_v27 = vadd.f32 %v1123_v23, %v965_v13  ;;  %v1125_v28 = vpop.f32.mrb[5].mxu1  ;;  %v1309_v29 = vpop.f32.mrb[5].mxu0  ;;  %v2088_v13 = vld [vmem:[%s2704_s5 + $0x10] sm:$0xff] }
 0x191   : > { %v1393_v33 = vadd.f32 %v1307_v24, %v1124_v27 }
 0x192   : > { %v1129_v35 = vpop.f32.mrb[6].mxu1  ;;  %v1313_v36 = vpop.f32.mrb[6].mxu0 }
 0x193   : > { %v1411_v39 = vadd.f32 %v1404_v16, %v1393_v33  ;;  %v1130_v40 = vadd.f32 %v1129_v35, %v971_v12  ;;  %v1131_v41 = vpop.f32.mrb[7].mxu1  ;;  %v1315_v42 = vpop.f32.mrb[7].mxu0  ;;  %v1680_v16 = vsel %vm1678_vm0, %v2313_v7, %v2314_v3 }
 0x195   : > { %v1423_v45 = vmul.f32 0.1, %v1411_v39  ;;  %v1396_v46 = vadd.f32 %v1313_v36, %v1130_v40  ;;  %vm1417_vm10 = vcmp.ge.f32.partialorder %v1411_v39, 0.0 }
 0x196   : > { %v2140_v48 = vpop.f32.mrb[8].mxu1 }
 0x197   : > { %v1414_v49 = vadd.f32 %v1409_v21, %v1396_v46  ;;  %v1384_v50 = vpop.f32.mrb[9].mxu1  ;;  %v1429_v51 = vsel %vm1417_vm10, %v1411_v39, %v1423_v45  ;;  %v2096_v21 = vld [vmem:[%s2704_s5 + $0x20] sm:$0xff] }
 0x198   : > { %v1459_v56 = vsel %vm1450_vm14, %v1429_v51, 0.0 }
 0x199   : > { %vm1420_vm13 = vcmp.ge.f32.partialorder %v1414_v49, 0.0  ;;  %v1426_v52 = vmul.f32 0.1, %v1414_v49 }
 0x19b   : > { %v1432_v53 = vsel %vm1420_vm13, %v1414_v49, %v1426_v52  ;;  %v1822_v49 = vld [vmem:[%s822_s9 + $0x8] sm:$0xff] }
 0x19c   : > { %v2176_v55 = vpack.c.bf16 %v1432_v53, %v1429_v51  ;;  %v1462_v57 = vsel %vm1450_vm14, %v1432_v53, 0.0 }
 0x19d   : > { %v2325_v58 = vpack.i.bf16 %v1462_v57, %v1459_v56 }
 0x19e   : > { %2178 = vmatprep.subr.msk.bf16.mxu0 %vm2177_vm15, %v2176_v55 }
 0x19f   : > { %2181 = vmatpush3.bf16.msk.msra.mxu0 %vm2177_vm15, %v2176_v55  ;;  %2326 = vrot.lane.b32.xlu0 %v2325_v58, %s2407_s21 }
 0x1a0   : > { %2316 = vrot.lane.b32.xlu1 %v2325_v58, %s2406_s20 }
 0x1a2   : > { %2146 = vmatmul.mubr.msk.f32.vlgmr.msra.gmra.mrb[8].mxu0 %vm892_vm8, %v1466_v59  ;;  %v1823_v59 = vld [vmem:[%s822_s9 + $0x10] sm:$0xff] }
 0x1a3   : > { %1783 = vperm.xlu0 %2298, %v1775_v60   ;;  %1757 = vmatprep.mubr.f32.mxu0 %v2403_v26 }
 0x1a4   : > { %2321 = vrot.lane.b32.xlu1 %v2403_v26, %s2407_s21 }
 0x1a7   : > { %1798 = vrot.lane.b32.xlu0 %v2508_v4, %s2408_s15 }
 0x1a8   : > { %1778 = vperm.xlu1 %2299, %v1774_v61  }
 0x1ab   : > { %1802 = vrot.lane.b32.xlu0 %v2520_v10, %s2408_s15 }
 0x1ac   : > { %1796 = vrot.lane.b32.xlu1 %v2518_v9, %s2408_s15 }
 0x1af   : > { %1806 = vrot.lane.b32.xlu0 %v2512_v6, %s2408_s15 }
 0x1b0   : > { %1800 = vrot.lane.b32.xlu1 %v2510_v5, %s2408_s15 }
 0x1b4   : > { %1804 = vrot.lane.b32.xlu1 %v2522_v11, %s2408_s15 }
 0x211   : > { %v2327_v63 = vpop.permute.xlu0 %2326 }
 0x212   : > { %v2317_v0 = vpop.permute.xlu1 %2316  ;;  %v2328_v8 = vunpack.i.l.bf16 %v2327_v63  ;;  %v2329_v6 = vunpack.i.h.bf16 %v2327_v63  ;;  %v1824_v63 = vld [vmem:[%s822_s9 + $0x18] sm:$0xff] }
 0x213   : > { %v2319_v1 = vunpack.i.h.bf16 %v2317_v0  ;;  %v2318_v2 = vunpack.i.l.bf16 %v2317_v0 }
 0x214   : > { %v1679_v14 = vsel %vm1678_vm0, %v2328_v8, %v2313_v7 }
 0x215   : > { %v1491_v4 = vsel %vm1488_vm9, %v2319_v1, %v2308_v31  ;;  %v1489_v9 = vsel %vm1488_vm9, %v2318_v2, %v2303_v38 }
 0x216   : > { %v2174_v5 = vpack.c.bf16 %v1491_v4, %v1489_v9  ;;  %v2322_v10 = vpop.permute.xlu1 %2321 }
 0x217   : > { %v2324_v12 = vunpack.i.h.bf16 %v2322_v10  ;;  %v2323_v11 = vunpack.i.l.bf16 %v2322_v10 }
 0x218   : > { %2175 = vmatpush1.bf16.msra.mxu1 %v2174_v5 }
 0x219   : > { %v1681_v15 = vsel %vm1678_vm0, %v2329_v6, %v2323_v11  ;;  %v1682_v17 = vsel %vm1678_vm0, %v2323_v11, %v2324_v12 }
 0x21a   : > { %v2184_v18 = vpack.c.bf16 %v1681_v15, %v1679_v14  ;;  %v2182_v19 = vpack.c.bf16 %v1682_v17, %v1680_v16 }
 0x21b   : > { %2090 = vmatmul.mubr.msk.f32.vlgmr.msra.gmra.mrb[10].mxu1 %vm892_vm8, %v2088_v13 }
 0x21c   : > { %2183 = vmatprep.subr.bf16.mxu0 %v2182_v19  ;;  %1573 = vmatprep.mubr.f32.mxu1 %v2403_v26 }
 0x21d   : > { %2185 = vmatpush1.bf16.msra.mxu0 %v2184_v18 }
 0x21f   : > { %2091 = vmatmul.mubr.msk.f32.gmra.mrb[12].mxu1 %vm892_vm8, %v2089_v20 }
 0x220   : > { %2098 = vmatmul.mubr.msk.f32.vlgmr.msra.gmra.mrb[10].mxu0 %vm892_vm8, %v2096_v21 }
 0x221   : > { %1763 = vmatprep.mubr.f32.mxu0 %v2403_v26 }
 0x222   : > { %v1784_v25 = vpop.permute.xlu0 %1783 }
 0x224   : > { %2099 = vmatmul.mubr.msk.f32.gmra.mrb[12].mxu0 %vm892_vm8, %v2097_v22 }
 0x226   : > { %v1799_v28 = vpop.permute.xlu0 %1798 }
 0x227   : > { %v1779_v27 = vpop.permute.xlu1 %1778 }
 0x22a   : > { %v1803_v26 = vpop.permute.xlu0 %1802 }
 0x22b   : > { %v1797_v29 = vpop.permute.xlu1 %1796 }
 0x22c   : > { %v1809_v42 = vsel %vm1808_vm1, %v1797_v29, %v1799_v28 }
 0x22e   : > { %v1807_v46 = vpop.permute.xlu0 %1806 }
 0x22f   : > { %v1801_v34 = vpop.permute.xlu1 %1800 }
 0x230   : > { %v1810_v48 = vsel %vm1808_vm1, %v1799_v28, %v1801_v34 }
 0x233   : > { %v1805_v51 = vpop.permute.xlu1 %1804 }
 0x234   : > { %v1812_v57 = vsel %vm1808_vm1, %v1805_v51, %v1807_v46  ;;  %v1811_v60 = vsel %vm1808_vm1, %v1803_v26, %v1805_v51 }
 0x275   : > { %v2147_v23 = vpop.f32.mrb[8].mxu0 }
 0x276   : > { %v1652_v24 = vpop.f32.mrb[9].mxu0 }
 0x2ee   : > { %v1569_v30 = vpop.f32.mrb[10].mxu1 }
 0x2ef   : > { %v1653_v31 = vadd.f32 %v1652_v24, %v1569_v30  ;;  %v1571_v32 = vpop.f32.mrb[11].mxu1 }
 0x2f2   : > { %v1575_v33 = vpop.f32.mrb[12].mxu1 }
 0x2f3   : > { %v1659_v35 = vadd.f32 %v2147_v23, %v1575_v33  ;;  %v1759_v36 = vpop.f32.mrb[10].mxu0  ;;  %v1577_v37 = vpop.f32.mrb[13].mxu1 }
 0x2f4   : > { %v1770_v38 = vadd.f32 %v1759_v36, %v1653_v31  ;;  %v1761_v39 = vpop.f32.mrb[11].mxu0 }
 0x2f5   : > { %v1771_v40 = vadd.f32 %v1761_v39, %v1571_v32 }
 0x2f6   : > { %v1786_v41 = vadd.f32 %v1779_v27, %v1770_v38 }
 0x2f7   : > { %v1787_v44 = vadd.f32 %v1779_v27, %v1771_v40  ;;  %v1765_v45 = vpop.f32.mrb[12].mxu0 }
 0x2f8   : > { %v1817_v47 = vadd.f32 %v1809_v42, %v1786_v41  ;;  %v1772_v50 = vadd.f32 %v1765_v45, %v1659_v35  ;;  %v1767_v52 = vpop.f32.mrb[13].mxu0 }
 0x2f9   : > { %v1818_v53 = vadd.f32 %v1810_v48, %v1787_v44  ;;  %v1773_v54 = vadd.f32 %v1767_v52, %v1577_v37 }
 0x2fa   : > { %v1825_v55 = vadd.f32 %v1821_v43, %v1817_v47  ;;  %v1788_v56 = vadd.f32 %v1784_v25, %v1772_v50 }
 0x2fb   : > { %v1826_v58 = vadd.f32 %v1822_v49, %v1818_v53  ;;  %v1789_v61 = vadd.f32 %v1784_v25, %v1773_v54 }
 0x2fc   : > { %1829 = vst [vmem:[%s832_s12] sm:$0xff] %v1825_v55  ;;  %v1819_v62 = vadd.f32 %v1811_v60, %v1788_v56 }
 0x2fd   : > { %1830 = vst [vmem:[%s832_s12 + $0x8] sm:$0xff] %v1826_v58  ;;  %v1820_v0 = vadd.f32 %v1812_v57, %v1789_v61 }
 0x2fe   : > { %v1827_v1 = vadd.f32 %v1823_v59, %v1819_v62 }
 0x2ff   : > { %v1828_v2 = vadd.f32 %v1824_v63, %v1820_v0 }
 0x300   : > { %1831 = vst [vmem:[%s832_s12 + $0x10] sm:$0xff] %v1827_v1 }
 0x301   : > { %1832 = vst [vmem:[%s832_s12 + $0x18] sm:$0xff] %v1828_v2 }
 0x302 PF: > { %s17_s28 = sadd.s32 1, %s2384_s28   ;;  %s2708_s24 = smov %s2372_s25 }
 0x303   : > { %p14_p12 = scmp.ge.s32.totalorder %s17_s28, 4   ;;  %s2709_s25 = smov %s2488_s10 }
 0x304   : > { %s2710_s26 = smov %s2380_s27  ;;  %s2711_s27 = smov %s2713_s29 }
 0x305   :  { %16 = sbr.rel (!%p14_p12) target bundleno = 3 (0x3), region = 264 }

// kernel: _lambda_.25
= control target key start
LH: loop header
LB: loop body
LE: loop exit
PB: predicated region body
PF: predicated region fallthrough
CT: control target
= control target key end

     0   :  { %s1426_s21 = smov 0   ;;  %s1428_s22 = smov 0   ;;  %s1553_s0 = inlined_call_operand.vmem [shape: f32[2,8,384], index: 0, kind: input, shape index: {}, may-alias: {0,1}]   ;;  %s1554_s1 = inlined_call_operand.vmem [shape: f32[2,8,384], index: 1, kind: input, shape index: {}, may-alias: {0,1}]   ;;  %s1555_s2 = inlined_call_operand.vmem [shape: f32[3,8,8], index: 2, kind: input, shape index: {}]   ;;  %s1556_s3 = inlined_call_operand.vmem [shape: f32[8,1], index: 3, kind: input, shape index: {}]   ;;  %s1557_s4 = inlined_call_operand.vmem [shape: f32[3,8,8], index: 4, kind: input, shape index: {}]   ;;  %s1558_s5 = inlined_call_operand.vmem [shape: f32[8,1], index: 5, kind: input, shape index: {}]   ;;  %s1559_s6 = inlined_call_operand.vmem [shape: f32[2,8,256], index: 6, kind: output, shape index: {}]  }
   0x1   :  { %s1430_s23 = smov 0  }
   0x2 LB: > { %s28_s24 = sadd.s32 1, %s1380_s22  ;;  %p1267_p0 = scmp.ge.s32.totalorder %s1384_s23, 1  ;;  %s1384_s23 = sphi %s1430_s23, %s16_s23   ;;  %s1380_s22 = sphi %s1428_s22, %s1561_s22   ;;  %s1376_s21 = sphi %s1426_s21, %s1560_s21  }
   0x3   : > { %p30_p1 = scmp.ge.s32.totalorder %s28_s24, 2  ;;  %p264_p2 = scmp.lt.s32.totalorder %s1384_s23, 3 }
   0x5   : > { %s1563_s24 = smov (%p30_p1, %s28_s24), 0  ;;  %p265_p3 = pnand %p1267_p0, %p264_p2 }
   0x6   : > { %p321_p4 = scmp.lt.s32.totalorder (!%p265_p3), %s1376_s21, 1  ;;  %v1386_v0 = vmov (!%p265_p3), 0.0   ;;  %vm1387_vm0 = vmmov (!%p265_p3), 0   ;;  %s1388_s9 = smov (!%p265_p3), 127   ;;  %v1389_v10 = vmov (!%p265_p3), 0   ;;  %v836_v11 = vld [vmem:[%s1556_s3] sm:$0xff] (!%p265_p3)  ;;  %v854_v33 = vlaneseq (!%p265_p3) }
   0x7   : > { %268 = sbr.rel (%p265_p3) target bundleno = 713 (0x2c9), region = 44  ;;  %1299 = vmatprep.subr.mxu1 (!%p265_p3), %v1386_v0  ;;  %454 = vmatprep.mubr.f32.mxu0 (!%p265_p3), %v1386_v0  ;;  %s1390_s10 = smov (!%p265_p3), 126   ;;  %v1133_v12 = vld [vmem:[%s1558_s5] sm:$0xff] (!%p265_p3)  ;;  %vm380_vm4 = vcmask (!%p265_p3), 1039360   ;;  %v1272_v15 = vld [vmem:[%s1555_s2 + $0x8] sm:$0xff] (!%p265_p3)  ;;  %vm386_vm5 = vcmask (!%p265_p3), 64512  }
   0x8   : > { %1301 = vmatprep.mubr.msk.f32.mxu1 (!%p265_p3), %vm1387_vm0, %v1386_v0  ;;  %1351 = vset.pattern.permute.xlu0 (!%p265_p3), %v1389_v10  ;;  %vm683_vm6 = vcmask (!%p265_p3), 1031168   ;;  %v368_v23 = vld [vmem:[%s1555_s2] sm:$0xff] (!%p265_p3)  ;;  %v1277_v25 = vld [vmem:[%s1555_s2 + $0x10] sm:$0xff] (!%p265_p3)  ;;  %v855_v40 = vand.u32 (!%p265_p3), 127, %v854_v33  ;;  %v1280_v56 = vld [vmem:[%s1557_s4 + $0x8] sm:$0xff] (!%p265_p3) }
   0x9   : > { %v881_v49 = vld [vmem:[%s1557_s4] sm:$0xff] (!%p265_p3)  ;;  %v1284_v60 = vld [vmem:[%s1557_s4 + $0x10] sm:$0xff] (!%p265_p3) }
   0xa   : > { %vm863_vm7 = vcmp.ge.s32.totalorder (!%p265_p3), %v855_v40, 1  ;;  %vm866_vm8 = vcmp.lt.s32.totalorder (!%p265_p3), %v855_v40, 33 }
   0xb   : > { %vm869_vm10 = vmand (!%p265_p3), %vm863_vm7, %vm866_vm8 }
   0xe   : > { %s1565_s21 = smov (!%p321_p4, %s1376_s21), 1 }
   0xf   : > { %s1319_s25 = smul.u32 24, %s1565_s21  ;;  %s1290_s7 = sshll.u32 %s1565_s21, 4 }
  0x11   : > { %s328_s28 = scalar_lea.vmem %s1553_s0, %s1319_s25  ;;  %s1289_s29 = sadd.s32 16, %s1319_s25 }
  0x12   : > { %v357_v1 = vld [vmem:[%s328_s28 + $0x8] sm:$0xff]  ;;  %v1454_v2 = vld [vmem:[%s328_s28] sm:$0xff]  ;;  %s343_s8 = scalar_lea.vmem %s1554_s1, %s1289_s29 }
  0x13   : > { %vm360_vm1 = vcmp.ge.f32.partialorder %v357_v1, 0.0  ;;  %v363_v3 = vmul.f32 0.1, %v357_v1  ;;  %vm359_vm2 = vcmp.ge.f32.partialorder %v1454_v2, 0.0  ;;  %v362_v4 = vmul.f32 0.1, %v1454_v2 }
  0x14   : > { %v1461_v5 = vld [vmem:[%s343_s8] sm:$0xff] }
  0x15   : > { %v366_v6 = vsel %vm360_vm1, %v357_v1, %v363_v3  ;;  %v365_v7 = vsel %vm359_vm2, %v1454_v2, %v362_v4  ;;  %vm361_vm3 = vcmp.ge.f32.partialorder %v1461_v5, 0.0  ;;  %v364_v8 = vmul.f32 0.1, %v1461_v5 }
  0x16   : > { %376 = vrot.lane.b32.xlu0 %v366_v6, %s1388_s9  ;;  %374 = vrot.lane.b32.xlu1 %v365_v7, %s1388_s9 }
  0x17   : > { %v367_v9 = vsel %vm361_vm3, %v1461_v5, %v364_v8 }
  0x1a   : > { %378 = vrot.lane.b32.xlu0 %v367_v9, %s1388_s9  ;;  %679 = vrot.lane.b32.xlu1 %v366_v6, %s1390_s10 }
  0x1e   : > { %681 = vrot.lane.b32.xlu0 %v367_v9, %s1390_s10  ;;  %677 = vrot.lane.b32.xlu1 %v365_v7, %s1390_s10 }
  0x22   : > { %839 = vperm.xlu0 %1351, %v836_v11   ;;  %1353 = vrot.lane.b32.xlu1 %v1386_v0, %s1388_s9 }
  0x26   : > { %1358 = vrot.lane.b32.xlu0 %v1386_v0, %s1390_s10 }
  0x2a   : > { %1136 = vperm.xlu0 %1351, %v1133_v12  }
  0x2e   : > { %1146 = vrot.lane.b32.xlu0 %v357_v1, %s1390_s10 }
  0x88   : > { %v377_v13 = vpop.permute.xlu0 %376  ;;  %v375_v14 = vpop.permute.xlu1 %374 }
  0x89   : > { %v381_v19 = vsel %vm380_vm4, %v375_v14, %v377_v13 }
  0x8c   : > { %v379_v16 = vpop.permute.xlu0 %378  ;;  %v680_v17 = vpop.permute.xlu1 %679 }
  0x8d   : > { %1300 = vmatpush3.msra.mxu1 %v379_v16  ;;  %v382_v18 = vsel %vm380_vm4, %v377_v13, %v379_v16 }
  0x8e   : > { %390 = vmatprep.subr.mxu0 %v382_v18  ;;  %1302 = vmatmul.mubr.msk.f32.vlgmr.msra.gmra.mrb[0].mxu1 %vm386_vm5, %v1272_v15 }
  0x8f   : > { %391 = vmatpush1.msra.mxu0 %v381_v19  ;;  %1304 = vmatprep.subr.mxu1 %v1386_v0 }
  0x90   : > { %1273 = vmatmul.mubr.msk.f32.vlgmr.msra.gmra.mrb[0].mxu0 %vm386_vm5, %v1272_v15  ;;  %v682_v20 = vpop.permute.xlu0 %681  ;;  %534 = vmatprep.subr.mxu0 %v366_v6  ;;  %v678_v21 = vpop.permute.xlu1 %677 }
  0x91   : > { %535 = vmatpush1.msra.mxu0 %v365_v7  ;;  %598 = vmatprep.mubr.f32.mxu0 %v1386_v0  ;;  %v685_v22 = vsel %vm683_vm6, %v680_v17, %v682_v20  ;;  %v684_v24 = vsel %vm683_vm6, %v678_v21, %v680_v17 }
  0x92   : > { %1305 = vmatpush3.msra.mxu1 %v367_v9  ;;  %692 = vmatprep.subr.mxu0 %v685_v22 }
  0x93   : > { %1306 = vmatprep.mubr.msk.f32.mxu1 %vm1387_vm0, %v1386_v0  ;;  %1309 = vmatprep.subr.mxu1 %v1386_v0 }
  0x94   : > { %1275 = vmatmul.mubr.msk.f32.vlgmr.msra.gmra.mrb[2].mxu0 %vm386_vm5, %v368_v23  ;;  %1307 = vmatmul.mubr.msk.f32.vlgmr.msra.gmra.mrb[2].mxu1 %vm386_vm5, %v368_v23  ;;  %v1354_v29 = vpop.permute.xlu1 %1353 }
  0x95   : > { %693 = vmatpush1.msra.mxu0 %v684_v24  ;;  %1310 = vmatpush3.msra.mxu1 %v682_v20  ;;  %v1356_v31 = vunpack.i.h.bf16 %v1354_v29  ;;  %v1355_v32 = vunpack.i.l.bf16 %v1354_v29 }
  0x96   : > { %756 = vmatprep.mubr.f32.mxu0 %v1386_v0  ;;  %1311 = vmatprep.mubr.msk.f32.mxu1 %vm1387_vm0, %v1386_v0 }
  0x97   : > { %1314 = vmatprep.subr.mxu1 %v1386_v0  ;;  %v894_v34 = vsel %vm380_vm4, %v1355_v32, %v1356_v31 }
  0x98   : > { %1278 = vmatmul.mubr.msk.f32.vlgmr.msra.gmra.mrb[4].mxu0 %vm386_vm5, %v1277_v25  ;;  %1312 = vmatmul.mubr.msk.f32.vlgmr.msra.gmra.mrb[4].mxu1 %vm386_vm5, %v1277_v25 }
  0x99   : > { %964 = vmatprep.mubr.f32.mxu0 %v1386_v0  ;;  %1316 = vmatprep.mubr.msk.f32.mxu1 %vm1387_vm0, %v1386_v0 }
  0x9a   : > { %900 = vmatprep.subr.mxu0 %v894_v34 }
  0xa1   : > { %v840_v46 = vpop.permute.xlu0 %839 }
  0xa5   : > { %v1359_v52 = vpop.permute.xlu0 %1358 }
  0xa6   : > { %v1361_v53 = vunpack.i.h.bf16 %v1359_v52  ;;  %v1360_v54 = vunpack.i.l.bf16 %v1359_v52 }
  0xa8   : > { %v1054_v57 = vsel %vm683_vm6, %v1360_v54, %v1361_v53 }
  0xa9   : > { %v1137_v3 = vpop.permute.xlu0 %1136 }
  0xad   : > { %v1147_v9 = vpop.permute.xlu0 %1146 }
 0x161   : > { %v527_v26 = vpop.f32.mrb[0].mxu1 }
 0x162   : > { %v1303_v27 = vpop.f32.mrb[1].mxu1 }
 0x163   : > { %v456_v28 = vpop.f32.mrb[0].mxu0 }
 0x164   : > { %v458_v30 = vpop.f32.mrb[1].mxu0 }
 0x167   : > { %v600_v35 = vpop.f32.mrb[2].mxu0  ;;  %v671_v36 = vpop.f32.mrb[2].mxu1 }
 0x168   : > { %v601_v37 = vadd.f32 %v600_v35, %v456_v28  ;;  %v602_v38 = vpop.f32.mrb[3].mxu0  ;;  %v1308_v39 = vpop.f32.mrb[3].mxu1 }
 0x16b   : > { %v758_v41 = vpop.f32.mrb[4].mxu0  ;;  %v829_v42 = vpop.f32.mrb[4].mxu1 }
 0x16c   : > { %v833_v43 = vadd.f32 %v758_v41, %v601_v37  ;;  %v760_v44 = vpop.f32.mrb[5].mxu0  ;;  %v1313_v45 = vpop.f32.mrb[5].mxu1 }
 0x16e   : > { %v842_v47 = vadd.f32 %v840_v46, %v833_v43 }
 0x170   : > { %vm845_vm9 = vcmp.ge.f32.partialorder %v842_v47, 0.0  ;;  %v848_v48 = vmul.f32 0.1, %v842_v47 }
 0x172   : > { %v851_v50 = vsel %vm845_vm9, %v842_v47, %v848_v48 }
 0x173   : > { %1315 = vmatpush3.msk.msra.mxu1 %vm869_vm10, %v851_v50  ;;  %v878_v51 = vsel %vm869_vm10, %v851_v50, 0.0 }
 0x174   : > { %887 = vrot.lane.b32.xlu1 %v878_v51, %s1388_s9  ;;  %1317 = vmatmul.mubr.msk.f32.vlgmr.msra.gmra.mrb[6].mxu1 %vm386_vm5, %v881_v49 }
 0x178   : > { %1047 = vrot.lane.b32.xlu1 %v878_v51, %s1390_s10 }
 0x17c   : > { %1144 = vrot.lane.b32.xlu1 %v1454_v2, %s1390_s10 }
 0x180   : > { %1148 = vrot.lane.b32.xlu1 %v1461_v5, %s1390_s10  ;;  %s354_s10 = scalar_lea.vmem %s1559_s6, %s1290_s7 }
 0x1e6   : > { %v888_v55 = vpop.permute.xlu1 %887 }
 0x1e7   : > { %v893_v58 = vsel %vm380_vm4, %v888_v55, %v1355_v32 }
 0x1e8   : > { %901 = vmatpush1.msra.mxu0 %v893_v58 }
 0x1e9   : > { %1281 = vmatmul.mubr.msk.f32.vlgmr.msra.gmra.mrb[6].mxu0 %vm386_vm5, %v1280_v56  ;;  %1060 = vmatprep.subr.mxu0 %v1054_v57 }
 0x1ea   : > { %v1048_v59 = vpop.permute.xlu1 %1047  ;;  %1124 = vmatprep.mubr.f32.mxu0 %v1386_v0 }
 0x1eb   : > { %v1053_v61 = vsel %vm683_vm6, %v1048_v59, %v1360_v54 }
 0x1ec   : > { %1061 = vmatpush1.msra.mxu0 %v1053_v61 }
 0x1ed   : > { %1285 = vmatmul.mubr.msk.f32.vlgmr.msra.gmra.mrb[8].mxu0 %vm386_vm5, %v1284_v60 }
 0x1ee   : > { %v1145_v1 = vpop.permute.xlu1 %1144 }
 0x1ef   : > { %v1150_v14 = vsel %vm683_vm6, %v1145_v1, %v1147_v9 }
 0x1f2   : > { %v1149_v7 = vpop.permute.xlu1 %1148 }
 0x1f3   : > { %v1151_v12 = vsel %vm683_vm6, %v1147_v9, %v1149_v7 }
 0x247   : > { %v1040_v62 = vpop.f32.mrb[6].mxu1 }
 0x248   : > { %v1318_v63 = vpop.f32.mrb[7].mxu1 }
 0x2bc   : > { %v966_v2 = vpop.f32.mrb[6].mxu0 }
 0x2bd   : > { %v1041_v4 = vadd.f32 %v1040_v62, %v966_v2  ;;  %v968_v5 = vpop.f32.mrb[7].mxu0 }
 0x2c0   : > { %v1126_v6 = vpop.f32.mrb[8].mxu0 }
 0x2c1   : > { %v1131_v0 = vadd.f32 %v1126_v6, %v1041_v4  ;;  %v1128_v8 = vpop.f32.mrb[9].mxu0 }
 0x2c2   : > { %v1132_v10 = vadd.f32 %v1128_v8, %v968_v5 }
 0x2c3   : > { %v1139_v11 = vadd.f32 %v1137_v3, %v1131_v0 }
 0x2c4   : > { %v1140_v13 = vadd.f32 %v1137_v3, %v1132_v10 }
 0x2c5   : > { %v1154_v15 = vadd.f32 %v1150_v14, %v1139_v11 }
 0x2c6   : > { %v1155_v16 = vadd.f32 %v1151_v12, %v1140_v13 }
 0x2c7   : > { %1156 = vst [vmem:[%s354_s10] sm:$0xff] %v1154_v15 }
 0x2c8   : > { %1157 = vst [vmem:[%s354_s10 + $0x8] sm:$0xff] %v1155_v16 }
 0x2c9 PF: > { %s16_s23 = sadd.s32 1, %s1384_s23   ;;  %s1560_s21 = smov %s1380_s22 }
 0x2ca   : > { %p13_p5 = scmp.ge.s32.totalorder %s16_s23, 4   ;;  %s1561_s22 = smov %s1563_s24 }
 0x2cc   :  { %15 = sbr.rel (!%p13_p5) target bundleno = 2 (0x2), region = 81 }

// kernel: _lambda_.26
= control target key start
LH: loop header
LB: loop body
LE: loop exit
PB: predicated region body
PF: predicated region fallthrough
CT: control target
= control target key end

     0   :  { %s1435_s21 = smov 0   ;;  %s1437_s22 = smov 0   ;;  %s1551_s0 = inlined_call_operand.vmem [shape: f32[2,8,384], index: 0, kind: input, shape index: {}, may-alias: {0,1}]   ;;  %s1552_s1 = inlined_call_operand.vmem [shape: f32[2,8,384], index: 1, kind: input, shape index: {}, may-alias: {0,1}]   ;;  %s1553_s2 = inlined_call_operand.vmem [shape: f32[3,8,8], index: 2, kind: input, shape index: {}]   ;;  %s1554_s3 = inlined_call_operand.vmem [shape: f32[8,1], index: 3, kind: input, shape index: {}]   ;;  %s1555_s4 = inlined_call_operand.vmem [shape: f32[3,8,8], index: 4, kind: input, shape index: {}]   ;;  %s1556_s5 = inlined_call_operand.vmem [shape: f32[8,1], index: 5, kind: input, shape index: {}]   ;;  %s1557_s6 = inlined_call_operand.vmem [shape: f32[2,8,256], index: 6, kind: output, shape index: {}]  }
   0x1   :  { %s1439_s23 = smov 0  }
   0x2 LB: > { %s28_s24 = sadd.s32 1, %s1386_s22  ;;  %p1270_p0 = scmp.ge.s32.totalorder %s1390_s23, 1  ;;  %s1390_s23 = sphi %s1439_s23, %s16_s23   ;;  %s1386_s22 = sphi %s1437_s22, %s1559_s22   ;;  %s1382_s21 = sphi %s1435_s21, %s1558_s21  }
   0x3   : > { %p30_p1 = scmp.ge.s32.totalorder %s28_s24, 2  ;;  %p264_p2 = scmp.lt.s32.totalorder %s1390_s23, 3 }
   0x5   : > { %s1561_s24 = smov (%p30_p1, %s28_s24), 0  ;;  %p265_p3 = pnand %p1270_p0, %p264_p2 }
   0x6   : > { %p321_p4 = scmp.lt.s32.totalorder (!%p265_p3), %s1382_s21, 1  ;;  %v1392_v0 = vmov (!%p265_p3), 0.0   ;;  %vm1393_vm0 = vmmov (!%p265_p3), 0   ;;  %s1394_s9 = smov (!%p265_p3), 125   ;;  %v1395_v10 = vmov (!%p265_p3), 0   ;;  %v836_v11 = vld [vmem:[%s1554_s3] sm:$0xff] (!%p265_p3)  ;;  %v854_v33 = vlaneseq (!%p265_p3) }
   0x7   : > { %268 = sbr.rel (%p265_p3) target bundleno = 713 (0x2c9), region = 44  ;;  %1302 = vmatprep.subr.mxu1 (!%p265_p3), %v1392_v0  ;;  %454 = vmatprep.mubr.f32.mxu0 (!%p265_p3), %v1392_v0  ;;  %s1396_s10 = smov (!%p265_p3), 122   ;;  %v1135_v12 = vld [vmem:[%s1556_s5] sm:$0xff] (!%p265_p3)  ;;  %vm380_vm4 = vcmask (!%p265_p3), 1022976   ;;  %v1275_v15 = vld [vmem:[%s1553_s2 + $0x8] sm:$0xff] (!%p265_p3)  ;;  %vm386_vm5 = vcmask (!%p265_p3), 64512  }
   0x8   : > { %1304 = vmatprep.mubr.msk.f32.mxu1 (!%p265_p3), %vm1393_vm0, %v1392_v0  ;;  %1357 = vset.pattern.permute.xlu0 (!%p265_p3), %v1395_v10  ;;  %s1397_s13 = smov (!%p265_p3), 126   ;;  %vm683_vm6 = vcmask (!%p265_p3), 998400   ;;  %v368_v23 = vld [vmem:[%s1553_s2] sm:$0xff] (!%p265_p3)  ;;  %v1280_v25 = vld [vmem:[%s1553_s2 + $0x10] sm:$0xff] (!%p265_p3)  ;;  %s1398_s26 = smov (!%p265_p3), 127   ;;  %vm893_vm7 = vcmask (!%p265_p3), 1039360  }
   0x9   : > { %v855_v40 = vand.u32 (!%p265_p3), 127, %v854_v33  ;;  %s1399_s27 = smov (!%p265_p3), 124   ;;  %v881_v49 = vld [vmem:[%s1555_s4] sm:$0xff] (!%p265_p3)  ;;  %vm1054_vm12 = vcmask (!%p265_p3), 1031168   ;;  %v1283_v56 = vld [vmem:[%s1555_s4 + $0x8] sm:$0xff] (!%p265_p3)  ;;  %v1287_v60 = vld [vmem:[%s1555_s4 + $0x10] sm:$0xff] (!%p265_p3) }
   0xa   : > { %vm1152_vm13 = vcmask (!%p265_p3), 1014784  }
   0xb   : > { %vm863_vm8 = vcmp.ge.s32.totalorder (!%p265_p3), %v855_v40, 1  ;;  %vm866_vm9 = vcmp.lt.s32.totalorder (!%p265_p3), %v855_v40, 33 }
   0xc   : > { %vm869_vm11 = vmand (!%p265_p3), %vm863_vm8, %vm866_vm9 }
   0xe   : > { %s1563_s21 = smov (!%p321_p4, %s1382_s21), 1 }
   0xf   : > { %s1322_s25 = smul.u32 24, %s1563_s21 }
  0x11   : > { %s328_s28 = scalar_lea.vmem %s1551_s0, %s1322_s25  ;;  %s1292_s29 = sadd.s32 16, %s1322_s25 }
  0x12   : > { %v1463_v1 = vld [vmem:[%s328_s28 + $0x8] sm:$0xff]  ;;  %v1465_v2 = vld [vmem:[%s328_s28] sm:$0xff]  ;;  %s343_s8 = scalar_lea.vmem %s1552_s1, %s1292_s29 }
  0x13   : > { %vm360_vm1 = vcmp.ge.f32.partialorder %v1463_v1, 0.0  ;;  %v363_v3 = vmul.f32 0.1, %v1463_v1  ;;  %vm359_vm2 = vcmp.ge.f32.partialorder %v1465_v2, 0.0  ;;  %v362_v4 = vmul.f32 0.1, %v1465_v2 }
  0x14   : > { %v1474_v5 = vld [vmem:[%s343_s8] sm:$0xff] }
  0x15   : > { %v366_v6 = vsel %vm360_vm1, %v1463_v1, %v363_v3  ;;  %v365_v7 = vsel %vm359_vm2, %v1465_v2, %v362_v4  ;;  %vm361_vm3 = vcmp.ge.f32.partialorder %v1474_v5, 0.0  ;;  %v364_v8 = vmul.f32 0.1, %v1474_v5 }
  0x16   : > { %376 = vrot.lane.b32.xlu0 %v366_v6, %s1394_s9  ;;  %374 = vrot.lane.b32.xlu1 %v365_v7, %s1394_s9 }
  0x17   : > { %v367_v9 = vsel %vm361_vm3, %v1474_v5, %v364_v8 }
  0x1a   : > { %378 = vrot.lane.b32.xlu0 %v367_v9, %s1394_s9  ;;  %679 = vrot.lane.b32.xlu1 %v366_v6, %s1396_s10 }
  0x1e   : > { %681 = vrot.lane.b32.xlu0 %v367_v9, %s1396_s10  ;;  %677 = vrot.lane.b32.xlu1 %v365_v7, %s1396_s10  ;;  %s1293_s10 = sshll.u32 %s1563_s21, 4 }
  0x22   : > { %839 = vperm.xlu0 %1357, %v836_v11   ;;  %1359 = vrot.lane.b32.xlu1 %v1392_v0, %s1398_s26 }
  0x26   : > { %1364 = vrot.lane.b32.xlu0 %v1392_v0, %s1397_s13 }
  0x2a   : > { %1138 = vperm.xlu0 %1357, %v1135_v12  }
  0x2e   : > { %1148 = vrot.lane.b32.xlu0 %v1463_v1, %s1399_s27 }
  0x88   : > { %v377_v13 = vpop.permute.xlu0 %376  ;;  %v375_v14 = vpop.permute.xlu1 %374 }
  0x89   : > { %v381_v19 = vsel %vm380_vm4, %v375_v14, %v377_v13 }
  0x8c   : > { %v379_v16 = vpop.permute.xlu0 %378  ;;  %v680_v17 = vpop.permute.xlu1 %679 }
  0x8d   : > { %1303 = vmatpush3.msra.mxu1 %v379_v16  ;;  %v382_v18 = vsel %vm380_vm4, %v377_v13, %v379_v16 }
  0x8e   : > { %390 = vmatprep.subr.mxu0 %v382_v18  ;;  %1305 = vmatmul.mubr.msk.f32.vlgmr.msra.gmra.mrb[0].mxu1 %vm386_vm5, %v1275_v15 }
  0x8f   : > { %391 = vmatpush1.msra.mxu0 %v381_v19  ;;  %1307 = vmatprep.subr.mxu1 %v1392_v0 }
  0x90   : > { %1276 = vmatmul.mubr.msk.f32.vlgmr.msra.gmra.mrb[0].mxu0 %vm386_vm5, %v1275_v15  ;;  %v682_v20 = vpop.permute.xlu0 %681  ;;  %534 = vmatprep.subr.mxu0 %v366_v6  ;;  %v678_v21 = vpop.permute.xlu1 %677 }
  0x91   : > { %535 = vmatpush1.msra.mxu0 %v365_v7  ;;  %598 = vmatprep.mubr.f32.mxu0 %v1392_v0  ;;  %v685_v22 = vsel %vm683_vm6, %v680_v17, %v682_v20  ;;  %v684_v24 = vsel %vm683_vm6, %v678_v21, %v680_v17 }
  0x92   : > { %1308 = vmatpush3.msra.mxu1 %v367_v9  ;;  %692 = vmatprep.subr.mxu0 %v685_v22 }
  0x93   : > { %1309 = vmatprep.mubr.msk.f32.mxu1 %vm1393_vm0, %v1392_v0  ;;  %1312 = vmatprep.subr.mxu1 %v1392_v0 }
  0x94   : > { %1278 = vmatmul.mubr.msk.f32.vlgmr.msra.gmra.mrb[2].mxu0 %vm386_vm5, %v368_v23  ;;  %1310 = vmatmul.mubr.msk.f32.vlgmr.msra.gmra.mrb[2].mxu1 %vm386_vm5, %v368_v23  ;;  %v1360_v29 = vpop.permute.xlu1 %1359 }
  0x95   : > { %693 = vmatpush1.msra.mxu0 %v684_v24  ;;  %1313 = vmatpush3.msra.mxu1 %v682_v20  ;;  %v1362_v31 = vunpack.i.h.bf16 %v1360_v29  ;;  %v1361_v32 = vunpack.i.l.bf16 %v1360_v29 }
  0x96   : > { %756 = vmatprep.mubr.f32.mxu0 %v1392_v0  ;;  %1314 = vmatprep.mubr.msk.f32.mxu1 %vm1393_vm0, %v1392_v0 }
  0x97   : > { %1317 = vmatprep.subr.mxu1 %v1392_v0  ;;  %v895_v34 = vsel %vm893_vm7, %v1361_v32, %v1362_v31 }
  0x98   : > { %1281 = vmatmul.mubr.msk.f32.vlgmr.msra.gmra.mrb[4].mxu0 %vm386_vm5, %v1280_v25  ;;  %1315 = vmatmul.mubr.msk.f32.vlgmr.msra.gmra.mrb[4].mxu1 %vm386_vm5, %v1280_v25 }
  0x99   : > { %965 = vmatprep.mubr.f32.mxu0 %v1392_v0  ;;  %1319 = vmatprep.mubr.msk.f32.mxu1 %vm1393_vm0, %v1392_v0 }
  0x9a   : > { %901 = vmatprep.subr.mxu0 %v895_v34 }
  0xa1   : > { %v840_v46 = vpop.permute.xlu0 %839 }
  0xa5   : > { %v1365_v52 = vpop.permute.xlu0 %1364 }
  0xa6   : > { %v1367_v53 = vunpack.i.h.bf16 %v1365_v52  ;;  %v1366_v54 = vunpack.i.l.bf16 %v1365_v52 }
  0xa8   : > { %v1056_v57 = vsel %vm1054_vm12, %v1366_v54, %v1367_v53 }
  0xa9   : > { %v1139_v3 = vpop.permute.xlu0 %1138 }
  0xad   : > { %v1149_v9 = vpop.permute.xlu0 %1148 }
 0x161   : > { %v527_v26 = vpop.f32.mrb[0].mxu1 }
 0x162   : > { %v1306_v27 = vpop.f32.mrb[1].mxu1 }
 0x163   : > { %v456_v28 = vpop.f32.mrb[0].mxu0 }
 0x164   : > { %v458_v30 = vpop.f32.mrb[1].mxu0 }
 0x167   : > { %v600_v35 = vpop.f32.mrb[2].mxu0  ;;  %v671_v36 = vpop.f32.mrb[2].mxu1 }
 0x168   : > { %v601_v37 = vadd.f32 %v600_v35, %v456_v28  ;;  %v602_v38 = vpop.f32.mrb[3].mxu0  ;;  %v1311_v39 = vpop.f32.mrb[3].mxu1 }
 0x16b   : > { %v758_v41 = vpop.f32.mrb[4].mxu0  ;;  %v829_v42 = vpop.f32.mrb[4].mxu1 }
 0x16c   : > { %v833_v43 = vadd.f32 %v758_v41, %v601_v37  ;;  %v760_v44 = vpop.f32.mrb[5].mxu0  ;;  %v1316_v45 = vpop.f32.mrb[5].mxu1 }
 0x16e   : > { %v842_v47 = vadd.f32 %v840_v46, %v833_v43 }
 0x170   : > { %vm845_vm10 = vcmp.ge.f32.partialorder %v842_v47, 0.0  ;;  %v848_v48 = vmul.f32 0.1, %v842_v47 }
 0x172   : > { %v851_v50 = vsel %vm845_vm10, %v842_v47, %v848_v48 }
 0x173   : > { %1318 = vmatpush3.msk.msra.mxu1 %vm869_vm11, %v851_v50  ;;  %v878_v51 = vsel %vm869_vm11, %v851_v50, 0.0 }
 0x174   : > { %887 = vrot.lane.b32.xlu1 %v878_v51, %s1398_s26  ;;  %1320 = vmatmul.mubr.msk.f32.vlgmr.msra.gmra.mrb[6].mxu1 %vm386_vm5, %v881_v49 }
 0x178   : > { %1048 = vrot.lane.b32.xlu1 %v878_v51, %s1397_s13  ;;  %s354_s13 = scalar_lea.vmem %s1557_s6, %s1293_s10 }
 0x17c   : > { %1146 = vrot.lane.b32.xlu1 %v1465_v2, %s1399_s27 }
 0x180   : > { %1150 = vrot.lane.b32.xlu1 %v1474_v5, %s1399_s27 }
 0x1e6   : > { %v888_v55 = vpop.permute.xlu1 %887 }
 0x1e7   : > { %v894_v58 = vsel %vm893_vm7, %v888_v55, %v1361_v32 }
 0x1e8   : > { %902 = vmatpush1.msra.mxu0 %v894_v58 }
 0x1e9   : > { %1284 = vmatmul.mubr.msk.f32.vlgmr.msra.gmra.mrb[6].mxu0 %vm386_vm5, %v1283_v56  ;;  %1062 = vmatprep.subr.mxu0 %v1056_v57 }
 0x1ea   : > { %v1049_v59 = vpop.permute.xlu1 %1048  ;;  %1126 = vmatprep.mubr.f32.mxu0 %v1392_v0 }
 0x1eb   : > { %v1055_v61 = vsel %vm1054_vm12, %v1049_v59, %v1366_v54 }
 0x1ec   : > { %1063 = vmatpush1.msra.mxu0 %v1055_v61 }
 0x1ed   : > { %1288 = vmatmul.mubr.msk.f32.vlgmr.msra.gmra.mrb[8].mxu0 %vm386_vm5, %v1287_v60 }
 0x1ee   : > { %v1147_v1 = vpop.permute.xlu1 %1146 }
 0x1ef   : > { %v1153_v14 = vsel %vm1152_vm13, %v1147_v1, %v1149_v9 }
 0x1f2   : > { %v1151_v7 = vpop.permute.xlu1 %1150 }
 0x1f3   : > { %v1154_v12 = vsel %vm1152_vm13, %v1149_v9, %v1151_v7 }
 0x247   : > { %v1041_v62 = vpop.f32.mrb[6].mxu1 }
 0x248   : > { %v1321_v63 = vpop.f32.mrb[7].mxu1 }
 0x2bc   : > { %v967_v2 = vpop.f32.mrb[6].mxu0 }
 0x2bd   : > { %v1042_v4 = vadd.f32 %v1041_v62, %v967_v2  ;;  %v969_v5 = vpop.f32.mrb[7].mxu0 }
 0x2c0   : > { %v1128_v6 = vpop.f32.mrb[8].mxu0 }
 0x2c1   : > { %v1133_v8 = vadd.f32 %v1128_v6, %v1042_v4  ;;  %v1130_v0 = vpop.f32.mrb[9].mxu0 }
 0x2c2   : > { %v1134_v10 = vadd.f32 %v1130_v0, %v969_v5 }
 0x2c3   : > { %v1141_v11 = vadd.f32 %v1139_v3, %v1133_v8 }
 0x2c4   : > { %v1142_v13 = vadd.f32 %v1139_v3, %v1134_v10 }
 0x2c5   : > { %v1157_v15 = vadd.f32 %v1153_v14, %v1141_v11 }
 0x2c6   : > { %v1158_v16 = vadd.f32 %v1154_v12, %v1142_v13 }
 0x2c7   : > { %1159 = vst [vmem:[%s354_s13] sm:$0xff] %v1157_v15 }
 0x2c8   : > { %1160 = vst [vmem:[%s354_s13 + $0x8] sm:$0xff] %v1158_v16 }
 0x2c9 PF: > { %s16_s23 = sadd.s32 1, %s1390_s23   ;;  %s1558_s21 = smov %s1386_s22 }
 0x2ca   : > { %p13_p5 = scmp.ge.s32.totalorder %s16_s23, 4   ;;  %s1559_s22 = smov %s1561_s24 }
 0x2cc   :  { %15 = sbr.rel (!%p13_p5) target bundleno = 2 (0x2), region = 81 }

// kernel: _lambda_.30
= control target key start
LH: loop header
LB: loop body
LE: loop exit
PB: predicated region body
PF: predicated region fallthrough
CT: control target
= control target key end

     0   :  { %s1528_s24 = smov 0   ;;  %s1530_s25 = smov 0   ;;  %s1647_s0 = inlined_call_operand.vmem [shape: f32[2,8,384], index: 0, kind: input, shape index: {}, may-alias: {0,1}]   ;;  %s1648_s1 = inlined_call_operand.vmem [shape: f32[2,8,384], index: 1, kind: input, shape index: {}, may-alias: {0,1}]   ;;  %s1649_s2 = inlined_call_operand.vmem [shape: f32[2,8,256], index: 2, kind: input, shape index: {}]   ;;  %s1650_s3 = inlined_call_operand.vmem [shape: f32[3,8,8], index: 3, kind: input, shape index: {}]   ;;  %s1651_s4 = inlined_call_operand.vmem [shape: f32[8,1], index: 4, kind: input, shape index: {}]   ;;  %s1652_s5 = inlined_call_operand.vmem [shape: f32[3,8,8], index: 5, kind: input, shape index: {}]   ;;  %s1653_s6 = inlined_call_operand.vmem [shape: f32[8,1], index: 6, kind: input, shape index: {}]   ;;  %s1654_s7 = inlined_call_operand.vmem [shape: f32[2,8,256], index: 7, kind: output, shape index: {}]  }
   0x1   :  { %s1532_s26 = smov 0  }
   0x2 LB: > { %s29_s27 = sadd.s32 1, %s1474_s25  ;;  %p1355_p0 = scmp.ge.s32.totalorder %s1478_s26, 1  ;;  %s1478_s26 = sphi %s1532_s26, %s17_s26   ;;  %s1474_s25 = sphi %s1530_s25, %s1656_s25   ;;  %s1470_s24 = sphi %s1528_s24, %s1655_s24  }
   0x3   : > { %p31_p1 = scmp.ge.s32.totalorder %s29_s27, 2  ;;  %p306_p2 = scmp.lt.s32.totalorder %s1478_s26, 3 }
   0x5   : > { %s1658_s27 = smov (%p31_p1, %s29_s27), 0  ;;  %p307_p3 = pnand %p1355_p0, %p306_p2 }
   0x6   : > { %p374_p4 = scmp.lt.s32.totalorder (!%p307_p3), %s1470_s24, 1  ;;  %v1480_v0 = vmov (!%p307_p3), 0.0   ;;  %vm1481_vm0 = vmmov (!%p307_p3), 0   ;;  %s1482_s13 = smov (!%p307_p3), 123   ;;  %v1483_v10 = vmov (!%p307_p3), 0   ;;  %v899_v11 = vld [vmem:[%s1651_s4] sm:$0xff] (!%p307_p3)  ;;  %v917_v33 = vlaneseq (!%p307_p3) }
   0x7   : > { %310 = sbr.rel (%p307_p3) target bundleno = 715 (0x2cb), region = 48  ;;  %1390 = vmatprep.subr.mxu1 (!%p307_p3), %v1480_v0  ;;  %517 = vmatprep.mubr.f32.mxu0 (!%p307_p3), %v1480_v0  ;;  %s1484_s14 = smov (!%p307_p3), 118   ;;  %v1198_v12 = vld [vmem:[%s1653_s6] sm:$0xff] (!%p307_p3)  ;;  %vm443_vm4 = vcmask (!%p307_p3), 1006592   ;;  %v1362_v15 = vld [vmem:[%s1650_s3 + $0x8] sm:$0xff] (!%p307_p3)  ;;  %vm449_vm5 = vcmask (!%p307_p3), 64512  }
   0x8   : > { %1392 = vmatprep.mubr.msk.f32.mxu1 (!%p307_p3), %vm1481_vm0, %v1480_v0  ;;  %1445 = vset.pattern.permute.xlu0 (!%p307_p3), %v1483_v10  ;;  %s1485_s17 = smov (!%p307_p3), 126   ;;  %vm746_vm6 = vcmask (!%p307_p3), 965632   ;;  %v431_v23 = vld [vmem:[%s1650_s3] sm:$0xff] (!%p307_p3)  ;;  %v1367_v25 = vld [vmem:[%s1650_s3 + $0x10] sm:$0xff] (!%p307_p3)  ;;  %s1486_s30 = smov (!%p307_p3), 127   ;;  %vm956_vm7 = vcmask (!%p307_p3), 1039360  }
   0x9   : > { %v918_v40 = vand.u32 (!%p307_p3), 127, %v917_v33  ;;  %v944_v49 = vld [vmem:[%s1652_s5] sm:$0xff] (!%p307_p3)  ;;  %vm1117_vm12 = vcmask (!%p307_p3), 1031168   ;;  %v1370_v56 = vld [vmem:[%s1652_s5 + $0x8] sm:$0xff] (!%p307_p3)  ;;  %v1374_v60 = vld [vmem:[%s1652_s5 + $0x10] sm:$0xff] (!%p307_p3)  ;;  %vm1215_vm13 = vcmask (!%p307_p3), 998400  }
   0xb   : > { %vm926_vm8 = vcmp.ge.s32.totalorder (!%p307_p3), %v918_v40, 1  ;;  %vm929_vm9 = vcmp.lt.s32.totalorder (!%p307_p3), %v918_v40, 33 }
   0xc   : > { %vm932_vm11 = vmand (!%p307_p3), %vm926_vm8, %vm929_vm9 }
   0xe   : > { %s1660_s24 = smov (!%p374_p4, %s1470_s24), 1 }
   0xf   : > { %s1410_s28 = smul.u32 24, %s1660_s24  ;;  %s1380_s15 = sshll.u32 %s1660_s24, 4 }
  0x10   : > { %s407_s18 = scalar_lea.vmem %s1649_s2, %s1380_s15  ;;  %s417_s20 = scalar_lea.vmem %s1654_s7, %s1380_s15 }
  0x11   : > { %s381_s8 = scalar_lea.vmem %s1647_s0, %s1410_s28  ;;  %s1379_s9 = sadd.s32 16, %s1410_s28 }
  0x12   : > { %v1556_v1 = vld [vmem:[%s381_s8 + $0x8] sm:$0xff]  ;;  %v1558_v2 = vld [vmem:[%s381_s8] sm:$0xff]  ;;  %s396_s12 = scalar_lea.vmem %s1648_s1, %s1379_s9  ;;  %s1487_s8 = smov 122  }
  0x13   : > { %vm423_vm1 = vcmp.ge.f32.partialorder %v1556_v1, 0.0  ;;  %v426_v3 = vmul.f32 0.1, %v1556_v1  ;;  %vm422_vm2 = vcmp.ge.f32.partialorder %v1558_v2, 0.0  ;;  %v425_v4 = vmul.f32 0.1, %v1558_v2 }
  0x14   : > { %v1567_v5 = vld [vmem:[%s396_s12] sm:$0xff] }
  0x15   : > { %v429_v6 = vsel %vm423_vm1, %v1556_v1, %v426_v3  ;;  %v428_v7 = vsel %vm422_vm2, %v1558_v2, %v425_v4  ;;  %vm424_vm3 = vcmp.ge.f32.partialorder %v1567_v5, 0.0  ;;  %v427_v8 = vmul.f32 0.1, %v1567_v5 }
  0x16   : > { %439 = vrot.lane.b32.xlu0 %v429_v6, %s1482_s13  ;;  %437 = vrot.lane.b32.xlu1 %v428_v7, %s1482_s13 }
  0x17   : > { %v430_v9 = vsel %vm424_vm3, %v1567_v5, %v427_v8 }
  0x1a   : > { %441 = vrot.lane.b32.xlu0 %v430_v9, %s1482_s13  ;;  %742 = vrot.lane.b32.xlu1 %v429_v6, %s1484_s14 }
  0x1e   : > { %744 = vrot.lane.b32.xlu0 %v430_v9, %s1484_s14  ;;  %740 = vrot.lane.b32.xlu1 %v428_v7, %s1484_s14 }
  0x22   : > { %902 = vperm.xlu0 %1445, %v899_v11   ;;  %1447 = vrot.lane.b32.xlu1 %v1480_v0, %s1486_s30 }
  0x26   : > { %1452 = vrot.lane.b32.xlu0 %v1480_v0, %s1485_s17 }
  0x2a   : > { %1201 = vperm.xlu0 %1445, %v1198_v12  }
  0x2e   : > { %1211 = vrot.lane.b32.xlu0 %v1556_v1, %s1487_s8 }
  0x88   : > { %v440_v13 = vpop.permute.xlu0 %439  ;;  %v438_v14 = vpop.permute.xlu1 %437 }
  0x89   : > { %v444_v19 = vsel %vm443_vm4, %v438_v14, %v440_v13  ;;  %v1222_v14 = vld [vmem:[%s407_s18] sm:$0xff] }
  0x8c   : > { %v442_v16 = vpop.permute.xlu0 %441  ;;  %v743_v17 = vpop.permute.xlu1 %742 }
  0x8d   : > { %1391 = vmatpush3.msra.mxu1 %v442_v16  ;;  %v445_v18 = vsel %vm443_vm4, %v440_v13, %v442_v16 }
  0x8e   : > { %453 = vmatprep.subr.mxu0 %v445_v18  ;;  %1393 = vmatmul.mubr.msk.f32.vlgmr.msra.gmra.mrb[0].mxu1 %vm449_vm5, %v1362_v15 }
  0x8f   : > { %454 = vmatpush1.msra.mxu0 %v444_v19  ;;  %1395 = vmatprep.subr.mxu1 %v1480_v0 }
  0x90   : > { %1363 = vmatmul.mubr.msk.f32.vlgmr.msra.gmra.mrb[0].mxu0 %vm449_vm5, %v1362_v15  ;;  %v745_v20 = vpop.permute.xlu0 %744  ;;  %597 = vmatprep.subr.mxu0 %v429_v6  ;;  %v741_v21 = vpop.permute.xlu1 %740 }
  0x91   : > { %598 = vmatpush1.msra.mxu0 %v428_v7  ;;  %661 = vmatprep.mubr.f32.mxu0 %v1480_v0  ;;  %v748_v22 = vsel %vm746_vm6, %v743_v17, %v745_v20  ;;  %v747_v24 = vsel %vm746_vm6, %v741_v21, %v743_v17  ;;  %v1223_v17 = vld [vmem:[%s407_s18 + $0x8] sm:$0xff] }
  0x92   : > { %1396 = vmatpush3.msra.mxu1 %v430_v9  ;;  %755 = vmatprep.subr.mxu0 %v748_v22 }
  0x93   : > { %1397 = vmatprep.mubr.msk.f32.mxu1 %vm1481_vm0, %v1480_v0  ;;  %1400 = vmatprep.subr.mxu1 %v1480_v0 }
  0x94   : > { %1365 = vmatmul.mubr.msk.f32.vlgmr.msra.gmra.mrb[2].mxu0 %vm449_vm5, %v431_v23  ;;  %1398 = vmatmul.mubr.msk.f32.vlgmr.msra.gmra.mrb[2].mxu1 %vm449_vm5, %v431_v23  ;;  %v1448_v29 = vpop.permute.xlu1 %1447 }
  0x95   : > { %756 = vmatpush1.msra.mxu0 %v747_v24  ;;  %1401 = vmatpush3.msra.mxu1 %v745_v20  ;;  %v1450_v31 = vunpack.i.h.bf16 %v1448_v29  ;;  %v1449_v32 = vunpack.i.l.bf16 %v1448_v29 }
  0x96   : > { %819 = vmatprep.mubr.f32.mxu0 %v1480_v0  ;;  %1402 = vmatprep.mubr.msk.f32.mxu1 %vm1481_vm0, %v1480_v0 }
  0x97   : > { %1405 = vmatprep.subr.mxu1 %v1480_v0  ;;  %v958_v34 = vsel %vm956_vm7, %v1449_v32, %v1450_v31 }
  0x98   : > { %1368 = vmatmul.mubr.msk.f32.vlgmr.msra.gmra.mrb[4].mxu0 %vm449_vm5, %v1367_v25  ;;  %1403 = vmatmul.mubr.msk.f32.vlgmr.msra.gmra.mrb[4].mxu1 %vm449_vm5, %v1367_v25 }
  0x99   : > { %1028 = vmatprep.mubr.f32.mxu0 %v1480_v0  ;;  %1407 = vmatprep.mubr.msk.f32.mxu1 %vm1481_vm0, %v1480_v0 }
  0x9a   : > { %964 = vmatprep.subr.mxu0 %v958_v34 }
  0xa1   : > { %v903_v46 = vpop.permute.xlu0 %902 }
  0xa5   : > { %v1453_v52 = vpop.permute.xlu0 %1452 }
  0xa6   : > { %v1455_v53 = vunpack.i.h.bf16 %v1453_v52  ;;  %v1454_v54 = vunpack.i.l.bf16 %v1453_v52 }
  0xa8   : > { %v1119_v57 = vsel %vm1117_vm12, %v1454_v54, %v1455_v53 }
  0xa9   : > { %v1202_v3 = vpop.permute.xlu0 %1201 }
  0xad   : > { %v1212_v9 = vpop.permute.xlu0 %1211 }
 0x161   : > { %v590_v26 = vpop.f32.mrb[0].mxu1 }
 0x162   : > { %v1394_v27 = vpop.f32.mrb[1].mxu1 }
 0x163   : > { %v519_v28 = vpop.f32.mrb[0].mxu0 }
 0x164   : > { %v521_v30 = vpop.f32.mrb[1].mxu0 }
 0x167   : > { %v663_v35 = vpop.f32.mrb[2].mxu0  ;;  %v734_v36 = vpop.f32.mrb[2].mxu1 }
 0x168   : > { %v664_v37 = vadd.f32 %v663_v35, %v519_v28  ;;  %v665_v38 = vpop.f32.mrb[3].mxu0  ;;  %v1399_v39 = vpop.f32.mrb[3].mxu1 }
 0x16b   : > { %v821_v41 = vpop.f32.mrb[4].mxu0  ;;  %v892_v42 = vpop.f32.mrb[4].mxu1 }
 0x16c   : > { %v896_v43 = vadd.f32 %v821_v41, %v664_v37  ;;  %v823_v44 = vpop.f32.mrb[5].mxu0  ;;  %v1404_v45 = vpop.f32.mrb[5].mxu1 }
 0x16e   : > { %v905_v47 = vadd.f32 %v903_v46, %v896_v43 }
 0x170   : > { %vm908_vm10 = vcmp.ge.f32.partialorder %v905_v47, 0.0  ;;  %v911_v48 = vmul.f32 0.1, %v905_v47 }
 0x172   : > { %v914_v50 = vsel %vm908_vm10, %v905_v47, %v911_v48 }
 0x173   : > { %1406 = vmatpush3.msk.msra.mxu1 %vm932_vm11, %v914_v50  ;;  %v941_v51 = vsel %vm932_vm11, %v914_v50, 0.0 }
 0x174   : > { %950 = vrot.lane.b32.xlu1 %v941_v51, %s1486_s30  ;;  %1408 = vmatmul.mubr.msk.f32.vlgmr.msra.gmra.mrb[6].mxu1 %vm449_vm5, %v944_v49 }
 0x178   : > { %1111 = vrot.lane.b32.xlu1 %v941_v51, %s1485_s17 }
 0x17c   : > { %1209 = vrot.lane.b32.xlu1 %v1558_v2, %s1487_s8 }
 0x180   : > { %1213 = vrot.lane.b32.xlu1 %v1567_v5, %s1487_s8 }
 0x1e6   : > { %v951_v55 = vpop.permute.xlu1 %950 }
 0x1e7   : > { %v957_v58 = vsel %vm956_vm7, %v951_v55, %v1449_v32 }
 0x1e8   : > { %965 = vmatpush1.msra.mxu0 %v957_v58 }
 0x1e9   : > { %1371 = vmatmul.mubr.msk.f32.vlgmr.msra.gmra.mrb[6].mxu0 %vm449_vm5, %v1370_v56  ;;  %1125 = vmatprep.subr.mxu0 %v1119_v57 }
 0x1ea   : > { %v1112_v59 = vpop.permute.xlu1 %1111  ;;  %1189 = vmatprep.mubr.f32.mxu0 %v1480_v0 }
 0x1eb   : > { %v1118_v61 = vsel %vm1117_vm12, %v1112_v59, %v1454_v54 }
 0x1ec   : > { %1126 = vmatpush1.msra.mxu0 %v1118_v61 }
 0x1ed   : > { %1375 = vmatmul.mubr.msk.f32.vlgmr.msra.gmra.mrb[8].mxu0 %vm449_vm5, %v1374_v60 }
 0x1ee   : > { %v1210_v1 = vpop.permute.xlu1 %1209 }
 0x1ef   : > { %v1216_v15 = vsel %vm1215_vm13, %v1210_v1, %v1212_v9 }
 0x1f2   : > { %v1214_v7 = vpop.permute.xlu1 %1213 }
 0x1f3   : > { %v1217_v12 = vsel %vm1215_vm13, %v1212_v9, %v1214_v7 }
 0x247   : > { %v1104_v62 = vpop.f32.mrb[6].mxu1 }
 0x248   : > { %v1409_v63 = vpop.f32.mrb[7].mxu1 }
 0x2bc   : > { %v1030_v2 = vpop.f32.mrb[6].mxu0 }
 0x2bd   : > { %v1105_v4 = vadd.f32 %v1104_v62, %v1030_v2  ;;  %v1032_v5 = vpop.f32.mrb[7].mxu0 }
 0x2c0   : > { %v1191_v6 = vpop.f32.mrb[8].mxu0 }
 0x2c1   : > { %v1196_v8 = vadd.f32 %v1191_v6, %v1105_v4  ;;  %v1193_v0 = vpop.f32.mrb[9].mxu0 }
 0x2c2   : > { %v1197_v10 = vadd.f32 %v1193_v0, %v1032_v5 }
 0x2c3   : > { %v1204_v11 = vadd.f32 %v1202_v3, %v1196_v8 }
 0x2c4   : > { %v1205_v13 = vadd.f32 %v1202_v3, %v1197_v10 }
 0x2c5   : > { %v1220_v16 = vadd.f32 %v1216_v15, %v1204_v11 }
 0x2c6   : > { %v1221_v18 = vadd.f32 %v1217_v12, %v1205_v13 }
 0x2c7   : > { %v1224_v19 = vadd.f32 %v1222_v14, %v1220_v16 }
 0x2c8   : > { %v1225_v20 = vadd.f32 %v1223_v17, %v1221_v18 }
 0x2c9   : > { %1226 = vst [vmem:[%s417_s20] sm:$0xff] %v1224_v19 }
 0x2ca   : > { %1227 = vst [vmem:[%s417_s20 + $0x8] sm:$0xff] %v1225_v20 }
 0x2cb PF: > { %s17_s26 = sadd.s32 1, %s1478_s26   ;;  %s1655_s24 = smov %s1474_s25 }
 0x2cc   : > { %p14_p5 = scmp.ge.s32.totalorder %s17_s26, 4   ;;  %s1656_s25 = smov %s1658_s27 }
 0x2ce   :  { %16 = sbr.rel (!%p14_p5) target bundleno = 2 (0x2), region = 88 }

// kernel: _lambda_.27
= control target key start
LH: loop header
LB: loop body
LE: loop exit
PB: predicated region body
PF: predicated region fallthrough
CT: control target
= control target key end

     0   :  { %s1435_s21 = smov 0   ;;  %s1437_s22 = smov 0   ;;  %s1551_s0 = inlined_call_operand.vmem [shape: f32[2,8,384], index: 0, kind: input, shape index: {}, may-alias: {0,1}]   ;;  %s1552_s1 = inlined_call_operand.vmem [shape: f32[2,8,384], index: 1, kind: input, shape index: {}, may-alias: {0,1}]   ;;  %s1553_s2 = inlined_call_operand.vmem [shape: f32[3,8,8], index: 2, kind: input, shape index: {}]   ;;  %s1554_s3 = inlined_call_operand.vmem [shape: f32[8,1], index: 3, kind: input, shape index: {}]   ;;  %s1555_s4 = inlined_call_operand.vmem [shape: f32[3,8,8], index: 4, kind: input, shape index: {}]   ;;  %s1556_s5 = inlined_call_operand.vmem [shape: f32[8,1], index: 5, kind: input, shape index: {}]   ;;  %s1557_s6 = inlined_call_operand.vmem [shape: f32[2,8,256], index: 6, kind: output, shape index: {}]  }
   0x1   :  { %s1439_s23 = smov 0  }
   0x2 LB: > { %s28_s24 = sadd.s32 1, %s1386_s22  ;;  %p1270_p0 = scmp.ge.s32.totalorder %s1390_s23, 1  ;;  %s1390_s23 = sphi %s1439_s23, %s16_s23   ;;  %s1386_s22 = sphi %s1437_s22, %s1559_s22   ;;  %s1382_s21 = sphi %s1435_s21, %s1558_s21  }
   0x3   : > { %p30_p1 = scmp.ge.s32.totalorder %s28_s24, 2  ;;  %p264_p2 = scmp.lt.s32.totalorder %s1390_s23, 3 }
   0x5   : > { %s1561_s24 = smov (%p30_p1, %s28_s24), 0  ;;  %p265_p3 = pnand %p1270_p0, %p264_p2 }
   0x6   : > { %p321_p4 = scmp.lt.s32.totalorder (!%p265_p3), %s1382_s21, 1  ;;  %v1392_v0 = vmov (!%p265_p3), 0.0   ;;  %vm1393_vm0 = vmmov (!%p265_p3), 0   ;;  %s1394_s9 = smov (!%p265_p3), 123   ;;  %v1395_v10 = vmov (!%p265_p3), 0   ;;  %v836_v11 = vld [vmem:[%s1554_s3] sm:$0xff] (!%p265_p3)  ;;  %v854_v33 = vlaneseq (!%p265_p3) }
   0x7   : > { %268 = sbr.rel (%p265_p3) target bundleno = 713 (0x2c9), region = 44  ;;  %1302 = vmatprep.subr.mxu1 (!%p265_p3), %v1392_v0  ;;  %454 = vmatprep.mubr.f32.mxu0 (!%p265_p3), %v1392_v0  ;;  %s1396_s10 = smov (!%p265_p3), 118   ;;  %v1135_v12 = vld [vmem:[%s1556_s5] sm:$0xff] (!%p265_p3)  ;;  %vm380_vm4 = vcmask (!%p265_p3), 1006592   ;;  %v1275_v15 = vld [vmem:[%s1553_s2 + $0x8] sm:$0xff] (!%p265_p3)  ;;  %vm386_vm5 = vcmask (!%p265_p3), 64512  }
   0x8   : > { %1304 = vmatprep.mubr.msk.f32.mxu1 (!%p265_p3), %vm1393_vm0, %v1392_v0  ;;  %1357 = vset.pattern.permute.xlu0 (!%p265_p3), %v1395_v10  ;;  %s1397_s13 = smov (!%p265_p3), 126   ;;  %vm683_vm6 = vcmask (!%p265_p3), 965632   ;;  %v368_v23 = vld [vmem:[%s1553_s2] sm:$0xff] (!%p265_p3)  ;;  %v1280_v25 = vld [vmem:[%s1553_s2 + $0x10] sm:$0xff] (!%p265_p3)  ;;  %s1398_s26 = smov (!%p265_p3), 127   ;;  %vm893_vm7 = vcmask (!%p265_p3), 1039360  }
   0x9   : > { %v855_v40 = vand.u32 (!%p265_p3), 127, %v854_v33  ;;  %s1399_s27 = smov (!%p265_p3), 122   ;;  %v881_v49 = vld [vmem:[%s1555_s4] sm:$0xff] (!%p265_p3)  ;;  %vm1054_vm12 = vcmask (!%p265_p3), 1031168   ;;  %v1283_v56 = vld [vmem:[%s1555_s4 + $0x8] sm:$0xff] (!%p265_p3)  ;;  %v1287_v60 = vld [vmem:[%s1555_s4 + $0x10] sm:$0xff] (!%p265_p3) }
   0xa   : > { %vm1152_vm13 = vcmask (!%p265_p3), 998400  }
   0xb   : > { %vm863_vm8 = vcmp.ge.s32.totalorder (!%p265_p3), %v855_v40, 1  ;;  %vm866_vm9 = vcmp.lt.s32.totalorder (!%p265_p3), %v855_v40, 33 }
   0xc   : > { %vm869_vm11 = vmand (!%p265_p3), %vm863_vm8, %vm866_vm9 }
   0xe   : > { %s1563_s21 = smov (!%p321_p4, %s1382_s21), 1 }
   0xf   : > { %s1322_s25 = smul.u32 24, %s1563_s21 }
  0x11   : > { %s328_s28 = scalar_lea.vmem %s1551_s0, %s1322_s25  ;;  %s1292_s29 = sadd.s32 16, %s1322_s25 }
  0x12   : > { %v1463_v1 = vld [vmem:[%s328_s28 + $0x8] sm:$0xff]  ;;  %v1465_v2 = vld [vmem:[%s328_s28] sm:$0xff]  ;;  %s343_s8 = scalar_lea.vmem %s1552_s1, %s1292_s29 }
  0x13   : > { %vm360_vm1 = vcmp.ge.f32.partialorder %v1463_v1, 0.0  ;;  %v363_v3 = vmul.f32 0.1, %v1463_v1  ;;  %vm359_vm2 = vcmp.ge.f32.partialorder %v1465_v2, 0.0  ;;  %v362_v4 = vmul.f32 0.1, %v1465_v2 }
  0x14   : > { %v1474_v5 = vld [vmem:[%s343_s8] sm:$0xff] }
  0x15   : > { %v366_v6 = vsel %vm360_vm1, %v1463_v1, %v363_v3  ;;  %v365_v7 = vsel %vm359_vm2, %v1465_v2, %v362_v4  ;;  %vm361_vm3 = vcmp.ge.f32.partialorder %v1474_v5, 0.0  ;;  %v364_v8 = vmul.f32 0.1, %v1474_v5 }
  0x16   : > { %376 = vrot.lane.b32.xlu0 %v366_v6, %s1394_s9  ;;  %374 = vrot.lane.b32.xlu1 %v365_v7, %s1394_s9 }
  0x17   : > { %v367_v9 = vsel %vm361_vm3, %v1474_v5, %v364_v8 }
  0x1a   : > { %378 = vrot.lane.b32.xlu0 %v367_v9, %s1394_s9  ;;  %679 = vrot.lane.b32.xlu1 %v366_v6, %s1396_s10 }
  0x1e   : > { %681 = vrot.lane.b32.xlu0 %v367_v9, %s1396_s10  ;;  %677 = vrot.lane.b32.xlu1 %v365_v7, %s1396_s10  ;;  %s1293_s10 = sshll.u32 %s1563_s21, 4 }
  0x22   : > { %839 = vperm.xlu0 %1357, %v836_v11   ;;  %1359 = vrot.lane.b32.xlu1 %v1392_v0, %s1398_s26 }
  0x26   : > { %1364 = vrot.lane.b32.xlu0 %v1392_v0, %s1397_s13 }
  0x2a   : > { %1138 = vperm.xlu0 %1357, %v1135_v12  }
  0x2e   : > { %1148 = vrot.lane.b32.xlu0 %v1463_v1, %s1399_s27 }
  0x88   : > { %v377_v13 = vpop.permute.xlu0 %376  ;;  %v375_v14 = vpop.permute.xlu1 %374 }
  0x89   : > { %v381_v19 = vsel %vm380_vm4, %v375_v14, %v377_v13 }
  0x8c   : > { %v379_v16 = vpop.permute.xlu0 %378  ;;  %v680_v17 = vpop.permute.xlu1 %679 }
  0x8d   : > { %1303 = vmatpush3.msra.mxu1 %v379_v16  ;;  %v382_v18 = vsel %vm380_vm4, %v377_v13, %v379_v16 }
  0x8e   : > { %390 = vmatprep.subr.mxu0 %v382_v18  ;;  %1305 = vmatmul.mubr.msk.f32.vlgmr.msra.gmra.mrb[0].mxu1 %vm386_vm5, %v1275_v15 }
  0x8f   : > { %391 = vmatpush1.msra.mxu0 %v381_v19  ;;  %1307 = vmatprep.subr.mxu1 %v1392_v0 }
  0x90   : > { %1276 = vmatmul.mubr.msk.f32.vlgmr.msra.gmra.mrb[0].mxu0 %vm386_vm5, %v1275_v15  ;;  %v682_v20 = vpop.permute.xlu0 %681  ;;  %534 = vmatprep.subr.mxu0 %v366_v6  ;;  %v678_v21 = vpop.permute.xlu1 %677 }
  0x91   : > { %535 = vmatpush1.msra.mxu0 %v365_v7  ;;  %598 = vmatprep.mubr.f32.mxu0 %v1392_v0  ;;  %v685_v22 = vsel %vm683_vm6, %v680_v17, %v682_v20  ;;  %v684_v24 = vsel %vm683_vm6, %v678_v21, %v680_v17 }
  0x92   : > { %1308 = vmatpush3.msra.mxu1 %v367_v9  ;;  %692 = vmatprep.subr.mxu0 %v685_v22 }
  0x93   : > { %1309 = vmatprep.mubr.msk.f32.mxu1 %vm1393_vm0, %v1392_v0  ;;  %1312 = vmatprep.subr.mxu1 %v1392_v0 }
  0x94   : > { %1278 = vmatmul.mubr.msk.f32.vlgmr.msra.gmra.mrb[2].mxu0 %vm386_vm5, %v368_v23  ;;  %1310 = vmatmul.mubr.msk.f32.vlgmr.msra.gmra.mrb[2].mxu1 %vm386_vm5, %v368_v23  ;;  %v1360_v29 = vpop.permute.xlu1 %1359 }
  0x95   : > { %693 = vmatpush1.msra.mxu0 %v684_v24  ;;  %1313 = vmatpush3.msra.mxu1 %v682_v20  ;;  %v1362_v31 = vunpack.i.h.bf16 %v1360_v29  ;;  %v1361_v32 = vunpack.i.l.bf16 %v1360_v29 }
  0x96   : > { %756 = vmatprep.mubr.f32.mxu0 %v1392_v0  ;;  %1314 = vmatprep.mubr.msk.f32.mxu1 %vm1393_vm0, %v1392_v0 }
  0x97   : > { %1317 = vmatprep.subr.mxu1 %v1392_v0  ;;  %v895_v34 = vsel %vm893_vm7, %v1361_v32, %v1362_v31 }
  0x98   : > { %1281 = vmatmul.mubr.msk.f32.vlgmr.msra.gmra.mrb[4].mxu0 %vm386_vm5, %v1280_v25  ;;  %1315 = vmatmul.mubr.msk.f32.vlgmr.msra.gmra.mrb[4].mxu1 %vm386_vm5, %v1280_v25 }
  0x99   : > { %965 = vmatprep.mubr.f32.mxu0 %v1392_v0  ;;  %1319 = vmatprep.mubr.msk.f32.mxu1 %vm1393_vm0, %v1392_v0 }
  0x9a   : > { %901 = vmatprep.subr.mxu0 %v895_v34 }
  0xa1   : > { %v840_v46 = vpop.permute.xlu0 %839 }
  0xa5   : > { %v1365_v52 = vpop.permute.xlu0 %1364 }
  0xa6   : > { %v1367_v53 = vunpack.i.h.bf16 %v1365_v52  ;;  %v1366_v54 = vunpack.i.l.bf16 %v1365_v52 }
  0xa8   : > { %v1056_v57 = vsel %vm1054_vm12, %v1366_v54, %v1367_v53 }
  0xa9   : > { %v1139_v3 = vpop.permute.xlu0 %1138 }
  0xad   : > { %v1149_v9 = vpop.permute.xlu0 %1148 }
 0x161   : > { %v527_v26 = vpop.f32.mrb[0].mxu1 }
 0x162   : > { %v1306_v27 = vpop.f32.mrb[1].mxu1 }
 0x163   : > { %v456_v28 = vpop.f32.mrb[0].mxu0 }
 0x164   : > { %v458_v30 = vpop.f32.mrb[1].mxu0 }
 0x167   : > { %v600_v35 = vpop.f32.mrb[2].mxu0  ;;  %v671_v36 = vpop.f32.mrb[2].mxu1 }
 0x168   : > { %v601_v37 = vadd.f32 %v600_v35, %v456_v28  ;;  %v602_v38 = vpop.f32.mrb[3].mxu0  ;;  %v1311_v39 = vpop.f32.mrb[3].mxu1 }
 0x16b   : > { %v758_v41 = vpop.f32.mrb[4].mxu0  ;;  %v829_v42 = vpop.f32.mrb[4].mxu1 }
 0x16c   : > { %v833_v43 = vadd.f32 %v758_v41, %v601_v37  ;;  %v760_v44 = vpop.f32.mrb[5].mxu0  ;;  %v1316_v45 = vpop.f32.mrb[5].mxu1 }
 0x16e   : > { %v842_v47 = vadd.f32 %v840_v46, %v833_v43 }
 0x170   : > { %vm845_vm10 = vcmp.ge.f32.partialorder %v842_v47, 0.0  ;;  %v848_v48 = vmul.f32 0.1, %v842_v47 }
 0x172   : > { %v851_v50 = vsel %vm845_vm10, %v842_v47, %v848_v48 }
 0x173   : > { %1318 = vmatpush3.msk.msra.mxu1 %vm869_vm11, %v851_v50  ;;  %v878_v51 = vsel %vm869_vm11, %v851_v50, 0.0 }
 0x174   : > { %887 = vrot.lane.b32.xlu1 %v878_v51, %s1398_s26  ;;  %1320 = vmatmul.mubr.msk.f32.vlgmr.msra.gmra.mrb[6].mxu1 %vm386_vm5, %v881_v49 }
 0x178   : > { %1048 = vrot.lane.b32.xlu1 %v878_v51, %s1397_s13  ;;  %s354_s13 = scalar_lea.vmem %s1557_s6, %s1293_s10 }
 0x17c   : > { %1146 = vrot.lane.b32.xlu1 %v1465_v2, %s1399_s27 }
 0x180   : > { %1150 = vrot.lane.b32.xlu1 %v1474_v5, %s1399_s27 }
 0x1e6   : > { %v888_v55 = vpop.permute.xlu1 %887 }
 0x1e7   : > { %v894_v58 = vsel %vm893_vm7, %v888_v55, %v1361_v32 }
 0x1e8   : > { %902 = vmatpush1.msra.mxu0 %v894_v58 }
 0x1e9   : > { %1284 = vmatmul.mubr.msk.f32.vlgmr.msra.gmra.mrb[6].mxu0 %vm386_vm5, %v1283_v56  ;;  %1062 = vmatprep.subr.mxu0 %v1056_v57 }
 0x1ea   : > { %v1049_v59 = vpop.permute.xlu1 %1048  ;;  %1126 = vmatprep.mubr.f32.mxu0 %v1392_v0 }
 0x1eb   : > { %v1055_v61 = vsel %vm1054_vm12, %v1049_v59, %v1366_v54 }
 0x1ec   : > { %1063 = vmatpush1.msra.mxu0 %v1055_v61 }
 0x1ed   : > { %1288 = vmatmul.mubr.msk.f32.vlgmr.msra.gmra.mrb[8].mxu0 %vm386_vm5, %v1287_v60 }
 0x1ee   : > { %v1147_v1 = vpop.permute.xlu1 %1146 }
 0x1ef   : > { %v1153_v14 = vsel %vm1152_vm13, %v1147_v1, %v1149_v9 }
 0x1f2   : > { %v1151_v7 = vpop.permute.xlu1 %1150 }
 0x1f3   : > { %v1154_v12 = vsel %vm1152_vm13, %v1149_v9, %v1151_v7 }
 0x247   : > { %v1041_v62 = vpop.f32.mrb[6].mxu1 }
 0x248   : > { %v1321_v63 = vpop.f32.mrb[7].mxu1 }
 0x2bc   : > { %v967_v2 = vpop.f32.mrb[6].mxu0 }
 0x2bd   : > { %v1042_v4 = vadd.f32 %v1041_v62, %v967_v2  ;;  %v969_v5 = vpop.f32.mrb[7].mxu0 }
 0x2c0   : > { %v1128_v6 = vpop.f32.mrb[8].mxu0 }
 0x2c1   : > { %v1133_v8 = vadd.f32 %v1128_v6, %v1042_v4  ;;  %v1130_v0 = vpop.f32.mrb[9].mxu0 }
 0x2c2   : > { %v1134_v10 = vadd.f32 %v1130_v0, %v969_v5 }
 0x2c3   : > { %v1141_v11 = vadd.f32 %v1139_v3, %v1133_v8 }
 0x2c4   : > { %v1142_v13 = vadd.f32 %v1139_v3, %v1134_v10 }
 0x2c5   : > { %v1157_v15 = vadd.f32 %v1153_v14, %v1141_v11 }
 0x2c6   : > { %v1158_v16 = vadd.f32 %v1154_v12, %v1142_v13 }
 0x2c7   : > { %1159 = vst [vmem:[%s354_s13] sm:$0xff] %v1157_v15 }
 0x2c8   : > { %1160 = vst [vmem:[%s354_s13 + $0x8] sm:$0xff] %v1158_v16 }
 0x2c9 PF: > { %s16_s23 = sadd.s32 1, %s1390_s23   ;;  %s1558_s21 = smov %s1386_s22 }
 0x2ca   : > { %p13_p5 = scmp.ge.s32.totalorder %s16_s23, 4   ;;  %s1559_s22 = smov %s1561_s24 }
 0x2cc   :  { %15 = sbr.rel (!%p13_p5) target bundleno = 2 (0x2), region = 81 }

// kernel: _lambda_.31
= control target key start
LH: loop header
LB: loop body
LE: loop exit
PB: predicated region body
PF: predicated region fallthrough
CT: control target
= control target key end

     0   :  { %s1756_s15 = smov 0   ;;  %s1758_s16 = smov 0   ;;  %s1880_s0 = inlined_call_operand.vmem [shape: f32[2,8,384], index: 0, kind: input, shape index: {}, may-alias: {0,1}]   ;;  %s1881_s1 = inlined_call_operand.vmem [shape: f32[2,8,384], index: 1, kind: input, shape index: {}, may-alias: {0,1}]   ;;  %s1882_s2 = inlined_call_operand.vmem [shape: f32[7,8,8], index: 2, kind: input, shape index: {}]   ;;  %s1883_s3 = inlined_call_operand.vmem [shape: f32[8,1], index: 3, kind: input, shape index: {}]   ;;  %s1884_s4 = inlined_call_operand.vmem [shape: f32[2,8,256], index: 4, kind: output, shape index: {}]  }
   0x1   :  { %s1760_s17 = smov 0  }
   0x2 LB: > { %s26_s18 = sadd.s32 1, %s1716_s16  ;;  %p1529_p0 = scmp.ge.s32.totalorder %s1720_s17, 1  ;;  %s1720_s17 = sphi %s1760_s17, %s14_s17   ;;  %s1716_s16 = sphi %s1758_s16, %s1886_s16   ;;  %s1712_s15 = sphi %s1756_s15, %s1885_s15  }
   0x3   : > { %p28_p1 = scmp.ge.s32.totalorder %s26_s18, 2  ;;  %p214_p2 = scmp.lt.s32.totalorder %s1720_s17, 3 }
   0x5   : > { %s1888_s18 = smov (%p28_p1, %s26_s18), 0  ;;  %p215_p3 = pnand %p1529_p0, %p214_p2 }
   0x6   : > { %p267_p4 = scmp.lt.s32.totalorder (!%p215_p3), %s1712_s15, 1  ;;  %v1722_v0 = vmov (!%p215_p3), 0.0   ;;  %vm1723_vm0 = vmmov (!%p215_p3), 0   ;;  %vm326_vm3 = vcmask (!%p215_p3), 64512   ;;  %v314_v7 = vld [vmem:[%s1882_s2] sm:$0xff] (!%p215_p3)  ;;  %s1724_s29 = smov (!%p215_p3), 126  }
   0x7   : > { %218 = sbr.rel (%p215_p3) target bundleno = 400 (0x190), region = 36  ;;  %1587 = vmatprep.subr.mxu0 (!%p215_p3), %v1722_v0  ;;  %1592 = vmatprep.subr.mxu1 (!%p215_p3), %v1722_v0  ;;  %s1725_s30 = smov (!%p215_p3), 127   ;;  %v1728_v11 = vmov (!%p215_p3), 0   ;;  %v1408_v12 = vld [vmem:[%s1883_s3] sm:$0xff] (!%p215_p3)  ;;  %vm323_vm5 = vcmask (!%p215_p3), 1039360   ;;  %v1534_v17 = vld [vmem:[%s1882_s2 + $0x8] sm:$0xff] (!%p215_p3) }
   0x8   : > { %1589 = vmatprep.mubr.msk.f32.mxu0 (!%p215_p3), %vm1723_vm0, %v1722_v0  ;;  %1594 = vmatprep.mubr.msk.f32.mxu1 (!%p215_p3), %vm1723_vm0, %v1722_v0  ;;  %s1726_s5 = smov (!%p215_p3), 125   ;;  %s1727_s6 = smov (!%p215_p3), 124   ;;  %vm624_vm6 = vcmask (!%p215_p3), 1031168   ;;  %vm782_vm7 = vcmask (!%p215_p3), 1022976   ;;  %v1539_v25 = vld [vmem:[%s1882_s2 + $0x10] sm:$0xff] (!%p215_p3)  ;;  %v1542_v30 = vld [vmem:[%s1882_s2 + $0x18] sm:$0xff] (!%p215_p3) }
   0x9   : > { %1693 = vset.pattern.permute.xlu0 (!%p215_p3), %v1728_v11  ;;  %s1729_s7 = smov (!%p215_p3), 123   ;;  %s1730_s8 = smov (!%p215_p3), 122   ;;  %vm940_vm8 = vcmask (!%p215_p3), 1014784   ;;  %v1545_v34 = vld [vmem:[%s1882_s2 + $0x20] sm:$0xff] (!%p215_p3)  ;;  %vm1098_vm9 = vcmask (!%p215_p3), 1006592   ;;  %v1548_v39 = vld [vmem:[%s1882_s2 + $0x28] sm:$0xff] (!%p215_p3) }
   0xa   : > { %vm1256_vm10 = vcmask (!%p215_p3), 998400   ;;  %v1551_v46 = vld [vmem:[%s1882_s2 + $0x30] sm:$0xff] (!%p215_p3) }
   0xe   : > { %s1890_s15 = smov (!%p267_p4, %s1712_s15), 1 }
   0xf   : > { %s1657_s19 = smul.u32 24, %s1890_s15  ;;  %s1558_s27 = sshll.u32 %s1890_s15, 4 }
  0x11   : > { %s274_s22 = scalar_lea.vmem %s1880_s0, %s1657_s19  ;;  %s1557_s23 = sadd.s32 16, %s1657_s19 }
  0x12   : > { %v302_v1 = vld [vmem:[%s274_s22] sm:$0xff]  ;;  %v303_v2 = vld [vmem:[%s274_s22 + $0x8] sm:$0xff]  ;;  %s289_s26 = scalar_lea.vmem %s1881_s1, %s1557_s23 }
  0x13   : > { %vm305_vm1 = vcmp.ge.f32.partialorder %v302_v1, 0.0  ;;  %v307_v3 = vmul.f32 0.01, %v302_v1  ;;  %v308_v4 = vmul.f32 0.01, %v303_v2  ;;  %vm306_vm2 = vcmp.ge.f32.partialorder %v303_v2, 0.0 }
  0x14   : > { %v304_v5 = vld [vmem:[%s289_s26] sm:$0xff] }
  0x15   : > { %v309_v6 = vsel %vm305_vm1, %v302_v1, %v307_v3  ;;  %v310_v8 = vsel %vm306_vm2, %v303_v2, %v308_v4  ;;  %v312_v9 = vmul.f32 0.01, %v304_v5  ;;  %vm311_vm4 = vcmp.ge.f32.partialorder %v304_v5, 0.0 }
  0x16   : > { %620 = vrot.lane.b32.xlu1 %v309_v6, %s1724_s29  ;;  %319 = vrot.lane.b32.xlu0 %v309_v6, %s1725_s30 }
  0x17   : > { %1593 = vmatpush3.msra.mxu1 %v309_v6  ;;  %v313_v10 = vsel %vm311_vm4, %v304_v5, %v312_v9 }
  0x18   : > { %1595 = vmatmul.mubr.msk.f32.vlgmr.msra.gmra.mrb[0].mxu1 %vm326_vm3, %v314_v7  ;;  %1602 = vmatprep.subr.mxu1 %v1722_v0 }
  0x19   : > { %1603 = vmatpush3.msra.mxu1 %v310_v8  ;;  %1604 = vmatprep.mubr.msk.f32.mxu1 %vm1723_vm0, %v1722_v0 }
  0x1a   : > { %780 = vrot.lane.b32.xlu1 %v310_v8, %s1726_s5  ;;  %321 = vrot.lane.b32.xlu0 %v310_v8, %s1725_s30 }
  0x1b   : > { %1612 = vmatprep.subr.mxu1 %v1722_v0 }
  0x1c   : > { %1605 = vmatmul.mubr.msk.f32.vlgmr.msra.gmra.mrb[2].mxu1 %vm326_vm3, %v314_v7 }
  0x1d   : > { %1614 = vmatprep.mubr.msk.f32.mxu1 %vm1723_vm0, %v1722_v0 }
  0x1e   : > { %474 = vrot.lane.b32.xlu1 %v313_v10, %s1725_s30  ;;  %622 = vrot.lane.b32.xlu0 %v310_v8, %s1724_s29  ;;  %s300_s30 = scalar_lea.vmem %s1884_s4, %s1558_s27 }
  0x22   : > { %701 = vrot.lane.b32.xlu1 %v313_v10, %s1724_s29  ;;  %778 = vrot.lane.b32.xlu0 %v309_v6, %s1726_s5 }
  0x26   : > { %936 = vrot.lane.b32.xlu1 %v309_v6, %s1727_s6  ;;  %859 = vrot.lane.b32.xlu0 %v313_v10, %s1726_s5 }
  0x2a   : > { %1017 = vrot.lane.b32.xlu1 %v313_v10, %s1727_s6  ;;  %938 = vrot.lane.b32.xlu0 %v310_v8, %s1727_s6 }
  0x2e   : > { %1096 = vrot.lane.b32.xlu1 %v310_v8, %s1729_s7  ;;  %1094 = vrot.lane.b32.xlu0 %v309_v6, %s1729_s7 }
  0x32   : > { %1252 = vrot.lane.b32.xlu1 %v309_v6, %s1730_s8  ;;  %1175 = vrot.lane.b32.xlu0 %v313_v10, %s1729_s7 }
  0x36   : > { %1333 = vrot.lane.b32.xlu1 %v313_v10, %s1730_s8  ;;  %1254 = vrot.lane.b32.xlu0 %v310_v8, %s1730_s8 }
  0x3a   : > { %1411 = vperm.xlu0 %1693, %v1408_v12  }
  0x88   : > { %v621_v13 = vpop.permute.xlu1 %620  ;;  %v320_v14 = vpop.permute.xlu0 %319 }
  0x8c   : > { %v781_v15 = vpop.permute.xlu1 %780  ;;  %v322_v16 = vpop.permute.xlu0 %321 }
  0x8d   : > { %v324_v18 = vsel %vm323_vm5, %v320_v14, %v322_v16 }
  0x8e   : > { %1588 = vmatpush3.msra.mxu0 %v324_v18 }
  0x8f   : > { %1590 = vmatmul.mubr.msk.f32.vlgmr.msra.gmra.mrb[0].mxu0 %vm326_vm3, %v1534_v17  ;;  %1597 = vmatprep.subr.mxu0 %v1722_v0 }
  0x90   : > { %v475_v19 = vpop.permute.xlu1 %474  ;;  %v623_v20 = vpop.permute.xlu0 %622  ;;  %1599 = vmatprep.mubr.msk.f32.mxu0 %vm1723_vm0, %v1722_v0 }
  0x91   : > { %v476_v21 = vsel %vm323_vm5, %v322_v16, %v475_v19  ;;  %v625_v22 = vsel %vm624_vm6, %v621_v13, %v623_v20 }
  0x92   : > { %1598 = vmatpush3.msra.mxu0 %v476_v21 }
  0x93   : > { %1600 = vmatmul.mubr.msk.f32.vlgmr.msra.gmra.mrb[2].mxu0 %vm326_vm3, %v1534_v17  ;;  %1607 = vmatprep.subr.mxu0 %v1722_v0 }
  0x94   : > { %v702_v23 = vpop.permute.xlu1 %701  ;;  %1608 = vmatpush3.msra.mxu0 %v625_v22  ;;  %v779_v24 = vpop.permute.xlu0 %778  ;;  %1609 = vmatprep.mubr.msk.f32.mxu0 %vm1723_vm0, %v1722_v0 }
  0x95   : > { %v703_v26 = vsel %vm624_vm6, %v623_v20, %v702_v23  ;;  %v783_v27 = vsel %vm782_vm7, %v779_v24, %v781_v15  ;;  %1617 = vmatprep.subr.mxu0 %v1722_v0 }
  0x96   : > { %1613 = vmatpush3.msra.mxu1 %v703_v26 }
  0x97   : > { %1610 = vmatmul.mubr.msk.f32.vlgmr.msra.gmra.mrb[4].mxu0 %vm326_vm3, %v1539_v25  ;;  %1615 = vmatmul.mubr.msk.f32.vlgmr.msra.gmra.mrb[4].mxu1 %vm326_vm3, %v1539_v25 }
  0x98   : > { %1618 = vmatpush3.msra.mxu0 %v783_v27  ;;  %v937_v28 = vpop.permute.xlu1 %936  ;;  %v860_v29 = vpop.permute.xlu0 %859  ;;  %1622 = vmatprep.subr.mxu1 %v1722_v0 }
  0x99   : > { %v861_v31 = vsel %vm782_vm7, %v781_v15, %v860_v29  ;;  %1619 = vmatprep.mubr.msk.f32.mxu0 %vm1723_vm0, %v1722_v0  ;;  %1624 = vmatprep.mubr.msk.f32.mxu1 %vm1723_vm0, %v1722_v0 }
  0x9a   : > { %1623 = vmatpush3.msra.mxu1 %v861_v31  ;;  %1627 = vmatprep.subr.mxu0 %v1722_v0 }
  0x9b   : > { %1620 = vmatmul.mubr.msk.f32.vlgmr.msra.gmra.mrb[6].mxu0 %vm326_vm3, %v1542_v30  ;;  %1625 = vmatmul.mubr.msk.f32.vlgmr.msra.gmra.mrb[6].mxu1 %vm326_vm3, %v1542_v30 }
  0x9c   : > { %v1018_v32 = vpop.permute.xlu1 %1017  ;;  %v939_v33 = vpop.permute.xlu0 %938  ;;  %1632 = vmatprep.subr.mxu1 %v1722_v0  ;;  %1629 = vmatprep.mubr.msk.f32.mxu0 %vm1723_vm0, %v1722_v0 }
  0x9d   : > { %v941_v35 = vsel %vm940_vm8, %v937_v28, %v939_v33  ;;  %v1019_v36 = vsel %vm940_vm8, %v939_v33, %v1018_v32  ;;  %1634 = vmatprep.mubr.msk.f32.mxu1 %vm1723_vm0, %v1722_v0 }
  0x9e   : > { %1628 = vmatpush3.msra.mxu0 %v941_v35  ;;  %1633 = vmatpush3.msra.mxu1 %v1019_v36 }
  0x9f   : > { %1630 = vmatmul.mubr.msk.f32.vlgmr.msra.gmra.mrb[8].mxu0 %vm326_vm3, %v1545_v34  ;;  %1635 = vmatmul.mubr.msk.f32.vlgmr.msra.gmra.mrb[8].mxu1 %vm326_vm3, %v1545_v34 }
  0xa0   : > { %v1097_v37 = vpop.permute.xlu1 %1096  ;;  %v1095_v38 = vpop.permute.xlu0 %1094  ;;  %1637 = vmatprep.subr.mxu0 %v1722_v0  ;;  %1639 = vmatprep.mubr.msk.f32.mxu0 %vm1723_vm0, %v1722_v0 }
  0xa1   : > { %v1099_v40 = vsel %vm1098_vm9, %v1095_v38, %v1097_v37  ;;  %1642 = vmatprep.subr.mxu1 %v1722_v0  ;;  %1644 = vmatprep.mubr.msk.f32.mxu1 %vm1723_vm0, %v1722_v0 }
  0xa2   : > { %1638 = vmatpush3.msra.mxu0 %v1099_v40 }
  0xa3   : > { %1640 = vmatmul.mubr.msk.f32.vlgmr.msra.gmra.mrb[10].mxu0 %vm326_vm3, %v1548_v39  ;;  %1647 = vmatprep.subr.mxu0 %v1722_v0 }
  0xa4   : > { %v1253_v41 = vpop.permute.xlu1 %1252  ;;  %v1176_v42 = vpop.permute.xlu0 %1175  ;;  %1649 = vmatprep.mubr.msk.f32.mxu0 %vm1723_vm0, %v1722_v0 }
  0xa5   : > { %v1177_v43 = vsel %vm1098_vm9, %v1097_v37, %v1176_v42 }
  0xa6   : > { %1643 = vmatpush3.msra.mxu1 %v1177_v43 }
  0xa7   : > { %1645 = vmatmul.mubr.msk.f32.vlgmr.msra.gmra.mrb[10].mxu1 %vm326_vm3, %v1548_v39  ;;  %1652 = vmatprep.subr.mxu1 %v1722_v0 }
  0xa8   : > { %v1334_v44 = vpop.permute.xlu1 %1333  ;;  %v1255_v45 = vpop.permute.xlu0 %1254  ;;  %1654 = vmatprep.mubr.msk.f32.mxu1 %vm1723_vm0, %v1722_v0 }
  0xa9   : > { %v1257_v47 = vsel %vm1256_vm10, %v1253_v41, %v1255_v45  ;;  %v1335_v48 = vsel %vm1256_vm10, %v1255_v45, %v1334_v44 }
  0xaa   : > { %1648 = vmatpush3.msra.mxu0 %v1257_v47  ;;  %1653 = vmatpush3.msra.mxu1 %v1335_v48 }
  0xab   : > { %1650 = vmatmul.mubr.msk.f32.vlgmr.msra.gmra.mrb[12].mxu0 %vm326_vm3, %v1551_v46  ;;  %1655 = vmatmul.mubr.msk.f32.vlgmr.msra.gmra.mrb[12].mxu1 %vm326_vm3, %v1551_v46 }
  0xb9   : > { %v1412_v19 = vpop.permute.xlu0 %1411 }
  0xeb   : > { %v469_v49 = vpop.f32.mrb[0].mxu1 }
  0xec   : > { %v1596_v50 = vpop.f32.mrb[1].mxu1 }
  0xef   : > { %v614_v51 = vpop.f32.mrb[2].mxu1 }
  0xf0   : > { %v1606_v52 = vpop.f32.mrb[3].mxu1 }
 0x162   : > { %v396_v53 = vpop.f32.mrb[0].mxu0 }
 0x163   : > { %v1591_v54 = vpop.f32.mrb[1].mxu0  ;;  %v470_v55 = vadd.f32 %v469_v49, %v396_v53 }
 0x166   : > { %v544_v56 = vpop.f32.mrb[2].mxu0 }
 0x167   : > { %v1601_v57 = vpop.f32.mrb[3].mxu0  ;;  %v615_v58 = vadd.f32 %v614_v51, %v544_v56 }
 0x16a   : > { %v696_v59 = vpop.f32.mrb[4].mxu0  ;;  %v771_v60 = vpop.f32.mrb[4].mxu1 }
 0x16b   : > { %v700_v61 = vadd.f32 %v696_v59, %v470_v55  ;;  %v1611_v62 = vpop.f32.mrb[5].mxu0  ;;  %v775_v63 = vadd.f32 %v771_v60, %v615_v58  ;;  %v1616_v0 = vpop.f32.mrb[5].mxu1 }
 0x16e   : > { %v854_v1 = vpop.f32.mrb[6].mxu0  ;;  %v929_v2 = vpop.f32.mrb[6].mxu1 }
 0x16f   : > { %v858_v3 = vadd.f32 %v854_v1, %v700_v61  ;;  %v1621_v4 = vpop.f32.mrb[7].mxu0  ;;  %v933_v5 = vadd.f32 %v929_v2, %v775_v63  ;;  %v1626_v6 = vpop.f32.mrb[7].mxu1 }
 0x172   : > { %v1012_v7 = vpop.f32.mrb[8].mxu0  ;;  %v1087_v8 = vpop.f32.mrb[8].mxu1 }
 0x173   : > { %v1016_v9 = vadd.f32 %v1012_v7, %v858_v3  ;;  %v1091_v10 = vadd.f32 %v1087_v8, %v933_v5  ;;  %v1631_v11 = vpop.f32.mrb[9].mxu0  ;;  %v1636_v12 = vpop.f32.mrb[9].mxu1 }
 0x176   : > { %v1170_v13 = vpop.f32.mrb[10].mxu0 }
 0x177   : > { %v1174_v14 = vadd.f32 %v1170_v13, %v1016_v9  ;;  %v1641_v15 = vpop.f32.mrb[11].mxu0 }
 0x17a   : > { %v1245_v16 = vpop.f32.mrb[10].mxu1 }
 0x17b   : > { %v1249_v17 = vadd.f32 %v1245_v16, %v1091_v10  ;;  %v1646_v18 = vpop.f32.mrb[11].mxu1 }
 0x17e   : > { %v1328_v20 = vpop.f32.mrb[12].mxu0  ;;  %v1403_v21 = vpop.f32.mrb[12].mxu1 }
 0x17f   : > { %v1332_v22 = vadd.f32 %v1328_v20, %v1174_v14  ;;  %v1407_v23 = vadd.f32 %v1403_v21, %v1249_v17  ;;  %v1651_v24 = vpop.f32.mrb[13].mxu0  ;;  %v1656_v25 = vpop.f32.mrb[13].mxu1 }
 0x181   : > { %v1414_v26 = vadd.f32 %v1412_v19, %v1332_v22  ;;  %v1415_v27 = vadd.f32 %v1412_v19, %v1407_v23 }
 0x183   : > { %1694 = vtanh.f32 %v1414_v26 }
 0x184   : > { %1696 = vtanh.f32 %v1415_v27 }
 0x18d   : > { %v1695_v28 = vpop.eup %1694 }
 0x18e   : > { %v1697_v29 = vpop.eup %1696  ;;  %1418 = vst [vmem:[%s300_s30] sm:$0xff] %v1695_v28 }
 0x18f   : > { %1419 = vst [vmem:[%s300_s30 + $0x8] sm:$0xff] %v1697_v29 }
 0x190 PF: > { %s14_s17 = sadd.s32 1, %s1720_s17   ;;  %s1885_s15 = smov %s1716_s16 }
 0x191   : > { %p11_p5 = scmp.ge.s32.totalorder %s14_s17, 4   ;;  %s1886_s16 = smov %s1888_s18 }
 0x193   :  { %13 = sbr.rel (!%p11_p5) target bundleno = 2 (0x2), region = 75 }

</bundles_post_ra>
